<compile_context>
chip_gen: v6e
topology: v6e:2x2x1
jax: 0.10.0
libtpu: 0.0.40
codegen_flags: <defaults>
</compile_context>

<pallas_src>
import jax
import jax.numpy as jnp
from jax.experimental import pallas as pl
from jax.experimental.pallas import tpu as pltpu

_BN_EPS = 1e-5
_NORM_EPS = 1e-12
_LEAKY_SLOPE = 0.2          # nn.LeakyReLU(negative_slope=0.2)


# ----------------------------------------------------------------------------
# Pallas kernel: fully fused IdentityHead forward for one (tm, :) row tile.
# ----------------------------------------------------------------------------

def _identity_head_kernel(x_ref, w1_ref, b1_ref, w2_ref, b2_ref, o_ref):
    # fc1: (tm, K) @ (K, N1) on the MXU, f32 accumulation.  BN1 scale is already
    # folded into W1, so only the folded bias add remains in the epilogue.
    x = x_ref[...].astype(jnp.bfloat16)
    h = jnp.dot(x, w1_ref[...], preferred_element_type=jnp.float32) + b1_ref[...]
    h = jnp.where(h >= 0.0, h, _LEAKY_SLOPE * h)          # LeakyReLU(0.2)

    # fc2: (tm, N1) @ (N1, N2); requantize the hidden activation to bf16.
    y = jnp.dot(h.astype(jnp.bfloat16), w2_ref[...],
                preferred_element_type=jnp.float32) + b2_ref[...]

    # F.normalize(p=2, dim=1):  y / max(||y||_2, eps)
    n2 = jnp.sum(y * y, axis=-1, keepdims=True)
    inv = jax.lax.rsqrt(jnp.maximum(n2, _NORM_EPS * _NORM_EPS))
    o_ref[...] = (y * inv).astype(o_ref.dtype)


# ----------------------------------------------------------------------------
# Wrapper
# ----------------------------------------------------------------------------

def _round_up(x, m):
    return (x + m - 1) // m * m


def _choose_row_tile(M, tm):
    """8-aligned row tile <= tm, preferring >=2 grid steps (dual-TC / megacore)."""
    t = min(tm, _round_up(pl.cdiv(M, 2), 8))
    if t >= M:
        t = M          # one exact block: no ragged tail, any M is a legal block dim
    return max(t, 1)


def identity_head_forward(x, params, *, tm=512):
    """x: (M, 2048) float32  ->  (M, 512) float32 L2-normalized embeddings."""
    M, K = x.shape
    w1, b1 = params["w1"], params["b1"]          # (1024, 2048), (1024,)
    w2, b2 = params["w2"], params["b2"]          # (512, 1024),  (512,)
    s1, t1 = params["bn1"]                       # folded eval-mode BN1 scale/bias
    s2, t2 = params["bn2"]                       # folded eval-mode BN2 scale/bias
    N1, K1 = w1.shape
    N2, K2 = w2.shape
    assert K1 == K and K2 == N1

    # Fold BN scale into the weight columns (once, in f32, then bf16) and fold the
    # Linear bias into the BN shift:
    #   ((x @ W^T + b) * s + t) == x @ (W * s[:,None])^T + (b*s + t)
    w1_f = (w1 * s1[:, None]).T.astype(jnp.bfloat16)      # (K,  N1)
    w2_f = (w2 * s2[:, None]).T.astype(jnp.bfloat16)      # (N1, N2)
    bias1 = (b1 * s1 + t1).reshape(1, N1).astype(jnp.float32)
    bias2 = (b2 * s2 + t2).reshape(1, N2).astype(jnp.float32)

    tm_eff = _choose_row_tile(M, tm)
    grid = (pl.cdiv(M, tm_eff),)

    return pl.pallas_call(
        _identity_head_kernel,
        out_shape=jax.ShapeDtypeStruct((M, N2), jnp.float32),
        grid_spec=pltpu.PrefetchScalarGridSpec(
            num_scalar_prefetch=0,
            grid=grid,
            in_specs=[
                pl.BlockSpec((tm_eff, K), lambda m: (m, 0)),   # x row tile (f32)
                pl.BlockSpec((K, N1), lambda m: (0, 0)),       # W1*s1 (VMEM resident)
                pl.BlockSpec((1, N1), lambda m: (0, 0)),       # folded bias1
                pl.BlockSpec((N1, N2), lambda m: (0, 0)),      # W2*s2 (VMEM resident)
                pl.BlockSpec((1, N2), lambda m: (0, 0)),       # folded bias2
            ],
            out_specs=pl.BlockSpec((tm_eff, N2), lambda m: (m, 0)),
        ),
        compiler_params=pltpu.CompilerParams(
            dimension_semantics=("parallel",),   # row tiles are independent
            vmem_limit_bytes=48 * 1024 * 1024,   # safe on v5e/v6e (128 MiB) and v7x (64 MiB)
        ),
    )(x, w1_f, bias1, w2_f, bias2)


# ----------------------------------------------------------------------------
# Deterministic synthetic parameters (eval-mode BN folded to scale/bias)
# ----------------------------------------------------------------------------

def _fold_bn(gamma, beta, mean, var):
    scale = gamma * jax.lax.rsqrt(var + _BN_EPS)
    bias = beta - mean * scale
    return scale, bias


def make_head_params(key):
    ks = jax.random.split(key, 6)

    def linear(kw, kb, fin, fout):
        std = (1.0 / fin) ** 0.5
        w = std * jax.random.normal(kw, (fout, fin), jnp.float32)
        b = std * jax.random.normal(kb, (fout,), jnp.float32)
        return w, b

    def bn(k, c):
        k1, k2, k3, k4 = jax.random.split(k, 4)
        gamma = 1.0 + 0.1 * jax.random.normal(k1, (c,), jnp.float32)
        beta = 0.1 * jax.random.normal(k2, (c,), jnp.float32)
        mean = 0.1 * jax.random.normal(k3, (c,), jnp.float32)
        var = jax.random.uniform(k4, (c,), jnp.float32, 0.5, 1.5)
        return _fold_bn(gamma, beta, mean, var)

    w1, b1 = linear(ks[0], ks[1], 512 * 4, 1024)
    w2, b2 = linear(ks[2], ks[3], 1024, 512)
    return {"w1": w1, "b1": b1, "bn1": bn(ks[4], 1024),
            "w2": w2, "b2": b2, "bn2": bn(ks[5], 512)}


# ----------------------------------------------------------------------------
# Pure-JAX reference (f32) for correctness checking
# ----------------------------------------------------------------------------

def identity_head_reference(x, params):
    s1, t1 = params["bn1"]
    s2, t2 = params["bn2"]
    h = x @ params["w1"].T + params["b1"]
    h = h * s1 + t1
    h = jnp.where(h >= 0.0, h, _LEAKY_SLOPE * h)
    y = h @ params["w2"].T + params["b2"]
    y = y * s2 + t2
    n = jnp.sqrt(jnp.sum(y * y, axis=1, keepdims=True))
    return y / jnp.maximum(n, _NORM_EPS)


# ----------------------------------------------------------------------------

if __name__ == "__main__":
    key = jax.random.PRNGKey(0)
    k_x, k_p = jax.random.split(key)

    # IdentityHead input: (batch, 512 * 4) features.
    x = jax.random.normal(k_x, (4, 512 * 4), jnp.float32)
    params = make_head_params(k_p)

    fwd = jax.jit(identity_head_forward)
    out = jax.block_until_ready(fwd(x, params))

    assert out.shape == (4, 512), out.shape
    assert bool(jnp.all(jnp.isfinite(out)))

    # Unit-norm rows (F.normalize semantics).
    norms = jnp.sqrt(jnp.sum(out * out, axis=1))
    assert bool(jnp.all(jnp.abs(norms - 1.0) < 1e-3)), norms

    # Match the f32 reference (bf16 MXU inputs -> loose-ish tolerance).
    ref = identity_head_reference(x, params)
    max_err = float(jnp.max(jnp.abs(out - ref)))
    assert max_err < 2e-2, max_err

    print("KERNEL_OK")
</pallas_src>

<mosaic_0001>
module attributes {stable_mosaic.version = 11 : i64} {
  func.func @_identity_head_kernel(%arg0: i32, %arg1: memref<4x2048xf32, #tpu.memory_space<vmem>>, %arg2: memref<2048x1024xbf16, #tpu.memory_space<vmem>>, %arg3: memref<1x1024xf32, #tpu.memory_space<vmem>>, %arg4: memref<1024x512xbf16, #tpu.memory_space<vmem>>, %arg5: memref<1x512xf32, #tpu.memory_space<vmem>>, %arg6: memref<4x512xf32, #tpu.memory_space<vmem>>) attributes {dimension_semantics = [#tpu.dimension_semantics<parallel>], iteration_bounds = array<i64: 1>, scalar_prefetch = 0 : i64, scratch_operands = 0 : i64, tpu.core_type = #tpu.core_type<tc>, window_params = [{transform_indices = @transform_0, window_bounds = array<i64: 4, 2048>}, {pipeline_mode = #tpu.pipeline_mode<synchronous>, transform_indices = @transform_1, window_bounds = array<i64: 2048, 1024>}, {pipeline_mode = #tpu.pipeline_mode<synchronous>, transform_indices = @transform_2, window_bounds = array<i64: 1, 1024>}, {pipeline_mode = #tpu.pipeline_mode<synchronous>, transform_indices = @transform_3, window_bounds = array<i64: 1024, 512>}, {pipeline_mode = #tpu.pipeline_mode<synchronous>, transform_indices = @transform_4, window_bounds = array<i64: 1, 512>}, {transform_indices = @transform_5, window_bounds = array<i64: 4, 512>}]} {
    %c0 = arith.constant 0 : index
    %c0_0 = arith.constant 0 : index
    %0 = vector.load %arg1[%c0, %c0_0] : memref<4x2048xf32, #tpu.memory_space<vmem>>, vector<4x2048xf32>
    %1 = arith.truncf %0 : vector<4x2048xf32> to vector<4x2048xbf16>
    %c0_1 = arith.constant 0 : index
    %c0_2 = arith.constant 0 : index
    %2 = vector.load %arg2[%c0_1, %c0_2] : memref<2048x1024xbf16, #tpu.memory_space<vmem>>, vector<2048x1024xbf16>
    %cst = arith.constant dense<0.000000e+00> : vector<4x1024xf32>
    %3 = tpu.matmul %1, %2, %cst {dimension_numbers = #tpu.dot_dimension_numbers<[1], [0], [0], [1], [0, 0, 1, 1], [], []>} : vector<4x2048xbf16>, vector<2048x1024xbf16>, vector<4x1024xf32> -> vector<4x1024xf32>
    %c0_3 = arith.constant 0 : index
    %c0_4 = arith.constant 0 : index
    %4 = vector.load %arg3[%c0_3, %c0_4] : memref<1x1024xf32, #tpu.memory_space<vmem>>, vector<1x1024xf32>
    %5 = vector.broadcast %4 : vector<1x1024xf32> to vector<4x1024xf32>
    %6 = arith.addf %3, %5 : vector<4x1024xf32>
    %cst_5 = arith.constant 0.000000e+00 : f32
    %7 = vector.broadcast %cst_5 : f32 to vector<4x1024xf32>
    %8 = arith.cmpf oge, %6, %7 : vector<4x1024xf32>
    %cst_6 = arith.constant 2.000000e-01 : f32
    %9 = vector.broadcast %cst_6 : f32 to vector<4x1024xf32>
    %10 = arith.mulf %9, %6 : vector<4x1024xf32>
    %11 = arith.select %8, %6, %10 : vector<4x1024xi1>, vector<4x1024xf32>
    %12 = arith.truncf %11 : vector<4x1024xf32> to vector<4x1024xbf16>
    %c0_7 = arith.constant 0 : index
    %c0_8 = arith.constant 0 : index
    %13 = vector.load %arg4[%c0_7, %c0_8] : memref<1024x512xbf16, #tpu.memory_space<vmem>>, vector<1024x512xbf16>
    %cst_9 = arith.constant dense<0.000000e+00> : vector<4x512xf32>
    %14 = tpu.matmul %12, %13, %cst_9 {dimension_numbers = #tpu.dot_dimension_numbers<[1], [0], [0], [1], [0, 0, 1, 1], [], []>} : vector<4x1024xbf16>, vector<1024x512xbf16>, vector<4x512xf32> -> vector<4x512xf32>
    %c0_10 = arith.constant 0 : index
    %c0_11 = arith.constant 0 : index
    %15 = vector.load %arg5[%c0_10, %c0_11] : memref<1x512xf32, #tpu.memory_space<vmem>>, vector<1x512xf32>
    %16 = vector.broadcast %15 : vector<1x512xf32> to vector<4x512xf32>
    %17 = arith.addf %14, %16 : vector<4x512xf32>
    %18 = arith.mulf %17, %17 : vector<4x512xf32>
    %cst_12 = arith.constant dense<0.000000e+00> : vector<4xf32>
    %19 = vector.multi_reduction <add>, %18, %cst_12 [1] : vector<4x512xf32> to vector<4xf32>
    %20 = vector.shape_cast %19 : vector<4xf32> to vector<4x1xf32>
    %cst_13 = arith.constant 1.000000e-24 : f32
    %21 = vector.broadcast %cst_13 : f32 to vector<4x1xf32>
    %22 = arith.maximumf %20, %21 : vector<4x1xf32>
    %23 = math.rsqrt %22 : vector<4x1xf32>
    %24 = vector.broadcast %23 : vector<4x1xf32> to vector<4x512xf32>
    %25 = arith.mulf %17, %24 : vector<4x512xf32>
    %c0_14 = arith.constant 0 : index
    %c0_15 = arith.constant 0 : index
    %26 = vector.load %arg6[%c0_14, %c0_15] : memref<4x512xf32, #tpu.memory_space<vmem>>, vector<4x512xf32>
    tpu.vector_store %arg6[%c0_14, %c0_15], %25 {strides = array<i32>} : memref<4x512xf32, #tpu.memory_space<vmem>>, vector<4x512xf32>,
    return
  }
  func.func @transform_0(%arg0: i32) -> (i32, i32) {
    %c0_i32 = arith.constant 0 : i32
    %c0_i32_0 = arith.constant 0 : i32
    return %arg0, %c0_i32 : i32, i32
  }
  func.func @transform_1(%arg0: i32) -> (i32, i32) {
    %c0_i32 = arith.constant 0 : i32
    %c0_i32_0 = arith.constant 0 : i32
    %c0_i32_1 = arith.constant 0 : i32
    return %c0_i32, %c0_i32_0 : i32, i32
  }
  func.func @transform_2(%arg0: i32) -> (i32, i32) {
    %c0_i32 = arith.constant 0 : i32
    %c0_i32_0 = arith.constant 0 : i32
    %c0_i32_1 = arith.constant 0 : i32
    return %c0_i32, %c0_i32_0 : i32, i32
  }
  func.func @transform_3(%arg0: i32) -> (i32, i32) {
    %c0_i32 = arith.constant 0 : i32
    %c0_i32_0 = arith.constant 0 : i32
    %c0_i32_1 = arith.constant 0 : i32
    return %c0_i32, %c0_i32_0 : i32, i32
  }
  func.func @transform_4(%arg0: i32) -> (i32, i32) {
    %c0_i32 = arith.constant 0 : i32
    %c0_i32_0 = arith.constant 0 : i32
    %c0_i32_1 = arith.constant 0 : i32
    return %c0_i32, %c0_i32_0 : i32, i32
  }
  func.func @transform_5(%arg0: i32) -> (i32, i32) {
    %c0_i32 = arith.constant 0 : i32
    %c0_i32_0 = arith.constant 0 : i32
    return %arg0, %c0_i32 : i32, i32
  }
}

</mosaic_0001>

<bundles_post_ra>
// kernel: identity_head_forward.1
= control target key start
LH: loop header
LB: loop body
LE: loop exit
PB: predicated region body
PF: predicated region fallthrough
CT: control target
= control target key end

     0   :  { %s15461_s0 = inlined_call_operand.vmem [shape: f32[4,2048], index: 0, kind: input, shape index: {}]   ;;  %s15462_s1 = inlined_call_operand.vmem [shape: bf16[2048,1024], index: 1, kind: input, shape index: {}]   ;;  %s15463_s2 = inlined_call_operand.vmem [shape: f32[1,1024], index: 2, kind: input, shape index: {}]   ;;  %s15464_s3 = inlined_call_operand.vmem [shape: bf16[1024,512], index: 3, kind: input, shape index: {}]   ;;  %s15465_s4 = inlined_call_operand.vmem [shape: f32[1,512], index: 4, kind: input, shape index: {}]   ;;  %s15466_s5 = inlined_call_operand.hbm [shape: f32[4,512], index: 5, kind: output, shape index: {}]  }
   0x1   :  { %v125_v0 = vld [vmem:[%s15462_s1 + $0x1c0] sm:$0xff]  ;;  %v11352_v54 = vld [vmem:[%s15461_s0 + $0x8] sm:$0xff] }
   0x2   :  { %v129_v1 = vld [vmem:[%s15462_s1 + $0x1e0] sm:$0xff]  ;;  %v38_v59 = vcombine.high %v11352_v54, %v11352_v54 }
   0x3   :  { %v253_v2 = vld [vmem:[%s15462_s1 + $0x5c0] sm:$0xff]  ;;  %v9586_v3 = vcombine.high %v125_v0, %v129_v1  ;;  %v9585_v5 = vcombine.low %v125_v0, %v129_v1 }
   0x4   :  { %v257_v4 = vld [vmem:[%s15462_s1 + $0x5e0] sm:$0xff]  ;;  %v11372_v0 = vpack.c.bf16 %v38_v59, %v38_v59 }
   0x5   :  { %v117_v6 = vld [vmem:[%s15462_s1 + $0x180] sm:$0xff]  ;;  %v9714_v8 = vcombine.high %v253_v2, %v257_v4  ;;  %v9713_v9 = vcombine.low %v253_v2, %v257_v4  ;;  %6255 = vmatprep.subr.bf16.mxu0 %v9586_v3 }
   0x6   :  { %v121_v7 = vld [vmem:[%s15462_s1 + $0x1a0] sm:$0xff]  ;;  %6256 = vmatpush1.bf16.msra.mxu0 %v9585_v5  ;;  %6328 = vmatprep.mubr.bf16.mxu1 %v11372_v0 }
   0x7   :  { %v9578_v10 = vcombine.high %v117_v6, %v121_v7  ;;  %v245_v11 = vld [vmem:[%s15462_s1 + $0x580] sm:$0xff]  ;;  %6296 = vmatprep.subr.bf16.mxu1 %v9714_v8  ;;  %v9577_v18 = vcombine.low %v117_v6, %v121_v7 }
   0x8   :  { %v249_v12 = vld [vmem:[%s15462_s1 + $0x5a0] sm:$0xff]  ;;  %6297 = vmatpush1.bf16.msra.mxu1 %v9713_v9 }
   0x9   :  { %v109_v13 = vld [vmem:[%s15462_s1 + $0x140] sm:$0xff]  ;;  %v9706_v14 = vcombine.high %v245_v11, %v249_v12  ;;  %6257 = vmatprep.subr.bf16.mxu0 %v9578_v10  ;;  %v9705_v19 = vcombine.low %v245_v11, %v249_v12 }
   0xa   :  { %v113_v15 = vld [vmem:[%s15462_s1 + $0x160] sm:$0xff]  ;;  %6258 = vmatpush1.bf16.msra.mxu0 %v9577_v18 }
   0xb   :  { %v237_v16 = vld [vmem:[%s15462_s1 + $0x540] sm:$0xff]  ;;  %v9570_v20 = vcombine.high %v109_v13, %v113_v15  ;;  %6298 = vmatprep.subr.bf16.mxu1 %v9706_v14  ;;  %v9569_v26 = vcombine.low %v109_v13, %v113_v15 }
   0xc   :  { %v241_v17 = vld [vmem:[%s15462_s1 + $0x560] sm:$0xff]  ;;  %6299 = vmatpush1.bf16.msra.mxu1 %v9705_v19 }
   0xd   :  { %v9698_v21 = vcombine.high %v237_v16, %v241_v17  ;;  %v101_v22 = vld [vmem:[%s15462_s1 + $0x100] sm:$0xff]  ;;  %6259 = vmatprep.subr.bf16.mxu0 %v9570_v20  ;;  %v9697_v27 = vcombine.low %v237_v16, %v241_v17 }
   0xe   :  { %v105_v23 = vld [vmem:[%s15462_s1 + $0x120] sm:$0xff]  ;;  %6260 = vmatpush1.bf16.msra.mxu0 %v9569_v26 }
   0xf   :  { %v229_v24 = vld [vmem:[%s15462_s1 + $0x500] sm:$0xff]  ;;  %v9562_v28 = vcombine.high %v101_v22, %v105_v23  ;;  %6300 = vmatprep.subr.bf16.mxu1 %v9698_v21  ;;  %v9561_v34 = vcombine.low %v101_v22, %v105_v23 }
  0x10   :  { %v233_v25 = vld [vmem:[%s15462_s1 + $0x520] sm:$0xff]  ;;  %6301 = vmatpush1.bf16.msra.mxu1 %v9697_v27 }
  0x11   :  { %v9690_v29 = vcombine.high %v229_v24, %v233_v25  ;;  %v93_v30 = vld [vmem:[%s15462_s1 + $0xc0] sm:$0xff]  ;;  %6261 = vmatprep.subr.bf16.mxu0 %v9562_v28  ;;  %v9689_v35 = vcombine.low %v229_v24, %v233_v25 }
  0x12   :  { %v97_v31 = vld [vmem:[%s15462_s1 + $0xe0] sm:$0xff]  ;;  %6262 = vmatpush1.bf16.msra.mxu0 %v9561_v34 }
  0x13   :  { %v221_v32 = vld [vmem:[%s15462_s1 + $0x4c0] sm:$0xff]  ;;  %v9554_v36 = vcombine.high %v93_v30, %v97_v31  ;;  %6302 = vmatprep.subr.bf16.mxu1 %v9690_v29  ;;  %v9553_v42 = vcombine.low %v93_v30, %v97_v31 }
  0x14   :  { %v225_v33 = vld [vmem:[%s15462_s1 + $0x4e0] sm:$0xff]  ;;  %6303 = vmatpush1.bf16.msra.mxu1 %v9689_v35 }
  0x15   :  { %v9682_v37 = vcombine.high %v221_v32, %v225_v33  ;;  %v85_v38 = vld [vmem:[%s15462_s1 + $0x80] sm:$0xff]  ;;  %6263 = vmatprep.subr.bf16.mxu0 %v9554_v36  ;;  %v9681_v43 = vcombine.low %v221_v32, %v225_v33 }
  0x16   :  { %v89_v39 = vld [vmem:[%s15462_s1 + $0xa0] sm:$0xff]  ;;  %6264 = vmatpush1.bf16.msra.mxu0 %v9553_v42 }
  0x17   :  { %v213_v40 = vld [vmem:[%s15462_s1 + $0x480] sm:$0xff]  ;;  %v9546_v44 = vcombine.high %v85_v38, %v89_v39  ;;  %6304 = vmatprep.subr.bf16.mxu1 %v9682_v37  ;;  %v9545_v50 = vcombine.low %v85_v38, %v89_v39 }
  0x18   :  { %v217_v41 = vld [vmem:[%s15462_s1 + $0x4a0] sm:$0xff]  ;;  %6305 = vmatpush1.bf16.msra.mxu1 %v9681_v43 }
  0x19   :  { %v9674_v45 = vcombine.high %v213_v40, %v217_v41  ;;  %v77_v46 = vld [vmem:[%s15462_s1 + $0x40] sm:$0xff]  ;;  %6265 = vmatprep.subr.bf16.mxu0 %v9546_v44  ;;  %v9673_v51 = vcombine.low %v213_v40, %v217_v41 }
  0x1a   :  { %v81_v47 = vld [vmem:[%s15462_s1 + $0x60] sm:$0xff]  ;;  %6266 = vmatpush1.bf16.msra.mxu0 %v9545_v50 }
  0x1b   :  { %v205_v48 = vld [vmem:[%s15462_s1 + $0x440] sm:$0xff]  ;;  %v9538_v52 = vcombine.high %v77_v46, %v81_v47  ;;  %6306 = vmatprep.subr.bf16.mxu1 %v9674_v45  ;;  %v9537_v62 = vcombine.low %v77_v46, %v81_v47 }
  0x1c   :  { %v209_v49 = vld [vmem:[%s15462_s1 + $0x460] sm:$0xff]  ;;  %6307 = vmatpush1.bf16.msra.mxu1 %v9673_v51 }
  0x1d   :  { %v11347_v53 = vld [vmem:[%s15461_s0] sm:$0xff]  ;;  %v9666_v55 = vcombine.high %v205_v48, %v209_v49  ;;  %6267 = vmatprep.subr.bf16.mxu0 %v9538_v52  ;;  %v9665_v1 = vcombine.low %v205_v48, %v209_v49 }
  0x1e   :  { %v69_v56 = vld [vmem:[%s15462_s1] sm:$0xff]  ;;  %v37_v58 = vcombine.high %v11347_v53, %v11347_v53  ;;  %6268 = vmatpush1.bf16.msra.mxu0 %v9537_v62 }
  0x1f   :  { %v73_v57 = vld [vmem:[%s15462_s1 + $0x20] sm:$0xff]  ;;  %6308 = vmatprep.subr.bf16.mxu1 %v9666_v55 }
  0x20   :  { %v197_v60 = vld [vmem:[%s15462_s1 + $0x400] sm:$0xff]  ;;  %v11370_v63 = vpack.c.bf16 %v37_v58, %v37_v58  ;;  %v9530_v2 = vcombine.high %v69_v56, %v73_v57  ;;  %v9529_v8 = vcombine.low %v69_v56, %v73_v57  ;;  %6309 = vmatpush1.bf16.msra.mxu1 %v9665_v1 }
  0x21   :  { %v201_v61 = vld [vmem:[%s15462_s1 + $0x420] sm:$0xff] }
  0x22   :  { %v9658_v3 = vcombine.high %v197_v60, %v201_v61  ;;  %v189_v4 = vld [vmem:[%s15462_s1 + $0x3c0] sm:$0xff]  ;;  %6287 = vmatprep.mubr.bf16.mxu0 %v11370_v63  ;;  %6269 = vmatprep.subr.bf16.mxu0 %v9530_v2  ;;  %v9657_v9 = vcombine.low %v197_v60, %v201_v61 }
  0x23   :  { %v193_v5 = vld [vmem:[%s15462_s1 + $0x3e0] sm:$0xff]  ;;  %6270 = vmatpush1.bf16.msra.mxu0 %v9529_v8 }
  0x24   :  { %v317_v6 = vld [vmem:[%s15462_s1 + $0x7c0] sm:$0xff]  ;;  %v9650_v10 = vcombine.high %v189_v4, %v193_v5  ;;  %6310 = vmatprep.subr.bf16.mxu1 %v9658_v3  ;;  %v9649_v16 = vcombine.low %v189_v4, %v193_v5 }
  0x25   :  { %v321_v7 = vld [vmem:[%s15462_s1 + $0x7e0] sm:$0xff]  ;;  %6311 = vmatpush1.bf16.msra.mxu1 %v9657_v9 }
  0x26   :  { %v9778_v11 = vcombine.high %v317_v6, %v321_v7  ;;  %v181_v12 = vld [vmem:[%s15462_s1 + $0x380] sm:$0xff]  ;;  %6271 = vmatprep.subr.bf16.mxu0 %v9650_v10  ;;  %v9777_v17 = vcombine.low %v317_v6, %v321_v7 }
  0x27   :  { %v185_v13 = vld [vmem:[%s15462_s1 + $0x3a0] sm:$0xff]  ;;  %6272 = vmatpush2.bf16.msra.mxu0 %v9649_v16 }
  0x28   :  { %v309_v14 = vld [vmem:[%s15462_s1 + $0x780] sm:$0xff]  ;;  %v9642_v18 = vcombine.high %v181_v12, %v185_v13  ;;  %6312 = vmatprep.subr.bf16.mxu1 %v9778_v11  ;;  %v9641_v24 = vcombine.low %v181_v12, %v185_v13  ;;  %v11487_v12 = vld [vmem:[%s15461_s0 + $0x10] sm:$0xff] }
  0x29   :  { %v313_v15 = vld [vmem:[%s15462_s1 + $0x7a0] sm:$0xff]  ;;  %6313 = vmatpush2.bf16.msra.mxu1 %v9777_v17 }
  0x2a   :  { %v9770_v19 = vcombine.high %v309_v14, %v313_v15  ;;  %v173_v20 = vld [vmem:[%s15462_s1 + $0x340] sm:$0xff]  ;;  %6273 = vmatprep.subr.bf16.mxu0 %v9642_v18  ;;  %v9769_v25 = vcombine.low %v309_v14, %v313_v15  ;;  %v11492_v14 = vld [vmem:[%s15461_s0 + $0x18] sm:$0xff] }
  0x2b   :  { %v177_v21 = vld [vmem:[%s15462_s1 + $0x360] sm:$0xff]  ;;  %6274 = vmatpush2.bf16.msra.mxu0 %v9641_v24  ;;  %v40_v24 = vcombine.high %v11492_v14, %v11492_v14 }
  0x2c   :  { %v301_v22 = vld [vmem:[%s15462_s1 + $0x740] sm:$0xff]  ;;  %v9634_v26 = vcombine.high %v173_v20, %v177_v21  ;;  %6314 = vmatprep.subr.bf16.mxu1 %v9770_v19  ;;  %v9633_v32 = vcombine.low %v173_v20, %v177_v21  ;;  %v39_v20 = vcombine.high %v11487_v12, %v11487_v12  ;;  %v11504_v21 = vpack.c.bf16 %v11347_v53, %v11347_v53 }
  0x2d   :  { %v305_v23 = vld [vmem:[%s15462_s1 + $0x760] sm:$0xff]  ;;  %6315 = vmatpush2.bf16.msra.mxu1 %v9769_v25  ;;  %v11516_v25 = vpack.c.bf16 %v11352_v54, %v11352_v54 }
  0x2e   :  { %v9762_v27 = vcombine.high %v301_v22, %v305_v23  ;;  %v165_v28 = vld [vmem:[%s15462_s1 + $0x300] sm:$0xff]  ;;  %6275 = vmatprep.subr.bf16.mxu0 %v9634_v26  ;;  %v9761_v33 = vcombine.low %v301_v22, %v305_v23 }
  0x2f   :  { %v169_v29 = vld [vmem:[%s15462_s1 + $0x320] sm:$0xff]  ;;  %6276 = vmatpush2.bf16.msra.mxu0 %v9633_v32 }
  0x30   :  { %v293_v30 = vld [vmem:[%s15462_s1 + $0x700] sm:$0xff]  ;;  %v9626_v34 = vcombine.high %v165_v28, %v169_v29  ;;  %6316 = vmatprep.subr.bf16.mxu1 %v9762_v27  ;;  %v9625_v40 = vcombine.low %v165_v28, %v169_v29 }
  0x31   :  { %v297_v31 = vld [vmem:[%s15462_s1 + $0x720] sm:$0xff]  ;;  %6317 = vmatpush2.bf16.msra.mxu1 %v9761_v33  ;;  %v11533_v33 = vpack.c.bf16 %v40_v24, %v40_v24 }
  0x32   :  { %v9754_v35 = vcombine.high %v293_v30, %v297_v31  ;;  %v157_v36 = vld [vmem:[%s15462_s1 + $0x2c0] sm:$0xff]  ;;  %6277 = vmatprep.subr.bf16.mxu0 %v9626_v34  ;;  %v9753_v41 = vcombine.low %v293_v30, %v297_v31  ;;  %v11527_v31 = vpack.c.bf16 %v39_v20, %v39_v20 }
  0x33   :  { %v161_v37 = vld [vmem:[%s15462_s1 + $0x2e0] sm:$0xff]  ;;  %6278 = vmatpush2.bf16.msra.mxu0 %v9625_v40 }
  0x34   :  { %v285_v38 = vld [vmem:[%s15462_s1 + $0x6c0] sm:$0xff]  ;;  %v9618_v42 = vcombine.high %v157_v36, %v161_v37  ;;  %6318 = vmatprep.subr.bf16.mxu1 %v9754_v35  ;;  %v9617_v48 = vcombine.low %v157_v36, %v161_v37 }
  0x35   :  { %v289_v39 = vld [vmem:[%s15462_s1 + $0x6e0] sm:$0xff]  ;;  %6319 = vmatpush2.bf16.msra.mxu1 %v9753_v41 }
  0x36   :  { %v9746_v43 = vcombine.high %v285_v38, %v289_v39  ;;  %v149_v44 = vld [vmem:[%s15462_s1 + $0x280] sm:$0xff]  ;;  %6279 = vmatprep.subr.bf16.mxu0 %v9618_v42  ;;  %v9745_v49 = vcombine.low %v285_v38, %v289_v39 }
  0x37   :  { %v153_v45 = vld [vmem:[%s15462_s1 + $0x2a0] sm:$0xff]  ;;  %6280 = vmatpush2.bf16.msra.mxu0 %v9617_v48 }
  0x38   :  { %v277_v46 = vld [vmem:[%s15462_s1 + $0x680] sm:$0xff]  ;;  %v9610_v50 = vcombine.high %v149_v44, %v153_v45  ;;  %6320 = vmatprep.subr.bf16.mxu1 %v9746_v43  ;;  %v9609_v58 = vcombine.low %v149_v44, %v153_v45 }
  0x39   :  { %v281_v47 = vld [vmem:[%s15462_s1 + $0x6a0] sm:$0xff]  ;;  %6321 = vmatpush2.bf16.msra.mxu1 %v9745_v49 }
  0x3a   :  { %v9738_v51 = vcombine.high %v277_v46, %v281_v47  ;;  %v141_v52 = vld [vmem:[%s15462_s1 + $0x240] sm:$0xff]  ;;  %6281 = vmatprep.subr.bf16.mxu0 %v9610_v50  ;;  %v9737_v59 = vcombine.low %v277_v46, %v281_v47 }
  0x3b   :  { %v145_v55 = vld [vmem:[%s15462_s1 + $0x260] sm:$0xff]  ;;  %6282 = vmatpush2.bf16.msra.mxu0 %v9609_v58 }
  0x3c   :  { %v269_v56 = vld [vmem:[%s15462_s1 + $0x640] sm:$0xff]  ;;  %v9602_v60 = vcombine.high %v141_v52, %v145_v55  ;;  %6322 = vmatprep.subr.bf16.mxu1 %v9738_v51  ;;  %v9601_v4 = vcombine.low %v141_v52, %v145_v55 }
  0x3d   :  { %v273_v57 = vld [vmem:[%s15462_s1 + $0x660] sm:$0xff]  ;;  %6323 = vmatpush2.bf16.msra.mxu1 %v9737_v59 }
  0x3e   :  { %v9730_v61 = vcombine.high %v269_v56, %v273_v57  ;;  %v133_v62 = vld [vmem:[%s15462_s1 + $0x200] sm:$0xff]  ;;  %6283 = vmatprep.subr.bf16.mxu0 %v9602_v60  ;;  %v9729_v5 = vcombine.low %v269_v56, %v273_v57 }
  0x3f   :  { %v137_v1 = vld [vmem:[%s15462_s1 + $0x220] sm:$0xff]  ;;  %6284 = vmatpush2.bf16.msra.mxu0 %v9601_v4 }
  0x40   :  { %v261_v2 = vld [vmem:[%s15462_s1 + $0x600] sm:$0xff]  ;;  %v9594_v6 = vcombine.high %v133_v62, %v137_v1  ;;  %6324 = vmatprep.subr.bf16.mxu1 %v9730_v61  ;;  %v9593_v13 = vcombine.low %v133_v62, %v137_v1 }
  0x41   :  { %v265_v3 = vld [vmem:[%s15462_s1 + $0x620] sm:$0xff]  ;;  %6325 = vmatpush2.bf16.msra.mxu1 %v9729_v5 }
  0x42   :  { %v9722_v7 = vcombine.high %v261_v2, %v265_v3  ;;  %v381_v8 = vld [vmem:[%s15462_s1 + $0x9c0] sm:$0xff]  ;;  %6285 = vmatprep.subr.bf16.mxu0 %v9594_v6  ;;  %v9721_v15 = vcombine.low %v261_v2, %v265_v3 }
  0x43   :  { %v385_v9 = vld [vmem:[%s15462_s1 + $0x9e0] sm:$0xff]  ;;  %6286 = vmatpush2.bf16.msra.mxu0 %v9593_v13 }
  0x44   :  { %v509_v10 = vld [vmem:[%s15462_s1 + $0xdc0] sm:$0xff]  ;;  %v9842_v16 = vcombine.high %v381_v8, %v385_v9  ;;  %6326 = vmatprep.subr.bf16.mxu1 %v9722_v7  ;;  %v9841_v26 = vcombine.low %v381_v8, %v385_v9 }
  0x45   :  { %v513_v11 = vld [vmem:[%s15462_s1 + $0xde0] sm:$0xff]  ;;  %6327 = vmatpush2.bf16.msra.mxu1 %v9721_v15 }
  0x46   :  { %v9970_v17 = vcombine.high %v509_v10, %v513_v11  ;;  %v373_v18 = vld [vmem:[%s15462_s1 + $0x980] sm:$0xff]  ;;  %6337 = vmatprep.subr.bf16.mxu0 %v9842_v16  ;;  %v9969_v53 = vcombine.low %v509_v10, %v513_v11  ;;  %6288 = vmatmul.mubr.bf16.vlgmr.msra.gmra.mxu0 %v11504_v21 }
  0x47   :  { %v377_v19 = vld [vmem:[%s15462_s1 + $0x9a0] sm:$0xff]  ;;  %6338 = vmatpush1.bf16.msra.mxu0 %v9841_v26  ;;  %6369 = vmatprep.mubr.bf16.mxu0 %v11527_v31 }
  0x48   :  { %v501_v22 = vld [vmem:[%s15462_s1 + $0xd80] sm:$0xff]  ;;  %v9834_v27 = vcombine.high %v373_v18, %v377_v19  ;;  %6378 = vmatprep.subr.bf16.mxu1 %v9970_v17  ;;  %6329 = vmatmul.mubr.bf16.vlgmr.msra.gmra.mxu1 %v11516_v25  ;;  %v9833_v34 = vcombine.low %v373_v18, %v377_v19 }
  0x49   :  { %v505_v23 = vld [vmem:[%s15462_s1 + $0xda0] sm:$0xff]  ;;  %6379 = vmatpush1.bf16.msra.mxu1 %v9969_v53  ;;  %6410 = vmatprep.mubr.bf16.mxu1 %v11533_v33 }
  0x4a   :  { %v9962_v28 = vcombine.high %v501_v22, %v505_v23  ;;  %v365_v29 = vld [vmem:[%s15462_s1 + $0x940] sm:$0xff]  ;;  %6339 = vmatprep.subr.bf16.mxu0 %v9834_v27  ;;  %v9961_v35 = vcombine.low %v501_v22, %v505_v23 }
  0x4b   :  { %v369_v30 = vld [vmem:[%s15462_s1 + $0x960] sm:$0xff]  ;;  %6340 = vmatpush1.bf16.msra.mxu0 %v9833_v34 }
  0x4c   :  { %v493_v54 = vld [vmem:[%s15462_s1 + $0xd40] sm:$0xff]  ;;  %v9826_v36 = vcombine.high %v365_v29, %v369_v30  ;;  %6380 = vmatprep.subr.bf16.mxu1 %v9962_v28  ;;  %v9825_v42 = vcombine.low %v365_v29, %v369_v30 }
  0x4d   :  { %v497_v32 = vld [vmem:[%s15462_s1 + $0xd60] sm:$0xff]  ;;  %6381 = vmatpush1.bf16.msra.mxu1 %v9961_v35 }
  0x4e   :  { %v357_v37 = vld [vmem:[%s15462_s1 + $0x900] sm:$0xff]  ;;  %v9954_v40 = vcombine.high %v493_v54, %v497_v32  ;;  %6341 = vmatprep.subr.bf16.mxu0 %v9826_v36  ;;  %v9953_v43 = vcombine.low %v493_v54, %v497_v32 }
  0x4f   :  { %v361_v38 = vld [vmem:[%s15462_s1 + $0x920] sm:$0xff]  ;;  %6342 = vmatpush1.bf16.msra.mxu0 %v9825_v42 }
  0x50   :  { %v485_v39 = vld [vmem:[%s15462_s1 + $0xd00] sm:$0xff]  ;;  %v9818_v44 = vcombine.high %v357_v37, %v361_v38  ;;  %6382 = vmatprep.subr.bf16.mxu1 %v9954_v40  ;;  %v9817_v50 = vcombine.low %v357_v37, %v361_v38 }
  0x51   :  { %v489_v41 = vld [vmem:[%s15462_s1 + $0xd20] sm:$0xff]  ;;  %6383 = vmatpush1.bf16.msra.mxu1 %v9953_v43 }
  0x52   :  { %v349_v45 = vld [vmem:[%s15462_s1 + $0x8c0] sm:$0xff]  ;;  %v9946_v48 = vcombine.high %v485_v39, %v489_v41  ;;  %6343 = vmatprep.subr.bf16.mxu0 %v9818_v44  ;;  %v9945_v51 = vcombine.low %v485_v39, %v489_v41 }
  0x53   :  { %v353_v46 = vld [vmem:[%s15462_s1 + $0x8e0] sm:$0xff]  ;;  %6344 = vmatpush1.bf16.msra.mxu0 %v9817_v50 }
  0x54   :  { %v477_v47 = vld [vmem:[%s15462_s1 + $0xcc0] sm:$0xff]  ;;  %v9810_v52 = vcombine.high %v349_v45, %v353_v46  ;;  %6384 = vmatprep.subr.bf16.mxu1 %v9946_v48  ;;  %v9809_v60 = vcombine.low %v349_v45, %v353_v46 }
  0x55   :  { %v481_v49 = vld [vmem:[%s15462_s1 + $0xce0] sm:$0xff]  ;;  %6385 = vmatpush1.bf16.msra.mxu1 %v9945_v51 }
  0x56   :  { %v341_v55 = vld [vmem:[%s15462_s1 + $0x880] sm:$0xff]  ;;  %v9938_v58 = vcombine.high %v477_v47, %v481_v49  ;;  %6345 = vmatprep.subr.bf16.mxu0 %v9810_v52  ;;  %v9937_v61 = vcombine.low %v477_v47, %v481_v49 }
  0x57   :  { %v345_v56 = vld [vmem:[%s15462_s1 + $0x8a0] sm:$0xff]  ;;  %6346 = vmatpush1.bf16.msra.mxu0 %v9809_v60 }
  0x58   :  { %v469_v57 = vld [vmem:[%s15462_s1 + $0xc80] sm:$0xff]  ;;  %v9802_v62 = vcombine.high %v341_v55, %v345_v56  ;;  %6386 = vmatprep.subr.bf16.mxu1 %v9938_v58  ;;  %v9801_v6 = vcombine.low %v341_v55, %v345_v56 }
  0x59   :  { %v473_v59 = vld [vmem:[%s15462_s1 + $0xca0] sm:$0xff]  ;;  %6387 = vmatpush1.bf16.msra.mxu1 %v9937_v61 }
  0x5a   :  { %v333_v1 = vld [vmem:[%s15462_s1 + $0x840] sm:$0xff]  ;;  %v9930_v4 = vcombine.high %v469_v57, %v473_v59  ;;  %6347 = vmatprep.subr.bf16.mxu0 %v9802_v62  ;;  %v9929_v7 = vcombine.low %v469_v57, %v473_v59 }
  0x5b   :  { %v337_v2 = vld [vmem:[%s15462_s1 + $0x860] sm:$0xff]  ;;  %6348 = vmatpush1.bf16.msra.mxu0 %v9801_v6 }
  0x5c   :  { %v461_v3 = vld [vmem:[%s15462_s1 + $0xc40] sm:$0xff]  ;;  %v9794_v8 = vcombine.high %v333_v1, %v337_v2  ;;  %6388 = vmatprep.subr.bf16.mxu1 %v9930_v4  ;;  %v9793_v16 = vcombine.low %v333_v1, %v337_v2 }
  0x5d   :  { %v465_v5 = vld [vmem:[%s15462_s1 + $0xc60] sm:$0xff]  ;;  %6389 = vmatpush1.bf16.msra.mxu1 %v9929_v7 }
  0x5e   :  { %v325_v9 = vld [vmem:[%s15462_s1 + $0x800] sm:$0xff]  ;;  %v9922_v13 = vcombine.high %v461_v3, %v465_v5  ;;  %6349 = vmatprep.subr.bf16.mxu0 %v9794_v8  ;;  %v9921_v17 = vcombine.low %v461_v3, %v465_v5 }
  0x5f   :  { %v329_v10 = vld [vmem:[%s15462_s1 + $0x820] sm:$0xff]  ;;  %6350 = vmatpush1.bf16.msra.mxu0 %v9793_v16 }
  0x60   :  { %v453_v11 = vld [vmem:[%s15462_s1 + $0xc00] sm:$0xff]  ;;  %v9786_v18 = vcombine.high %v325_v9, %v329_v10  ;;  %6390 = vmatprep.subr.bf16.mxu1 %v9922_v13  ;;  %v9785_v26 = vcombine.low %v325_v9, %v329_v10 }
  0x61   :  { %v457_v15 = vld [vmem:[%s15462_s1 + $0xc20] sm:$0xff]  ;;  %6391 = vmatpush1.bf16.msra.mxu1 %v9921_v17 }
  0x62   :  { %v445_v19 = vld [vmem:[%s15462_s1 + $0xbc0] sm:$0xff]  ;;  %v9914_v23 = vcombine.high %v453_v11, %v457_v15  ;;  %6351 = vmatprep.subr.bf16.mxu0 %v9786_v18  ;;  %v9913_v53 = vcombine.low %v453_v11, %v457_v15 }
  0x63   :  { %v449_v20 = vld [vmem:[%s15462_s1 + $0xbe0] sm:$0xff]  ;;  %6352 = vmatpush1.bf16.msra.mxu0 %v9785_v26 }
  0x64   :  { %v573_v22 = vld [vmem:[%s15462_s1 + $0xfc0] sm:$0xff]  ;;  %v9906_v27 = vcombine.high %v445_v19, %v449_v20  ;;  %6392 = vmatprep.subr.bf16.mxu1 %v9914_v23  ;;  %v9905_v34 = vcombine.low %v445_v19, %v449_v20 }
  0x65   :  { %v577_v24 = vld [vmem:[%s15462_s1 + $0xfe0] sm:$0xff]  ;;  %6393 = vmatpush1.bf16.msra.mxu1 %v9913_v53 }
  0x66   :  { %v437_v28 = vld [vmem:[%s15462_s1 + $0xb80] sm:$0xff]  ;;  %v10034_v54 = vcombine.high %v573_v22, %v577_v24  ;;  %6353 = vmatprep.subr.bf16.mxu0 %v9906_v27  ;;  %v10033_v35 = vcombine.low %v573_v22, %v577_v24 }
  0x67   :  { %v441_v29 = vld [vmem:[%s15462_s1 + $0xba0] sm:$0xff]  ;;  %6354 = vmatpush2.bf16.msra.mxu0 %v9905_v34 }
  0x68   :  { %v565_v30 = vld [vmem:[%s15462_s1 + $0xf80] sm:$0xff]  ;;  %v9898_v36 = vcombine.high %v437_v28, %v441_v29  ;;  %6394 = vmatprep.subr.bf16.mxu1 %v10034_v54  ;;  %v9897_v42 = vcombine.low %v437_v28, %v441_v29 }
  0x69   :  { %v569_v32 = vld [vmem:[%s15462_s1 + $0xfa0] sm:$0xff]  ;;  %6395 = vmatpush2.bf16.msra.mxu1 %v10033_v35  ;;  %v11714_v35 = vld [vmem:[%s15461_s0 + $0x28] sm:$0xff] }
  0x6a   :  { %v429_v37 = vld [vmem:[%s15462_s1 + $0xb40] sm:$0xff]  ;;  %v10026_v40 = vcombine.high %v565_v30, %v569_v32  ;;  %6355 = vmatprep.subr.bf16.mxu0 %v9898_v36  ;;  %v10025_v43 = vcombine.low %v565_v30, %v569_v32 }
  0x6b   :  { %v433_v38 = vld [vmem:[%s15462_s1 + $0xb60] sm:$0xff]  ;;  %6356 = vmatpush2.bf16.msra.mxu0 %v9897_v42 }
  0x6c   :  { %v557_v39 = vld [vmem:[%s15462_s1 + $0xf40] sm:$0xff]  ;;  %v9890_v44 = vcombine.high %v429_v37, %v433_v38  ;;  %6396 = vmatprep.subr.bf16.mxu1 %v10026_v40  ;;  %v9889_v50 = vcombine.low %v429_v37, %v433_v38 }
  0x6d   :  { %v561_v41 = vld [vmem:[%s15462_s1 + $0xf60] sm:$0xff]  ;;  %6397 = vmatpush2.bf16.msra.mxu1 %v10025_v43 }
  0x6e   :  { %v421_v45 = vld [vmem:[%s15462_s1 + $0xb00] sm:$0xff]  ;;  %v10018_v48 = vcombine.high %v557_v39, %v561_v41  ;;  %6357 = vmatprep.subr.bf16.mxu0 %v9890_v44  ;;  %v10017_v51 = vcombine.low %v557_v39, %v561_v41 }
  0x6f   :  { %v425_v46 = vld [vmem:[%s15462_s1 + $0xb20] sm:$0xff]  ;;  %6358 = vmatpush2.bf16.msra.mxu0 %v9889_v50 }
  0x70   :  { %v549_v47 = vld [vmem:[%s15462_s1 + $0xf00] sm:$0xff]  ;;  %v9882_v52 = vcombine.high %v421_v45, %v425_v46  ;;  %6398 = vmatprep.subr.bf16.mxu1 %v10018_v48  ;;  %v9881_v60 = vcombine.low %v421_v45, %v425_v46  ;;  %v11732_v45 = vpack.c.bf16 %v11487_v12, %v11487_v12  ;;  %v42_v46 = vcombine.high %v11714_v35, %v11714_v35 }
  0x71   :  { %v553_v49 = vld [vmem:[%s15462_s1 + $0xf20] sm:$0xff]  ;;  %6399 = vmatpush2.bf16.msra.mxu1 %v10017_v51 }
  0x72   :  { %v413_v55 = vld [vmem:[%s15462_s1 + $0xac0] sm:$0xff]  ;;  %v10010_v58 = vcombine.high %v549_v47, %v553_v49  ;;  %6359 = vmatprep.subr.bf16.mxu0 %v9882_v52  ;;  %v10009_v61 = vcombine.low %v549_v47, %v553_v49  ;;  %v11738_v47 = vpack.c.bf16 %v11492_v14, %v11492_v14 }
  0x73   :  { %v417_v56 = vld [vmem:[%s15462_s1 + $0xae0] sm:$0xff]  ;;  %6360 = vmatpush2.bf16.msra.mxu0 %v9881_v60 }
  0x74   :  { %v541_v57 = vld [vmem:[%s15462_s1 + $0xec0] sm:$0xff]  ;;  %v9874_v62 = vcombine.high %v413_v55, %v417_v56  ;;  %6400 = vmatprep.subr.bf16.mxu1 %v10010_v58  ;;  %v9873_v6 = vcombine.low %v413_v55, %v417_v56 }
  0x75   :  { %v545_v59 = vld [vmem:[%s15462_s1 + $0xee0] sm:$0xff]  ;;  %6401 = vmatpush2.bf16.msra.mxu1 %v10009_v61 }
  0x76   :  { %v405_v1 = vld [vmem:[%s15462_s1 + $0xa80] sm:$0xff]  ;;  %v10002_v4 = vcombine.high %v541_v57, %v545_v59  ;;  %6361 = vmatprep.subr.bf16.mxu0 %v9874_v62  ;;  %v10001_v7 = vcombine.low %v541_v57, %v545_v59  ;;  %v11755_v57 = vpack.c.bf16 %v42_v46, %v42_v46 }
  0x77   :  { %v409_v2 = vld [vmem:[%s15462_s1 + $0xaa0] sm:$0xff]  ;;  %6362 = vmatpush2.bf16.msra.mxu0 %v9873_v6 }
  0x78   :  { %v533_v3 = vld [vmem:[%s15462_s1 + $0xe80] sm:$0xff]  ;;  %v9866_v8 = vcombine.high %v405_v1, %v409_v2  ;;  %6402 = vmatprep.subr.bf16.mxu1 %v10002_v4  ;;  %v9865_v16 = vcombine.low %v405_v1, %v409_v2 }
  0x79   :  { %v537_v5 = vld [vmem:[%s15462_s1 + $0xea0] sm:$0xff]  ;;  %6403 = vmatpush2.bf16.msra.mxu1 %v10001_v7 }
  0x7a   :  { %v397_v9 = vld [vmem:[%s15462_s1 + $0xa40] sm:$0xff]  ;;  %v9994_v13 = vcombine.high %v533_v3, %v537_v5  ;;  %6363 = vmatprep.subr.bf16.mxu0 %v9866_v8  ;;  %v9993_v17 = vcombine.low %v533_v3, %v537_v5 }
  0x7b   :  { %v401_v10 = vld [vmem:[%s15462_s1 + $0xa60] sm:$0xff]  ;;  %6364 = vmatpush2.bf16.msra.mxu0 %v9865_v16 }
  0x7c   :  { %v525_v11 = vld [vmem:[%s15462_s1 + $0xe40] sm:$0xff]  ;;  %v9858_v18 = vcombine.high %v397_v9, %v401_v10  ;;  %6404 = vmatprep.subr.bf16.mxu1 %v9994_v13  ;;  %v9857_v26 = vcombine.low %v397_v9, %v401_v10 }
  0x7d   :  { %v529_v15 = vld [vmem:[%s15462_s1 + $0xe60] sm:$0xff]  ;;  %6405 = vmatpush2.bf16.msra.mxu1 %v9993_v17 }
  0x7e   :  { %v389_v19 = vld [vmem:[%s15462_s1 + $0xa00] sm:$0xff]  ;;  %v9986_v23 = vcombine.high %v525_v11, %v529_v15  ;;  %6365 = vmatprep.subr.bf16.mxu0 %v9858_v18  ;;  %v9985_v28 = vcombine.low %v525_v11, %v529_v15 }
  0x7f   :  { %v393_v20 = vld [vmem:[%s15462_s1 + $0xa20] sm:$0xff]  ;;  %6366 = vmatpush2.bf16.msra.mxu0 %v9857_v26 }
  0x80   :  { %v517_v22 = vld [vmem:[%s15462_s1 + $0xe00] sm:$0xff]  ;;  %v9850_v29 = vcombine.high %v389_v19, %v393_v20  ;;  %6406 = vmatprep.subr.bf16.mxu1 %v9986_v23  ;;  %v9849_v36 = vcombine.low %v389_v19, %v393_v20 }
  0x81   :  { %v521_v24 = vld [vmem:[%s15462_s1 + $0xe20] sm:$0xff]  ;;  %6407 = vmatpush2.bf16.msra.mxu1 %v9985_v28 }
  0x82   :  { %v637_v53 = vld [vmem:[%s15462_s1 + $0x11c0] sm:$0xff]  ;;  %v9978_v34 = vcombine.high %v517_v22, %v521_v24  ;;  %6367 = vmatprep.subr.bf16.mxu0 %v9850_v29  ;;  %v9977_v37 = vcombine.low %v517_v22, %v521_v24 }
  0x83   :  { %v641_v27 = vld [vmem:[%s15462_s1 + $0x11e0] sm:$0xff]  ;;  %6368 = vmatpush2.bf16.msra.mxu0 %v9849_v36 }
  0x84   :  { %v765_v30 = vld [vmem:[%s15462_s1 + $0x15c0] sm:$0xff]  ;;  %v10098_v38 = vcombine.high %v637_v53, %v641_v27  ;;  %6408 = vmatprep.subr.bf16.mxu1 %v9978_v34  ;;  %v10097_v48 = vcombine.low %v637_v53, %v641_v27 }
  0x85   :  { %v769_v54 = vld [vmem:[%s15462_s1 + $0x15e0] sm:$0xff]  ;;  %6409 = vmatpush2.bf16.msra.mxu1 %v9977_v37 }
  0x86   :  { %v11709_v32 = vld [vmem:[%s15461_s0 + $0x20] sm:$0xff]  ;;  %v10226_v40 = vcombine.high %v765_v30, %v769_v54  ;;  %6419 = vmatprep.subr.bf16.mxu0 %v10098_v38  ;;  %v10225_v49 = vcombine.low %v765_v30, %v769_v54  ;;  %6370 = vmatmul.mubr.bf16.vlgmr.msra.gmra.mxu0 %v11732_v45 }
  0x87   :  { %v629_v39 = vld [vmem:[%s15462_s1 + $0x1180] sm:$0xff]  ;;  %v41_v44 = vcombine.high %v11709_v32, %v11709_v32  ;;  %6420 = vmatpush1.bf16.msra.mxu0 %v10097_v48 }
  0x88   :  { %v633_v41 = vld [vmem:[%s15462_s1 + $0x11a0] sm:$0xff]  ;;  %6460 = vmatprep.subr.bf16.mxu1 %v10226_v40  ;;  %6411 = vmatmul.mubr.bf16.vlgmr.msra.gmra.mxu1 %v11738_v47 }
  0x89   :  { %v757_v42 = vld [vmem:[%s15462_s1 + $0x1580] sm:$0xff]  ;;  %v10090_v50 = vcombine.high %v629_v39, %v633_v41  ;;  %v11752_v56 = vpack.c.bf16 %v41_v44, %v41_v44  ;;  %v10089_v58 = vcombine.low %v629_v39, %v633_v41  ;;  %6461 = vmatpush1.bf16.msra.mxu1 %v10225_v49  ;;  %6492 = vmatprep.mubr.bf16.mxu1 %v11755_v57 }
  0x8a   :  { %v761_v43 = vld [vmem:[%s15462_s1 + $0x15a0] sm:$0xff] }
  0x8b   :  { %v621_v51 = vld [vmem:[%s15462_s1 + $0x1140] sm:$0xff]  ;;  %v10218_v52 = vcombine.high %v757_v42, %v761_v43  ;;  %6421 = vmatprep.subr.bf16.mxu0 %v10090_v50  ;;  %v10217_v59 = vcombine.low %v757_v42, %v761_v43  ;;  %6451 = vmatprep.mubr.bf16.mxu0 %v11752_v56 }
  0x8c   :  { %v625_v12 = vld [vmem:[%s15462_s1 + $0x1160] sm:$0xff]  ;;  %6422 = vmatpush1.bf16.msra.mxu0 %v10089_v58 }
  0x8d   :  { %v749_v14 = vld [vmem:[%s15462_s1 + $0x1540] sm:$0xff]  ;;  %v10082_v60 = vcombine.high %v621_v51, %v625_v12  ;;  %6462 = vmatprep.subr.bf16.mxu1 %v10218_v52  ;;  %v10081_v4 = vcombine.low %v621_v51, %v625_v12 }
  0x8e   :  { %v753_v55 = vld [vmem:[%s15462_s1 + $0x1560] sm:$0xff]  ;;  %6463 = vmatpush1.bf16.msra.mxu1 %v10217_v59 }
  0x8f   :  { %v613_v61 = vld [vmem:[%s15462_s1 + $0x1100] sm:$0xff]  ;;  %v10210_v2 = vcombine.high %v749_v14, %v753_v55  ;;  %6423 = vmatprep.subr.bf16.mxu0 %v10082_v60  ;;  %v10209_v5 = vcombine.low %v749_v14, %v753_v55 }
  0x90   :  { %v617_v62 = vld [vmem:[%s15462_s1 + $0x1120] sm:$0xff]  ;;  %6424 = vmatpush1.bf16.msra.mxu0 %v10081_v4 }
  0x91   :  { %v741_v1 = vld [vmem:[%s15462_s1 + $0x1500] sm:$0xff]  ;;  %v10074_v6 = vcombine.high %v613_v61, %v617_v62  ;;  %6464 = vmatprep.subr.bf16.mxu1 %v10210_v2  ;;  %v10073_v13 = vcombine.low %v613_v61, %v617_v62 }
  0x92   :  { %v745_v3 = vld [vmem:[%s15462_s1 + $0x1520] sm:$0xff]  ;;  %6465 = vmatpush1.bf16.msra.mxu1 %v10209_v5 }
  0x93   :  { %v605_v7 = vld [vmem:[%s15462_s1 + $0x10c0] sm:$0xff]  ;;  %v10202_v10 = vcombine.high %v741_v1, %v745_v3  ;;  %6425 = vmatprep.subr.bf16.mxu0 %v10074_v6  ;;  %v10201_v15 = vcombine.low %v741_v1, %v745_v3 }
  0x94   :  { %v609_v8 = vld [vmem:[%s15462_s1 + $0x10e0] sm:$0xff]  ;;  %6426 = vmatpush1.bf16.msra.mxu0 %v10073_v13 }
  0x95   :  { %v733_v9 = vld [vmem:[%s15462_s1 + $0x14c0] sm:$0xff]  ;;  %v10066_v16 = vcombine.high %v605_v7, %v609_v8  ;;  %6466 = vmatprep.subr.bf16.mxu1 %v10202_v10  ;;  %v10065_v23 = vcombine.low %v605_v7, %v609_v8 }
  0x96   :  { %v737_v11 = vld [vmem:[%s15462_s1 + $0x14e0] sm:$0xff]  ;;  %6467 = vmatpush1.bf16.msra.mxu1 %v10201_v15 }
  0x97   :  { %v597_v17 = vld [vmem:[%s15462_s1 + $0x1080] sm:$0xff]  ;;  %v10194_v20 = vcombine.high %v733_v9, %v737_v11  ;;  %6427 = vmatprep.subr.bf16.mxu0 %v10066_v16  ;;  %v10193_v24 = vcombine.low %v733_v9, %v737_v11 }
  0x98   :  { %v601_v18 = vld [vmem:[%s15462_s1 + $0x10a0] sm:$0xff]  ;;  %6428 = vmatpush1.bf16.msra.mxu0 %v10065_v23 }
  0x99   :  { %v725_v19 = vld [vmem:[%s15462_s1 + $0x1480] sm:$0xff]  ;;  %v10058_v26 = vcombine.high %v597_v17, %v601_v18  ;;  %6468 = vmatprep.subr.bf16.mxu1 %v10194_v20  ;;  %v10057_v54 = vcombine.low %v597_v17, %v601_v18 }
  0x9a   :  { %v729_v22 = vld [vmem:[%s15462_s1 + $0x14a0] sm:$0xff]  ;;  %6469 = vmatpush1.bf16.msra.mxu1 %v10193_v24 }
  0x9b   :  { %v589_v53 = vld [vmem:[%s15462_s1 + $0x1040] sm:$0xff]  ;;  %v10186_v29 = vcombine.high %v725_v19, %v729_v22  ;;  %6429 = vmatprep.subr.bf16.mxu0 %v10058_v26  ;;  %v10185_v34 = vcombine.low %v725_v19, %v729_v22 }
  0x9c   :  { %v593_v27 = vld [vmem:[%s15462_s1 + $0x1060] sm:$0xff]  ;;  %6430 = vmatpush1.bf16.msra.mxu0 %v10057_v54 }
  0x9d   :  { %v717_v28 = vld [vmem:[%s15462_s1 + $0x1440] sm:$0xff]  ;;  %v10050_v36 = vcombine.high %v589_v53, %v593_v27  ;;  %6470 = vmatprep.subr.bf16.mxu1 %v10186_v29  ;;  %v10049_v42 = vcombine.low %v589_v53, %v593_v27 }
  0x9e   :  { %v721_v30 = vld [vmem:[%s15462_s1 + $0x1460] sm:$0xff]  ;;  %6471 = vmatpush1.bf16.msra.mxu1 %v10185_v34 }
  0x9f   :  { %v581_v37 = vld [vmem:[%s15462_s1 + $0x1000] sm:$0xff]  ;;  %v10178_v40 = vcombine.high %v717_v28, %v721_v30  ;;  %6431 = vmatprep.subr.bf16.mxu0 %v10050_v36  ;;  %v10177_v43 = vcombine.low %v717_v28, %v721_v30 }
  0xa0   :  { %v585_v38 = vld [vmem:[%s15462_s1 + $0x1020] sm:$0xff]  ;;  %6432 = vmatpush1.bf16.msra.mxu0 %v10049_v42 }
  0xa1   :  { %v709_v39 = vld [vmem:[%s15462_s1 + $0x1400] sm:$0xff]  ;;  %v10042_v44 = vcombine.high %v581_v37, %v585_v38  ;;  %6472 = vmatprep.subr.bf16.mxu1 %v10178_v40  ;;  %v10041_v12 = vcombine.low %v581_v37, %v585_v38 }
  0xa2   :  { %v713_v41 = vld [vmem:[%s15462_s1 + $0x1420] sm:$0xff]  ;;  %6473 = vmatpush1.bf16.msra.mxu1 %v10177_v43 }
  0xa3   :  { %v701_v46 = vld [vmem:[%s15462_s1 + $0x13c0] sm:$0xff]  ;;  %v10170_v50 = vcombine.high %v709_v39, %v713_v41  ;;  %6433 = vmatprep.subr.bf16.mxu0 %v10042_v44  ;;  %v10169_v52 = vcombine.low %v709_v39, %v713_v41 }
  0xa4   :  { %v705_v48 = vld [vmem:[%s15462_s1 + $0x13e0] sm:$0xff]  ;;  %6434 = vmatpush1.bf16.msra.mxu0 %v10041_v12 }
  0xa5   :  { %v829_v49 = vld [vmem:[%s15462_s1 + $0x17c0] sm:$0xff]  ;;  %v10162_v14 = vcombine.high %v701_v46, %v705_v48  ;;  %6474 = vmatprep.subr.bf16.mxu1 %v10170_v50  ;;  %v10161_v62 = vcombine.low %v701_v46, %v705_v48 }
  0xa6   :  { %v833_v51 = vld [vmem:[%s15462_s1 + $0x17e0] sm:$0xff]  ;;  %6475 = vmatpush1.bf16.msra.mxu1 %v10169_v52 }
  0xa7   :  { %v693_v55 = vld [vmem:[%s15462_s1 + $0x1380] sm:$0xff]  ;;  %v10290_v60 = vcombine.high %v829_v49, %v833_v51  ;;  %6435 = vmatprep.subr.bf16.mxu0 %v10162_v14  ;;  %v10289_v1 = vcombine.low %v829_v49, %v833_v51 }
  0xa8   :  { %v697_v58 = vld [vmem:[%s15462_s1 + $0x13a0] sm:$0xff]  ;;  %6436 = vmatpush2.bf16.msra.mxu0 %v10161_v62 }
  0xa9   :  { %v821_v59 = vld [vmem:[%s15462_s1 + $0x1780] sm:$0xff]  ;;  %v10154_v2 = vcombine.high %v693_v55, %v697_v58  ;;  %6476 = vmatprep.subr.bf16.mxu1 %v10290_v60  ;;  %v10153_v8 = vcombine.low %v693_v55, %v697_v58 }
  0xaa   :  { %v825_v61 = vld [vmem:[%s15462_s1 + $0x17a0] sm:$0xff]  ;;  %6477 = vmatpush2.bf16.msra.mxu1 %v10289_v1 }
  0xab   :  { %v685_v3 = vld [vmem:[%s15462_s1 + $0x1340] sm:$0xff]  ;;  %v10282_v6 = vcombine.high %v821_v59, %v825_v61  ;;  %6437 = vmatprep.subr.bf16.mxu0 %v10154_v2  ;;  %v10281_v9 = vcombine.low %v821_v59, %v825_v61 }
  0xac   :  { %v689_v4 = vld [vmem:[%s15462_s1 + $0x1360] sm:$0xff]  ;;  %6438 = vmatpush2.bf16.msra.mxu0 %v10153_v8 }
  0xad   :  { %v813_v5 = vld [vmem:[%s15462_s1 + $0x1740] sm:$0xff]  ;;  %v10146_v10 = vcombine.high %v685_v3, %v689_v4  ;;  %6478 = vmatprep.subr.bf16.mxu1 %v10282_v6  ;;  %v10145_v18 = vcombine.low %v685_v3, %v689_v4  ;;  %v11931_v3 = vld [vmem:[%s15461_s0 + $0x30] sm:$0xff] }
  0xae   :  { %v817_v7 = vld [vmem:[%s15462_s1 + $0x1760] sm:$0xff]  ;;  %6479 = vmatpush2.bf16.msra.mxu1 %v10281_v9 }
  0xaf   :  { %v677_v11 = vld [vmem:[%s15462_s1 + $0x1300] sm:$0xff]  ;;  %v10274_v16 = vcombine.high %v813_v5, %v817_v7  ;;  %6439 = vmatprep.subr.bf16.mxu0 %v10146_v10  ;;  %v10273_v19 = vcombine.low %v813_v5, %v817_v7  ;;  %v11936_v5 = vld [vmem:[%s15461_s0 + $0x38] sm:$0xff] }
  0xb0   :  { %v681_v13 = vld [vmem:[%s15462_s1 + $0x1320] sm:$0xff]  ;;  %6440 = vmatpush2.bf16.msra.mxu0 %v10145_v18  ;;  %v44_v18 = vcombine.high %v11936_v5, %v11936_v5 }
  0xb1   :  { %v805_v15 = vld [vmem:[%s15462_s1 + $0x1700] sm:$0xff]  ;;  %v10138_v20 = vcombine.high %v677_v11, %v681_v13  ;;  %6480 = vmatprep.subr.bf16.mxu1 %v10274_v16  ;;  %v10137_v27 = vcombine.low %v677_v11, %v681_v13  ;;  %v43_v16 = vcombine.high %v11931_v3, %v11931_v3 }
  0xb2   :  { %v809_v17 = vld [vmem:[%s15462_s1 + $0x1720] sm:$0xff]  ;;  %6481 = vmatpush2.bf16.msra.mxu1 %v10273_v19  ;;  %v11960_v19 = vpack.c.bf16 %v11714_v35, %v11714_v35 }
  0xb3   :  { %v669_v22 = vld [vmem:[%s15462_s1 + $0x12c0] sm:$0xff]  ;;  %v10266_v26 = vcombine.high %v805_v15, %v809_v17  ;;  %6441 = vmatprep.subr.bf16.mxu0 %v10138_v20  ;;  %v10265_v28 = vcombine.low %v805_v15, %v809_v17  ;;  %v11954_v17 = vpack.c.bf16 %v11709_v32, %v11709_v32 }
  0xb4   :  { %v673_v23 = vld [vmem:[%s15462_s1 + $0x12e0] sm:$0xff]  ;;  %6442 = vmatpush2.bf16.msra.mxu0 %v10137_v27  ;;  %v11974_v27 = vpack.c.bf16 %v43_v16, %v43_v16 }
  0xb5   :  { %v797_v24 = vld [vmem:[%s15462_s1 + $0x16c0] sm:$0xff]  ;;  %v10130_v29 = vcombine.high %v669_v22, %v673_v23  ;;  %6482 = vmatprep.subr.bf16.mxu1 %v10266_v26  ;;  %v10129_v38 = vcombine.low %v669_v22, %v673_v23 }
  0xb6   :  { %v801_v53 = vld [vmem:[%s15462_s1 + $0x16e0] sm:$0xff]  ;;  %6483 = vmatpush2.bf16.msra.mxu1 %v10265_v28  ;;  %v11977_v28 = vpack.c.bf16 %v44_v18, %v44_v18 }
  0xb7   :  { %v661_v30 = vld [vmem:[%s15462_s1 + $0x1280] sm:$0xff]  ;;  %v10258_v36 = vcombine.high %v797_v24, %v801_v53  ;;  %6443 = vmatprep.subr.bf16.mxu0 %v10130_v29  ;;  %v10257_v39 = vcombine.low %v797_v24, %v801_v53 }
  0xb8   :  { %v665_v54 = vld [vmem:[%s15462_s1 + $0x12a0] sm:$0xff]  ;;  %6444 = vmatpush2.bf16.msra.mxu0 %v10129_v38 }
  0xb9   :  { %v789_v34 = vld [vmem:[%s15462_s1 + $0x1680] sm:$0xff]  ;;  %v10122_v40 = vcombine.high %v661_v30, %v665_v54  ;;  %6484 = vmatprep.subr.bf16.mxu1 %v10258_v36  ;;  %v10121_v48 = vcombine.low %v661_v30, %v665_v54 }
  0xba   :  { %v793_v37 = vld [vmem:[%s15462_s1 + $0x16a0] sm:$0xff]  ;;  %6485 = vmatpush2.bf16.msra.mxu1 %v10257_v39 }
  0xbb   :  { %v653_v41 = vld [vmem:[%s15462_s1 + $0x1240] sm:$0xff]  ;;  %v10250_v44 = vcombine.high %v789_v34, %v793_v37  ;;  %6445 = vmatprep.subr.bf16.mxu0 %v10122_v40  ;;  %v10249_v49 = vcombine.low %v789_v34, %v793_v37 }
  0xbc   :  { %v657_v42 = vld [vmem:[%s15462_s1 + $0x1260] sm:$0xff]  ;;  %6446 = vmatpush2.bf16.msra.mxu0 %v10121_v48 }
  0xbd   :  { %v781_v43 = vld [vmem:[%s15462_s1 + $0x1640] sm:$0xff]  ;;  %v10114_v50 = vcombine.high %v653_v41, %v657_v42  ;;  %6486 = vmatprep.subr.bf16.mxu1 %v10250_v44  ;;  %v10113_v58 = vcombine.low %v653_v41, %v657_v42 }
  0xbe   :  { %v785_v46 = vld [vmem:[%s15462_s1 + $0x1660] sm:$0xff]  ;;  %6487 = vmatpush2.bf16.msra.mxu1 %v10249_v49 }
  0xbf   :  { %v645_v51 = vld [vmem:[%s15462_s1 + $0x1200] sm:$0xff]  ;;  %v10242_v14 = vcombine.high %v781_v43, %v785_v46  ;;  %6447 = vmatprep.subr.bf16.mxu0 %v10114_v50  ;;  %v10241_v61 = vcombine.low %v781_v43, %v785_v46 }
  0xc0   :  { %v649_v12 = vld [vmem:[%s15462_s1 + $0x1220] sm:$0xff]  ;;  %6448 = vmatpush2.bf16.msra.mxu0 %v10113_v58 }
  0xc1   :  { %v773_v52 = vld [vmem:[%s15462_s1 + $0x1600] sm:$0xff]  ;;  %v10106_v62 = vcombine.high %v645_v51, %v649_v12  ;;  %6488 = vmatprep.subr.bf16.mxu1 %v10242_v14  ;;  %v10105_v6 = vcombine.low %v645_v51, %v649_v12 }
  0xc2   :  { %v777_v55 = vld [vmem:[%s15462_s1 + $0x1620] sm:$0xff]  ;;  %6489 = vmatpush2.bf16.msra.mxu1 %v10241_v61 }
  0xc3   :  { %v893_v59 = vld [vmem:[%s15462_s1 + $0x19c0] sm:$0xff]  ;;  %v10234_v4 = vcombine.high %v773_v52, %v777_v55  ;;  %6449 = vmatprep.subr.bf16.mxu0 %v10106_v62  ;;  %v10233_v7 = vcombine.low %v773_v52, %v777_v55 }
  0xc4   :  { %v897_v60 = vld [vmem:[%s15462_s1 + $0x19e0] sm:$0xff]  ;;  %6450 = vmatpush2.bf16.msra.mxu0 %v10105_v6 }
  0xc5   :  { %v1021_v1 = vld [vmem:[%s15462_s1 + $0x1dc0] sm:$0xff]  ;;  %v10354_v8 = vcombine.high %v893_v59, %v897_v60  ;;  %6490 = vmatprep.subr.bf16.mxu1 %v10234_v4  ;;  %v10353_v20 = vcombine.low %v893_v59, %v897_v60 }
  0xc6   :  { %v1025_v2 = vld [vmem:[%s15462_s1 + $0x1de0] sm:$0xff]  ;;  %6491 = vmatpush2.bf16.msra.mxu1 %v10233_v7 }
  0xc7   :  { %v885_v9 = vld [vmem:[%s15462_s1 + $0x1980] sm:$0xff]  ;;  %v10482_v13 = vcombine.high %v1021_v1, %v1025_v2  ;;  %6501 = vmatprep.subr.bf16.mxu0 %v10354_v8  ;;  %v10481_v22 = vcombine.low %v1021_v1, %v1025_v2  ;;  %6452 = vmatmul.mubr.bf16.vlgmr.msra.gmra.mxu0 %v11954_v17 }
  0xc8   :  { %v889_v10 = vld [vmem:[%s15462_s1 + $0x19a0] sm:$0xff]  ;;  %6502 = vmatpush1.bf16.msra.mxu0 %v10353_v20 }
  0xc9   :  { %v1013_v11 = vld [vmem:[%s15462_s1 + $0x1d80] sm:$0xff]  ;;  %v10346_v23 = vcombine.high %v885_v9, %v889_v10  ;;  %6542 = vmatprep.subr.bf16.mxu1 %v10482_v13  ;;  %6493 = vmatmul.mubr.bf16.vlgmr.msra.gmra.mxu1 %v11960_v19  ;;  %v10345_v29 = vcombine.low %v885_v9, %v889_v10 }
  0xca   :  { %v1017_v15 = vld [vmem:[%s15462_s1 + $0x1da0] sm:$0xff] }
  0xcb   :  { %v877_v24 = vld [vmem:[%s15462_s1 + $0x1940] sm:$0xff]  ;;  %v10474_v35 = vcombine.high %v1013_v11, %v1017_v15 }
  0xcc   :  { %v881_v32 = vld [vmem:[%s15462_s1 + $0x1960] sm:$0xff] }
  0xcd   :  { %v1005_v26 = vld [vmem:[%s15462_s1 + $0x1d40] sm:$0xff] }
  0xce   :  { %v1009_v53 = vld [vmem:[%s15462_s1 + $0x1d60] sm:$0xff] }
  0xcf   :  { %10 = vsyncpa [#allocation3], 0  ;;  %6543 = vmatpush1.bf16.msra.mxu1 %v10481_v22  ;;  %6503 = vmatprep.subr.bf16.mxu0 %v10346_v23  ;;  %v10473_v30 = vcombine.low %v1013_v11, %v1017_v15  ;;  %v10338_v54 = vcombine.high %v877_v24, %v881_v32  ;;  %v10466_v34 = vcombine.high %v1005_v26, %v1009_v53  ;;  %v869_v36 = vld [vmem:[%s15462_s1 + $0x1900] sm:$0xff]  ;;  %vm9489_vm8 = vcmask 1043456  }
  0xd0   :  { %6544 = vmatprep.subr.bf16.mxu1 %v10474_v35  ;;  %v873_v37 = vld [vmem:[%s15462_s1 + $0x1920] sm:$0xff]  ;;  %6533 = vmatprep.mubr.bf16.mxu0 %v11974_v27  ;;  %v10337_v40 = vcombine.low %v877_v24, %v881_v32  ;;  %v10465_v41 = vcombine.low %v1005_v26, %v1009_v53 }
  0xd1   :  { %v997_v38 = vld [vmem:[%s15462_s1 + $0x1d00] sm:$0xff]  ;;  %6574 = vmatprep.mubr.bf16.mxu1 %v11977_v28  ;;  %6504 = vmatpush1.bf16.msra.mxu0 %v10345_v29  ;;  %v10330_v42 = vcombine.high %v869_v36, %v873_v37  ;;  %v10329_v50 = vcombine.low %v869_v36, %v873_v37 }
  0xd2   :  { %v1001_v39 = vld [vmem:[%s15462_s1 + $0x1d20] sm:$0xff]  ;;  %6505 = vmatprep.subr.bf16.mxu0 %v10338_v54 }
  0xd3   :  { %6545 = vmatpush1.bf16.msra.mxu1 %v10473_v30  ;;  %v10458_v43 = vcombine.high %v997_v38, %v1001_v39  ;;  %v861_v44 = vld [vmem:[%s15462_s1 + $0x18c0] sm:$0xff]  ;;  %v10457_v51 = vcombine.low %v997_v38, %v1001_v39 }
  0xd4   :  { %6546 = vmatprep.subr.bf16.mxu1 %v10466_v34  ;;  %v865_v46 = vld [vmem:[%s15462_s1 + $0x18e0] sm:$0xff] }
  0xd5   :  { %v989_v48 = vld [vmem:[%s15462_s1 + $0x1cc0] sm:$0xff]  ;;  %6506 = vmatpush1.bf16.msra.mxu0 %v10337_v40  ;;  %v10322_v12 = vcombine.high %v861_v44, %v865_v46  ;;  %v10321_v60 = vcombine.low %v861_v44, %v865_v46 }
  0xd6   :  { %v993_v49 = vld [vmem:[%s15462_s1 + $0x1ce0] sm:$0xff]  ;;  %6507 = vmatprep.subr.bf16.mxu0 %v10330_v42 }
  0xd7   :  { %6547 = vmatpush1.bf16.msra.mxu1 %v10465_v41  ;;  %v10450_v52 = vcombine.high %v989_v48, %v993_v49  ;;  %v853_v14 = vld [vmem:[%s15462_s1 + $0x1880] sm:$0xff]  ;;  %v10449_v61 = vcombine.low %v989_v48, %v993_v49 }
  0xd8   :  { %6548 = vmatprep.subr.bf16.mxu1 %v10458_v43  ;;  %v857_v55 = vld [vmem:[%s15462_s1 + $0x18a0] sm:$0xff] }
  0xd9   :  { %v981_v58 = vld [vmem:[%s15462_s1 + $0x1c80] sm:$0xff]  ;;  %6508 = vmatpush1.bf16.msra.mxu0 %v10329_v50  ;;  %v10314_v62 = vcombine.high %v853_v14, %v857_v55  ;;  %v10313_v8 = vcombine.low %v853_v14, %v857_v55 }
  0xda   :  { %v985_v59 = vld [vmem:[%s15462_s1 + $0x1ca0] sm:$0xff]  ;;  %6509 = vmatprep.subr.bf16.mxu0 %v10322_v12 }
  0xdb   :  { %6549 = vmatpush1.bf16.msra.mxu1 %v10457_v51  ;;  %v10442_v1 = vcombine.high %v981_v58, %v985_v59  ;;  %v845_v2 = vld [vmem:[%s15462_s1 + $0x1840] sm:$0xff]  ;;  %v10441_v9 = vcombine.low %v981_v58, %v985_v59 }
  0xdc   :  { %6550 = vmatprep.subr.bf16.mxu1 %v10450_v52  ;;  %v849_v4 = vld [vmem:[%s15462_s1 + $0x1860] sm:$0xff] }
  0xdd   :  { %v973_v6 = vld [vmem:[%s15462_s1 + $0x1c40] sm:$0xff]  ;;  %6510 = vmatpush1.bf16.msra.mxu0 %v10321_v60  ;;  %v10306_v10 = vcombine.high %v845_v2, %v849_v4  ;;  %v10305_v20 = vcombine.low %v845_v2, %v849_v4 }
  0xde   :  { %v977_v7 = vld [vmem:[%s15462_s1 + $0x1c60] sm:$0xff]  ;;  %6511 = vmatprep.subr.bf16.mxu0 %v10314_v62 }
  0xdf   :  { %6551 = vmatpush1.bf16.msra.mxu1 %v10449_v61  ;;  %v10434_v11 = vcombine.high %v973_v6, %v977_v7  ;;  %v837_v13 = vld [vmem:[%s15462_s1 + $0x1800] sm:$0xff]  ;;  %v10433_v22 = vcombine.low %v973_v6, %v977_v7 }
  0xe0   :  { %6552 = vmatprep.subr.bf16.mxu1 %v10442_v1  ;;  %v841_v15 = vld [vmem:[%s15462_s1 + $0x1820] sm:$0xff] }
  0xe1   :  { %v965_v16 = vld [vmem:[%s15462_s1 + $0x1c00] sm:$0xff]  ;;  %6512 = vmatpush1.bf16.msra.mxu0 %v10313_v8  ;;  %v10298_v23 = vcombine.high %v837_v13, %v841_v15  ;;  %v10297_v29 = vcombine.low %v837_v13, %v841_v15 }
  0xe2   :  { %v969_v18 = vld [vmem:[%s15462_s1 + $0x1c20] sm:$0xff]  ;;  %6513 = vmatprep.subr.bf16.mxu0 %v10306_v10 }
  0xe3   :  { %6553 = vmatpush1.bf16.msra.mxu1 %v10441_v9  ;;  %v10426_v24 = vcombine.high %v965_v16, %v969_v18  ;;  %v957_v32 = vld [vmem:[%s15462_s1 + $0x1bc0] sm:$0xff]  ;;  %v10425_v30 = vcombine.low %v965_v16, %v969_v18 }
  0xe4   :  { %6554 = vmatprep.subr.bf16.mxu1 %v10434_v11  ;;  %v961_v26 = vld [vmem:[%s15462_s1 + $0x1be0] sm:$0xff] }
  0xe5   :  { %v1085_v35 = vld [vmem:[%s15462_s1 + $0x1fc0] sm:$0xff]  ;;  %6514 = vmatpush1.bf16.msra.mxu0 %v10305_v20  ;;  %v10418_v54 = vcombine.high %v957_v32, %v961_v26  ;;  %v10417_v40 = vcombine.low %v957_v32, %v961_v26 }
  0xe6   :  { %v1089_v53 = vld [vmem:[%s15462_s1 + $0x1fe0] sm:$0xff]  ;;  %6515 = vmatprep.subr.bf16.mxu0 %v10298_v23 }
  0xe7   :  { %6555 = vmatpush1.bf16.msra.mxu1 %v10433_v22  ;;  %v10546_v34 = vcombine.high %v1085_v35, %v1089_v53  ;;  %v949_v36 = vld [vmem:[%s15462_s1 + $0x1b80] sm:$0xff]  ;;  %v10545_v41 = vcombine.low %v1085_v35, %v1089_v53 }
  0xe8   :  { %6556 = vmatprep.subr.bf16.mxu1 %v10426_v24  ;;  %v953_v37 = vld [vmem:[%s15462_s1 + $0x1ba0] sm:$0xff] }
  0xe9   :  { %v1077_v38 = vld [vmem:[%s15462_s1 + $0x1f80] sm:$0xff]  ;;  %6516 = vmatpush1.bf16.msra.mxu0 %v10297_v29  ;;  %v10410_v42 = vcombine.high %v949_v36, %v953_v37  ;;  %v10409_v50 = vcombine.low %v949_v36, %v953_v37 }
  0xea   :  { %v1081_v39 = vld [vmem:[%s15462_s1 + $0x1fa0] sm:$0xff]  ;;  %6517 = vmatprep.subr.bf16.mxu0 %v10418_v54 }
  0xeb   :  { %6557 = vmatpush1.bf16.msra.mxu1 %v10425_v30  ;;  %v10538_v43 = vcombine.high %v1077_v38, %v1081_v39  ;;  %v941_v44 = vld [vmem:[%s15462_s1 + $0x1b40] sm:$0xff]  ;;  %v10537_v51 = vcombine.low %v1077_v38, %v1081_v39  ;;  %v1095_v30 = vlaneseq }
  0xec   :  { %6558 = vmatprep.subr.bf16.mxu1 %v10546_v34  ;;  %v945_v46 = vld [vmem:[%s15462_s1 + $0x1b60] sm:$0xff] }
  0xed   :  { %v1069_v48 = vld [vmem:[%s15462_s1 + $0x1f40] sm:$0xff]  ;;  %6518 = vmatpush2.bf16.msra.mxu0 %v10417_v40  ;;  %v10402_v12 = vcombine.high %v941_v44, %v945_v46  ;;  %v10401_v60 = vcombine.low %v941_v44, %v945_v46 }
  0xee   :  { %v1073_v49 = vld [vmem:[%s15462_s1 + $0x1f60] sm:$0xff]  ;;  %6519 = vmatprep.subr.bf16.mxu0 %v10410_v42  ;;  %v12138_v42 = vshrl.u32 %v1095_v30, 7 }
  0xef   :  { %6559 = vmatpush2.bf16.msra.mxu1 %v10545_v41  ;;  %v10530_v52 = vcombine.high %v1069_v48, %v1073_v49  ;;  %v933_v14 = vld [vmem:[%s15462_s1 + $0x1b00] sm:$0xff]  ;;  %v10529_v61 = vcombine.low %v1069_v48, %v1073_v49  ;;  %v126_v48 = vld [vmem:[%s15462_s1 + $0x1c8] sm:$0xff] }
  0xf0   :  { %6560 = vmatprep.subr.bf16.mxu1 %v10538_v43  ;;  %v937_v55 = vld [vmem:[%s15462_s1 + $0x1b20] sm:$0xff]  ;;  %v130_v49 = vld [vmem:[%s15462_s1 + $0x1e8] sm:$0xff] }
  0xf1   :  { %v1061_v58 = vld [vmem:[%s15462_s1 + $0x1f00] sm:$0xff]  ;;  %6520 = vmatpush2.bf16.msra.mxu0 %v10409_v50  ;;  %v10394_v62 = vcombine.high %v933_v14, %v937_v55  ;;  %v10393_v8 = vcombine.low %v933_v14, %v937_v55  ;;  %v254_v50 = vld [vmem:[%s15462_s1 + $0x5c8] sm:$0xff] }
  0xf2   :  { %v1065_v59 = vld [vmem:[%s15462_s1 + $0x1f20] sm:$0xff]  ;;  %6521 = vmatprep.subr.bf16.mxu0 %v10402_v12 }
  0xf3   :  { %6561 = vmatpush2.bf16.msra.mxu1 %v10537_v51  ;;  %v10522_v1 = vcombine.high %v1061_v58, %v1065_v59  ;;  %v925_v2 = vld [vmem:[%s15462_s1 + $0x1ac0] sm:$0xff]  ;;  %v10521_v9 = vcombine.low %v1061_v58, %v1065_v59  ;;  %v258_v51 = vld [vmem:[%s15462_s1 + $0x5e8] sm:$0xff]  ;;  %v9588_v58 = vcombine.high %v126_v48, %v130_v49 }
  0xf4   :  { %6562 = vmatprep.subr.bf16.mxu1 %v10530_v52  ;;  %v929_v4 = vld [vmem:[%s15462_s1 + $0x1ae0] sm:$0xff]  ;;  %v1097_v52 = vsub.s32 0, %v12138_v42  ;;  %v9716_v59 = vcombine.high %v254_v50, %v258_v51 }
  0xf5   :  { %v1053_v6 = vld [vmem:[%s15462_s1 + $0x1ec0] sm:$0xff]  ;;  %6522 = vmatpush2.bf16.msra.mxu0 %v10401_v60  ;;  %v10386_v10 = vcombine.high %v925_v2, %v929_v4  ;;  %v10385_v20 = vcombine.low %v925_v2, %v929_v4  ;;  %v1101_v60 = vsub.s32 1, %v12138_v42  ;;  %v246_v2 = vld [vmem:[%s15462_s1 + $0x588] sm:$0xff] }
  0xf6   :  { %v1057_v7 = vld [vmem:[%s15462_s1 + $0x1ee0] sm:$0xff]  ;;  %6523 = vmatprep.subr.bf16.mxu0 %v10394_v62  ;;  %v122_v62 = vld [vmem:[%s15462_s1 + $0x1a8] sm:$0xff] }
  0xf7   :  { %6563 = vmatpush2.bf16.msra.mxu1 %v10529_v61  ;;  %v10514_v11 = vcombine.high %v1053_v6, %v1057_v7  ;;  %v917_v13 = vld [vmem:[%s15462_s1 + $0x1a80] sm:$0xff]  ;;  %v10513_v22 = vcombine.low %v1053_v6, %v1057_v7  ;;  %v118_v61 = vld [vmem:[%s15462_s1 + $0x188] sm:$0xff]  ;;  %v12177_v7 = vpack.c.bf16 %v11936_v5, %v11936_v5 }
  0xf8   :  { %6564 = vmatprep.subr.bf16.mxu1 %v10522_v1  ;;  %v921_v15 = vld [vmem:[%s15462_s1 + $0x1aa0] sm:$0xff]  ;;  %v12165_v1 = vpack.c.bf16 %v11931_v3, %v11931_v3  ;;  %v250_v4 = vld [vmem:[%s15462_s1 + $0x5a8] sm:$0xff]  ;;  %v9715_v3 = vcombine.low %v254_v50, %v258_v51 }
  0xf9   :  { %v1045_v16 = vld [vmem:[%s15462_s1 + $0x1e80] sm:$0xff]  ;;  %6524 = vmatpush2.bf16.msra.mxu0 %v10393_v8  ;;  %v10378_v23 = vcombine.high %v917_v13, %v921_v15  ;;  %v10377_v29 = vcombine.low %v917_v13, %v921_v15  ;;  %v9587_v8 = vcombine.low %v126_v48, %v130_v49  ;;  %v110_v13 = vld [vmem:[%s15462_s1 + $0x148] sm:$0xff] }
  0xfa   :  { %v1049_v18 = vld [vmem:[%s15462_s1 + $0x1ea0] sm:$0xff]  ;;  %6525 = vmatprep.subr.bf16.mxu0 %v10386_v10  ;;  %v114_v15 = vld [vmem:[%s15462_s1 + $0x168] sm:$0xff] }
  0xfb   :  { %6565 = vmatpush2.bf16.msra.mxu1 %v10521_v9  ;;  %v10506_v24 = vcombine.high %v1045_v16, %v1049_v18  ;;  %v909_v32 = vld [vmem:[%s15462_s1 + $0x1a40] sm:$0xff]  ;;  %v10505_v54 = vcombine.low %v1045_v16, %v1049_v18  ;;  %v9580_v9 = vcombine.high %v118_v61, %v122_v62  ;;  %v238_v16 = vld [vmem:[%s15462_s1 + $0x548] sm:$0xff] }
  0xfc   :  { %6566 = vmatprep.subr.bf16.mxu1 %v10514_v11  ;;  %v913_v26 = vld [vmem:[%s15462_s1 + $0x1a60] sm:$0xff]  ;;  %v9708_v11 = vcombine.high %v246_v2, %v250_v4  ;;  %v242_v18 = vld [vmem:[%s15462_s1 + $0x568] sm:$0xff] }
  0xfd   :  { %v1037_v35 = vld [vmem:[%s15462_s1 + $0x1e40] sm:$0xff]  ;;  %6526 = vmatpush2.bf16.msra.mxu0 %v10385_v20  ;;  %v10370_v34 = vcombine.high %v909_v32, %v913_v26  ;;  %v10369_v41 = vcombine.low %v909_v32, %v913_v26  ;;  %v9707_v32 = vcombine.low %v246_v2, %v250_v4  ;;  %v9572_v26 = vcombine.high %v110_v13, %v114_v15  ;;  %v94_v50 = vld [vmem:[%s15462_s1 + $0xc8] sm:$0xff] }
  0xfe   :  { %v1041_v53 = vld [vmem:[%s15462_s1 + $0x1e60] sm:$0xff]  ;;  %6527 = vmatprep.subr.bf16.mxu0 %v10378_v23  ;;  %v9579_v23 = vcombine.low %v118_v61, %v122_v62  ;;  %v9700_v30 = vcombine.high %v238_v16, %v242_v18  ;;  %v98_v51 = vld [vmem:[%s15462_s1 + $0xe8] sm:$0xff] }
  0xff   :  { %6567 = vmatpush2.bf16.msra.mxu1 %v10513_v22  ;;  %v10498_v36 = vcombine.high %v1037_v35, %v1041_v53  ;;  %v901_v37 = vld [vmem:[%s15462_s1 + $0x1a00] sm:$0xff]  ;;  %v10497_v43 = vcombine.low %v1037_v35, %v1041_v53  ;;  %v86_v62 = vld [vmem:[%s15462_s1 + $0x88] sm:$0xff] }
 0x100   :  { %6568 = vmatprep.subr.bf16.mxu1 %v10506_v24  ;;  %v905_v38 = vld [vmem:[%s15462_s1 + $0x1a20] sm:$0xff]  ;;  %v90_v2 = vld [vmem:[%s15462_s1 + $0xa8] sm:$0xff] }
 0x101   :  { %v1029_v39 = vld [vmem:[%s15462_s1 + $0x1e00] sm:$0xff]  ;;  %6528 = vmatpush2.bf16.msra.mxu0 %v10377_v29  ;;  %v10362_v44 = vcombine.high %v901_v37, %v905_v38  ;;  %v10361_v12 = vcombine.low %v901_v37, %v905_v38  ;;  %v230_v37 = vld [vmem:[%s15462_s1 + $0x508] sm:$0xff] }
 0x102   :  { %v1033_v40 = vld [vmem:[%s15462_s1 + $0x1e20] sm:$0xff]  ;;  %6529 = vmatprep.subr.bf16.mxu0 %v10370_v34  ;;  %v106_v34 = vld [vmem:[%s15462_s1 + $0x128] sm:$0xff] }
 0x103   :  { %6569 = vmatpush2.bf16.msra.mxu1 %v10505_v54  ;;  %v10490_v46 = vcombine.high %v1029_v39, %v1033_v40  ;;  %v10489_v14 = vcombine.low %v1029_v39, %v1033_v40  ;;  %v1093_v55 = vld [vmem:[%s15463_s2] sm:$0xff]  ;;  %v102_v54 = vld [vmem:[%s15462_s1 + $0x108] sm:$0xff] }
 0x104   :  { %6570 = vmatprep.subr.bf16.mxu1 %v10498_v36  ;;  %v1098_v6 = vrot.slane %v1093_v55, %v1097_v52  ;;  %v1102_v10 = vrot.slane %v1093_v55, %v1101_v60  ;;  %v234_v38 = vld [vmem:[%s15462_s1 + $0x528] sm:$0xff]  ;;  %v9563_v55 = vcombine.low %v102_v54, %v106_v34 }
 0x105   :  { %6530 = vmatpush2.bf16.msra.mxu0 %v10369_v41  ;;  %v9571_v41 = vcombine.low %v110_v13, %v114_v15  ;;  %v9692_v49 = vcombine.high %v230_v37, %v234_v38  ;;  %v214_v4 = vld [vmem:[%s15462_s1 + $0x488] sm:$0xff] }
 0x106   :  { %6531 = vmatprep.subr.bf16.mxu0 %v10362_v44  ;;  %v6289_v5 = vpop.f32.mrf.mxu0  ;;  %v9699_v44 = vcombine.low %v238_v16, %v242_v18  ;;  %v82_v13 = vld [vmem:[%s15462_s1 + $0x68] sm:$0xff]  ;;  %v9547_v16 = vcombine.low %v86_v62, %v90_v2 }
 0x107   :  { %6571 = vmatpush2.bf16.msra.mxu1 %v10497_v43  ;;  %v6290_v20 = vadd.f32 %v6289_v5, %v1098_v6  ;;  %v218_v6 = vld [vmem:[%s15462_s1 + $0x4a8] sm:$0xff] }
 0x108   :  { %6572 = vmatprep.subr.bf16.mxu1 %v10490_v46  ;;  %v6330_v22 = vpop.f32.mrf.mxu1  ;;  %v6291_v24 = vpop.f32.mrf.mxu0  ;;  %v9564_v46 = vcombine.high %v102_v54, %v106_v34  ;;  %v206_v15 = vld [vmem:[%s15462_s1 + $0x448] sm:$0xff]  ;;  %v9675_v18 = vcombine.low %v214_v4, %v218_v6 }
 0x109   :  { %6532 = vmatpush2.bf16.msra.mxu0 %v10361_v12  ;;  %v12195_v35 = vadd.f32 %v6330_v22, %v6290_v20  ;;  %v6292_v53 = vadd.f32 %v6291_v24, %v1102_v10  ;;  %v222_v12 = vld [vmem:[%s15462_s1 + $0x4c8] sm:$0xff]  ;;  %v9676_v10 = vcombine.high %v214_v4, %v218_v6 }
 0x10a   :  { %6583 = vmatprep.subr.bf16.mxu0 %v9588_v58  ;;  %v6332_v29 = vpop.f32.mrf.mxu1  ;;  %v6293_v36 = vpop.f32.mrf.mxu0  ;;  %v9691_v58 = vcombine.low %v230_v37, %v234_v38  ;;  %v210_v5 = vld [vmem:[%s15462_s1 + $0x468] sm:$0xff] }
 0x10b   :  { %6573 = vmatpush2.bf16.msra.mxu1 %v10489_v14  ;;  %v12211_v39 = vadd.f32 %v6332_v29, %v6292_v53  ;;  %v226_v14 = vld [vmem:[%s15462_s1 + $0x4e8] sm:$0xff]  ;;  %v9668_v22 = vcombine.high %v206_v15, %v210_v5  ;;  %v9667_v29 = vcombine.low %v206_v15, %v210_v5 }
 0x10c   :  { %6624 = vmatprep.subr.bf16.mxu1 %v9716_v59  ;;  %6534 = vmatmul.mubr.bf16.vlgmr.msra.gmra.mxu0 %v12165_v1  ;;  %v6334_v40 = vpop.f32.mrf.mxu1  ;;  %v6294_v43 = vpop.f32.mrf.mxu0  ;;  %v9556_v59 = vcombine.high %v94_v50, %v98_v51  ;;  %v9684_v61 = vcombine.high %v222_v12, %v226_v14  ;;  %v74_v24 = vld [vmem:[%s15462_s1 + $0x28] sm:$0xff] }
 0x10d   :  { %6584 = vmatpush1.bf16.msra.mxu0 %v9587_v8  ;;  %6615 = vmatprep.mubr.bf16.mxu0 %v11370_v63  ;;  %v9555_v8 = vcombine.low %v94_v50, %v98_v51  ;;  %v190_v34 = vld [vmem:[%s15462_s1 + $0x3c8] sm:$0xff] }
 0x10e   :  { %6575 = vmatmul.mubr.bf16.vlgmr.msra.gmra.mxu1 %v12177_v7  ;;  %6585 = vmatprep.subr.bf16.mxu0 %v9580_v9  ;;  %v6335_v48 = vpop.f32.mrf.mxu1  ;;  %v9548_v9 = vcombine.high %v86_v62, %v90_v2  ;;  %v194_v36 = vld [vmem:[%s15462_s1 + $0x3e8] sm:$0xff] }
 0x10f   :  { %6625 = vmatpush1.bf16.msra.mxu1 %v9715_v3  ;;  %6656 = vmatprep.mubr.bf16.mxu1 %v11372_v0  ;;  %v9683_v3 = vcombine.low %v222_v12, %v226_v14  ;;  %v318_v37 = vld [vmem:[%s15462_s1 + $0x7c8] sm:$0xff]  ;;  %v9652_v43 = vcombine.high %v190_v34, %v194_v36  ;;  %v9651_v51 = vcombine.low %v190_v34, %v194_v36 }
 0x110   :  { %6626 = vmatprep.subr.bf16.mxu1 %v9708_v11  ;;  %v78_v11 = vld [vmem:[%s15462_s1 + $0x48] sm:$0xff] }
 0x111   :  { %6586 = vmatpush1.bf16.msra.mxu0 %v9579_v23  ;;  %v9540_v20 = vcombine.high %v78_v11, %v82_v13  ;;  %v70_v23 = vld [vmem:[%s15462_s1 + $0x8] sm:$0xff]  ;;  %v9539_v53 = vcombine.low %v78_v11, %v82_v13 }
 0x112   :  { %6587 = vmatprep.subr.bf16.mxu0 %v9572_v26  ;;  %v202_v26 = vld [vmem:[%s15462_s1 + $0x428] sm:$0xff]  ;;  %v9531_v40 = vcombine.low %v70_v23, %v74_v24 }
 0x113   :  { %6627 = vmatpush1.bf16.msra.mxu1 %v9707_v32  ;;  %v198_v32 = vld [vmem:[%s15462_s1 + $0x408] sm:$0xff] }
 0x114   :  { %6628 = vmatprep.subr.bf16.mxu1 %v9700_v30  ;;  %v9532_v30 = vcombine.high %v70_v23, %v74_v24  ;;  %v9660_v54 = vcombine.high %v198_v32, %v202_v26  ;;  %v322_v38 = vld [vmem:[%s15462_s1 + $0x7e8] sm:$0xff] }
 0x115   :  { %6588 = vmatpush1.bf16.msra.mxu0 %v9571_v41  ;;  %v9659_v41 = vcombine.low %v198_v32, %v202_v26  ;;  %v186_v48 = vld [vmem:[%s15462_s1 + $0x3a8] sm:$0xff]  ;;  %v9779_v12 = vcombine.low %v318_v37, %v322_v38 }
 0x116   :  { %6589 = vmatprep.subr.bf16.mxu0 %v9564_v46  ;;  %v182_v46 = vld [vmem:[%s15462_s1 + $0x388] sm:$0xff] }
 0x117   :  { %6629 = vmatpush1.bf16.msra.mxu1 %v9699_v44  ;;  %v9780_v44 = vcombine.high %v318_v37, %v322_v38  ;;  %v314_v50 = vld [vmem:[%s15462_s1 + $0x7a8] sm:$0xff]  ;;  %v9644_v14 = vcombine.high %v182_v46, %v186_v48  ;;  %v9643_v2 = vcombine.low %v182_v46, %v186_v48 }
 0x118   :  { %6630 = vmatprep.subr.bf16.mxu1 %v9692_v49  ;;  %v310_v49 = vld [vmem:[%s15462_s1 + $0x788] sm:$0xff] }
 0x119   :  { %6590 = vmatpush1.bf16.msra.mxu0 %v9563_v55  ;;  %v9772_v55 = vcombine.high %v310_v49, %v314_v50  ;;  %v306_v62 = vld [vmem:[%s15462_s1 + $0x768] sm:$0xff]  ;;  %v9771_v4 = vcombine.low %v310_v49, %v314_v50 }
 0x11a   :  { %6591 = vmatprep.subr.bf16.mxu0 %v9556_v59  ;;  %v178_v59 = vld [vmem:[%s15462_s1 + $0x368] sm:$0xff] }
 0x11b   :  { %6631 = vmatpush1.bf16.msra.mxu1 %v9691_v58  ;;  %v174_v58 = vld [vmem:[%s15462_s1 + $0x348] sm:$0xff] }
 0x11c   :  { %6632 = vmatprep.subr.bf16.mxu1 %v9684_v61  ;;  %v302_v61 = vld [vmem:[%s15462_s1 + $0x748] sm:$0xff]  ;;  %v9636_v6 = vcombine.high %v174_v58, %v178_v59  ;;  %v9635_v13 = vcombine.low %v174_v58, %v178_v59 }
 0x11d   :  { %6592 = vmatpush1.bf16.msra.mxu0 %v9555_v8  ;;  %v9764_v8 = vcombine.high %v302_v61, %v306_v62  ;;  %v298_v11 = vld [vmem:[%s15462_s1 + $0x728] sm:$0xff]  ;;  %v9763_v15 = vcombine.low %v302_v61, %v306_v62 }
 0x11e   :  { %6593 = vmatprep.subr.bf16.mxu0 %v9548_v9  ;;  %v170_v9 = vld [vmem:[%s15462_s1 + $0x328] sm:$0xff] }
 0x11f   :  { %6633 = vmatpush1.bf16.msra.mxu1 %v9683_v3  ;;  %v166_v3 = vld [vmem:[%s15462_s1 + $0x308] sm:$0xff] }
 0x120   :  { %6634 = vmatprep.subr.bf16.mxu1 %v9676_v10  ;;  %v294_v10 = vld [vmem:[%s15462_s1 + $0x708] sm:$0xff]  ;;  %v9628_v5 = vcombine.high %v166_v3, %v170_v9  ;;  %v9627_v24 = vcombine.low %v166_v3, %v170_v9 }
 0x121   :  { %6594 = vmatpush1.bf16.msra.mxu0 %v9547_v16  ;;  %v9756_v16 = vcombine.high %v294_v10, %v298_v11  ;;  %v290_v23 = vld [vmem:[%s15462_s1 + $0x6e8] sm:$0xff]  ;;  %v9755_v32 = vcombine.low %v294_v10, %v298_v11 }
 0x122   :  { %6595 = vmatprep.subr.bf16.mxu0 %v9540_v20  ;;  %v162_v20 = vld [vmem:[%s15462_s1 + $0x2e8] sm:$0xff] }
 0x123   :  { %6635 = vmatpush1.bf16.msra.mxu1 %v9675_v18  ;;  %v158_v18 = vld [vmem:[%s15462_s1 + $0x2c8] sm:$0xff] }
 0x124   :  { %6636 = vmatprep.subr.bf16.mxu1 %v9668_v22  ;;  %v286_v22 = vld [vmem:[%s15462_s1 + $0x6c8] sm:$0xff]  ;;  %v9620_v26 = vcombine.high %v158_v18, %v162_v20  ;;  %v9619_v36 = vcombine.low %v158_v18, %v162_v20 }
 0x125   :  { %6596 = vmatpush1.bf16.msra.mxu0 %v9539_v53  ;;  %v9748_v53 = vcombine.high %v286_v22, %v290_v23  ;;  %v282_v34 = vld [vmem:[%s15462_s1 + $0x6a8] sm:$0xff]  ;;  %v9747_v37 = vcombine.low %v286_v22, %v290_v23 }
 0x126   :  { %6597 = vmatprep.subr.bf16.mxu0 %v9532_v30  ;;  %v154_v30 = vld [vmem:[%s15462_s1 + $0x2a8] sm:$0xff] }
 0x127   :  { %6637 = vmatpush1.bf16.msra.mxu1 %v9667_v29  ;;  %v150_v29 = vld [vmem:[%s15462_s1 + $0x288] sm:$0xff] }
 0x128   :  { %6638 = vmatprep.subr.bf16.mxu1 %v9660_v54  ;;  %v278_v54 = vld [vmem:[%s15462_s1 + $0x688] sm:$0xff]  ;;  %v9612_v38 = vcombine.high %v150_v29, %v154_v30  ;;  %v9611_v48 = vcombine.low %v150_v29, %v154_v30 }
 0x129   :  { %6598 = vmatpush1.bf16.msra.mxu0 %v9531_v40  ;;  %v9740_v40 = vcombine.high %v278_v54, %v282_v34  ;;  %v274_v46 = vld [vmem:[%s15462_s1 + $0x668] sm:$0xff]  ;;  %v9739_v49 = vcombine.low %v278_v54, %v282_v34 }
 0x12a   :  { %6599 = vmatprep.subr.bf16.mxu0 %v9652_v43  ;;  %v146_v43 = vld [vmem:[%s15462_s1 + $0x268] sm:$0xff] }
 0x12b   :  { %6639 = vmatpush1.bf16.msra.mxu1 %v9659_v41  ;;  %v142_v41 = vld [vmem:[%s15462_s1 + $0x248] sm:$0xff] }
 0x12c   :  { %6640 = vmatprep.subr.bf16.mxu1 %v9780_v44  ;;  %v270_v44 = vld [vmem:[%s15462_s1 + $0x648] sm:$0xff]  ;;  %v9604_v50 = vcombine.high %v142_v41, %v146_v43  ;;  %v9603_v59 = vcombine.low %v142_v41, %v146_v43 }
 0x12d   :  { %6600 = vmatpush2.bf16.msra.mxu0 %v9651_v51  ;;  %v9732_v51 = vcombine.high %v270_v44, %v274_v46  ;;  %v266_v58 = vld [vmem:[%s15462_s1 + $0x628] sm:$0xff]  ;;  %v9731_v61 = vcombine.low %v270_v44, %v274_v46 }
 0x12e   :  { %6601 = vmatprep.subr.bf16.mxu0 %v9644_v14  ;;  %v138_v14 = vld [vmem:[%s15462_s1 + $0x228] sm:$0xff] }
 0x12f   :  { %6641 = vmatpush2.bf16.msra.mxu1 %v9779_v12  ;;  %v134_v12 = vld [vmem:[%s15462_s1 + $0x208] sm:$0xff] }
 0x130   :  { %6642 = vmatprep.subr.bf16.mxu1 %v9772_v55  ;;  %v262_v55 = vld [vmem:[%s15462_s1 + $0x608] sm:$0xff]  ;;  %v9596_v62 = vcombine.high %v134_v12, %v138_v14  ;;  %v9595_v9 = vcombine.low %v134_v12, %v138_v14 }
 0x131   :  { %6602 = vmatpush2.bf16.msra.mxu0 %v9643_v2  ;;  %v9724_v2 = vcombine.high %v262_v55, %v266_v58  ;;  %v514_v3 = vld [vmem:[%s15462_s1 + $0xde8] sm:$0xff]  ;;  %v9723_v10 = vcombine.low %v262_v55, %v266_v58 }
 0x132   :  { %6603 = vmatprep.subr.bf16.mxu0 %v9636_v6  ;;  %v386_v6 = vld [vmem:[%s15462_s1 + $0x9e8] sm:$0xff] }
 0x133   :  { %6643 = vmatpush2.bf16.msra.mxu1 %v9771_v4  ;;  %v382_v4 = vld [vmem:[%s15462_s1 + $0x9c8] sm:$0xff] }
 0x134   :  { %6644 = vmatprep.subr.bf16.mxu1 %v9764_v8  ;;  %v510_v8 = vld [vmem:[%s15462_s1 + $0xdc8] sm:$0xff]  ;;  %v9844_v11 = vcombine.high %v382_v4, %v386_v6  ;;  %v9843_v20 = vcombine.low %v382_v4, %v386_v6 }
 0x135   :  { %6604 = vmatpush2.bf16.msra.mxu0 %v9635_v13  ;;  %v9972_v13 = vcombine.high %v510_v8, %v514_v3  ;;  %v506_v18 = vld [vmem:[%s15462_s1 + $0xda8] sm:$0xff]  ;;  %v9971_v22 = vcombine.low %v510_v8, %v514_v3 }
 0x136   :  { %6605 = vmatprep.subr.bf16.mxu0 %v9628_v5  ;;  %v378_v5 = vld [vmem:[%s15462_s1 + $0x9a8] sm:$0xff] }
 0x137   :  { %6645 = vmatpush2.bf16.msra.mxu1 %v9763_v15  ;;  %v374_v15 = vld [vmem:[%s15462_s1 + $0x988] sm:$0xff] }
 0x138   :  { %6646 = vmatprep.subr.bf16.mxu1 %v9756_v16  ;;  %v502_v16 = vld [vmem:[%s15462_s1 + $0xd88] sm:$0xff]  ;;  %v9836_v23 = vcombine.high %v374_v15, %v378_v5 }
 0x139   :  { %6606 = vmatpush2.bf16.msra.mxu0 %v9627_v24  ;;  %v9964_v24 = vcombine.high %v502_v16, %v506_v18  ;;  %v494_v29 = vld [vmem:[%s15462_s1 + $0xd48] sm:$0xff] }
 0x13a   :  { %6607 = vmatprep.subr.bf16.mxu0 %v9620_v26  ;;  %v370_v26 = vld [vmem:[%s15462_s1 + $0x968] sm:$0xff] }
 0x13b   :  { %6647 = vmatpush2.bf16.msra.mxu1 %v9755_v32  ;;  %v366_v32 = vld [vmem:[%s15462_s1 + $0x948] sm:$0xff] }
 0x13c   :  { %6648 = vmatprep.subr.bf16.mxu1 %v9748_v53  ;;  %v498_v30 = vld [vmem:[%s15462_s1 + $0xd68] sm:$0xff]  ;;  %v9827_v14 = vcombine.low %v366_v32, %v370_v26 }
 0x13d   :  { %6608 = vmatpush2.bf16.msra.mxu0 %v9619_v36  ;;  %v9835_v36 = vcombine.low %v374_v15, %v378_v5  ;;  %v9956_v46 = vcombine.high %v494_v29, %v498_v30  ;;  %v9955_v58 = vcombine.low %v494_v29, %v498_v30  ;;  %v354_v4 = vld [vmem:[%s15462_s1 + $0x8e8] sm:$0xff] }
 0x13e   :  { %6609 = vmatprep.subr.bf16.mxu0 %v9612_v38  ;;  %v9963_v38 = vcombine.low %v502_v16, %v506_v18  ;;  %v478_v6 = vld [vmem:[%s15462_s1 + $0xcc8] sm:$0xff] }
 0x13f   :  { %6649 = vmatpush2.bf16.msra.mxu1 %v9747_v37  ;;  %v482_v8 = vld [vmem:[%s15462_s1 + $0xce8] sm:$0xff] }
 0x140   :  { %6650 = vmatprep.subr.bf16.mxu1 %v9740_v40  ;;  %v9828_v40 = vcombine.high %v366_v32, %v370_v26  ;;  %v346_v15 = vld [vmem:[%s15462_s1 + $0x8a8] sm:$0xff] }
 0x141   :  { %6610 = vmatpush2.bf16.msra.mxu0 %v9611_v48  ;;  %v362_v48 = vld [vmem:[%s15462_s1 + $0x928] sm:$0xff] }
 0x142   :  { %6611 = vmatprep.subr.bf16.mxu0 %v9604_v50  ;;  %v486_v50 = vld [vmem:[%s15462_s1 + $0xd08] sm:$0xff] }
 0x143   :  { %6651 = vmatpush2.bf16.msra.mxu1 %v9739_v49  ;;  %v470_v5 = vld [vmem:[%s15462_s1 + $0xc88] sm:$0xff] }
 0x144   :  { %6652 = vmatprep.subr.bf16.mxu1 %v9732_v51  ;;  %v474_v16 = vld [vmem:[%s15462_s1 + $0xca8] sm:$0xff] }
 0x145   :  { %6612 = vmatpush2.bf16.msra.mxu0 %v9603_v59  ;;  %v338_v32 = vld [vmem:[%s15462_s1 + $0x868] sm:$0xff]  ;;  %v9931_v30 = vcombine.low %v470_v5, %v474_v16 }
 0x146   :  { %6613 = vmatprep.subr.bf16.mxu0 %v9596_v62  ;;  %v6371_v53 = vpop.f32.mrf.mxu0  ;;  %v462_v26 = vld [vmem:[%s15462_s1 + $0xc48] sm:$0xff] }
 0x147   :  { %6653 = vmatpush2.bf16.msra.mxu1 %v9731_v61  ;;  %v6372_v54 = vadd.f32 %v6371_v53, %v12195_v35  ;;  %v358_v35 = vld [vmem:[%s15462_s1 + $0x908] sm:$0xff] }
 0x148   :  { %6654 = vmatprep.subr.bf16.mxu1 %v9724_v2  ;;  %v6412_v34 = vpop.f32.mrf.mxu1  ;;  %v6373_v37 = vpop.f32.mrf.mxu0  ;;  %v9820_v59 = vcombine.high %v358_v35, %v362_v48  ;;  %v350_v2 = vld [vmem:[%s15462_s1 + $0x8c8] sm:$0xff]  ;;  %v9819_v3 = vcombine.low %v358_v35, %v362_v48 }
 0x149   :  { %6614 = vmatpush2.bf16.msra.mxu0 %v9595_v9  ;;  %v12396_v41 = vadd.f32 %v6412_v34, %v6372_v54  ;;  %v6374_v43 = vadd.f32 %v6373_v37, %v12211_v39  ;;  %v490_v39 = vld [vmem:[%s15462_s1 + $0xd28] sm:$0xff]  ;;  %v9811_v18 = vcombine.low %v350_v2, %v354_v4 }
 0x14a   :  { %6665 = vmatprep.subr.bf16.mxu0 %v9844_v11  ;;  %v6414_v44 = vpop.f32.mrf.mxu1  ;;  %v6375_v49 = vpop.f32.mrf.mxu0  ;;  %v9948_v62 = vcombine.high %v486_v50, %v490_v39  ;;  %v9947_v9 = vcombine.low %v486_v50, %v490_v39  ;;  %v9940_v11 = vcombine.high %v478_v6, %v482_v8  ;;  %v466_v53 = vld [vmem:[%s15462_s1 + $0xc68] sm:$0xff] }
 0x14b   :  { %6655 = vmatpush2.bf16.msra.mxu1 %v9723_v10  ;;  %v12413_v51 = vadd.f32 %v6414_v44, %v6374_v43  ;;  %v9812_v10 = vcombine.high %v350_v2, %v354_v4  ;;  %v9924_v34 = vcombine.high %v462_v26, %v466_v53  ;;  %v330_v37 = vld [vmem:[%s15462_s1 + $0x828] sm:$0xff]  ;;  %v9923_v44 = vcombine.low %v462_v26, %v466_v53 }
 0x14c   :  { %6706 = vmatprep.subr.bf16.mxu1 %v9972_v13  ;;  %6616 = vmatmul.mubr.bf16.vlgmr.msra.gmra.mxu0 %v11504_v21  ;;  %v6416_v12 = vpop.f32.mrf.mxu1  ;;  %v6376_v55 = vpop.f32.mrf.mxu0  ;;  %v342_v13 = vld [vmem:[%s15462_s1 + $0x888] sm:$0xff] }
 0x14d   :  { %6666 = vmatpush1.bf16.msra.mxu0 %v9843_v20  ;;  %6697 = vmatprep.mubr.bf16.mxu0 %v11527_v31  ;;  %v9939_v20 = vcombine.low %v478_v6, %v482_v8  ;;  %v9803_v29 = vcombine.low %v342_v13, %v346_v15  ;;  %v446_v48 = vld [vmem:[%s15462_s1 + $0xbc8] sm:$0xff] }
 0x14e   :  { %6657 = vmatmul.mubr.bf16.vlgmr.msra.gmra.mxu1 %v11516_v25  ;;  %6667 = vmatprep.subr.bf16.mxu0 %v9836_v23  ;;  %v6417_v61 = vpop.f32.mrf.mxu1  ;;  %v9932_v23 = vcombine.high %v470_v5, %v474_v16  ;;  %v450_v49 = vld [vmem:[%s15462_s1 + $0xbe8] sm:$0xff] }
 0x14f   :  { %6707 = vmatpush1.bf16.msra.mxu1 %v9971_v22  ;;  %6738 = vmatprep.mubr.bf16.mxu1 %v11533_v33  ;;  %v9804_v22 = vcombine.high %v342_v13, %v346_v15  ;;  %v574_v50 = vld [vmem:[%s15462_s1 + $0xfc8] sm:$0xff]  ;;  %v9908_v55 = vcombine.high %v446_v48, %v450_v49  ;;  %v9907_v4 = vcombine.low %v446_v48, %v450_v49 }
 0x150   :  { %6708 = vmatprep.subr.bf16.mxu1 %v9964_v24  ;;  %v334_v24 = vld [vmem:[%s15462_s1 + $0x848] sm:$0xff] }
 0x151   :  { %6668 = vmatpush1.bf16.msra.mxu0 %v9835_v36  ;;  %v9796_v54 = vcombine.high %v334_v24, %v338_v32  ;;  %v326_v36 = vld [vmem:[%s15462_s1 + $0x808] sm:$0xff]  ;;  %v9795_v43 = vcombine.low %v334_v24, %v338_v32 }
 0x152   :  { %6669 = vmatprep.subr.bf16.mxu0 %v9828_v40  ;;  %v458_v40 = vld [vmem:[%s15462_s1 + $0xc28] sm:$0xff]  ;;  %v9787_v12 = vcombine.low %v326_v36, %v330_v37 }
 0x153   :  { %6709 = vmatpush1.bf16.msra.mxu1 %v9963_v38  ;;  %v454_v38 = vld [vmem:[%s15462_s1 + $0xc08] sm:$0xff] }
 0x154   :  { %6710 = vmatprep.subr.bf16.mxu1 %v9956_v46  ;;  %v9788_v46 = vcombine.high %v326_v36, %v330_v37  ;;  %v9916_v35 = vcombine.high %v454_v38, %v458_v40  ;;  %v578_v39 = vld [vmem:[%s15462_s1 + $0xfe8] sm:$0xff] }
 0x155   :  { %6670 = vmatpush1.bf16.msra.mxu0 %v9827_v14  ;;  %v9915_v14 = vcombine.low %v454_v38, %v458_v40  ;;  %v442_v61 = vld [vmem:[%s15462_s1 + $0xba8] sm:$0xff]  ;;  %v10035_v6 = vcombine.low %v574_v50, %v578_v39 }
 0x156   :  { %6671 = vmatprep.subr.bf16.mxu0 %v9820_v59  ;;  %v438_v59 = vld [vmem:[%s15462_s1 + $0xb88] sm:$0xff] }
 0x157   :  { %6711 = vmatpush1.bf16.msra.mxu1 %v9955_v58  ;;  %v10036_v58 = vcombine.high %v574_v50, %v578_v39  ;;  %v570_v2 = vld [vmem:[%s15462_s1 + $0xfa8] sm:$0xff]  ;;  %v9900_v8 = vcombine.high %v438_v59, %v442_v61  ;;  %v9899_v15 = vcombine.low %v438_v59, %v442_v61 }
 0x158   :  { %6712 = vmatprep.subr.bf16.mxu1 %v9948_v62  ;;  %v566_v62 = vld [vmem:[%s15462_s1 + $0xf88] sm:$0xff] }
 0x159   :  { %6672 = vmatpush1.bf16.msra.mxu0 %v9819_v3  ;;  %v10028_v3 = vcombine.high %v566_v62, %v570_v2  ;;  %v562_v13 = vld [vmem:[%s15462_s1 + $0xf68] sm:$0xff]  ;;  %v10027_v5 = vcombine.low %v566_v62, %v570_v2 }
 0x15a   :  { %6673 = vmatprep.subr.bf16.mxu0 %v9812_v10  ;;  %v434_v10 = vld [vmem:[%s15462_s1 + $0xb68] sm:$0xff] }
 0x15b   :  { %6713 = vmatpush1.bf16.msra.mxu1 %v9947_v9  ;;  %v430_v9 = vld [vmem:[%s15462_s1 + $0xb48] sm:$0xff] }
 0x15c   :  { %6714 = vmatprep.subr.bf16.mxu1 %v9940_v11  ;;  %v558_v11 = vld [vmem:[%s15462_s1 + $0xf48] sm:$0xff]  ;;  %v9892_v16 = vcombine.high %v430_v9, %v434_v10  ;;  %v9891_v32 = vcombine.low %v430_v9, %v434_v10 }
 0x15d   :  { %6674 = vmatpush1.bf16.msra.mxu0 %v9811_v18  ;;  %v10020_v18 = vcombine.high %v558_v11, %v562_v13  ;;  %v554_v24 = vld [vmem:[%s15462_s1 + $0xf28] sm:$0xff]  ;;  %v10019_v26 = vcombine.low %v558_v11, %v562_v13 }
 0x15e   :  { %6675 = vmatprep.subr.bf16.mxu0 %v9804_v22  ;;  %v426_v22 = vld [vmem:[%s15462_s1 + $0xb28] sm:$0xff] }
 0x15f   :  { %6715 = vmatpush1.bf16.msra.mxu1 %v9939_v20  ;;  %v422_v20 = vld [vmem:[%s15462_s1 + $0xb08] sm:$0xff] }
 0x160   :  { %6716 = vmatprep.subr.bf16.mxu1 %v9932_v23  ;;  %v550_v23 = vld [vmem:[%s15462_s1 + $0xf08] sm:$0xff]  ;;  %v9884_v53 = vcombine.high %v422_v20, %v426_v22  ;;  %v9883_v37 = vcombine.low %v422_v20, %v426_v22 }
 0x161   :  { %6676 = vmatpush1.bf16.msra.mxu0 %v9803_v29  ;;  %v10012_v29 = vcombine.high %v550_v23, %v554_v24  ;;  %v546_v36 = vld [vmem:[%s15462_s1 + $0xee8] sm:$0xff]  ;;  %v10011_v38 = vcombine.low %v550_v23, %v554_v24 }
 0x162   :  { %6677 = vmatprep.subr.bf16.mxu0 %v9796_v54  ;;  %v418_v54 = vld [vmem:[%s15462_s1 + $0xae8] sm:$0xff] }
 0x163   :  { %6717 = vmatpush1.bf16.msra.mxu1 %v9931_v30  ;;  %v414_v30 = vld [vmem:[%s15462_s1 + $0xac8] sm:$0xff] }
 0x164   :  { %6718 = vmatprep.subr.bf16.mxu1 %v9924_v34  ;;  %v542_v34 = vld [vmem:[%s15462_s1 + $0xec8] sm:$0xff]  ;;  %v9876_v40 = vcombine.high %v414_v30, %v418_v54  ;;  %v9875_v49 = vcombine.low %v414_v30, %v418_v54 }
 0x165   :  { %6678 = vmatpush1.bf16.msra.mxu0 %v9795_v43  ;;  %v10004_v43 = vcombine.high %v542_v34, %v546_v36  ;;  %v538_v48 = vld [vmem:[%s15462_s1 + $0xea8] sm:$0xff]  ;;  %v10003_v50 = vcombine.low %v542_v34, %v546_v36 }
 0x166   :  { %6679 = vmatprep.subr.bf16.mxu0 %v9788_v46  ;;  %v410_v46 = vld [vmem:[%s15462_s1 + $0xaa8] sm:$0xff] }
 0x167   :  { %6719 = vmatpush1.bf16.msra.mxu1 %v9923_v44  ;;  %v406_v44 = vld [vmem:[%s15462_s1 + $0xa88] sm:$0xff] }
 0x168   :  { %6720 = vmatprep.subr.bf16.mxu1 %v9916_v35  ;;  %v534_v35 = vld [vmem:[%s15462_s1 + $0xe88] sm:$0xff]  ;;  %v9868_v39 = vcombine.high %v406_v44, %v410_v46  ;;  %v9867_v61 = vcombine.low %v406_v44, %v410_v46 }
 0x169   :  { %6680 = vmatpush1.bf16.msra.mxu0 %v9787_v12  ;;  %v9996_v12 = vcombine.high %v534_v35, %v538_v48  ;;  %v530_v59 = vld [vmem:[%s15462_s1 + $0xe68] sm:$0xff]  ;;  %v9995_v62 = vcombine.low %v534_v35, %v538_v48 }
 0x16a   :  { %6681 = vmatprep.subr.bf16.mxu0 %v9908_v55  ;;  %v402_v55 = vld [vmem:[%s15462_s1 + $0xa68] sm:$0xff] }
 0x16b   :  { %6721 = vmatpush1.bf16.msra.mxu1 %v9915_v14  ;;  %v398_v14 = vld [vmem:[%s15462_s1 + $0xa48] sm:$0xff] }
 0x16c   :  { %6722 = vmatprep.subr.bf16.mxu1 %v10036_v58  ;;  %v526_v58 = vld [vmem:[%s15462_s1 + $0xe48] sm:$0xff]  ;;  %v9860_v2 = vcombine.high %v398_v14, %v402_v55  ;;  %v9859_v10 = vcombine.low %v398_v14, %v402_v55 }
 0x16d   :  { %6682 = vmatpush2.bf16.msra.mxu0 %v9907_v4  ;;  %v9988_v4 = vcombine.high %v526_v58, %v530_v59  ;;  %v522_v9 = vld [vmem:[%s15462_s1 + $0xe28] sm:$0xff]  ;;  %v9987_v11 = vcombine.low %v526_v58, %v530_v59 }
 0x16e   :  { %6683 = vmatprep.subr.bf16.mxu0 %v9900_v8  ;;  %v394_v8 = vld [vmem:[%s15462_s1 + $0xa28] sm:$0xff] }
 0x16f   :  { %6723 = vmatpush2.bf16.msra.mxu1 %v10035_v6  ;;  %v390_v6 = vld [vmem:[%s15462_s1 + $0xa08] sm:$0xff] }
 0x170   :  { %6724 = vmatprep.subr.bf16.mxu1 %v10028_v3  ;;  %v518_v3 = vld [vmem:[%s15462_s1 + $0xe08] sm:$0xff]  ;;  %v9852_v13 = vcombine.high %v390_v6, %v394_v8  ;;  %v9851_v22 = vcombine.low %v390_v6, %v394_v8 }
 0x171   :  { %6684 = vmatpush2.bf16.msra.mxu0 %v9899_v15  ;;  %v9980_v15 = vcombine.high %v518_v3, %v522_v9  ;;  %v770_v20 = vld [vmem:[%s15462_s1 + $0x15e8] sm:$0xff]  ;;  %v9979_v23 = vcombine.low %v518_v3, %v522_v9 }
 0x172   :  { %6685 = vmatprep.subr.bf16.mxu0 %v9892_v16  ;;  %v642_v16 = vld [vmem:[%s15462_s1 + $0x11e8] sm:$0xff] }
 0x173   :  { %6725 = vmatpush2.bf16.msra.mxu1 %v10027_v5  ;;  %v638_v5 = vld [vmem:[%s15462_s1 + $0x11c8] sm:$0xff] }
 0x174   :  { %6726 = vmatprep.subr.bf16.mxu1 %v10020_v18  ;;  %v766_v18 = vld [vmem:[%s15462_s1 + $0x15c8] sm:$0xff]  ;;  %v10100_v24 = vcombine.high %v638_v5, %v642_v16  ;;  %v10099_v54 = vcombine.low %v638_v5, %v642_v16 }
 0x175   :  { %6686 = vmatpush2.bf16.msra.mxu0 %v9891_v32  ;;  %v10228_v32 = vcombine.high %v766_v18, %v770_v20  ;;  %v762_v30 = vld [vmem:[%s15462_s1 + $0x15a8] sm:$0xff]  ;;  %v10227_v34 = vcombine.low %v766_v18, %v770_v20 }
 0x176   :  { %6687 = vmatprep.subr.bf16.mxu0 %v9884_v53  ;;  %v634_v53 = vld [vmem:[%s15462_s1 + $0x11a8] sm:$0xff] }
 0x177   :  { %6727 = vmatpush2.bf16.msra.mxu1 %v10019_v26  ;;  %v630_v26 = vld [vmem:[%s15462_s1 + $0x1188] sm:$0xff] }
 0x178   :  { %6728 = vmatprep.subr.bf16.mxu1 %v10012_v29  ;;  %v758_v29 = vld [vmem:[%s15462_s1 + $0x1588] sm:$0xff]  ;;  %v10092_v36 = vcombine.high %v630_v26, %v634_v53 }
 0x179   :  { %6688 = vmatpush2.bf16.msra.mxu0 %v9883_v37  ;;  %v10220_v37 = vcombine.high %v758_v29, %v762_v30  ;;  %v750_v44 = vld [vmem:[%s15462_s1 + $0x1548] sm:$0xff] }
 0x17a   :  { %6689 = vmatprep.subr.bf16.mxu0 %v9876_v40  ;;  %v626_v40 = vld [vmem:[%s15462_s1 + $0x1168] sm:$0xff] }
 0x17b   :  { %6729 = vmatpush2.bf16.msra.mxu1 %v10011_v38  ;;  %v622_v38 = vld [vmem:[%s15462_s1 + $0x1148] sm:$0xff] }
 0x17c   :  { %6730 = vmatprep.subr.bf16.mxu1 %v10004_v43  ;;  %v754_v46 = vld [vmem:[%s15462_s1 + $0x1568] sm:$0xff]  ;;  %v10083_v8 = vcombine.low %v622_v38, %v626_v40 }
 0x17d   :  { %6690 = vmatpush2.bf16.msra.mxu0 %v9875_v49  ;;  %v10091_v49 = vcombine.low %v630_v26, %v634_v53  ;;  %v10212_v59 = vcombine.high %v750_v44, %v754_v46  ;;  %v10211_v9 = vcombine.low %v750_v44, %v754_v46  ;;  %v610_v5 = vld [vmem:[%s15462_s1 + $0x10e8] sm:$0xff] }
 0x17e   :  { %6691 = vmatprep.subr.bf16.mxu0 %v9868_v39  ;;  %v10219_v39 = vcombine.low %v758_v29, %v762_v30  ;;  %v734_v16 = vld [vmem:[%s15462_s1 + $0x14c8] sm:$0xff] }
 0x17f   :  { %6731 = vmatpush2.bf16.msra.mxu1 %v10003_v50  ;;  %v738_v18 = vld [vmem:[%s15462_s1 + $0x14e8] sm:$0xff] }
 0x180   :  { %6732 = vmatprep.subr.bf16.mxu1 %v9996_v12  ;;  %v10084_v12 = vcombine.high %v622_v38, %v626_v40  ;;  %v602_v26 = vld [vmem:[%s15462_s1 + $0x10a8] sm:$0xff] }
 0x181   :  { %6692 = vmatpush2.bf16.msra.mxu0 %v9867_v61  ;;  %v618_v61 = vld [vmem:[%s15462_s1 + $0x1128] sm:$0xff] }
 0x182   :  { %6693 = vmatprep.subr.bf16.mxu0 %v9860_v2  ;;  %v742_v2 = vld [vmem:[%s15462_s1 + $0x1508] sm:$0xff] }
 0x183   :  { %6733 = vmatpush2.bf16.msra.mxu1 %v9995_v62  ;;  %v726_v53 = vld [vmem:[%s15462_s1 + $0x1488] sm:$0xff] }
 0x184   :  { %6734 = vmatprep.subr.bf16.mxu1 %v9988_v4  ;;  %v730_v29 = vld [vmem:[%s15462_s1 + $0x14a8] sm:$0xff] }
 0x185   :  { %6694 = vmatpush2.bf16.msra.mxu0 %v9859_v10  ;;  %v594_v38 = vld [vmem:[%s15462_s1 + $0x1068] sm:$0xff]  ;;  %v10187_v46 = vcombine.low %v726_v53, %v730_v29 }
 0x186   :  { %6695 = vmatprep.subr.bf16.mxu0 %v9852_v13  ;;  %v718_v40 = vld [vmem:[%s15462_s1 + $0x1448] sm:$0xff] }
 0x187   :  { %6735 = vmatpush2.bf16.msra.mxu1 %v9987_v11  ;;  %v6453_v43 = vpop.f32.mrf.mxu0 }
 0x188   :  { %6736 = vmatprep.subr.bf16.mxu1 %v9980_v15  ;;  %v6454_v35 = vadd.f32 %v6453_v43, %v12396_v41  ;;  %v614_v41 = vld [vmem:[%s15462_s1 + $0x1108] sm:$0xff] }
 0x189   :  { %6696 = vmatpush2.bf16.msra.mxu0 %v9851_v22  ;;  %v6494_v48 = vpop.f32.mrf.mxu1  ;;  %v6455_v50 = vpop.f32.mrf.mxu0  ;;  %v10076_v10 = vcombine.high %v614_v41, %v618_v61  ;;  %v606_v15 = vld [vmem:[%s15462_s1 + $0x10c8] sm:$0xff]  ;;  %v10075_v20 = vcombine.low %v614_v41, %v618_v61 }
 0x18a   :  { %6747 = vmatprep.subr.bf16.mxu0 %v10100_v24  ;;  %v12598_v14 = vadd.f32 %v6494_v48, %v6454_v35  ;;  %v6456_v55 = vadd.f32 %v6455_v50, %v12413_v51  ;;  %v746_v51 = vld [vmem:[%s15462_s1 + $0x1528] sm:$0xff]  ;;  %v10196_v24 = vcombine.high %v734_v16, %v738_v18  ;;  %v10067_v30 = vcombine.low %v606_v15, %v610_v5 }
 0x18b   :  { %6737 = vmatpush2.bf16.msra.mxu1 %v9979_v23  ;;  %v6496_v58 = vpop.f32.mrf.mxu1  ;;  %v6457_v62 = vpop.f32.mrf.mxu0  ;;  %v10204_v13 = vcombine.high %v742_v2, %v746_v51  ;;  %v10203_v22 = vcombine.low %v742_v2, %v746_v51  ;;  %v10068_v23 = vcombine.high %v606_v15, %v610_v5  ;;  %v722_v43 = vld [vmem:[%s15462_s1 + $0x1468] sm:$0xff] }
 0x18c   :  { %6788 = vmatprep.subr.bf16.mxu1 %v10228_v32  ;;  %6698 = vmatmul.mubr.bf16.vlgmr.msra.gmra.mxu0 %v11732_v45  ;;  %v12615_v4 = vadd.f32 %v6496_v58, %v6456_v55  ;;  %v598_v32 = vld [vmem:[%s15462_s1 + $0x1088] sm:$0xff]  ;;  %v10180_v48 = vcombine.high %v718_v40, %v722_v43  ;;  %v10179_v58 = vcombine.low %v718_v40, %v722_v43 }
 0x18d   :  { %6748 = vmatpush1.bf16.msra.mxu0 %v10099_v54  ;;  %6779 = vmatprep.mubr.bf16.mxu0 %v11752_v56  ;;  %v6498_v6 = vpop.f32.mrf.mxu1  ;;  %v6458_v3 = vpop.f32.mrf.mxu0  ;;  %v10195_v54 = vcombine.low %v734_v16, %v738_v18  ;;  %v10059_v44 = vcombine.low %v598_v32, %v602_v26  ;;  %v586_v50 = vld [vmem:[%s15462_s1 + $0x1028] sm:$0xff] }
 0x18e   :  { %6739 = vmatmul.mubr.bf16.vlgmr.msra.gmra.mxu1 %v11738_v47  ;;  %6749 = vmatprep.subr.bf16.mxu0 %v10092_v36  ;;  %v10188_v36 = vcombine.high %v726_v53, %v730_v29  ;;  %v702_v61 = vld [vmem:[%s15462_s1 + $0x13c8] sm:$0xff] }
 0x18f   :  { %6789 = vmatpush1.bf16.msra.mxu1 %v10227_v34  ;;  %6820 = vmatprep.mubr.bf16.mxu1 %v11755_v57  ;;  %v6499_v11 = vpop.f32.mrf.mxu1  ;;  %v10060_v34 = vcombine.high %v598_v32, %v602_v26  ;;  %v706_v62 = vld [vmem:[%s15462_s1 + $0x13e8] sm:$0xff] }
 0x190   :  { %6790 = vmatprep.subr.bf16.mxu1 %v10220_v37  ;;  %v590_v37 = vld [vmem:[%s15462_s1 + $0x1048] sm:$0xff]  ;;  %v10164_v3 = vcombine.high %v702_v61, %v706_v62  ;;  %v10163_v5 = vcombine.low %v702_v61, %v706_v62 }
 0x191   :  { %6750 = vmatpush1.bf16.msra.mxu0 %v10091_v49  ;;  %v10052_v35 = vcombine.high %v590_v37, %v594_v38  ;;  %v582_v49 = vld [vmem:[%s15462_s1 + $0x1008] sm:$0xff]  ;;  %v10051_v55 = vcombine.low %v590_v37, %v594_v38 }
 0x192   :  { %6751 = vmatprep.subr.bf16.mxu0 %v10084_v12  ;;  %v714_v12 = vld [vmem:[%s15462_s1 + $0x1428] sm:$0xff]  ;;  %v10043_v6 = vcombine.low %v582_v49, %v586_v50 }
 0x193   :  { %6791 = vmatpush1.bf16.msra.mxu1 %v10219_v39  ;;  %v710_v39 = vld [vmem:[%s15462_s1 + $0x1408] sm:$0xff] }
 0x194   :  { %6792 = vmatprep.subr.bf16.mxu1 %v10212_v59  ;;  %v10044_v59 = vcombine.high %v582_v49, %v586_v50  ;;  %v10172_v41 = vcombine.high %v710_v39, %v714_v12  ;;  %v830_v2 = vld [vmem:[%s15462_s1 + $0x17c8] sm:$0xff] }
 0x195   :  { %6752 = vmatpush1.bf16.msra.mxu0 %v10083_v8  ;;  %v834_v51 = vld [vmem:[%s15462_s1 + $0x17e8] sm:$0xff]  ;;  %v10171_v8 = vcombine.low %v710_v39, %v714_v12 }
 0x196   :  { %6753 = vmatprep.subr.bf16.mxu0 %v10076_v10  ;;  %v694_v10 = vld [vmem:[%s15462_s1 + $0x1388] sm:$0xff]  ;;  %v10291_v16 = vcombine.low %v830_v2, %v834_v51 }
 0x197   :  { %6793 = vmatpush1.bf16.msra.mxu1 %v10211_v9  ;;  %v10292_v9 = vcombine.high %v830_v2, %v834_v51  ;;  %v698_v11 = vld [vmem:[%s15462_s1 + $0x13a8] sm:$0xff] }
 0x198   :  { %6794 = vmatprep.subr.bf16.mxu1 %v10204_v13  ;;  %v822_v13 = vld [vmem:[%s15462_s1 + $0x1788] sm:$0xff]  ;;  %v10156_v18 = vcombine.high %v694_v10, %v698_v11  ;;  %v10155_v26 = vcombine.low %v694_v10, %v698_v11 }
 0x199   :  { %6754 = vmatpush1.bf16.msra.mxu0 %v10075_v20  ;;  %v826_v15 = vld [vmem:[%s15462_s1 + $0x17a8] sm:$0xff] }
 0x19a   :  { %6755 = vmatprep.subr.bf16.mxu0 %v10068_v23  ;;  %v10284_v20 = vcombine.high %v822_v13, %v826_v15  ;;  %v690_v23 = vld [vmem:[%s15462_s1 + $0x1368] sm:$0xff]  ;;  %v10283_v53 = vcombine.low %v822_v13, %v826_v15 }
 0x19b   :  { %6795 = vmatpush1.bf16.msra.mxu1 %v10203_v22  ;;  %v686_v22 = vld [vmem:[%s15462_s1 + $0x1348] sm:$0xff] }
 0x19c   :  { %6796 = vmatprep.subr.bf16.mxu1 %v10196_v24  ;;  %v814_v24 = vld [vmem:[%s15462_s1 + $0x1748] sm:$0xff]  ;;  %v10148_v29 = vcombine.high %v686_v22, %v690_v23  ;;  %v10147_v38 = vcombine.low %v686_v22, %v690_v23 }
 0x19d   :  { %6756 = vmatpush1.bf16.msra.mxu0 %v10067_v30  ;;  %v818_v32 = vld [vmem:[%s15462_s1 + $0x1768] sm:$0xff] }
 0x19e   :  { %6757 = vmatprep.subr.bf16.mxu0 %v10060_v34  ;;  %v10276_v30 = vcombine.high %v814_v24, %v818_v32  ;;  %v682_v34 = vld [vmem:[%s15462_s1 + $0x1328] sm:$0xff]  ;;  %v10275_v40 = vcombine.low %v814_v24, %v818_v32 }
 0x19f   :  { %6797 = vmatpush1.bf16.msra.mxu1 %v10195_v54  ;;  %v678_v54 = vld [vmem:[%s15462_s1 + $0x1308] sm:$0xff] }
 0x1a0   :  { %6798 = vmatprep.subr.bf16.mxu1 %v10188_v36  ;;  %v806_v36 = vld [vmem:[%s15462_s1 + $0x1708] sm:$0xff]  ;;  %v10140_v43 = vcombine.high %v678_v54, %v682_v34  ;;  %v10139_v50 = vcombine.low %v678_v54, %v682_v34 }
 0x1a1   :  { %6758 = vmatpush1.bf16.msra.mxu0 %v10059_v44  ;;  %v810_v37 = vld [vmem:[%s15462_s1 + $0x1728] sm:$0xff] }
 0x1a2   :  { %6759 = vmatprep.subr.bf16.mxu0 %v10052_v35  ;;  %v10268_v44 = vcombine.high %v806_v36, %v810_v37  ;;  %v674_v35 = vld [vmem:[%s15462_s1 + $0x12e8] sm:$0xff]  ;;  %v10267_v39 = vcombine.low %v806_v36, %v810_v37 }
 0x1a3   :  { %6799 = vmatpush1.bf16.msra.mxu1 %v10187_v46  ;;  %v670_v46 = vld [vmem:[%s15462_s1 + $0x12c8] sm:$0xff] }
 0x1a4   :  { %6800 = vmatprep.subr.bf16.mxu1 %v10180_v48  ;;  %v798_v48 = vld [vmem:[%s15462_s1 + $0x16c8] sm:$0xff]  ;;  %v10132_v12 = vcombine.high %v670_v46, %v674_v35  ;;  %v10131_v62 = vcombine.low %v670_v46, %v674_v35 }
 0x1a5   :  { %6760 = vmatpush1.bf16.msra.mxu0 %v10051_v55  ;;  %v802_v49 = vld [vmem:[%s15462_s1 + $0x16e8] sm:$0xff] }
 0x1a6   :  { %6761 = vmatprep.subr.bf16.mxu0 %v10044_v59  ;;  %v10260_v55 = vcombine.high %v798_v48, %v802_v49  ;;  %v666_v59 = vld [vmem:[%s15462_s1 + $0x12a8] sm:$0xff]  ;;  %v10259_v2 = vcombine.low %v798_v48, %v802_v49 }
 0x1a7   :  { %6801 = vmatpush1.bf16.msra.mxu1 %v10179_v58  ;;  %v662_v58 = vld [vmem:[%s15462_s1 + $0x1288] sm:$0xff] }
 0x1a8   :  { %6802 = vmatprep.subr.bf16.mxu1 %v10172_v41  ;;  %v790_v41 = vld [vmem:[%s15462_s1 + $0x1688] sm:$0xff]  ;;  %v10124_v51 = vcombine.high %v662_v58, %v666_v59  ;;  %v10123_v11 = vcombine.low %v662_v58, %v666_v59 }
 0x1a9   :  { %6762 = vmatpush1.bf16.msra.mxu0 %v10043_v6  ;;  %v794_v61 = vld [vmem:[%s15462_s1 + $0x16a8] sm:$0xff] }
 0x1aa   :  { %6763 = vmatprep.subr.bf16.mxu0 %v10164_v3  ;;  %v10252_v6 = vcombine.high %v790_v41, %v794_v61  ;;  %v658_v3 = vld [vmem:[%s15462_s1 + $0x1268] sm:$0xff]  ;;  %v10251_v13 = vcombine.low %v790_v41, %v794_v61 }
 0x1ab   :  { %6803 = vmatpush1.bf16.msra.mxu1 %v10171_v8  ;;  %v654_v8 = vld [vmem:[%s15462_s1 + $0x1248] sm:$0xff] }
 0x1ac   :  { %6804 = vmatprep.subr.bf16.mxu1 %v10292_v9  ;;  %v782_v9 = vld [vmem:[%s15462_s1 + $0x1648] sm:$0xff]  ;;  %v10116_v15 = vcombine.high %v654_v8, %v658_v3  ;;  %v10115_v23 = vcombine.low %v654_v8, %v658_v3 }
 0x1ad   :  { %6764 = vmatpush2.bf16.msra.mxu0 %v10163_v5  ;;  %v786_v10 = vld [vmem:[%s15462_s1 + $0x1668] sm:$0xff] }
 0x1ae   :  { %6765 = vmatprep.subr.bf16.mxu0 %v10156_v18  ;;  %v10244_v5 = vcombine.high %v782_v9, %v786_v10  ;;  %v650_v18 = vld [vmem:[%s15462_s1 + $0x1228] sm:$0xff]  ;;  %v10243_v24 = vcombine.low %v782_v9, %v786_v10 }
 0x1af   :  { %6805 = vmatpush2.bf16.msra.mxu1 %v10291_v16  ;;  %v646_v16 = vld [vmem:[%s15462_s1 + $0x1208] sm:$0xff] }
 0x1b0   :  { %6806 = vmatprep.subr.bf16.mxu1 %v10284_v20  ;;  %v774_v20 = vld [vmem:[%s15462_s1 + $0x1608] sm:$0xff]  ;;  %v10108_v32 = vcombine.high %v646_v16, %v650_v18  ;;  %v10107_v34 = vcombine.low %v646_v16, %v650_v18 }
 0x1b1   :  { %6766 = vmatpush2.bf16.msra.mxu0 %v10155_v26  ;;  %v778_v22 = vld [vmem:[%s15462_s1 + $0x1628] sm:$0xff] }
 0x1b2   :  { %6767 = vmatprep.subr.bf16.mxu0 %v10148_v29  ;;  %v10236_v26 = vcombine.high %v774_v20, %v778_v22  ;;  %v898_v29 = vld [vmem:[%s15462_s1 + $0x19e8] sm:$0xff]  ;;  %v10235_v36 = vcombine.low %v774_v20, %v778_v22 }
 0x1b3   :  { %6807 = vmatpush2.bf16.msra.mxu1 %v10283_v53  ;;  %v894_v53 = vld [vmem:[%s15462_s1 + $0x19c8] sm:$0xff] }
 0x1b4   :  { %6808 = vmatprep.subr.bf16.mxu1 %v10276_v30  ;;  %v1022_v30 = vld [vmem:[%s15462_s1 + $0x1dc8] sm:$0xff]  ;;  %v10356_v37 = vcombine.high %v894_v53, %v898_v29  ;;  %v10355_v35 = vcombine.low %v894_v53, %v898_v29 }
 0x1b5   :  { %6768 = vmatpush2.bf16.msra.mxu0 %v10147_v38  ;;  %v1026_v54 = vld [vmem:[%s15462_s1 + $0x1de8] sm:$0xff] }
 0x1b6   :  { %6769 = vmatprep.subr.bf16.mxu0 %v10140_v43  ;;  %v10484_v38 = vcombine.high %v1022_v30, %v1026_v54  ;;  %v890_v43 = vld [vmem:[%s15462_s1 + $0x19a8] sm:$0xff]  ;;  %v10483_v48 = vcombine.low %v1022_v30, %v1026_v54 }
 0x1b7   :  { %6809 = vmatpush2.bf16.msra.mxu1 %v10275_v40  ;;  %v886_v40 = vld [vmem:[%s15462_s1 + $0x1988] sm:$0xff] }
 0x1b8   :  { %6810 = vmatprep.subr.bf16.mxu1 %v10268_v44  ;;  %v1014_v44 = vld [vmem:[%s15462_s1 + $0x1d88] sm:$0xff]  ;;  %v10348_v49 = vcombine.high %v886_v40, %v890_v43 }
 0x1b9   :  { %6770 = vmatpush2.bf16.msra.mxu0 %v10139_v50  ;;  %v1018_v46 = vld [vmem:[%s15462_s1 + $0x1da8] sm:$0xff] }
 0x1ba   :  { %6771 = vmatprep.subr.bf16.mxu0 %v10132_v12  ;;  %v10476_v50 = vcombine.high %v1014_v44, %v1018_v46  ;;  %v882_v12 = vld [vmem:[%s15462_s1 + $0x1968] sm:$0xff] }
 0x1bb   :  { %6811 = vmatpush2.bf16.msra.mxu1 %v10267_v39  ;;  %v878_v39 = vld [vmem:[%s15462_s1 + $0x1948] sm:$0xff] }
 0x1bc   :  { %6812 = vmatprep.subr.bf16.mxu1 %v10260_v55  ;;  %v1006_v58 = vld [vmem:[%s15462_s1 + $0x1d48] sm:$0xff]  ;;  %v10339_v18 = vcombine.low %v878_v39, %v882_v12 }
 0x1bd   :  { %6772 = vmatpush2.bf16.msra.mxu0 %v10131_v62  ;;  %v1010_v59 = vld [vmem:[%s15462_s1 + $0x1d68] sm:$0xff]  ;;  %v10347_v62 = vcombine.low %v886_v40, %v890_v43 }
 0x1be   :  { %6773 = vmatprep.subr.bf16.mxu0 %v10124_v51  ;;  %v10475_v51 = vcombine.low %v1014_v44, %v1018_v46  ;;  %v10468_v10 = vcombine.high %v1006_v58, %v1010_v59  ;;  %v10467_v22 = vcombine.low %v1006_v58, %v1010_v59  ;;  %v866_v53 = vld [vmem:[%s15462_s1 + $0x18e8] sm:$0xff] }
 0x1bf   :  { %6813 = vmatpush2.bf16.msra.mxu1 %v10259_v2  ;;  %v990_v29 = vld [vmem:[%s15462_s1 + $0x1cc8] sm:$0xff] }
 0x1c0   :  { %6814 = vmatprep.subr.bf16.mxu1 %v10252_v6  ;;  %v10340_v6 = vcombine.high %v878_v39, %v882_v12  ;;  %v994_v30 = vld [vmem:[%s15462_s1 + $0x1ce8] sm:$0xff] }
 0x1c1   :  { %6774 = vmatpush2.bf16.msra.mxu0 %v10123_v11  ;;  %v874_v11 = vld [vmem:[%s15462_s1 + $0x1928] sm:$0xff] }
 0x1c2   :  { %6775 = vmatprep.subr.bf16.mxu0 %v10116_v15  ;;  %v998_v15 = vld [vmem:[%s15462_s1 + $0x1d08] sm:$0xff] }
 0x1c3   :  { %6815 = vmatpush2.bf16.msra.mxu1 %v10251_v13  ;;  %v858_v40 = vld [vmem:[%s15462_s1 + $0x18a8] sm:$0xff] }
 0x1c4   :  { %6816 = vmatprep.subr.bf16.mxu1 %v10244_v5  ;;  %v982_v43 = vld [vmem:[%s15462_s1 + $0x1c88] sm:$0xff] }
 0x1c5   :  { %6776 = vmatpush2.bf16.msra.mxu0 %v10115_v23  ;;  %v986_v44 = vld [vmem:[%s15462_s1 + $0x1ca8] sm:$0xff] }
 0x1c6   :  { %6777 = vmatprep.subr.bf16.mxu0 %v10108_v32  ;;  %v850_v39 = vld [vmem:[%s15462_s1 + $0x1868] sm:$0xff]  ;;  %v10443_v59 = vcombine.low %v982_v43, %v986_v44 }
 0x1c7   :  { %6817 = vmatpush2.bf16.msra.mxu1 %v10243_v24  ;;  %v974_v12 = vld [vmem:[%s15462_s1 + $0x1c48] sm:$0xff] }
 0x1c8   :  { %6818 = vmatprep.subr.bf16.mxu1 %v10236_v26  ;;  %v862_v26 = vld [vmem:[%s15462_s1 + $0x18c8] sm:$0xff] }
 0x1c9   :  { %6778 = vmatpush2.bf16.msra.mxu0 %v10107_v34  ;;  %v10323_v46 = vcombine.low %v862_v26, %v866_v53 }
 0x1ca   :  { %6829 = vmatprep.subr.bf16.mxu0 %v10356_v37  ;;  %v10452_v37 = vcombine.high %v990_v29, %v994_v30 }
 0x1cb   :  { %6819 = vmatpush2.bf16.msra.mxu1 %v10235_v36  ;;  %v10324_v36 = vcombine.high %v862_v26, %v866_v53  ;;  %v1082_v26 = vld [vmem:[%s15462_s1 + $0x1fa8] sm:$0xff] }
 0x1cc   :  { %6870 = vmatprep.subr.bf16.mxu1 %v10484_v38  ;;  %v6535_v55 = vpop.f32.mrf.mxu0  ;;  %6780 = vmatmul.mubr.bf16.vlgmr.msra.gmra.mxu0 %v11954_v17  ;;  %v854_v38 = vld [vmem:[%s15462_s1 + $0x1888] sm:$0xff] }
 0x1cd   :  { %v6536_v41 = vadd.f32 %v6535_v55, %v12598_v14  ;;  %6830 = vmatpush1.bf16.msra.mxu0 %v10355_v35  ;;  %v870_v14 = vld [vmem:[%s15462_s1 + $0x1908] sm:$0xff]  ;;  %6861 = vmatprep.mubr.bf16.mxu0 %v11974_v27  ;;  %v10451_v35 = vcombine.low %v990_v29, %v994_v30  ;;  %v10315_v58 = vcombine.low %v854_v38, %v858_v40 }
 0x1ce   :  { %v6576_v61 = vpop.f32.mrf.mxu1  ;;  %6821 = vmatmul.mubr.bf16.vlgmr.msra.gmra.mxu1 %v11960_v19  ;;  %v6537_v2 = vpop.f32.mrf.mxu0  ;;  %6831 = vmatprep.subr.bf16.mxu0 %v10348_v49  ;;  %v10332_v23 = vcombine.high %v870_v14, %v874_v11  ;;  %v10331_v54 = vcombine.low %v870_v14, %v874_v11  ;;  %v10444_v49 = vcombine.high %v982_v43, %v986_v44  ;;  %v978_v55 = vld [vmem:[%s15462_s1 + $0x1c68] sm:$0xff] }
 0x1cf   :  { %6871 = vmatpush1.bf16.msra.mxu1 %v10483_v48  ;;  %v12800_v8 = vadd.f32 %v6576_v61, %v6536_v41  ;;  %v6538_v3 = vadd.f32 %v6537_v2, %v12615_v4  ;;  %v1002_v4 = vld [vmem:[%s15462_s1 + $0x1d28] sm:$0xff]  ;;  %6902 = vmatprep.mubr.bf16.mxu1 %v11977_v28  ;;  %v10316_v48 = vcombine.high %v854_v38, %v858_v40 }
 0x1d0   :  { %v6578_v9 = vpop.f32.mrf.mxu1  ;;  %6872 = vmatprep.subr.bf16.mxu1 %v10476_v50  ;;  %v6539_v13 = vpop.f32.mrf.mxu0  ;;  %v10460_v32 = vcombine.high %v998_v15, %v1002_v4  ;;  %v10459_v34 = vcombine.low %v998_v15, %v1002_v4  ;;  %v846_v50 = vld [vmem:[%s15462_s1 + $0x1848] sm:$0xff]  ;;  %v10436_v61 = vcombine.high %v974_v12, %v978_v55 }
 0x1d1   :  { %v12817_v5 = vadd.f32 %v6578_v9, %v6538_v3  ;;  %6832 = vmatpush1.bf16.msra.mxu0 %v10347_v62  ;;  %v10308_v41 = vcombine.high %v846_v50, %v850_v39  ;;  %v838_v62 = vld [vmem:[%s15462_s1 + $0x1808] sm:$0xff]  ;;  %v10307_v3 = vcombine.low %v846_v50, %v850_v39  ;;  %v10435_v9 = vcombine.low %v974_v12, %v978_v55 }
 0x1d2   :  { %v6580_v16 = vpop.f32.mrf.mxu1  ;;  %v6540_v20 = vpop.f32.mrf.mxu0  ;;  %6833 = vmatprep.subr.bf16.mxu0 %v10340_v6  ;;  %v842_v2 = vld [vmem:[%s15462_s1 + $0x1828] sm:$0xff]  ;;  %vm7567_vm2 = vcmp.ge.f32.partialorder %v12800_v8, 0.0 }
 0x1d3   :  { %6873 = vmatpush1.bf16.msra.mxu1 %v10475_v51  ;;  %v966_v51 = vld [vmem:[%s15462_s1 + $0x1c08] sm:$0xff]  ;;  %v10299_v16 = vcombine.low %v838_v62, %v842_v2  ;;  %vm7568_vm0 = vcmp.ge.f32.partialorder %v12817_v5, 0.0 }
 0x1d4   :  { %v6581_v24 = vpop.f32.mrf.mxu1  ;;  %6874 = vmatprep.subr.bf16.mxu1 %v10468_v10  ;;  %v970_v6 = vld [vmem:[%s15462_s1 + $0x1c28] sm:$0xff]  ;;  %v10300_v10 = vcombine.high %v838_v62, %v842_v2 }
 0x1d5   :  { %6834 = vmatpush1.bf16.msra.mxu0 %v10339_v18  ;;  %v10428_v14 = vcombine.high %v966_v51, %v970_v6  ;;  %v958_v11 = vld [vmem:[%s15462_s1 + $0x1bc8] sm:$0xff]  ;;  %v10427_v18 = vcombine.low %v966_v51, %v970_v6 }
 0x1d6   :  { %6835 = vmatprep.subr.bf16.mxu0 %v10332_v23  ;;  %v962_v13 = vld [vmem:[%s15462_s1 + $0x1be8] sm:$0xff] }
 0x1d7   :  { %6875 = vmatpush1.bf16.msra.mxu1 %v10467_v22  ;;  %v1086_v15 = vld [vmem:[%s15462_s1 + $0x1fc8] sm:$0xff]  ;;  %v10420_v20 = vcombine.high %v958_v11, %v962_v13  ;;  %v10419_v53 = vcombine.low %v958_v11, %v962_v13 }
 0x1d8   :  { %6876 = vmatprep.subr.bf16.mxu1 %v10460_v32  ;;  %v1090_v4 = vld [vmem:[%s15462_s1 + $0x1fe8] sm:$0xff] }
 0x1d9   :  { %6836 = vmatpush1.bf16.msra.mxu0 %v10331_v54  ;;  %v10548_v22 = vcombine.high %v1086_v15, %v1090_v4  ;;  %v950_v23 = vld [vmem:[%s15462_s1 + $0x1b88] sm:$0xff]  ;;  %v10547_v29 = vcombine.low %v1086_v15, %v1090_v4 }
 0x1da   :  { %6837 = vmatprep.subr.bf16.mxu0 %v10324_v36  ;;  %v954_v24 = vld [vmem:[%s15462_s1 + $0x1ba8] sm:$0xff] }
 0x1db   :  { %6877 = vmatpush1.bf16.msra.mxu1 %v10459_v34  ;;  %v1078_v32 = vld [vmem:[%s15462_s1 + $0x1f88] sm:$0xff]  ;;  %v10412_v30 = vcombine.high %v950_v23, %v954_v24  ;;  %v10411_v40 = vcombine.low %v950_v23, %v954_v24 }
 0x1dc   :  { %6878 = vmatprep.subr.bf16.mxu1 %v10452_v37  ;;  %v10540_v54 = vcombine.high %v1078_v32, %v1082_v26  ;;  %v942_v34 = vld [vmem:[%s15462_s1 + $0x1b48] sm:$0xff]  ;;  %v10539_v43 = vcombine.low %v1078_v32, %v1082_v26 }
 0x1dd   :  { %6838 = vmatpush1.bf16.msra.mxu0 %v10323_v46  ;;  %v946_v36 = vld [vmem:[%s15462_s1 + $0x1b68] sm:$0xff] }
 0x1de   :  { %6839 = vmatprep.subr.bf16.mxu0 %v10316_v48  ;;  %v1070_v37 = vld [vmem:[%s15462_s1 + $0x1f48] sm:$0xff]  ;;  %v10404_v44 = vcombine.high %v942_v34, %v946_v36  ;;  %v10403_v39 = vcombine.low %v942_v34, %v946_v36 }
 0x1df   :  { %6879 = vmatpush1.bf16.msra.mxu1 %v10451_v35  ;;  %v1074_v38 = vld [vmem:[%s15462_s1 + $0x1f68] sm:$0xff] }
 0x1e0   :  { %6880 = vmatprep.subr.bf16.mxu1 %v10444_v49  ;;  %v10532_v46 = vcombine.high %v1070_v37, %v1074_v38  ;;  %v934_v35 = vld [vmem:[%s15462_s1 + $0x1b08] sm:$0xff]  ;;  %v10531_v12 = vcombine.low %v1070_v37, %v1074_v38 }
 0x1e1   :  { %6840 = vmatpush1.bf16.msra.mxu0 %v10315_v58  ;;  %v938_v48 = vld [vmem:[%s15462_s1 + $0x1b28] sm:$0xff] }
 0x1e2   :  { %6841 = vmatprep.subr.bf16.mxu0 %v10308_v41  ;;  %v1062_v49 = vld [vmem:[%s15462_s1 + $0x1f08] sm:$0xff]  ;;  %v10396_v55 = vcombine.high %v934_v35, %v938_v48  ;;  %v10395_v2 = vcombine.low %v934_v35, %v938_v48  ;;  %v259_v35 = vld [vmem:[%s15462_s1 + $0x5f0] sm:$0xff] }
 0x1e3   :  { %6881 = vmatpush1.bf16.msra.mxu1 %v10443_v59  ;;  %v1066_v50 = vld [vmem:[%s15462_s1 + $0x1f28] sm:$0xff] }
 0x1e4   :  { %6882 = vmatprep.subr.bf16.mxu1 %v10436_v61  ;;  %v10524_v58 = vcombine.high %v1062_v49, %v1066_v50  ;;  %v926_v59 = vld [vmem:[%s15462_s1 + $0x1ac8] sm:$0xff]  ;;  %v10523_v51 = vcombine.low %v1062_v49, %v1066_v50  ;;  %v1105_v49 = vsub.s32 2, %v12138_v42 }
 0x1e5   :  { %6842 = vmatpush1.bf16.msra.mxu0 %v10307_v3  ;;  %v930_v41 = vld [vmem:[%s15462_s1 + $0x1ae8] sm:$0xff] }
 0x1e6   :  { %6843 = vmatprep.subr.bf16.mxu0 %v10300_v10  ;;  %v1054_v61 = vld [vmem:[%s15462_s1 + $0x1ec8] sm:$0xff]  ;;  %v10388_v6 = vcombine.high %v926_v59, %v930_v41  ;;  %v10387_v13 = vcombine.low %v926_v59, %v930_v41  ;;  %v123_v59 = vld [vmem:[%s15462_s1 + $0x1b0] sm:$0xff] }
 0x1e7   :  { %6883 = vmatpush1.bf16.msra.mxu1 %v10435_v9  ;;  %v1058_v62 = vld [vmem:[%s15462_s1 + $0x1ee8] sm:$0xff]  ;;  %v247_v41 = vld [vmem:[%s15462_s1 + $0x590] sm:$0xff] }
 0x1e8   :  { %6884 = vmatprep.subr.bf16.mxu1 %v10428_v14  ;;  %v10516_v3 = vcombine.high %v1054_v61, %v1058_v62  ;;  %v918_v9 = vld [vmem:[%s15462_s1 + $0x1a88] sm:$0xff]  ;;  %v10515_v15 = vcombine.low %v1054_v61, %v1058_v62  ;;  %v251_v61 = vld [vmem:[%s15462_s1 + $0x5b0] sm:$0xff]  ;;  %v11204_v62 = vld [vmem:[%s15463_s2] sm:$0xff] }
 0x1e9   :  { %6844 = vmatpush1.bf16.msra.mxu0 %v10299_v16  ;;  %v922_v10 = vld [vmem:[%s15462_s1 + $0x1aa8] sm:$0xff] }
 0x1ea   :  { %6845 = vmatprep.subr.bf16.mxu0 %v10420_v20  ;;  %v1046_v14 = vld [vmem:[%s15462_s1 + $0x1e88] sm:$0xff]  ;;  %v10380_v4 = vcombine.high %v918_v9, %v922_v10  ;;  %v10379_v24 = vcombine.low %v918_v9, %v922_v10  ;;  %v9710_v10 = vcombine.high %v247_v41, %v251_v61 }
 0x1eb   :  { %6885 = vmatpush1.bf16.msra.mxu1 %v10427_v18  ;;  %v1050_v11 = vld [vmem:[%s15462_s1 + $0x1ea8] sm:$0xff] }
 0x1ec   :  { %6886 = vmatprep.subr.bf16.mxu1 %v10548_v22  ;;  %v10508_v16 = vcombine.high %v1046_v14, %v1050_v11  ;;  %v910_v18 = vld [vmem:[%s15462_s1 + $0x1a48] sm:$0xff]  ;;  %v10507_v32 = vcombine.low %v1046_v14, %v1050_v11  ;;  %v111_v14 = vld [vmem:[%s15462_s1 + $0x150] sm:$0xff] }
 0x1ed   :  { %6846 = vmatpush2.bf16.msra.mxu0 %v10419_v53  ;;  %v914_v20 = vld [vmem:[%s15462_s1 + $0x1a68] sm:$0xff]  ;;  %v115_v11 = vld [vmem:[%s15462_s1 + $0x170] sm:$0xff] }
 0x1ee   :  { %6847 = vmatprep.subr.bf16.mxu0 %v10412_v30  ;;  %v1038_v22 = vld [vmem:[%s15462_s1 + $0x1e48] sm:$0xff]  ;;  %v10372_v26 = vcombine.high %v910_v18, %v914_v20  ;;  %v10371_v36 = vcombine.low %v910_v18, %v914_v20 }
 0x1ef   :  { %6887 = vmatpush2.bf16.msra.mxu1 %v10547_v29  ;;  %v1042_v23 = vld [vmem:[%s15462_s1 + $0x1e68] sm:$0xff] }
 0x1f0   :  { %6888 = vmatprep.subr.bf16.mxu1 %v10540_v54  ;;  %v10500_v53 = vcombine.high %v1038_v22, %v1042_v23  ;;  %v902_v29 = vld [vmem:[%s15462_s1 + $0x1a08] sm:$0xff]  ;;  %v10499_v37 = vcombine.low %v1038_v22, %v1042_v23  ;;  %v9709_v23 = vcombine.low %v247_v41, %v251_v61 }
 0x1f1   :  { %6848 = vmatpush2.bf16.msra.mxu0 %v10411_v40  ;;  %v906_v30 = vld [vmem:[%s15462_s1 + $0x1a28] sm:$0xff] }
 0x1f2   :  { %6849 = vmatprep.subr.bf16.mxu0 %v10404_v44  ;;  %v1030_v54 = vld [vmem:[%s15462_s1 + $0x1e08] sm:$0xff]  ;;  %v10364_v38 = vcombine.high %v902_v29, %v906_v30  ;;  %v131_v44 = vld [vmem:[%s15462_s1 + $0x1f0] sm:$0xff]  ;;  %v10363_v48 = vcombine.low %v902_v29, %v906_v30 }
 0x1f3   :  { %6889 = vmatpush2.bf16.msra.mxu1 %v10539_v43  ;;  %v1034_v34 = vld [vmem:[%s15462_s1 + $0x1e28] sm:$0xff]  ;;  %v127_v43 = vld [vmem:[%s15462_s1 + $0x1d0] sm:$0xff] }
 0x1f4   :  { %6890 = vmatprep.subr.bf16.mxu1 %v10532_v46  ;;  %v10492_v40 = vcombine.high %v1030_v54, %v1034_v34  ;;  %v255_v46 = vld [vmem:[%s15462_s1 + $0x5d0] sm:$0xff]  ;;  %v10491_v50 = vcombine.low %v1030_v54, %v1034_v34 }
 0x1f5   :  { %6850 = vmatpush2.bf16.msra.mxu0 %v10403_v39  ;;  %v9590_v39 = vcombine.high %v127_v43, %v131_v44  ;;  %v103_v30 = vld [vmem:[%s15462_s1 + $0x110] sm:$0xff] }
 0x1f6   :  { %6851 = vmatprep.subr.bf16.mxu0 %v10396_v55  ;;  %v1109_v55 = vsub.s32 3, %v12138_v42  ;;  %v107_v54 = vld [vmem:[%s15462_s1 + $0x130] sm:$0xff] }
 0x1f7   :  { %6891 = vmatpush2.bf16.msra.mxu1 %v10531_v12  ;;  %v9718_v12 = vcombine.high %v255_v46, %v259_v35  ;;  %v9565_v41 = vcombine.low %v103_v30, %v107_v54 }
 0x1f8   :  { %6892 = vmatprep.subr.bf16.mxu1 %v10524_v58  ;;  %v119_v58 = vld [vmem:[%s15462_s1 + $0x190] sm:$0xff]  ;;  %v1110_v9 = vrot.slane %v11204_v62, %v1109_v55 }
 0x1f9   :  { %6852 = vmatpush2.bf16.msra.mxu0 %v10395_v2  ;;  %v1106_v2 = vrot.slane %v11204_v62, %v1105_v49  ;;  %v9581_v20 = vcombine.low %v119_v58, %v123_v59 }
 0x1fa   :  { %6853 = vmatprep.subr.bf16.mxu0 %v10388_v6  ;;  %v9717_v6 = vcombine.low %v255_v46, %v259_v35  ;;  %v9566_v35 = vcombine.high %v103_v30, %v107_v54  ;;  %v203_v30 = vld [vmem:[%s15462_s1 + $0x430] sm:$0xff] }
 0x1fb   :  { %6893 = vmatpush2.bf16.msra.mxu1 %v10523_v51  ;;  %v9589_v51 = vcombine.low %v127_v43, %v131_v44  ;;  %v9573_v43 = vcombine.low %v111_v14, %v115_v11 }
 0x1fc   :  { %6894 = vmatprep.subr.bf16.mxu1 %v10516_v3  ;;  %v9582_v3 = vcombine.high %v119_v58, %v123_v59  ;;  %v223_v58 = vld [vmem:[%s15462_s1 + $0x4d0] sm:$0xff] }
 0x1fd   :  { %6854 = vmatpush2.bf16.msra.mxu0 %v10387_v13  ;;  %v227_v59 = vld [vmem:[%s15462_s1 + $0x4f0] sm:$0xff] }
 0x1fe   :  { %6855 = vmatprep.subr.bf16.mxu0 %v10380_v4  ;;  %v243_v4 = vld [vmem:[%s15462_s1 + $0x570] sm:$0xff] }
 0x1ff   :  { %6895 = vmatpush2.bf16.msra.mxu1 %v10515_v15  ;;  %v239_v15 = vld [vmem:[%s15462_s1 + $0x550] sm:$0xff] }
 0x200   :  { %6896 = vmatprep.subr.bf16.mxu1 %v10508_v16  ;;  %v9702_v29 = vcombine.high %v239_v15, %v243_v4  ;;  %v9701_v46 = vcombine.low %v239_v15, %v243_v4  ;;  %v79_v15 = vld [vmem:[%s15462_s1 + $0x50] sm:$0xff] }
 0x201   :  { %6856 = vmatpush2.bf16.msra.mxu0 %v10379_v24  ;;  %v9574_v24 = vcombine.high %v111_v14, %v115_v11  ;;  %v9685_v14 = vcombine.low %v223_v58, %v227_v59  ;;  %v83_v4 = vld [vmem:[%s15462_s1 + $0x70] sm:$0xff] }
 0x202   :  { %6857 = vmatprep.subr.bf16.mxu0 %v10372_v26  ;;  %v9541_v54 = vcombine.low %v79_v15, %v83_v4 }
 0x203   :  { %6897 = vmatpush2.bf16.msra.mxu1 %v10507_v32 }
 0x204   :  { %6898 = vmatprep.subr.bf16.mxu1 %v10500_v53 }
 0x205   :  { %6858 = vmatpush2.bf16.msra.mxu0 %v10371_v36  ;;  %v231_v36 = vld [vmem:[%s15462_s1 + $0x510] sm:$0xff] }
 0x206   :  { %6859 = vmatprep.subr.bf16.mxu0 %v10364_v38 }
 0x207   :  { %6899 = vmatpush2.bf16.msra.mxu1 %v10499_v37  ;;  %v235_v37 = vld [vmem:[%s15462_s1 + $0x530] sm:$0xff] }
 0x208   :  { %6900 = vmatprep.subr.bf16.mxu1 %v10492_v40  ;;  %v9693_v61 = vcombine.low %v231_v36, %v235_v37 }
 0x209   :  { %6860 = vmatpush2.bf16.msra.mxu0 %v10363_v48 }
 0x20a   :  { %6911 = vmatprep.subr.bf16.mxu0 %v9590_v39  ;;  %v95_v39 = vld [vmem:[%s15462_s1 + $0xd0] sm:$0xff] }
 0x20b   :  { %6901 = vmatpush2.bf16.msra.mxu1 %v10491_v50  ;;  %v9694_v50 = vcombine.high %v231_v36, %v235_v37 }
 0x20c   :  { %6952 = vmatprep.subr.bf16.mxu1 %v9718_v12  ;;  %v6617_v13 = vpop.f32.mrf.mxu0  ;;  %6862 = vmatmul.mubr.bf16.vlgmr.msra.gmra.mxu0 %v12165_v1  ;;  %v99_v12 = vld [vmem:[%s15462_s1 + $0xf0] sm:$0xff] }
 0x20d   :  { %v6618_v16 = vadd.f32 %v6617_v13, %v1106_v2  ;;  %6912 = vmatpush1.bf16.msra.mxu0 %v9589_v51  ;;  %6943 = vmatprep.mubr.bf16.mxu0 %v11370_v63  ;;  %v9558_v62 = vcombine.high %v95_v39, %v99_v12  ;;  %v9686_v2 = vcombine.high %v223_v58, %v227_v59  ;;  %v87_v51 = vld [vmem:[%s15462_s1 + $0x90] sm:$0xff] }
 0x20e   :  { %v6658_v18 = vpop.f32.mrf.mxu1  ;;  %6903 = vmatmul.mubr.bf16.vlgmr.msra.gmra.mxu1 %v12177_v7  ;;  %v6619_v22 = vpop.f32.mrf.mxu0  ;;  %6913 = vmatprep.subr.bf16.mxu0 %v9582_v3  ;;  %v215_v3 = vld [vmem:[%s15462_s1 + $0x490] sm:$0xff] }
 0x20f   :  { %6953 = vmatpush1.bf16.msra.mxu1 %v9717_v6  ;;  %v13010_v32 = vadd.f32 %v6658_v18, %v6618_v16  ;;  %v6620_v26 = vadd.f32 %v6619_v22, %v1110_v9  ;;  %6984 = vmatprep.mubr.bf16.mxu1 %v11372_v0  ;;  %v91_v6 = vld [vmem:[%s15462_s1 + $0xb0] sm:$0xff] }
 0x210   :  { %v6660_v53 = vpop.f32.mrf.mxu1  ;;  %6954 = vmatprep.subr.bf16.mxu1 %v9710_v10  ;;  %v6621_v34 = vpop.f32.mrf.mxu0  ;;  %v219_v9 = vld [vmem:[%s15462_s1 + $0x4b0] sm:$0xff]  ;;  %v9557_v10 = vcombine.low %v95_v39, %v99_v12  ;;  %v9550_v11 = vcombine.high %v87_v51, %v91_v6 }
 0x211   :  { %v13026_v38 = vadd.f32 %v6660_v53, %v6620_v26  ;;  %6914 = vmatpush1.bf16.msra.mxu0 %v9581_v20  ;;  %v9678_v13 = vcombine.high %v215_v3, %v219_v9  ;;  %v207_v16 = vld [vmem:[%s15462_s1 + $0x450] sm:$0xff]  ;;  %v9549_v20 = vcombine.low %v87_v51, %v91_v6  ;;  %v9677_v22 = vcombine.low %v215_v3, %v219_v9 }
 0x212   :  { %v6662_v40 = vpop.f32.mrf.mxu1  ;;  %v6622_v44 = vpop.f32.mrf.mxu0  ;;  %6915 = vmatprep.subr.bf16.mxu0 %v9574_v24  ;;  %v211_v18 = vld [vmem:[%s15462_s1 + $0x470] sm:$0xff] }
 0x213   :  { %6955 = vmatpush1.bf16.msra.mxu1 %v9709_v23  ;;  %v9542_v23 = vcombine.high %v79_v15, %v83_v4  ;;  %v9670_v24 = vcombine.high %v207_v16, %v211_v18  ;;  %v71_v26 = vld [vmem:[%s15462_s1 + $0x10] sm:$0xff]  ;;  %v9669_v34 = vcombine.low %v207_v16, %v211_v18 }
 0x214   :  { %v6663_v48 = vpop.f32.mrf.mxu1  ;;  %6956 = vmatprep.subr.bf16.mxu1 %v9702_v29  ;;  %v75_v53 = vld [vmem:[%s15462_s1 + $0x30] sm:$0xff] }
 0x215   :  { %6916 = vmatpush1.bf16.msra.mxu0 %v9573_v43  ;;  %v199_v29 = vld [vmem:[%s15462_s1 + $0x410] sm:$0xff]  ;;  %v9534_v36 = vcombine.high %v71_v26, %v75_v53 }
 0x216   :  { %6917 = vmatprep.subr.bf16.mxu0 %v9566_v35  ;;  %v9662_v37 = vcombine.high %v199_v29, %v203_v30  ;;  %v191_v40 = vld [vmem:[%s15462_s1 + $0x3d0] sm:$0xff]  ;;  %v9533_v35 = vcombine.low %v71_v26, %v75_v53  ;;  %v9661_v48 = vcombine.low %v199_v29, %v203_v30 }
 0x217   :  { %6957 = vmatpush1.bf16.msra.mxu1 %v9701_v46  ;;  %v195_v43 = vld [vmem:[%s15462_s1 + $0x3f0] sm:$0xff] }
 0x218   :  { %6958 = vmatprep.subr.bf16.mxu1 %v9694_v50  ;;  %v319_v44 = vld [vmem:[%s15462_s1 + $0x7d0] sm:$0xff]  ;;  %v9654_v50 = vcombine.high %v191_v40, %v195_v43 }
 0x219   :  { %6918 = vmatpush1.bf16.msra.mxu0 %v9565_v41  ;;  %v323_v46 = vld [vmem:[%s15462_s1 + $0x7f0] sm:$0xff] }
 0x21a   :  { %6919 = vmatprep.subr.bf16.mxu0 %v9558_v62  ;;  %v9782_v39 = vcombine.high %v319_v44, %v323_v46  ;;  %v183_v12 = vld [vmem:[%s15462_s1 + $0x390] sm:$0xff]  ;;  %v9781_v62 = vcombine.low %v319_v44, %v323_v46 }
 0x21b   :  { %6959 = vmatpush1.bf16.msra.mxu1 %v9693_v61  ;;  %v187_v58 = vld [vmem:[%s15462_s1 + $0x3b0] sm:$0xff]  ;;  %v9653_v61 = vcombine.low %v191_v40, %v195_v43 }
 0x21c   :  { %6960 = vmatprep.subr.bf16.mxu1 %v9686_v2  ;;  %v311_v59 = vld [vmem:[%s15462_s1 + $0x790] sm:$0xff]  ;;  %v9646_v2 = vcombine.high %v183_v12, %v187_v58 }
 0x21d   :  { %6920 = vmatpush1.bf16.msra.mxu0 %v9557_v10  ;;  %v315_v41 = vld [vmem:[%s15462_s1 + $0x7b0] sm:$0xff] }
 0x21e   :  { %6921 = vmatprep.subr.bf16.mxu0 %v9550_v11  ;;  %v9774_v51 = vcombine.high %v311_v59, %v315_v41  ;;  %v175_v6 = vld [vmem:[%s15462_s1 + $0x350] sm:$0xff]  ;;  %v9773_v11 = vcombine.low %v311_v59, %v315_v41 }
 0x21f   :  { %6961 = vmatpush1.bf16.msra.mxu1 %v9685_v14  ;;  %v179_v3 = vld [vmem:[%s15462_s1 + $0x370] sm:$0xff]  ;;  %v9645_v14 = vcombine.low %v183_v12, %v187_v58 }
 0x220   :  { %6962 = vmatprep.subr.bf16.mxu1 %v9678_v13  ;;  %v303_v9 = vld [vmem:[%s15462_s1 + $0x750] sm:$0xff]  ;;  %v9638_v13 = vcombine.high %v175_v6, %v179_v3 }
 0x221   :  { %6922 = vmatpush1.bf16.msra.mxu0 %v9549_v20  ;;  %v307_v10 = vld [vmem:[%s15462_s1 + $0x770] sm:$0xff] }
 0x222   :  { %6923 = vmatprep.subr.bf16.mxu0 %v9542_v23  ;;  %v9766_v15 = vcombine.high %v303_v9, %v307_v10  ;;  %v167_v4 = vld [vmem:[%s15462_s1 + $0x310] sm:$0xff]  ;;  %v9765_v23 = vcombine.low %v303_v9, %v307_v10 }
 0x223   :  { %6963 = vmatpush1.bf16.msra.mxu1 %v9677_v22  ;;  %v171_v16 = vld [vmem:[%s15462_s1 + $0x330] sm:$0xff]  ;;  %v9637_v22 = vcombine.low %v175_v6, %v179_v3 }
 0x224   :  { %6964 = vmatprep.subr.bf16.mxu1 %v9670_v24  ;;  %v295_v18 = vld [vmem:[%s15462_s1 + $0x710] sm:$0xff]  ;;  %v9630_v24 = vcombine.high %v167_v4, %v171_v16 }
 0x225   :  { %6924 = vmatpush1.bf16.msra.mxu0 %v9541_v54  ;;  %v299_v20 = vld [vmem:[%s15462_s1 + $0x730] sm:$0xff] }
 0x226   :  { %6925 = vmatprep.subr.bf16.mxu0 %v9534_v36  ;;  %v9758_v26 = vcombine.high %v295_v18, %v299_v20  ;;  %v159_v53 = vld [vmem:[%s15462_s1 + $0x2d0] sm:$0xff]  ;;  %v9757_v36 = vcombine.low %v295_v18, %v299_v20 }
 0x227   :  { %6965 = vmatpush1.bf16.msra.mxu1 %v9669_v34  ;;  %v163_v29 = vld [vmem:[%s15462_s1 + $0x2f0] sm:$0xff]  ;;  %v9629_v34 = vcombine.low %v167_v4, %v171_v16 }
 0x228   :  { %6966 = vmatprep.subr.bf16.mxu1 %v9662_v37  ;;  %v287_v30 = vld [vmem:[%s15462_s1 + $0x6d0] sm:$0xff]  ;;  %v9622_v37 = vcombine.high %v159_v53, %v163_v29 }
 0x229   :  { %6926 = vmatpush1.bf16.msra.mxu0 %v9533_v35  ;;  %v291_v54 = vld [vmem:[%s15462_s1 + $0x6f0] sm:$0xff] }
 0x22a   :  { %6927 = vmatprep.subr.bf16.mxu0 %v9654_v50  ;;  %v9750_v40 = vcombine.high %v287_v30, %v291_v54  ;;  %v151_v43 = vld [vmem:[%s15462_s1 + $0x290] sm:$0xff]  ;;  %v9749_v50 = vcombine.low %v287_v30, %v291_v54 }
 0x22b   :  { %6967 = vmatpush1.bf16.msra.mxu1 %v9661_v48  ;;  %v155_v44 = vld [vmem:[%s15462_s1 + $0x2b0] sm:$0xff]  ;;  %v9621_v48 = vcombine.low %v159_v53, %v163_v29 }
 0x22c   :  { %6968 = vmatprep.subr.bf16.mxu1 %v9782_v39  ;;  %v279_v46 = vld [vmem:[%s15462_s1 + $0x690] sm:$0xff]  ;;  %v9614_v39 = vcombine.high %v151_v43, %v155_v44 }
 0x22d   :  { %6928 = vmatpush2.bf16.msra.mxu0 %v9653_v61  ;;  %v283_v35 = vld [vmem:[%s15462_s1 + $0x6b0] sm:$0xff] }
 0x22e   :  { %6929 = vmatprep.subr.bf16.mxu0 %v9646_v2  ;;  %v9742_v12 = vcombine.high %v279_v46, %v283_v35  ;;  %v143_v58 = vld [vmem:[%s15462_s1 + $0x250] sm:$0xff]  ;;  %v9741_v2 = vcombine.low %v279_v46, %v283_v35 }
 0x22f   :  { %6969 = vmatpush2.bf16.msra.mxu1 %v9781_v62  ;;  %v147_v59 = vld [vmem:[%s15462_s1 + $0x270] sm:$0xff]  ;;  %v9613_v62 = vcombine.low %v151_v43, %v155_v44 }
 0x230   :  { %6970 = vmatprep.subr.bf16.mxu1 %v9774_v51  ;;  %v271_v41 = vld [vmem:[%s15462_s1 + $0x650] sm:$0xff]  ;;  %v9606_v51 = vcombine.high %v143_v58, %v147_v59 }
 0x231   :  { %6930 = vmatpush2.bf16.msra.mxu0 %v9645_v14  ;;  %v275_v61 = vld [vmem:[%s15462_s1 + $0x670] sm:$0xff] }
 0x232   :  { %6931 = vmatprep.subr.bf16.mxu0 %v9638_v13  ;;  %v9734_v6 = vcombine.high %v271_v41, %v275_v61  ;;  %v135_v3 = vld [vmem:[%s15462_s1 + $0x210] sm:$0xff]  ;;  %v9733_v13 = vcombine.low %v271_v41, %v275_v61 }
 0x233   :  { %6971 = vmatpush2.bf16.msra.mxu1 %v9773_v11  ;;  %v139_v9 = vld [vmem:[%s15462_s1 + $0x230] sm:$0xff]  ;;  %v9605_v11 = vcombine.low %v143_v58, %v147_v59 }
 0x234   :  { %6972 = vmatprep.subr.bf16.mxu1 %v9766_v15  ;;  %v263_v10 = vld [vmem:[%s15462_s1 + $0x610] sm:$0xff]  ;;  %v9598_v15 = vcombine.high %v135_v3, %v139_v9 }
 0x235   :  { %6932 = vmatpush2.bf16.msra.mxu0 %v9637_v22  ;;  %v267_v14 = vld [vmem:[%s15462_s1 + $0x630] sm:$0xff] }
 0x236   :  { %6933 = vmatprep.subr.bf16.mxu0 %v9630_v24  ;;  %v9726_v4 = vcombine.high %v263_v10, %v267_v14  ;;  %v383_v16 = vld [vmem:[%s15462_s1 + $0x9d0] sm:$0xff]  ;;  %v9725_v24 = vcombine.low %v263_v10, %v267_v14 }
 0x237   :  { %6973 = vmatpush2.bf16.msra.mxu1 %v9765_v23  ;;  %v387_v18 = vld [vmem:[%s15462_s1 + $0x9f0] sm:$0xff]  ;;  %v9597_v23 = vcombine.low %v135_v3, %v139_v9 }
 0x238   :  { %6974 = vmatprep.subr.bf16.mxu1 %v9758_v26  ;;  %v511_v20 = vld [vmem:[%s15462_s1 + $0xdd0] sm:$0xff]  ;;  %v9846_v26 = vcombine.high %v383_v16, %v387_v18 }
 0x239   :  { %6934 = vmatpush2.bf16.msra.mxu0 %v9629_v34  ;;  %v515_v22 = vld [vmem:[%s15462_s1 + $0xdf0] sm:$0xff] }
 0x23a   :  { %6935 = vmatprep.subr.bf16.mxu0 %v9622_v37  ;;  %v9974_v53 = vcombine.high %v511_v20, %v515_v22  ;;  %v375_v29 = vld [vmem:[%s15462_s1 + $0x990] sm:$0xff]  ;;  %v9973_v37 = vcombine.low %v511_v20, %v515_v22 }
 0x23b   :  { %6975 = vmatpush2.bf16.msra.mxu1 %v9757_v36  ;;  %v379_v30 = vld [vmem:[%s15462_s1 + $0x9b0] sm:$0xff]  ;;  %v9845_v36 = vcombine.low %v383_v16, %v387_v18 }
 0x23c   :  { %6976 = vmatprep.subr.bf16.mxu1 %v9750_v40  ;;  %v503_v54 = vld [vmem:[%s15462_s1 + $0xd90] sm:$0xff]  ;;  %v9838_v40 = vcombine.high %v375_v29, %v379_v30  ;;  %v9837_v58 = vcombine.low %v375_v29, %v379_v30 }
 0x23d   :  { %6936 = vmatpush2.bf16.msra.mxu0 %v9621_v48  ;;  %v507_v34 = vld [vmem:[%s15462_s1 + $0xdb0] sm:$0xff] }
 0x23e   :  { %6937 = vmatprep.subr.bf16.mxu0 %v9614_v39  ;;  %v9966_v43 = vcombine.high %v503_v54, %v507_v34  ;;  %v367_v44 = vld [vmem:[%s15462_s1 + $0x950] sm:$0xff]  ;;  %v9965_v41 = vcombine.low %v503_v54, %v507_v34 }
 0x23f   :  { %6977 = vmatpush2.bf16.msra.mxu1 %v9749_v50  ;;  %v371_v46 = vld [vmem:[%s15462_s1 + $0x970] sm:$0xff] }
 0x240   :  { %6978 = vmatprep.subr.bf16.mxu1 %v9742_v12  ;;  %v495_v48 = vld [vmem:[%s15462_s1 + $0xd50] sm:$0xff]  ;;  %v9830_v61 = vcombine.high %v367_v44, %v371_v46 }
 0x241   :  { %6938 = vmatpush2.bf16.msra.mxu0 %v9613_v62  ;;  %v499_v50 = vld [vmem:[%s15462_s1 + $0xd70] sm:$0xff] }
 0x242   :  { %6939 = vmatprep.subr.bf16.mxu0 %v9606_v51  ;;  %v363_v3 = vld [vmem:[%s15462_s1 + $0x930] sm:$0xff] }
 0x243   :  { %6979 = vmatpush2.bf16.msra.mxu1 %v9741_v2  ;;  %v487_v10 = vld [vmem:[%s15462_s1 + $0xd10] sm:$0xff] }
 0x244   :  { %6980 = vmatprep.subr.bf16.mxu1 %v9734_v6  ;;  %v9958_v6 = vcombine.high %v495_v48, %v499_v50  ;;  %v351_v22 = vld [vmem:[%s15462_s1 + $0x8d0] sm:$0xff] }
 0x245   :  { %6940 = vmatpush2.bf16.msra.mxu0 %v9605_v11  ;;  %v343_v34 = vld [vmem:[%s15462_s1 + $0x890] sm:$0xff] }
 0x246   :  { %6941 = vmatprep.subr.bf16.mxu0 %v9598_v15 }
 0x247   :  { %6981 = vmatpush2.bf16.msra.mxu1 %v9733_v13  ;;  %v9829_v13 = vcombine.low %v367_v44, %v371_v46 }
 0x248   :  { %6982 = vmatprep.subr.bf16.mxu1 %v9726_v4  ;;  %v9957_v4 = vcombine.low %v495_v48, %v499_v50  ;;  %v335_v48 = vld [vmem:[%s15462_s1 + $0x850] sm:$0xff] }
 0x249   :  { %6942 = vmatpush2.bf16.msra.mxu0 %v9597_v23  ;;  %v355_v23 = vld [vmem:[%s15462_s1 + $0x8f0] sm:$0xff] }
 0x24a   :  { %6993 = vmatprep.subr.bf16.mxu0 %v9846_v26  ;;  %v483_v26 = vld [vmem:[%s15462_s1 + $0xcf0] sm:$0xff]  ;;  %v9814_v30 = vcombine.high %v351_v22, %v355_v23 }
 0x24b   :  { %6983 = vmatpush2.bf16.msra.mxu1 %v9725_v24  ;;  %v479_v24 = vld [vmem:[%s15462_s1 + $0xcd0] sm:$0xff] }
 0x24c   :  { %7034 = vmatprep.subr.bf16.mxu1 %v9974_v53  ;;  %v6699_v35 = vpop.f32.mrf.mxu0  ;;  %6944 = vmatmul.mubr.bf16.vlgmr.msra.gmra.mxu0 %v11504_v21  ;;  %v9942_v54 = vcombine.high %v479_v24, %v483_v26  ;;  %v9941_v44 = vcombine.low %v479_v24, %v483_v26  ;;  %v339_v50 = vld [vmem:[%s15462_s1 + $0x870] sm:$0xff] }
 0x24d   :  { %v6700_v39 = vadd.f32 %v6699_v35, %v13010_v32  ;;  %6994 = vmatpush1.bf16.msra.mxu0 %v9845_v36  ;;  %v359_v32 = vld [vmem:[%s15462_s1 + $0x910] sm:$0xff]  ;;  %7025 = vmatprep.mubr.bf16.mxu0 %v11527_v31 }
 0x24e   :  { %v6740_v12 = vpop.f32.mrf.mxu1  ;;  %6985 = vmatmul.mubr.bf16.vlgmr.msra.gmra.mxu1 %v11516_v25  ;;  %v6701_v59 = vpop.f32.mrf.mxu0  ;;  %6995 = vmatprep.subr.bf16.mxu0 %v9838_v40  ;;  %v9822_v16 = vcombine.high %v359_v32, %v363_v3  ;;  %v9821_v53 = vcombine.low %v359_v32, %v363_v3  ;;  %v347_v36 = vld [vmem:[%s15462_s1 + $0x8b0] sm:$0xff]  ;;  %v9797_v3 = vcombine.low %v335_v48, %v339_v50 }
 0x24f   :  { %7035 = vmatpush1.bf16.msra.mxu1 %v9973_v37  ;;  %v13211_v62 = vadd.f32 %v6740_v12, %v6700_v39  ;;  %v6702_v2 = vadd.f32 %v6701_v59, %v13026_v38  ;;  %v491_v38 = vld [vmem:[%s15462_s1 + $0xd30] sm:$0xff]  ;;  %7066 = vmatprep.mubr.bf16.mxu1 %v11533_v33  ;;  %v9806_v46 = vcombine.high %v343_v34, %v347_v36 }
 0x250   :  { %v6742_v51 = vpop.f32.mrf.mxu1  ;;  %7036 = vmatprep.subr.bf16.mxu1 %v9966_v43  ;;  %v6703_v9 = vpop.f32.mrf.mxu0  ;;  %v9950_v20 = vcombine.high %v487_v10, %v491_v38  ;;  %v9949_v29 = vcombine.low %v487_v10, %v491_v38  ;;  %v471_v37 = vld [vmem:[%s15462_s1 + $0xc90] sm:$0xff]  ;;  %v9813_v43 = vcombine.low %v351_v22, %v355_v23 }
 0x251   :  { %v13228_v14 = vadd.f32 %v6742_v51, %v6702_v2  ;;  %6996 = vmatpush1.bf16.msra.mxu0 %v9837_v58  ;;  %v475_v40 = vld [vmem:[%s15462_s1 + $0xcb0] sm:$0xff]  ;;  %v9805_v58 = vcombine.low %v343_v34, %v347_v36 }
 0x252   :  { %v6744_v11 = vpop.f32.mrf.mxu1  ;;  %v6704_v15 = vpop.f32.mrf.mxu0  ;;  %6997 = vmatprep.subr.bf16.mxu0 %v9830_v61  ;;  %v9934_v35 = vcombine.high %v471_v37, %v475_v40  ;;  %v463_v39 = vld [vmem:[%s15462_s1 + $0xc50] sm:$0xff]  ;;  %v9933_v59 = vcombine.low %v471_v37, %v475_v40 }
 0x253   :  { %7037 = vmatpush1.bf16.msra.mxu1 %v9965_v41  ;;  %v467_v12 = vld [vmem:[%s15462_s1 + $0xc70] sm:$0xff]  ;;  %v9798_v41 = vcombine.high %v335_v48, %v339_v50 }
 0x254   :  { %v6745_v18 = vpop.f32.mrf.mxu1  ;;  %7038 = vmatprep.subr.bf16.mxu1 %v9958_v6  ;;  %v9926_v61 = vcombine.high %v463_v39, %v467_v12  ;;  %v327_v2 = vld [vmem:[%s15462_s1 + $0x810] sm:$0xff]  ;;  %v9925_v9 = vcombine.low %v463_v39, %v467_v12 }
 0x255   :  { %6998 = vmatpush1.bf16.msra.mxu0 %v9829_v13  ;;  %v331_v51 = vld [vmem:[%s15462_s1 + $0x830] sm:$0xff] }
 0x256   :  { %6999 = vmatprep.subr.bf16.mxu0 %v9822_v16  ;;  %v455_v6 = vld [vmem:[%s15462_s1 + $0xc10] sm:$0xff]  ;;  %v9790_v10 = vcombine.high %v327_v2, %v331_v51  ;;  %v9789_v16 = vcombine.low %v327_v2, %v331_v51 }
 0x257   :  { %7039 = vmatpush1.bf16.msra.mxu1 %v9957_v4  ;;  %v459_v32 = vld [vmem:[%s15462_s1 + $0xc30] sm:$0xff] }
 0x258   :  { %7040 = vmatprep.subr.bf16.mxu1 %v9950_v20  ;;  %v9918_v38 = vcombine.high %v455_v6, %v459_v32  ;;  %v447_v11 = vld [vmem:[%s15462_s1 + $0xbd0] sm:$0xff]  ;;  %v9917_v18 = vcombine.low %v455_v6, %v459_v32 }
 0x259   :  { %7000 = vmatpush1.bf16.msra.mxu0 %v9821_v53  ;;  %v451_v13 = vld [vmem:[%s15462_s1 + $0xbf0] sm:$0xff] }
 0x25a   :  { %7001 = vmatprep.subr.bf16.mxu0 %v9814_v30  ;;  %v575_v15 = vld [vmem:[%s15462_s1 + $0xfd0] sm:$0xff]  ;;  %v9910_v20 = vcombine.high %v447_v11, %v451_v13 }
 0x25b   :  { %7041 = vmatpush1.bf16.msra.mxu1 %v9949_v29  ;;  %v579_v4 = vld [vmem:[%s15462_s1 + $0xff0] sm:$0xff]  ;;  %v9909_v29 = vcombine.low %v447_v11, %v451_v13 }
 0x25c   :  { %7042 = vmatprep.subr.bf16.mxu1 %v9942_v54  ;;  %v10038_v22 = vcombine.high %v575_v15, %v579_v4  ;;  %v439_v23 = vld [vmem:[%s15462_s1 + $0xb90] sm:$0xff]  ;;  %v10037_v30 = vcombine.low %v575_v15, %v579_v4 }
 0x25d   :  { %7002 = vmatpush1.bf16.msra.mxu0 %v9813_v43  ;;  %v443_v24 = vld [vmem:[%s15462_s1 + $0xbb0] sm:$0xff] }
 0x25e   :  { %7003 = vmatprep.subr.bf16.mxu0 %v9806_v46  ;;  %v567_v26 = vld [vmem:[%s15462_s1 + $0xf90] sm:$0xff]  ;;  %v9902_v54 = vcombine.high %v439_v23, %v443_v24 }
 0x25f   :  { %7043 = vmatpush1.bf16.msra.mxu1 %v9941_v44  ;;  %v571_v53 = vld [vmem:[%s15462_s1 + $0xfb0] sm:$0xff]  ;;  %v9901_v44 = vcombine.low %v439_v23, %v443_v24 }
 0x260   :  { %7044 = vmatprep.subr.bf16.mxu1 %v9934_v35  ;;  %v10030_v34 = vcombine.high %v567_v26, %v571_v53  ;;  %v431_v36 = vld [vmem:[%s15462_s1 + $0xb50] sm:$0xff]  ;;  %v10029_v46 = vcombine.low %v567_v26, %v571_v53 }
 0x261   :  { %7004 = vmatpush1.bf16.msra.mxu0 %v9805_v58  ;;  %v435_v37 = vld [vmem:[%s15462_s1 + $0xb70] sm:$0xff] }
 0x262   :  { %7005 = vmatprep.subr.bf16.mxu0 %v9798_v41  ;;  %v559_v40 = vld [vmem:[%s15462_s1 + $0xf50] sm:$0xff]  ;;  %v9894_v35 = vcombine.high %v431_v36, %v435_v37 }
 0x263   :  { %7045 = vmatpush1.bf16.msra.mxu1 %v9933_v59  ;;  %v563_v43 = vld [vmem:[%s15462_s1 + $0xf70] sm:$0xff]  ;;  %v9893_v59 = vcombine.low %v431_v36, %v435_v37 }
 0x264   :  { %7046 = vmatprep.subr.bf16.mxu1 %v9926_v61  ;;  %v10022_v48 = vcombine.high %v559_v40, %v563_v43  ;;  %v423_v50 = vld [vmem:[%s15462_s1 + $0xb10] sm:$0xff]  ;;  %v10021_v41 = vcombine.low %v559_v40, %v563_v43 }
 0x265   :  { %7006 = vmatpush1.bf16.msra.mxu0 %v9797_v3  ;;  %v427_v39 = vld [vmem:[%s15462_s1 + $0xb30] sm:$0xff] }
 0x266   :  { %7007 = vmatprep.subr.bf16.mxu0 %v9790_v10  ;;  %v551_v12 = vld [vmem:[%s15462_s1 + $0xf10] sm:$0xff]  ;;  %v9886_v61 = vcombine.high %v423_v50, %v427_v39 }
 0x267   :  { %7047 = vmatpush1.bf16.msra.mxu1 %v9925_v9  ;;  %v555_v58 = vld [vmem:[%s15462_s1 + $0xf30] sm:$0xff]  ;;  %v9885_v9 = vcombine.low %v423_v50, %v427_v39 }
 0x268   :  { %7048 = vmatprep.subr.bf16.mxu1 %v9918_v38  ;;  %v10014_v2 = vcombine.high %v551_v12, %v555_v58  ;;  %v415_v51 = vld [vmem:[%s15462_s1 + $0xad0] sm:$0xff]  ;;  %v10013_v10 = vcombine.low %v551_v12, %v555_v58 }
 0x269   :  { %7008 = vmatpush1.bf16.msra.mxu0 %v9789_v16  ;;  %v419_v6 = vld [vmem:[%s15462_s1 + $0xaf0] sm:$0xff] }
 0x26a   :  { %7009 = vmatprep.subr.bf16.mxu0 %v9910_v20  ;;  %v543_v32 = vld [vmem:[%s15462_s1 + $0xed0] sm:$0xff]  ;;  %v9878_v38 = vcombine.high %v415_v51, %v419_v6 }
 0x26b   :  { %7049 = vmatpush1.bf16.msra.mxu1 %v9917_v18  ;;  %v547_v3 = vld [vmem:[%s15462_s1 + $0xef0] sm:$0xff]  ;;  %v9877_v18 = vcombine.low %v415_v51, %v419_v6 }
 0x26c   :  { %7050 = vmatprep.subr.bf16.mxu1 %v10038_v22  ;;  %v10006_v11 = vcombine.high %v543_v32, %v547_v3  ;;  %v407_v13 = vld [vmem:[%s15462_s1 + $0xa90] sm:$0xff]  ;;  %v10005_v20 = vcombine.low %v543_v32, %v547_v3 }
 0x26d   :  { %7010 = vmatpush2.bf16.msra.mxu0 %v9909_v29  ;;  %v411_v15 = vld [vmem:[%s15462_s1 + $0xab0] sm:$0xff] }
 0x26e   :  { %7011 = vmatprep.subr.bf16.mxu0 %v9902_v54  ;;  %v535_v4 = vld [vmem:[%s15462_s1 + $0xe90] sm:$0xff]  ;;  %v9870_v22 = vcombine.high %v407_v13, %v411_v15 }
 0x26f   :  { %7051 = vmatpush2.bf16.msra.mxu1 %v10037_v30  ;;  %v539_v16 = vld [vmem:[%s15462_s1 + $0xeb0] sm:$0xff]  ;;  %v9869_v30 = vcombine.low %v407_v13, %v411_v15 }
 0x270   :  { %7052 = vmatprep.subr.bf16.mxu1 %v10030_v34  ;;  %v9998_v23 = vcombine.high %v535_v4, %v539_v16  ;;  %v399_v24 = vld [vmem:[%s15462_s1 + $0xa50] sm:$0xff]  ;;  %v9997_v54 = vcombine.low %v535_v4, %v539_v16 }
 0x271   :  { %7012 = vmatpush2.bf16.msra.mxu0 %v9901_v44  ;;  %v403_v26 = vld [vmem:[%s15462_s1 + $0xa70] sm:$0xff] }
 0x272   :  { %7013 = vmatprep.subr.bf16.mxu0 %v9894_v35  ;;  %v527_v53 = vld [vmem:[%s15462_s1 + $0xe50] sm:$0xff]  ;;  %v9862_v34 = vcombine.high %v399_v24, %v403_v26 }
 0x273   :  { %7053 = vmatpush2.bf16.msra.mxu1 %v10029_v46  ;;  %v531_v29 = vld [vmem:[%s15462_s1 + $0xe70] sm:$0xff]  ;;  %v9861_v46 = vcombine.low %v399_v24, %v403_v26 }
 0x274   :  { %7054 = vmatprep.subr.bf16.mxu1 %v10022_v48  ;;  %v9990_v36 = vcombine.high %v527_v53, %v531_v29  ;;  %v391_v37 = vld [vmem:[%s15462_s1 + $0xa10] sm:$0xff]  ;;  %v9989_v35 = vcombine.low %v527_v53, %v531_v29 }
 0x275   :  { %7014 = vmatpush2.bf16.msra.mxu0 %v9893_v59  ;;  %v395_v40 = vld [vmem:[%s15462_s1 + $0xa30] sm:$0xff] }
 0x276   :  { %7015 = vmatprep.subr.bf16.mxu0 %v9886_v61  ;;  %v519_v43 = vld [vmem:[%s15462_s1 + $0xe10] sm:$0xff]  ;;  %v9854_v48 = vcombine.high %v391_v37, %v395_v40 }
 0x277   :  { %7055 = vmatpush2.bf16.msra.mxu1 %v10021_v41  ;;  %v523_v44 = vld [vmem:[%s15462_s1 + $0xe30] sm:$0xff]  ;;  %v9853_v41 = vcombine.low %v391_v37, %v395_v40 }
 0x278   :  { %7056 = vmatprep.subr.bf16.mxu1 %v10014_v2  ;;  %v9982_v50 = vcombine.high %v519_v43, %v523_v44  ;;  %v639_v39 = vld [vmem:[%s15462_s1 + $0x11d0] sm:$0xff]  ;;  %v9981_v61 = vcombine.low %v519_v43, %v523_v44 }
 0x279   :  { %7016 = vmatpush2.bf16.msra.mxu0 %v9885_v9  ;;  %v643_v12 = vld [vmem:[%s15462_s1 + $0x11f0] sm:$0xff] }
 0x27a   :  { %7017 = vmatprep.subr.bf16.mxu0 %v9878_v38  ;;  %v767_v58 = vld [vmem:[%s15462_s1 + $0x15d0] sm:$0xff]  ;;  %v10102_v2 = vcombine.high %v639_v39, %v643_v12 }
 0x27b   :  { %7057 = vmatpush2.bf16.msra.mxu1 %v10013_v10  ;;  %v771_v59 = vld [vmem:[%s15462_s1 + $0x15f0] sm:$0xff]  ;;  %v10101_v10 = vcombine.low %v639_v39, %v643_v12 }
 0x27c   :  { %7058 = vmatprep.subr.bf16.mxu1 %v10006_v11  ;;  %v10230_v51 = vcombine.high %v767_v58, %v771_v59  ;;  %v631_v6 = vld [vmem:[%s15462_s1 + $0x1190] sm:$0xff]  ;;  %v10229_v38 = vcombine.low %v767_v58, %v771_v59 }
 0x27d   :  { %7018 = vmatpush2.bf16.msra.mxu0 %v9877_v18  ;;  %v635_v32 = vld [vmem:[%s15462_s1 + $0x11b0] sm:$0xff] }
 0x27e   :  { %7019 = vmatprep.subr.bf16.mxu0 %v9870_v22  ;;  %v759_v3 = vld [vmem:[%s15462_s1 + $0x1590] sm:$0xff]  ;;  %v10094_v11 = vcombine.high %v631_v6, %v635_v32  ;;  %v10093_v24 = vcombine.low %v631_v6, %v635_v32 }
 0x27f   :  { %7059 = vmatpush2.bf16.msra.mxu1 %v10005_v20  ;;  %v763_v9 = vld [vmem:[%s15462_s1 + $0x15b0] sm:$0xff] }
 0x280   :  { %7060 = vmatprep.subr.bf16.mxu1 %v9998_v23  ;;  %v10222_v13 = vcombine.high %v759_v3, %v763_v9  ;;  %v623_v15 = vld [vmem:[%s15462_s1 + $0x1150] sm:$0xff]  ;;  %v10221_v53 = vcombine.low %v759_v3, %v763_v9 }
 0x281   :  { %7020 = vmatpush2.bf16.msra.mxu0 %v9869_v30  ;;  %v627_v4 = vld [vmem:[%s15462_s1 + $0x1170] sm:$0xff] }
 0x282   :  { %7021 = vmatprep.subr.bf16.mxu0 %v9862_v34  ;;  %v751_v18 = vld [vmem:[%s15462_s1 + $0x1550] sm:$0xff]  ;;  %v10086_v29 = vcombine.high %v623_v15, %v627_v4 }
 0x283   :  { %7061 = vmatpush2.bf16.msra.mxu1 %v9997_v54  ;;  %v755_v20 = vld [vmem:[%s15462_s1 + $0x1570] sm:$0xff] }
 0x284   :  { %7062 = vmatprep.subr.bf16.mxu1 %v9990_v36  ;;  %v10214_v36 = vcombine.high %v751_v18, %v755_v20  ;;  %v619_v37 = vld [vmem:[%s15462_s1 + $0x1130] sm:$0xff] }
 0x285   :  { %7022 = vmatpush2.bf16.msra.mxu0 %v9861_v46  ;;  %v743_v43 = vld [vmem:[%s15462_s1 + $0x1510] sm:$0xff] }
 0x286   :  { %7023 = vmatprep.subr.bf16.mxu0 %v9854_v48  ;;  %v607_v59 = vld [vmem:[%s15462_s1 + $0x10d0] sm:$0xff] }
 0x287   :  { %7063 = vmatpush2.bf16.msra.mxu1 %v9989_v35  ;;  %v10085_v35 = vcombine.low %v623_v15, %v627_v4  ;;  %v599_v9 = vld [vmem:[%s15462_s1 + $0x1090] sm:$0xff] }
 0x288   :  { %7064 = vmatprep.subr.bf16.mxu1 %v9982_v50  ;;  %v10213_v50 = vcombine.low %v751_v18, %v755_v20  ;;  %v591_v18 = vld [vmem:[%s15462_s1 + $0x1050] sm:$0xff] }
 0x289   :  { %7024 = vmatpush2.bf16.msra.mxu0 %v9853_v41  ;;  %v611_v41 = vld [vmem:[%s15462_s1 + $0x10f0] sm:$0xff] }
 0x28a   :  { %7075 = vmatprep.subr.bf16.mxu0 %v10102_v2  ;;  %v739_v2 = vld [vmem:[%s15462_s1 + $0x14f0] sm:$0xff]  ;;  %v10070_v32 = vcombine.high %v607_v59, %v611_v41 }
 0x28b   :  { %7065 = vmatpush2.bf16.msra.mxu1 %v9981_v61  ;;  %v735_v61 = vld [vmem:[%s15462_s1 + $0x14d0] sm:$0xff] }
 0x28c   :  { %7116 = vmatprep.subr.bf16.mxu1 %v10230_v51  ;;  %v6781_v16 = vpop.f32.mrf.mxu0  ;;  %7026 = vmatmul.mubr.bf16.vlgmr.msra.gmra.mxu0 %v11732_v45  ;;  %v10198_v3 = vcombine.high %v735_v61, %v739_v2  ;;  %v10197_v15 = vcombine.low %v735_v61, %v739_v2  ;;  %v595_v20 = vld [vmem:[%s15462_s1 + $0x1070] sm:$0xff] }
 0x28d   :  { %v6782_v22 = vadd.f32 %v6781_v16, %v13211_v62  ;;  %7076 = vmatpush1.bf16.msra.mxu0 %v10101_v10  ;;  %v615_v62 = vld [vmem:[%s15462_s1 + $0x1110] sm:$0xff]  ;;  %7107 = vmatprep.mubr.bf16.mxu0 %v11752_v56 }
 0x28e   :  { %v6822_v23 = vpop.f32.mrf.mxu1  ;;  %7067 = vmatmul.mubr.bf16.vlgmr.msra.gmra.mxu1 %v11738_v47  ;;  %v6783_v26 = vpop.f32.mrf.mxu0  ;;  %7077 = vmatprep.subr.bf16.mxu0 %v10094_v11  ;;  %v10078_v39 = vcombine.high %v615_v62, %v619_v37  ;;  %v10077_v51 = vcombine.low %v615_v62, %v619_v37  ;;  %v603_v10 = vld [vmem:[%s15462_s1 + $0x10b0] sm:$0xff]  ;;  %v10053_v37 = vcombine.low %v591_v18, %v595_v20 }
 0x28f   :  { %7117 = vmatpush1.bf16.msra.mxu1 %v10229_v38  ;;  %v13413_v30 = vadd.f32 %v6822_v23, %v6782_v22  ;;  %v6784_v54 = vadd.f32 %v6783_v26, %v13228_v14  ;;  %v747_v14 = vld [vmem:[%s15462_s1 + $0x1530] sm:$0xff]  ;;  %7148 = vmatprep.mubr.bf16.mxu1 %v11755_v57  ;;  %v10062_v4 = vcombine.high %v599_v9, %v603_v10 }
 0x290   :  { %v6824_v34 = vpop.f32.mrf.mxu1  ;;  %7118 = vmatprep.subr.bf16.mxu1 %v10222_v13  ;;  %v6785_v40 = vpop.f32.mrf.mxu0  ;;  %v10206_v58 = vcombine.high %v743_v43, %v747_v14  ;;  %v10205_v6 = vcombine.low %v743_v43, %v747_v14  ;;  %v727_v38 = vld [vmem:[%s15462_s1 + $0x1490] sm:$0xff]  ;;  %v10069_v13 = vcombine.low %v607_v59, %v611_v41 }
 0x291   :  { %v13430_v44 = vadd.f32 %v6824_v34, %v6784_v54  ;;  %7078 = vmatpush1.bf16.msra.mxu0 %v10093_v24  ;;  %v731_v11 = vld [vmem:[%s15462_s1 + $0x14b0] sm:$0xff]  ;;  %v10061_v24 = vcombine.low %v599_v9, %v603_v10 }
 0x292   :  { %v6826_v46 = vpop.f32.mrf.mxu1  ;;  %v6786_v48 = vpop.f32.mrf.mxu0  ;;  %7079 = vmatprep.subr.bf16.mxu0 %v10086_v29  ;;  %v10190_v16 = vcombine.high %v727_v38, %v731_v11  ;;  %v719_v22 = vld [vmem:[%s15462_s1 + $0x1450] sm:$0xff]  ;;  %v10189_v26 = vcombine.low %v727_v38, %v731_v11 }
 0x293   :  { %7119 = vmatpush1.bf16.msra.mxu1 %v10221_v53  ;;  %v723_v23 = vld [vmem:[%s15462_s1 + $0x1470] sm:$0xff]  ;;  %v10054_v53 = vcombine.high %v591_v18, %v595_v20 }
 0x294   :  { %v6827_v12 = vpop.f32.mrf.mxu1  ;;  %7120 = vmatprep.subr.bf16.mxu1 %v10214_v36  ;;  %v10182_v29 = vcombine.high %v719_v22, %v723_v23  ;;  %v583_v54 = vld [vmem:[%s15462_s1 + $0x1010] sm:$0xff]  ;;  %v10181_v40 = vcombine.low %v719_v22, %v723_v23 }
 0x295   :  { %7080 = vmatpush1.bf16.msra.mxu0 %v10085_v35  ;;  %v587_v34 = vld [vmem:[%s15462_s1 + $0x1030] sm:$0xff] }
 0x296   :  { %7081 = vmatprep.subr.bf16.mxu0 %v10078_v39  ;;  %v711_v36 = vld [vmem:[%s15462_s1 + $0x1410] sm:$0xff]  ;;  %v10046_v43 = vcombine.high %v583_v54, %v587_v34  ;;  %v10045_v39 = vcombine.low %v583_v54, %v587_v34 }
 0x297   :  { %7121 = vmatpush1.bf16.msra.mxu1 %v10213_v50  ;;  %v715_v62 = vld [vmem:[%s15462_s1 + $0x1430] sm:$0xff] }
 0x298   :  { %7122 = vmatprep.subr.bf16.mxu1 %v10206_v58  ;;  %v10174_v14 = vcombine.high %v711_v36, %v715_v62  ;;  %v703_v46 = vld [vmem:[%s15462_s1 + $0x13d0] sm:$0xff]  ;;  %v10173_v12 = vcombine.low %v711_v36, %v715_v62 }
 0x299   :  { %7082 = vmatpush1.bf16.msra.mxu0 %v10077_v51  ;;  %v707_v35 = vld [vmem:[%s15462_s1 + $0x13f0] sm:$0xff] }
 0x29a   :  { %7083 = vmatprep.subr.bf16.mxu0 %v10070_v32  ;;  %v831_v48 = vld [vmem:[%s15462_s1 + $0x17d0] sm:$0xff]  ;;  %v10166_v58 = vcombine.high %v703_v46, %v707_v35 }
 0x29b   :  { %7123 = vmatpush1.bf16.msra.mxu1 %v10205_v6  ;;  %v835_v50 = vld [vmem:[%s15462_s1 + $0x17f0] sm:$0xff]  ;;  %v10165_v6 = vcombine.low %v703_v46, %v707_v35 }
 0x29c   :  { %7124 = vmatprep.subr.bf16.mxu1 %v10198_v3  ;;  %v10294_v59 = vcombine.high %v831_v48, %v835_v50  ;;  %v695_v41 = vld [vmem:[%s15462_s1 + $0x1390] sm:$0xff]  ;;  %v10293_v32 = vcombine.low %v831_v48, %v835_v50 }
 0x29d   :  { %7084 = vmatpush1.bf16.msra.mxu0 %v10069_v13  ;;  %v699_v61 = vld [vmem:[%s15462_s1 + $0x13b0] sm:$0xff] }
 0x29e   :  { %7085 = vmatprep.subr.bf16.mxu0 %v10062_v4  ;;  %v823_v2 = vld [vmem:[%s15462_s1 + $0x1790] sm:$0xff]  ;;  %v10158_v3 = vcombine.high %v695_v41, %v699_v61 }
 0x29f   :  { %7125 = vmatpush1.bf16.msra.mxu1 %v10197_v15  ;;  %v827_v51 = vld [vmem:[%s15462_s1 + $0x17b0] sm:$0xff]  ;;  %v10157_v15 = vcombine.low %v695_v41, %v699_v61 }
 0x2a0   :  { %7126 = vmatprep.subr.bf16.mxu1 %v10190_v16  ;;  %v10286_v9 = vcombine.high %v823_v2, %v827_v51  ;;  %v687_v10 = vld [vmem:[%s15462_s1 + $0x1350] sm:$0xff]  ;;  %v10285_v4 = vcombine.low %v823_v2, %v827_v51 }
 0x2a1   :  { %7086 = vmatpush1.bf16.msra.mxu0 %v10061_v24  ;;  %v691_v38 = vld [vmem:[%s15462_s1 + $0x1370] sm:$0xff] }
 0x2a2   :  { %7087 = vmatprep.subr.bf16.mxu0 %v10054_v53  ;;  %v815_v11 = vld [vmem:[%s15462_s1 + $0x1750] sm:$0xff]  ;;  %v10150_v16 = vcombine.high %v687_v10, %v691_v38 }
 0x2a3   :  { %7127 = vmatpush1.bf16.msra.mxu1 %v10189_v26  ;;  %v819_v13 = vld [vmem:[%s15462_s1 + $0x1770] sm:$0xff]  ;;  %v10149_v26 = vcombine.low %v687_v10, %v691_v38 }
 0x2a4   :  { %7128 = vmatprep.subr.bf16.mxu1 %v10182_v29  ;;  %v10278_v18 = vcombine.high %v815_v11, %v819_v13  ;;  %v679_v20 = vld [vmem:[%s15462_s1 + $0x1310] sm:$0xff]  ;;  %v10277_v53 = vcombine.low %v815_v11, %v819_v13 }
 0x2a5   :  { %7088 = vmatpush1.bf16.msra.mxu0 %v10053_v37  ;;  %v683_v22 = vld [vmem:[%s15462_s1 + $0x1330] sm:$0xff] }
 0x2a6   :  { %7089 = vmatprep.subr.bf16.mxu0 %v10046_v43  ;;  %v807_v23 = vld [vmem:[%s15462_s1 + $0x1710] sm:$0xff]  ;;  %v10142_v29 = vcombine.high %v679_v20, %v683_v22 }
 0x2a7   :  { %7129 = vmatpush1.bf16.msra.mxu1 %v10181_v40  ;;  %v811_v24 = vld [vmem:[%s15462_s1 + $0x1730] sm:$0xff]  ;;  %v10141_v40 = vcombine.low %v679_v20, %v683_v22 }
 0x2a8   :  { %7130 = vmatprep.subr.bf16.mxu1 %v10174_v14  ;;  %v10270_v54 = vcombine.high %v807_v23, %v811_v24  ;;  %v671_v34 = vld [vmem:[%s15462_s1 + $0x12d0] sm:$0xff]  ;;  %v10269_v43 = vcombine.low %v807_v23, %v811_v24 }
 0x2a9   :  { %7090 = vmatpush1.bf16.msra.mxu0 %v10045_v39  ;;  %v675_v36 = vld [vmem:[%s15462_s1 + $0x12f0] sm:$0xff] }
 0x2aa   :  { %7091 = vmatprep.subr.bf16.mxu0 %v10166_v58  ;;  %v799_v62 = vld [vmem:[%s15462_s1 + $0x16d0] sm:$0xff]  ;;  %v10134_v14 = vcombine.high %v671_v34, %v675_v36 }
 0x2ab   :  { %7131 = vmatpush1.bf16.msra.mxu1 %v10173_v12  ;;  %v803_v37 = vld [vmem:[%s15462_s1 + $0x16f0] sm:$0xff]  ;;  %v10133_v12 = vcombine.low %v671_v34, %v675_v36 }
 0x2ac   :  { %7132 = vmatprep.subr.bf16.mxu1 %v10294_v59  ;;  %v10262_v46 = vcombine.high %v799_v62, %v803_v37  ;;  %v663_v35 = vld [vmem:[%s15462_s1 + $0x1290] sm:$0xff]  ;;  %v10261_v58 = vcombine.low %v799_v62, %v803_v37 }
 0x2ad   :  { %7092 = vmatpush2.bf16.msra.mxu0 %v10165_v6  ;;  %v667_v48 = vld [vmem:[%s15462_s1 + $0x12b0] sm:$0xff] }
 0x2ae   :  { %7093 = vmatprep.subr.bf16.mxu0 %v10158_v3  ;;  %v791_v50 = vld [vmem:[%s15462_s1 + $0x1690] sm:$0xff]  ;;  %v10126_v59 = vcombine.high %v663_v35, %v667_v48 }
 0x2af   :  { %7133 = vmatpush2.bf16.msra.mxu1 %v10293_v32  ;;  %v795_v39 = vld [vmem:[%s15462_s1 + $0x16b0] sm:$0xff]  ;;  %v10125_v32 = vcombine.low %v663_v35, %v667_v48 }
 0x2b0   :  { %7134 = vmatprep.subr.bf16.mxu1 %v10286_v9  ;;  %v10254_v41 = vcombine.high %v791_v50, %v795_v39  ;;  %v655_v61 = vld [vmem:[%s15462_s1 + $0x1250] sm:$0xff]  ;;  %v10253_v3 = vcombine.low %v791_v50, %v795_v39 }
 0x2b1   :  { %7094 = vmatpush2.bf16.msra.mxu0 %v10157_v15  ;;  %v659_v2 = vld [vmem:[%s15462_s1 + $0x1270] sm:$0xff] }
 0x2b2   :  { %7095 = vmatprep.subr.bf16.mxu0 %v10150_v16  ;;  %v783_v51 = vld [vmem:[%s15462_s1 + $0x1650] sm:$0xff]  ;;  %v10118_v9 = vcombine.high %v655_v61, %v659_v2 }
 0x2b3   :  { %7135 = vmatpush2.bf16.msra.mxu1 %v10285_v4  ;;  %v787_v6 = vld [vmem:[%s15462_s1 + $0x1670] sm:$0xff]  ;;  %v10117_v4 = vcombine.low %v655_v61, %v659_v2 }
 0x2b4   :  { %7136 = vmatprep.subr.bf16.mxu1 %v10278_v18  ;;  %v10246_v10 = vcombine.high %v783_v51, %v787_v6  ;;  %v647_v38 = vld [vmem:[%s15462_s1 + $0x1210] sm:$0xff]  ;;  %v10245_v16 = vcombine.low %v783_v51, %v787_v6 }
 0x2b5   :  { %7096 = vmatpush2.bf16.msra.mxu0 %v10149_v26  ;;  %v651_v11 = vld [vmem:[%s15462_s1 + $0x1230] sm:$0xff] }
 0x2b6   :  { %7097 = vmatprep.subr.bf16.mxu0 %v10142_v29  ;;  %v775_v13 = vld [vmem:[%s15462_s1 + $0x1610] sm:$0xff]  ;;  %v10110_v18 = vcombine.high %v647_v38, %v651_v11 }
 0x2b7   :  { %7137 = vmatpush2.bf16.msra.mxu1 %v10277_v53  ;;  %v779_v15 = vld [vmem:[%s15462_s1 + $0x1630] sm:$0xff]  ;;  %v10109_v53 = vcombine.low %v647_v38, %v651_v11 }
 0x2b8   :  { %7138 = vmatprep.subr.bf16.mxu1 %v10270_v54  ;;  %v10238_v20 = vcombine.high %v775_v13, %v779_v15  ;;  %v895_v22 = vld [vmem:[%s15462_s1 + $0x19d0] sm:$0xff]  ;;  %v10237_v29 = vcombine.low %v775_v13, %v779_v15 }
 0x2b9   :  { %7098 = vmatpush2.bf16.msra.mxu0 %v10141_v40  ;;  %v899_v23 = vld [vmem:[%s15462_s1 + $0x19f0] sm:$0xff] }
 0x2ba   :  { %7099 = vmatprep.subr.bf16.mxu0 %v10134_v14  ;;  %v1023_v24 = vld [vmem:[%s15462_s1 + $0x1dd0] sm:$0xff]  ;;  %v10358_v54 = vcombine.high %v895_v22, %v899_v23 }
 0x2bb   :  { %7139 = vmatpush2.bf16.msra.mxu1 %v10269_v43  ;;  %v1027_v26 = vld [vmem:[%s15462_s1 + $0x1df0] sm:$0xff]  ;;  %v10357_v43 = vcombine.low %v895_v22, %v899_v23 }
 0x2bc   :  { %7140 = vmatprep.subr.bf16.mxu1 %v10262_v46  ;;  %v10486_v34 = vcombine.high %v1023_v24, %v1027_v26  ;;  %v887_v36 = vld [vmem:[%s15462_s1 + $0x1990] sm:$0xff]  ;;  %v10485_v14 = vcombine.low %v1023_v24, %v1027_v26 }
 0x2bd   :  { %7100 = vmatpush2.bf16.msra.mxu0 %v10133_v12  ;;  %v891_v62 = vld [vmem:[%s15462_s1 + $0x19b0] sm:$0xff] }
 0x2be   :  { %7101 = vmatprep.subr.bf16.mxu0 %v10126_v59  ;;  %v1015_v37 = vld [vmem:[%s15462_s1 + $0x1d90] sm:$0xff]  ;;  %v10350_v46 = vcombine.high %v887_v36, %v891_v62  ;;  %v10349_v61 = vcombine.low %v887_v36, %v891_v62 }
 0x2bf   :  { %7141 = vmatpush2.bf16.msra.mxu1 %v10261_v58  ;;  %v1019_v40 = vld [vmem:[%s15462_s1 + $0x1db0] sm:$0xff] }
 0x2c0   :  { %7142 = vmatprep.subr.bf16.mxu1 %v10254_v41  ;;  %v10478_v35 = vcombine.high %v1015_v37, %v1019_v40  ;;  %v879_v48 = vld [vmem:[%s15462_s1 + $0x1950] sm:$0xff]  ;;  %v10477_v51 = vcombine.low %v1015_v37, %v1019_v40 }
 0x2c1   :  { %7102 = vmatpush2.bf16.msra.mxu0 %v10125_v32  ;;  %v883_v50 = vld [vmem:[%s15462_s1 + $0x1970] sm:$0xff] }
 0x2c2   :  { %7103 = vmatprep.subr.bf16.mxu0 %v10118_v9  ;;  %v1007_v12 = vld [vmem:[%s15462_s1 + $0x1d50] sm:$0xff]  ;;  %v10342_v6 = vcombine.high %v879_v48, %v883_v50 }
 0x2c3   :  { %7143 = vmatpush2.bf16.msra.mxu1 %v10253_v3  ;;  %v1011_v58 = vld [vmem:[%s15462_s1 + $0x1d70] sm:$0xff] }
 0x2c4   :  { %7144 = vmatprep.subr.bf16.mxu1 %v10246_v10  ;;  %v10470_v10 = vcombine.high %v1007_v12, %v1011_v58  ;;  %v875_v38 = vld [vmem:[%s15462_s1 + $0x1930] sm:$0xff] }
 0x2c5   :  { %7104 = vmatpush2.bf16.msra.mxu0 %v10117_v4  ;;  %v999_v13 = vld [vmem:[%s15462_s1 + $0x1d10] sm:$0xff] }
 0x2c6   :  { %7105 = vmatprep.subr.bf16.mxu0 %v10110_v18  ;;  %v863_v26 = vld [vmem:[%s15462_s1 + $0x18d0] sm:$0xff] }
 0x2c7   :  { %7145 = vmatpush2.bf16.msra.mxu1 %v10245_v16  ;;  %v10341_v16 = vcombine.low %v879_v48, %v883_v50  ;;  %v855_v40 = vld [vmem:[%s15462_s1 + $0x1890] sm:$0xff] }
 0x2c8   :  { %7146 = vmatprep.subr.bf16.mxu1 %v10238_v20  ;;  %v10469_v20 = vcombine.low %v1007_v12, %v1011_v58  ;;  %v847_v12 = vld [vmem:[%s15462_s1 + $0x1850] sm:$0xff] }
 0x2c9   :  { %7106 = vmatpush2.bf16.msra.mxu0 %v10109_v53  ;;  %v867_v53 = vld [vmem:[%s15462_s1 + $0x18f0] sm:$0xff] }
 0x2ca   :  { %7157 = vmatprep.subr.bf16.mxu0 %v10358_v54  ;;  %v995_v54 = vld [vmem:[%s15462_s1 + $0x1cf0] sm:$0xff]  ;;  %v10326_v62 = vcombine.high %v863_v26, %v867_v53 }
 0x2cb   :  { %7147 = vmatpush2.bf16.msra.mxu1 %v10237_v29  ;;  %v991_v29 = vld [vmem:[%s15462_s1 + $0x1cd0] sm:$0xff] }
 0x2cc   :  { %7198 = vmatprep.subr.bf16.mxu1 %v10486_v34  ;;  %v6863_v39 = vpop.f32.mrf.mxu0  ;;  %7108 = vmatmul.mubr.bf16.vlgmr.msra.gmra.mxu0 %v11954_v17  ;;  %v10454_v37 = vcombine.high %v991_v29, %v995_v54  ;;  %v10453_v48 = vcombine.low %v991_v29, %v995_v54  ;;  %v851_v58 = vld [vmem:[%s15462_s1 + $0x1870] sm:$0xff] }
 0x2cd   :  { %v6864_v59 = vadd.f32 %v6863_v39, %v13413_v30  ;;  %7158 = vmatpush1.bf16.msra.mxu0 %v10357_v43  ;;  %v871_v30 = vld [vmem:[%s15462_s1 + $0x1910] sm:$0xff]  ;;  %7189 = vmatprep.mubr.bf16.mxu0 %v11974_v27 }
 0x2ce   :  { %v6904_v41 = vpop.f32.mrf.mxu1  ;;  %7149 = vmatmul.mubr.bf16.vlgmr.msra.gmra.mxu1 %v11960_v19  ;;  %v6865_v2 = vpop.f32.mrf.mxu0  ;;  %7159 = vmatprep.subr.bf16.mxu0 %v10350_v46  ;;  %v10334_v22 = vcombine.high %v871_v30, %v875_v38  ;;  %v10333_v34 = vcombine.low %v871_v30, %v875_v38  ;;  %v859_v43 = vld [vmem:[%s15462_s1 + $0x18b0] sm:$0xff]  ;;  %v10309_v38 = vcombine.low %v847_v12, %v851_v58 }
 0x2cf   :  { %7199 = vmatpush1.bf16.msra.mxu1 %v10485_v14  ;;  %v13615_v32 = vadd.f32 %v6904_v41, %v6864_v59  ;;  %v6866_v3 = vadd.f32 %v6865_v2, %v13430_v44  ;;  %v1003_v44 = vld [vmem:[%s15462_s1 + $0x1d30] sm:$0xff]  ;;  %7230 = vmatprep.mubr.bf16.mxu1 %v11977_v28  ;;  %v10318_v50 = vcombine.high %v855_v40, %v859_v43 }
 0x2d0   :  { %v6906_v9 = vpop.f32.mrf.mxu1  ;;  %7200 = vmatprep.subr.bf16.mxu1 %v10478_v35  ;;  %v6867_v11 = vpop.f32.mrf.mxu0  ;;  %v10462_v24 = vcombine.high %v999_v13, %v1003_v44  ;;  %v10461_v36 = vcombine.low %v999_v13, %v1003_v44  ;;  %v983_v14 = vld [vmem:[%s15462_s1 + $0x1c90] sm:$0xff]  ;;  %v10325_v35 = vcombine.low %v863_v26, %v867_v53 }
 0x2d1   :  { %v13632_v15 = vadd.f32 %v6906_v9, %v6866_v3  ;;  %7160 = vmatpush1.bf16.msra.mxu0 %v10349_v61  ;;  %v987_v46 = vld [vmem:[%s15462_s1 + $0x1cb0] sm:$0xff]  ;;  %v10317_v61 = vcombine.low %v855_v40, %v859_v43  ;;  %vm7569_vm3 = vcmp.ge.f32.partialorder %v13615_v32, 0.0 }
 0x2d2   :  { %v6908_v4 = vpop.f32.mrf.mxu1  ;;  %v6868_v18 = vpop.f32.mrf.mxu0  ;;  %7161 = vmatprep.subr.bf16.mxu0 %v10342_v6  ;;  %v10446_v39 = vcombine.high %v983_v14, %v987_v46  ;;  %v975_v59 = vld [vmem:[%s15462_s1 + $0x1c50] sm:$0xff]  ;;  %v10445_v2 = vcombine.low %v983_v14, %v987_v46 }
 0x2d3   :  { %7201 = vmatpush1.bf16.msra.mxu1 %v10477_v51  ;;  %v979_v41 = vld [vmem:[%s15462_s1 + $0x1c70] sm:$0xff]  ;;  %v10310_v51 = vcombine.high %v847_v12, %v851_v58  ;;  %vm7570_vm1 = vcmp.ge.f32.partialorder %v13632_v15, 0.0 }
 0x2d4   :  { %v6909_v23 = vpop.f32.mrf.mxu1  ;;  %7202 = vmatprep.subr.bf16.mxu1 %v10470_v10  ;;  %v10438_v6 = vcombine.high %v975_v59, %v979_v41  ;;  %v839_v3 = vld [vmem:[%s15462_s1 + $0x1810] sm:$0xff]  ;;  %v10437_v11 = vcombine.low %v975_v59, %v979_v41 }
 0x2d5   :  { %7162 = vmatpush1.bf16.msra.mxu0 %v10341_v16  ;;  %v843_v9 = vld [vmem:[%s15462_s1 + $0x1830] sm:$0xff] }
 0x2d6   :  { %7163 = vmatprep.subr.bf16.mxu0 %v10334_v22  ;;  %v967_v10 = vld [vmem:[%s15462_s1 + $0x1c10] sm:$0xff]  ;;  %v10302_v13 = vcombine.high %v839_v3, %v843_v9  ;;  %v10301_v22 = vcombine.low %v839_v3, %v843_v9 }
 0x2d7   :  { %7203 = vmatpush1.bf16.msra.mxu1 %v10469_v20  ;;  %v971_v30 = vld [vmem:[%s15462_s1 + $0x1c30] sm:$0xff] }
 0x2d8   :  { %7204 = vmatprep.subr.bf16.mxu1 %v10462_v24  ;;  %v10430_v44 = vcombine.high %v967_v10, %v971_v30  ;;  %v959_v4 = vld [vmem:[%s15462_s1 + $0x1bd0] sm:$0xff]  ;;  %v10429_v23 = vcombine.low %v967_v10, %v971_v30 }
 0x2d9   :  { %7164 = vmatpush1.bf16.msra.mxu0 %v10333_v34  ;;  %v963_v16 = vld [vmem:[%s15462_s1 + $0x1bf0] sm:$0xff] }
 0x2da   :  { %7165 = vmatprep.subr.bf16.mxu0 %v10326_v62  ;;  %v1087_v18 = vld [vmem:[%s15462_s1 + $0x1fd0] sm:$0xff]  ;;  %v10422_v24 = vcombine.high %v959_v4, %v963_v16 }
 0x2db   :  { %7205 = vmatpush1.bf16.msra.mxu1 %v10461_v36  ;;  %v1091_v20 = vld [vmem:[%s15462_s1 + $0x1ff0] sm:$0xff]  ;;  %v10421_v36 = vcombine.low %v959_v4, %v963_v16 }
 0x2dc   :  { %7206 = vmatprep.subr.bf16.mxu1 %v10454_v37  ;;  %v10550_v26 = vcombine.high %v1087_v18, %v1091_v20  ;;  %v951_v53 = vld [vmem:[%s15462_s1 + $0x1b90] sm:$0xff]  ;;  %v10549_v62 = vcombine.low %v1087_v18, %v1091_v20 }
 0x2dd   :  { %7166 = vmatpush1.bf16.msra.mxu0 %v10325_v35  ;;  %v955_v29 = vld [vmem:[%s15462_s1 + $0x1bb0] sm:$0xff] }
 0x2de   :  { %7167 = vmatprep.subr.bf16.mxu0 %v10318_v50  ;;  %v1079_v54 = vld [vmem:[%s15462_s1 + $0x1f90] sm:$0xff]  ;;  %v10414_v37 = vcombine.high %v951_v53, %v955_v29 }
 0x2df   :  { %7207 = vmatpush1.bf16.msra.mxu1 %v10453_v48  ;;  %v1083_v34 = vld [vmem:[%s15462_s1 + $0x1fb0] sm:$0xff]  ;;  %v10413_v48 = vcombine.low %v951_v53, %v955_v29 }
 0x2e0   :  { %7208 = vmatprep.subr.bf16.mxu1 %v10446_v39  ;;  %v10542_v40 = vcombine.high %v1079_v54, %v1083_v34  ;;  %v943_v43 = vld [vmem:[%s15462_s1 + $0x1b50] sm:$0xff]  ;;  %v10541_v50 = vcombine.low %v1079_v54, %v1083_v34 }
 0x2e1   :  { %7168 = vmatpush1.bf16.msra.mxu0 %v10317_v61  ;;  %v947_v14 = vld [vmem:[%s15462_s1 + $0x1b70] sm:$0xff] }
 0x2e2   :  { %7169 = vmatprep.subr.bf16.mxu0 %v10310_v51  ;;  %v1071_v46 = vld [vmem:[%s15462_s1 + $0x1f50] sm:$0xff]  ;;  %v10406_v39 = vcombine.high %v943_v43, %v947_v14 }
 0x2e3   :  { %7209 = vmatpush1.bf16.msra.mxu1 %v10445_v2  ;;  %v1075_v35 = vld [vmem:[%s15462_s1 + $0x1f70] sm:$0xff]  ;;  %v10405_v2 = vcombine.low %v943_v43, %v947_v14 }
 0x2e4   :  { %7210 = vmatprep.subr.bf16.mxu1 %v10438_v6  ;;  %v10534_v12 = vcombine.high %v1071_v46, %v1075_v35  ;;  %v935_v58 = vld [vmem:[%s15462_s1 + $0x1b10] sm:$0xff]  ;;  %v10533_v51 = vcombine.low %v1071_v46, %v1075_v35 }
 0x2e5   :  { %7170 = vmatpush1.bf16.msra.mxu0 %v10309_v38  ;;  %v939_v59 = vld [vmem:[%s15462_s1 + $0x1b30] sm:$0xff] }
 0x2e6   :  { %7171 = vmatprep.subr.bf16.mxu0 %v10302_v13  ;;  %v1063_v41 = vld [vmem:[%s15462_s1 + $0x1f10] sm:$0xff]  ;;  %v10398_v6 = vcombine.high %v935_v58, %v939_v59 }
 0x2e7   :  { %7211 = vmatpush1.bf16.msra.mxu1 %v10437_v11  ;;  %v1067_v61 = vld [vmem:[%s15462_s1 + $0x1f30] sm:$0xff]  ;;  %v10397_v11 = vcombine.low %v935_v58, %v939_v59  ;;  %v128_v59 = vld [vmem:[%s15462_s1 + $0x1d8] sm:$0xff] }
 0x2e8   :  { %7212 = vmatprep.subr.bf16.mxu1 %v10430_v44  ;;  %v10526_v3 = vcombine.high %v1063_v41, %v1067_v61  ;;  %v927_v9 = vld [vmem:[%s15462_s1 + $0x1ad0] sm:$0xff]  ;;  %v10525_v13 = vcombine.low %v1063_v41, %v1067_v61  ;;  %v132_v41 = vld [vmem:[%s15462_s1 + $0x1f8] sm:$0xff] }
 0x2e9   :  { %7172 = vmatpush1.bf16.msra.mxu0 %v10301_v22  ;;  %v931_v10 = vld [vmem:[%s15462_s1 + $0x1af0] sm:$0xff]  ;;  %v256_v61 = vld [vmem:[%s15462_s1 + $0x5d8] sm:$0xff] }
 0x2ea   :  { %7173 = vmatprep.subr.bf16.mxu0 %v10422_v24  ;;  %v1055_v30 = vld [vmem:[%s15462_s1 + $0x1ed0] sm:$0xff]  ;;  %v10390_v44 = vcombine.high %v927_v9, %v931_v10 }
 0x2eb   :  { %7213 = vmatpush1.bf16.msra.mxu1 %v10429_v23  ;;  %v1059_v38 = vld [vmem:[%s15462_s1 + $0x1ef0] sm:$0xff]  ;;  %v10389_v23 = vcombine.low %v927_v9, %v931_v10  ;;  %v9592_v9 = vcombine.high %v128_v59, %v132_v41 }
 0x2ec   :  { %7214 = vmatprep.subr.bf16.mxu1 %v10550_v26  ;;  %v10518_v4 = vcombine.high %v1055_v30, %v1059_v38  ;;  %v919_v16 = vld [vmem:[%s15462_s1 + $0x1a90] sm:$0xff]  ;;  %v10517_v24 = vcombine.low %v1055_v30, %v1059_v38  ;;  %v1117_v30 = vsub.s32 5, %v12138_v42  ;;  %v120_v38 = vld [vmem:[%s15462_s1 + $0x198] sm:$0xff] }
 0x2ed   :  { %7174 = vmatpush2.bf16.msra.mxu0 %v10421_v36  ;;  %v923_v18 = vld [vmem:[%s15462_s1 + $0x1ab0] sm:$0xff] }
 0x2ee   :  { %7175 = vmatprep.subr.bf16.mxu0 %v10414_v37  ;;  %v1047_v20 = vld [vmem:[%s15462_s1 + $0x1e90] sm:$0xff]  ;;  %v10382_v26 = vcombine.high %v919_v16, %v923_v18 }
 0x2ef   :  { %7215 = vmatpush2.bf16.msra.mxu1 %v10549_v62  ;;  %v1051_v22 = vld [vmem:[%s15462_s1 + $0x1eb0] sm:$0xff]  ;;  %v10381_v62 = vcombine.low %v919_v16, %v923_v18  ;;  %v9591_v18 = vcombine.low %v128_v59, %v132_v41  ;;  %v232_v59 = vld [vmem:[%s15462_s1 + $0x518] sm:$0xff] }
 0x2f0   :  { %7216 = vmatprep.subr.bf16.mxu1 %v10542_v40  ;;  %v10510_v53 = vcombine.high %v1047_v20, %v1051_v22  ;;  %v911_v29 = vld [vmem:[%s15462_s1 + $0x1a50] sm:$0xff]  ;;  %v10509_v37 = vcombine.low %v1047_v20, %v1051_v22  ;;  %v236_v41 = vld [vmem:[%s15462_s1 + $0x538] sm:$0xff] }
 0x2f1   :  { %7176 = vmatpush2.bf16.msra.mxu0 %v10413_v48  ;;  %v915_v54 = vld [vmem:[%s15462_s1 + $0x1a70] sm:$0xff] }
 0x2f2   :  { %7177 = vmatprep.subr.bf16.mxu0 %v10406_v39  ;;  %v1039_v34 = vld [vmem:[%s15462_s1 + $0x1e50] sm:$0xff]  ;;  %v10374_v40 = vcombine.high %v911_v29, %v915_v54 }
 0x2f3   :  { %7217 = vmatpush2.bf16.msra.mxu1 %v10541_v50  ;;  %v1043_v36 = vld [vmem:[%s15462_s1 + $0x1e70] sm:$0xff]  ;;  %v10373_v50 = vcombine.low %v911_v29, %v915_v54  ;;  %v240_v54 = vld [vmem:[%s15462_s1 + $0x558] sm:$0xff] }
 0x2f4   :  { %7218 = vmatprep.subr.bf16.mxu1 %v10534_v12  ;;  %v10502_v43 = vcombine.high %v1039_v34, %v1043_v36  ;;  %v903_v14 = vld [vmem:[%s15462_s1 + $0x1a10] sm:$0xff]  ;;  %v10501_v39 = vcombine.low %v1039_v34, %v1043_v36  ;;  %v244_v34 = vld [vmem:[%s15462_s1 + $0x578] sm:$0xff] }
 0x2f5   :  { %7178 = vmatpush2.bf16.msra.mxu0 %v10405_v2  ;;  %v907_v46 = vld [vmem:[%s15462_s1 + $0x1a30] sm:$0xff]  ;;  %v260_v2 = vld [vmem:[%s15462_s1 + $0x5f8] sm:$0xff] }
 0x2f6   :  { %7179 = vmatprep.subr.bf16.mxu0 %v10398_v6  ;;  %v1031_v35 = vld [vmem:[%s15462_s1 + $0x1e10] sm:$0xff]  ;;  %v10366_v12 = vcombine.high %v903_v14, %v907_v46  ;;  %v1113_v6 = vsub.s32 4, %v12138_v42  ;;  %v9720_v10 = vcombine.high %v256_v61, %v260_v2  ;;  %v9719_v20 = vcombine.low %v256_v61, %v260_v2 }
 0x2f7   :  { %7219 = vmatpush2.bf16.msra.mxu1 %v10533_v51  ;;  %v1035_v48 = vld [vmem:[%s15462_s1 + $0x1e30] sm:$0xff]  ;;  %v10365_v51 = vcombine.low %v903_v14, %v907_v46 }
 0x2f8   :  { %7220 = vmatprep.subr.bf16.mxu1 %v10526_v3  ;;  %v10494_v58 = vcombine.high %v1031_v35, %v1035_v48  ;;  %v10493_v3 = vcombine.low %v1031_v35, %v1035_v48 }
 0x2f9   :  { %7180 = vmatpush2.bf16.msra.mxu0 %v10397_v11  ;;  %v124_v11 = vld [vmem:[%s15462_s1 + $0x1b8] sm:$0xff] }
 0x2fa   :  { %7181 = vmatprep.subr.bf16.mxu0 %v10390_v44  ;;  %v252_v44 = vld [vmem:[%s15462_s1 + $0x5b8] sm:$0xff]  ;;  %v9584_v22 = vcombine.high %v120_v38, %v124_v11 }
 0x2fb   :  { %7221 = vmatpush2.bf16.msra.mxu1 %v10525_v13  ;;  %v248_v13 = vld [vmem:[%s15462_s1 + $0x598] sm:$0xff] }
 0x2fc   :  { %7222 = vmatprep.subr.bf16.mxu1 %v10518_v4  ;;  %v11205_v4 = vld [vmem:[%s15463_s2] sm:$0xff] }
 0x2fd   :  { %7182 = vmatpush2.bf16.msra.mxu0 %v10389_v23  ;;  %v1114_v16 = vrot.slane %v11205_v4, %v1113_v6  ;;  %v1118_v23 = vrot.slane %v11205_v4, %v1117_v30  ;;  %v96_v30 = vld [vmem:[%s15462_s1 + $0xd8] sm:$0xff] }
 0x2fe   :  { %7183 = vmatprep.subr.bf16.mxu0 %v10382_v26  ;;  %v112_v26 = vld [vmem:[%s15462_s1 + $0x158] sm:$0xff] }
 0x2ff   :  { %7223 = vmatpush2.bf16.msra.mxu1 %v10517_v24  ;;  %v9712_v24 = vcombine.high %v248_v13, %v252_v44 }
 0x300   :  { %7224 = vmatprep.subr.bf16.mxu1 %v10510_v53  ;;  %v116_v53 = vld [vmem:[%s15462_s1 + $0x178] sm:$0xff] }
 0x301   :  { %7184 = vmatpush2.bf16.msra.mxu0 %v10381_v62  ;;  %v9576_v14 = vcombine.high %v112_v26, %v116_v53 }
 0x302   :  { %7185 = vmatprep.subr.bf16.mxu0 %v10374_v40 }
 0x303   :  { %7225 = vmatpush2.bf16.msra.mxu1 %v10509_v37  ;;  %v9583_v37 = vcombine.low %v120_v38, %v124_v11  ;;  %v224_v38 = vld [vmem:[%s15462_s1 + $0x4d8] sm:$0xff] }
 0x304   :  { %7226 = vmatprep.subr.bf16.mxu1 %v10502_v43  ;;  %v9711_v43 = vcombine.low %v248_v13, %v252_v44  ;;  %v228_v11 = vld [vmem:[%s15462_s1 + $0x4f8] sm:$0xff]  ;;  %v9695_v44 = vcombine.low %v232_v59, %v236_v41 }
 0x305   :  { %7186 = vmatpush2.bf16.msra.mxu0 %v10373_v50  ;;  %v9704_v50 = vcombine.high %v240_v54, %v244_v34 }
 0x306   :  { %7187 = vmatprep.subr.bf16.mxu0 %v10366_v12  ;;  %v108_v12 = vld [vmem:[%s15462_s1 + $0x138] sm:$0xff] }
 0x307   :  { %7227 = vmatpush2.bf16.msra.mxu1 %v10501_v39  ;;  %v104_v39 = vld [vmem:[%s15462_s1 + $0x118] sm:$0xff] }
 0x308   :  { %7228 = vmatprep.subr.bf16.mxu1 %v10494_v58  ;;  %v9567_v13 = vcombine.low %v104_v39, %v108_v12 }
 0x309   :  { %7188 = vmatpush2.bf16.msra.mxu0 %v10365_v51  ;;  %v9575_v51 = vcombine.low %v112_v26, %v116_v53  ;;  %v9687_v26 = vcombine.low %v224_v38, %v228_v11 }
 0x30a   :  { %7239 = vmatprep.subr.bf16.mxu0 %v9592_v9 }
 0x30b   :  { %7229 = vmatpush2.bf16.msra.mxu1 %v10493_v3  ;;  %v9568_v3 = vcombine.high %v104_v39, %v108_v12  ;;  %v204_v39 = vld [vmem:[%s15462_s1 + $0x438] sm:$0xff] }
 0x30c   :  { %7280 = vmatprep.subr.bf16.mxu1 %v9720_v10  ;;  %v6945_v29 = vpop.f32.mrf.mxu0  ;;  %7190 = vmatmul.mubr.bf16.vlgmr.msra.gmra.mxu0 %v12165_v1  ;;  %v9696_v10 = vcombine.high %v232_v59, %v236_v41 }
 0x30d   :  { %v6946_v36 = vadd.f32 %v6945_v29, %v1114_v16  ;;  %7240 = vmatpush1.bf16.msra.mxu0 %v9591_v18  ;;  %7271 = vmatprep.mubr.bf16.mxu0 %v11370_v63  ;;  %v9703_v63 = vcombine.low %v240_v54, %v244_v34  ;;  %v9688_v16 = vcombine.high %v224_v38, %v228_v11  ;;  %v88_v18 = vld [vmem:[%s15462_s1 + $0x98] sm:$0xff] }
 0x30e   :  { %v6986_v62 = vpop.f32.mrf.mxu1  ;;  %7231 = vmatmul.mubr.bf16.vlgmr.msra.gmra.mxu1 %v12177_v7  ;;  %v6947_v40 = vpop.f32.mrf.mxu0  ;;  %7241 = vmatprep.subr.bf16.mxu0 %v9584_v22  ;;  %v216_v22 = vld [vmem:[%s15462_s1 + $0x498] sm:$0xff] }
 0x30f   :  { %7281 = vmatpush1.bf16.msra.mxu1 %v9719_v20  ;;  %v13821_v46 = vadd.f32 %v6986_v62, %v6946_v36  ;;  %v6948_v35 = vadd.f32 %v6947_v40, %v1118_v23  ;;  %7312 = vmatprep.mubr.bf16.mxu1 %v11372_v0  ;;  %v100_v0 = vld [vmem:[%s15462_s1 + $0xf8] sm:$0xff] }
 0x310   :  { %v6988_v48 = vpop.f32.mrf.mxu1  ;;  %7282 = vmatprep.subr.bf16.mxu1 %v9712_v24  ;;  %v6949_v58 = vpop.f32.mrf.mxu0  ;;  %v9560_v4 = vcombine.high %v96_v30, %v100_v0  ;;  %v92_v20 = vld [vmem:[%s15462_s1 + $0xb8] sm:$0xff]  ;;  %v9559_v24 = vcombine.low %v96_v30, %v100_v0 }
 0x311   :  { %v13837_v61 = vadd.f32 %v6988_v48, %v6948_v35  ;;  %7242 = vmatpush1.bf16.msra.mxu0 %v9583_v37  ;;  %v220_v23 = vld [vmem:[%s15462_s1 + $0x4b8] sm:$0xff]  ;;  %v9552_v53 = vcombine.high %v88_v18, %v92_v20  ;;  %v9551_v37 = vcombine.low %v88_v18, %v92_v20 }
 0x312   :  { %v6990_v2 = vpop.f32.mrf.mxu1  ;;  %v6950_v6 = vpop.f32.mrf.mxu0  ;;  %7243 = vmatprep.subr.bf16.mxu0 %v9576_v14  ;;  %v9680_v29 = vcombine.high %v216_v22, %v220_v23  ;;  %v80_v54 = vld [vmem:[%s15462_s1 + $0x58] sm:$0xff]  ;;  %v9679_v40 = vcombine.low %v216_v22, %v220_v23 }
 0x313   :  { %7283 = vmatpush1.bf16.msra.mxu1 %v9711_v43  ;;  %v84_v34 = vld [vmem:[%s15462_s1 + $0x78] sm:$0xff] }
 0x314   :  { %v6991_v9 = vpop.f32.mrf.mxu1  ;;  %7284 = vmatprep.subr.bf16.mxu1 %v9704_v50  ;;  %v208_v36 = vld [vmem:[%s15462_s1 + $0x458] sm:$0xff]  ;;  %v9544_v43 = vcombine.high %v80_v54, %v84_v34  ;;  %v9543_v12 = vcombine.low %v80_v54, %v84_v34 }
 0x315   :  { %7244 = vmatpush1.bf16.msra.mxu0 %v9575_v51  ;;  %v212_v62 = vld [vmem:[%s15462_s1 + $0x478] sm:$0xff] }
 0x316   :  { %7245 = vmatprep.subr.bf16.mxu0 %v9568_v3  ;;  %v9672_v14 = vcombine.high %v208_v36, %v212_v62  ;;  %v72_v35 = vld [vmem:[%s15462_s1 + $0x18] sm:$0xff]  ;;  %v9671_v58 = vcombine.low %v208_v36, %v212_v62 }
 0x317   :  { %7285 = vmatpush1.bf16.msra.mxu1 %v9703_v63  ;;  %v76_v48 = vld [vmem:[%s15462_s1 + $0x38] sm:$0xff] }
 0x318   :  { %7286 = vmatprep.subr.bf16.mxu1 %v9696_v10  ;;  %v200_v50 = vld [vmem:[%s15462_s1 + $0x418] sm:$0xff]  ;;  %v9536_v59 = vcombine.high %v72_v35, %v76_v48  ;;  %v9535_v3 = vcombine.low %v72_v35, %v76_v48 }
 0x319   :  { %7246 = vmatpush1.bf16.msra.mxu0 %v9567_v13  ;;  %v9664_v41 = vcombine.high %v200_v50, %v204_v39  ;;  %v192_v2 = vld [vmem:[%s15462_s1 + $0x3d8] sm:$0xff]  ;;  %v9663_v9 = vcombine.low %v200_v50, %v204_v39 }
 0x31a   :  { %7247 = vmatprep.subr.bf16.mxu0 %v9560_v4  ;;  %v196_v51 = vld [vmem:[%s15462_s1 + $0x3f8] sm:$0xff] }
 0x31b   :  { %7287 = vmatpush1.bf16.msra.mxu1 %v9695_v44  ;;  %v320_v6 = vld [vmem:[%s15462_s1 + $0x7d8] sm:$0xff]  ;;  %v9656_v10 = vcombine.high %v192_v2, %v196_v51  ;;  %v9655_v44 = vcombine.low %v192_v2, %v196_v51 }
 0x31c   :  { %7288 = vmatprep.subr.bf16.mxu1 %v9688_v16  ;;  %v324_v63 = vld [vmem:[%s15462_s1 + $0x7f8] sm:$0xff] }
 0x31d   :  { %7248 = vmatpush1.bf16.msra.mxu0 %v9559_v24  ;;  %v9784_v30 = vcombine.high %v320_v6, %v324_v63  ;;  %v184_v0 = vld [vmem:[%s15462_s1 + $0x398] sm:$0xff]  ;;  %v9783_v4 = vcombine.low %v320_v6, %v324_v63 }
 0x31e   :  { %7249 = vmatprep.subr.bf16.mxu0 %v9552_v53  ;;  %v188_v38 = vld [vmem:[%s15462_s1 + $0x3b8] sm:$0xff] }
 0x31f   :  { %7289 = vmatpush1.bf16.msra.mxu1 %v9687_v26  ;;  %v312_v11 = vld [vmem:[%s15462_s1 + $0x798] sm:$0xff]  ;;  %v9648_v16 = vcombine.high %v184_v0, %v188_v38  ;;  %v9647_v26 = vcombine.low %v184_v0, %v188_v38 }
 0x320   :  { %7290 = vmatprep.subr.bf16.mxu1 %v9680_v29  ;;  %v316_v13 = vld [vmem:[%s15462_s1 + $0x7b8] sm:$0xff] }
 0x321   :  { %7250 = vmatpush1.bf16.msra.mxu0 %v9551_v37  ;;  %v9776_v18 = vcombine.high %v312_v11, %v316_v13  ;;  %v176_v20 = vld [vmem:[%s15462_s1 + $0x358] sm:$0xff]  ;;  %v9775_v53 = vcombine.low %v312_v11, %v316_v13 }
 0x322   :  { %7251 = vmatprep.subr.bf16.mxu0 %v9544_v43  ;;  %v180_v22 = vld [vmem:[%s15462_s1 + $0x378] sm:$0xff] }
 0x323   :  { %7291 = vmatpush1.bf16.msra.mxu1 %v9679_v40  ;;  %v304_v23 = vld [vmem:[%s15462_s1 + $0x758] sm:$0xff]  ;;  %v9640_v29 = vcombine.high %v176_v20, %v180_v22  ;;  %v9639_v40 = vcombine.low %v176_v20, %v180_v22 }
 0x324   :  { %7292 = vmatprep.subr.bf16.mxu1 %v9672_v14  ;;  %v308_v24 = vld [vmem:[%s15462_s1 + $0x778] sm:$0xff] }
 0x325   :  { %7252 = vmatpush1.bf16.msra.mxu0 %v9543_v12  ;;  %v9768_v54 = vcombine.high %v304_v23, %v308_v24  ;;  %v168_v34 = vld [vmem:[%s15462_s1 + $0x318] sm:$0xff]  ;;  %v9767_v43 = vcombine.low %v304_v23, %v308_v24 }
 0x326   :  { %7253 = vmatprep.subr.bf16.mxu0 %v9536_v59  ;;  %v172_v36 = vld [vmem:[%s15462_s1 + $0x338] sm:$0xff] }
 0x327   :  { %7293 = vmatpush1.bf16.msra.mxu1 %v9671_v58  ;;  %v296_v62 = vld [vmem:[%s15462_s1 + $0x718] sm:$0xff]  ;;  %v9632_v14 = vcombine.high %v168_v34, %v172_v36  ;;  %v9631_v58 = vcombine.low %v168_v34, %v172_v36 }
 0x328   :  { %7294 = vmatprep.subr.bf16.mxu1 %v9664_v41  ;;  %v300_v37 = vld [vmem:[%s15462_s1 + $0x738] sm:$0xff] }
 0x329   :  { %7254 = vmatpush1.bf16.msra.mxu0 %v9535_v3  ;;  %v9760_v35 = vcombine.high %v296_v62, %v300_v37  ;;  %v160_v48 = vld [vmem:[%s15462_s1 + $0x2d8] sm:$0xff]  ;;  %v9759_v59 = vcombine.low %v296_v62, %v300_v37 }
 0x32a   :  { %7255 = vmatprep.subr.bf16.mxu0 %v9656_v10  ;;  %v164_v50 = vld [vmem:[%s15462_s1 + $0x2f8] sm:$0xff] }
 0x32b   :  { %7295 = vmatpush1.bf16.msra.mxu1 %v9663_v9  ;;  %v288_v39 = vld [vmem:[%s15462_s1 + $0x6d8] sm:$0xff]  ;;  %v9624_v41 = vcombine.high %v160_v48, %v164_v50  ;;  %v9623_v9 = vcombine.low %v160_v48, %v164_v50 }
 0x32c   :  { %7296 = vmatprep.subr.bf16.mxu1 %v9784_v30  ;;  %v292_v12 = vld [vmem:[%s15462_s1 + $0x6f8] sm:$0xff] }
 0x32d   :  { %7256 = vmatpush2.bf16.msra.mxu0 %v9655_v44  ;;  %v9752_v2 = vcombine.high %v288_v39, %v292_v12  ;;  %v152_v51 = vld [vmem:[%s15462_s1 + $0x298] sm:$0xff]  ;;  %v9751_v10 = vcombine.low %v288_v39, %v292_v12 }
 0x32e   :  { %7257 = vmatprep.subr.bf16.mxu0 %v9648_v16  ;;  %v156_v6 = vld [vmem:[%s15462_s1 + $0x2b8] sm:$0xff] }
 0x32f   :  { %7297 = vmatpush2.bf16.msra.mxu1 %v9783_v4  ;;  %v280_v63 = vld [vmem:[%s15462_s1 + $0x698] sm:$0xff]  ;;  %v9616_v30 = vcombine.high %v152_v51, %v156_v6  ;;  %v9615_v4 = vcombine.low %v152_v51, %v156_v6 }
 0x330   :  { %7298 = vmatprep.subr.bf16.mxu1 %v9776_v18  ;;  %v284_v3 = vld [vmem:[%s15462_s1 + $0x6b8] sm:$0xff] }
 0x331   :  { %7258 = vmatpush2.bf16.msra.mxu0 %v9647_v26  ;;  %v9744_v0 = vcombine.high %v280_v63, %v284_v3  ;;  %v144_v38 = vld [vmem:[%s15462_s1 + $0x258] sm:$0xff]  ;;  %v9743_v16 = vcombine.low %v280_v63, %v284_v3 }
 0x332   :  { %7259 = vmatprep.subr.bf16.mxu0 %v9640_v29  ;;  %v148_v11 = vld [vmem:[%s15462_s1 + $0x278] sm:$0xff] }
 0x333   :  { %7299 = vmatpush2.bf16.msra.mxu1 %v9775_v53  ;;  %v272_v13 = vld [vmem:[%s15462_s1 + $0x658] sm:$0xff]  ;;  %v9608_v18 = vcombine.high %v144_v38, %v148_v11  ;;  %v9607_v53 = vcombine.low %v144_v38, %v148_v11 }
 0x334   :  { %7300 = vmatprep.subr.bf16.mxu1 %v9768_v54  ;;  %v276_v44 = vld [vmem:[%s15462_s1 + $0x678] sm:$0xff] }
 0x335   :  { %7260 = vmatpush2.bf16.msra.mxu0 %v9639_v40  ;;  %v9736_v20 = vcombine.high %v272_v13, %v276_v44  ;;  %v136_v22 = vld [vmem:[%s15462_s1 + $0x218] sm:$0xff]  ;;  %v9735_v29 = vcombine.low %v272_v13, %v276_v44 }
 0x336   :  { %7261 = vmatprep.subr.bf16.mxu0 %v9632_v14  ;;  %v140_v23 = vld [vmem:[%s15462_s1 + $0x238] sm:$0xff] }
 0x337   :  { %7301 = vmatpush2.bf16.msra.mxu1 %v9767_v43  ;;  %v264_v24 = vld [vmem:[%s15462_s1 + $0x618] sm:$0xff]  ;;  %v9600_v54 = vcombine.high %v136_v22, %v140_v23  ;;  %v9599_v43 = vcombine.low %v136_v22, %v140_v23 }
 0x338   :  { %7302 = vmatprep.subr.bf16.mxu1 %v9760_v35  ;;  %v268_v26 = vld [vmem:[%s15462_s1 + $0x638] sm:$0xff] }
 0x339   :  { %7262 = vmatpush2.bf16.msra.mxu0 %v9631_v58  ;;  %v9728_v34 = vcombine.high %v264_v24, %v268_v26  ;;  %v384_v36 = vld [vmem:[%s15462_s1 + $0x9d8] sm:$0xff]  ;;  %v9727_v14 = vcombine.low %v264_v24, %v268_v26 }
 0x33a   :  { %7263 = vmatprep.subr.bf16.mxu0 %v9624_v41  ;;  %v388_v62 = vld [vmem:[%s15462_s1 + $0x9f8] sm:$0xff] }
 0x33b   :  { %7303 = vmatpush2.bf16.msra.mxu1 %v9759_v59  ;;  %v512_v37 = vld [vmem:[%s15462_s1 + $0xdd8] sm:$0xff]  ;;  %v9848_v35 = vcombine.high %v384_v36, %v388_v62  ;;  %v9847_v59 = vcombine.low %v384_v36, %v388_v62 }
 0x33c   :  { %7304 = vmatprep.subr.bf16.mxu1 %v9752_v2  ;;  %v516_v40 = vld [vmem:[%s15462_s1 + $0xdf8] sm:$0xff] }
 0x33d   :  { %7264 = vmatpush2.bf16.msra.mxu0 %v9623_v9  ;;  %v9976_v48 = vcombine.high %v512_v37, %v516_v40  ;;  %v376_v50 = vld [vmem:[%s15462_s1 + $0x998] sm:$0xff]  ;;  %v9975_v41 = vcombine.low %v512_v37, %v516_v40 }
 0x33e   :  { %7265 = vmatprep.subr.bf16.mxu0 %v9616_v30  ;;  %v380_v39 = vld [vmem:[%s15462_s1 + $0x9b8] sm:$0xff] }
 0x33f   :  { %7305 = vmatpush2.bf16.msra.mxu1 %v9751_v10  ;;  %v504_v12 = vld [vmem:[%s15462_s1 + $0xd98] sm:$0xff]  ;;  %v9840_v2 = vcombine.high %v376_v50, %v380_v39  ;;  %v9839_v38 = vcombine.low %v376_v50, %v380_v39 }
 0x340   :  { %7306 = vmatprep.subr.bf16.mxu1 %v9744_v0  ;;  %v508_v58 = vld [vmem:[%s15462_s1 + $0xdb8] sm:$0xff] }
 0x341   :  { %7266 = vmatpush2.bf16.msra.mxu0 %v9615_v4  ;;  %v9968_v51 = vcombine.high %v504_v12, %v508_v58  ;;  %v368_v6 = vld [vmem:[%s15462_s1 + $0x958] sm:$0xff]  ;;  %v9967_v13 = vcombine.low %v504_v12, %v508_v58 }
 0x342   :  { %7267 = vmatprep.subr.bf16.mxu0 %v9608_v18  ;;  %v372_v63 = vld [vmem:[%s15462_s1 + $0x978] sm:$0xff] }
 0x343   :  { %7307 = vmatpush2.bf16.msra.mxu1 %v9743_v16  ;;  %v496_v9 = vld [vmem:[%s15462_s1 + $0xd58] sm:$0xff]  ;;  %v9831_v26 = vcombine.low %v368_v6, %v372_v63 }
 0x344   :  { %7308 = vmatprep.subr.bf16.mxu1 %v9736_v20  ;;  %v500_v10 = vld [vmem:[%s15462_s1 + $0xd78] sm:$0xff] }
 0x345   :  { %7268 = vmatpush2.bf16.msra.mxu0 %v9607_v53  ;;  %v9960_v18 = vcombine.high %v496_v9, %v500_v10  ;;  %v488_v22 = vld [vmem:[%s15462_s1 + $0xd18] sm:$0xff] }
 0x346   :  { %7269 = vmatprep.subr.bf16.mxu0 %v9600_v54  ;;  %v352_v36 = vld [vmem:[%s15462_s1 + $0x8d8] sm:$0xff] }
 0x347   :  { %7309 = vmatpush2.bf16.msra.mxu1 %v9735_v29  ;;  %v480_v62 = vld [vmem:[%s15462_s1 + $0xcd8] sm:$0xff] }
 0x348   :  { %7310 = vmatprep.subr.bf16.mxu1 %v9728_v34  ;;  %v484_v37 = vld [vmem:[%s15462_s1 + $0xcf8] sm:$0xff] }
 0x349   :  { %7270 = vmatpush2.bf16.msra.mxu0 %v9599_v43  ;;  %v348_v50 = vld [vmem:[%s15462_s1 + $0x8b8] sm:$0xff] }
 0x34a   :  { %7321 = vmatprep.subr.bf16.mxu0 %v9848_v35  ;;  %v9944_v35 = vcombine.high %v480_v62, %v484_v37  ;;  %v472_v39 = vld [vmem:[%s15462_s1 + $0xc98] sm:$0xff] }
 0x34b   :  { %7311 = vmatpush2.bf16.msra.mxu1 %v9727_v14  ;;  %v476_v12 = vld [vmem:[%s15462_s1 + $0xcb8] sm:$0xff] }
 0x34c   :  { %7362 = vmatprep.subr.bf16.mxu1 %v9976_v48  ;;  %v7027_v3 = vpop.f32.mrf.mxu0  ;;  %7272 = vmatmul.mubr.bf16.vlgmr.msra.gmra.mxu0 %v11504_v21  ;;  %v9832_v21 = vcombine.high %v368_v6, %v372_v63  ;;  %v344_v48 = vld [vmem:[%s15462_s1 + $0x898] sm:$0xff] }
 0x34d   :  { %v7028_v30 = vadd.f32 %v7027_v3, %v13821_v46  ;;  %7322 = vmatpush1.bf16.msra.mxu0 %v9847_v59  ;;  %v360_v46 = vld [vmem:[%s15462_s1 + $0x918] sm:$0xff]  ;;  %7353 = vmatprep.mubr.bf16.mxu0 %v11527_v31  ;;  %v9959_v31 = vcombine.low %v496_v9, %v500_v10  ;;  %v9943_v59 = vcombine.low %v480_v62, %v484_v37 }
 0x34e   :  { %v7068_v0 = vpop.f32.mrf.mxu1  ;;  %7313 = vmatmul.mubr.bf16.vlgmr.msra.gmra.mxu1 %v11516_v25  ;;  %v7029_v11 = vpop.f32.mrf.mxu0  ;;  %7323 = vmatprep.subr.bf16.mxu0 %v9840_v2  ;;  %v364_v25 = vld [vmem:[%s15462_s1 + $0x938] sm:$0xff]  ;;  %v9936_v2 = vcombine.high %v472_v39, %v476_v12  ;;  %v9807_v9 = vcombine.low %v344_v48, %v348_v50  ;;  %v9935_v10 = vcombine.low %v472_v39, %v476_v12 }
 0x34f   :  { %7363 = vmatpush1.bf16.msra.mxu1 %v9975_v41  ;;  %v14022_v44 = vadd.f32 %v7068_v0, %v7028_v30  ;;  %v7030_v4 = vadd.f32 %v7029_v11, %v13837_v61  ;;  %v492_v61 = vld [vmem:[%s15462_s1 + $0xd38] sm:$0xff]  ;;  %7394 = vmatprep.mubr.bf16.mxu1 %v11533_v33  ;;  %v9824_v29 = vcombine.high %v360_v46, %v364_v25 }
 0x350   :  { %v7070_v16 = vpop.f32.mrf.mxu1  ;;  %7364 = vmatprep.subr.bf16.mxu1 %v9968_v51  ;;  %v7031_v20 = vpop.f32.mrf.mxu0  ;;  %v9952_v34 = vcombine.high %v488_v22, %v492_v61  ;;  %v356_v33 = vld [vmem:[%s15462_s1 + $0x8f8] sm:$0xff]  ;;  %v9823_v40 = vcombine.low %v360_v46, %v364_v25  ;;  %v9951_v43 = vcombine.low %v488_v22, %v492_v61  ;;  %v9808_v41 = vcombine.high %v344_v48, %v348_v50 }
 0x351   :  { %v14039_v23 = vadd.f32 %v7070_v16, %v7030_v4  ;;  %7324 = vmatpush1.bf16.msra.mxu0 %v9839_v38  ;;  %v9816_v14 = vcombine.high %v352_v36, %v356_v33  ;;  %v9815_v58 = vcombine.low %v352_v36, %v356_v33  ;;  %v336_v51 = vld [vmem:[%s15462_s1 + $0x858] sm:$0xff] }
 0x352   :  { %v7072_v24 = vpop.f32.mrf.mxu1  ;;  %v7032_v53 = vpop.f32.mrf.mxu0  ;;  %7325 = vmatprep.subr.bf16.mxu0 %v9832_v21  ;;  %v340_v6 = vld [vmem:[%s15462_s1 + $0x878] sm:$0xff] }
 0x353   :  { %7365 = vmatpush1.bf16.msra.mxu1 %v9967_v13  ;;  %v464_v63 = vld [vmem:[%s15462_s1 + $0xc58] sm:$0xff]  ;;  %v9800_v30 = vcombine.high %v336_v51, %v340_v6  ;;  %v9799_v4 = vcombine.low %v336_v51, %v340_v6 }
 0x354   :  { %v7073_v54 = vpop.f32.mrf.mxu1  ;;  %7366 = vmatprep.subr.bf16.mxu1 %v9960_v18  ;;  %v468_v3 = vld [vmem:[%s15462_s1 + $0xc78] sm:$0xff] }
 0x355   :  { %7326 = vmatpush1.bf16.msra.mxu0 %v9831_v26  ;;  %v9928_v0 = vcombine.high %v464_v63, %v468_v3  ;;  %v328_v38 = vld [vmem:[%s15462_s1 + $0x818] sm:$0xff]  ;;  %v9927_v16 = vcombine.low %v464_v63, %v468_v3 }
 0x356   :  { %7327 = vmatprep.subr.bf16.mxu0 %v9824_v29  ;;  %v332_v11 = vld [vmem:[%s15462_s1 + $0x838] sm:$0xff] }
 0x357   :  { %7367 = vmatpush1.bf16.msra.mxu1 %v9959_v31  ;;  %v456_v13 = vld [vmem:[%s15462_s1 + $0xc18] sm:$0xff]  ;;  %v9792_v18 = vcombine.high %v328_v38, %v332_v11  ;;  %v9791_v24 = vcombine.low %v328_v38, %v332_v11 }
 0x358   :  { %7368 = vmatprep.subr.bf16.mxu1 %v9952_v34  ;;  %v460_v21 = vld [vmem:[%s15462_s1 + $0xc38] sm:$0xff] }
 0x359   :  { %7328 = vmatpush1.bf16.msra.mxu0 %v9823_v40  ;;  %v9920_v46 = vcombine.high %v456_v13, %v460_v21  ;;  %v448_v25 = vld [vmem:[%s15462_s1 + $0xbd8] sm:$0xff]  ;;  %v9919_v26 = vcombine.low %v456_v13, %v460_v21 }
 0x35a   :  { %7329 = vmatprep.subr.bf16.mxu0 %v9816_v14  ;;  %v452_v20 = vld [vmem:[%s15462_s1 + $0xbf8] sm:$0xff] }
 0x35b   :  { %7369 = vmatpush1.bf16.msra.mxu1 %v9951_v43  ;;  %v576_v22 = vld [vmem:[%s15462_s1 + $0xfd8] sm:$0xff]  ;;  %v9912_v53 = vcombine.high %v448_v25, %v452_v20  ;;  %v9911_v33 = vcombine.low %v448_v25, %v452_v20 }
 0x35c   :  { %7370 = vmatprep.subr.bf16.mxu1 %v9944_v35  ;;  %v580_v61 = vld [vmem:[%s15462_s1 + $0xff8] sm:$0xff] }
 0x35d   :  { %7330 = vmatpush1.bf16.msra.mxu0 %v9815_v58  ;;  %v10040_v31 = vcombine.high %v576_v22, %v580_v61  ;;  %v440_v29 = vld [vmem:[%s15462_s1 + $0xb98] sm:$0xff]  ;;  %v10039_v62 = vcombine.low %v576_v22, %v580_v61 }
 0x35e   :  { %7331 = vmatprep.subr.bf16.mxu0 %v9808_v41  ;;  %v444_v54 = vld [vmem:[%s15462_s1 + $0xbb8] sm:$0xff] }
 0x35f   :  { %7371 = vmatpush1.bf16.msra.mxu1 %v9943_v59  ;;  %v568_v34 = vld [vmem:[%s15462_s1 + $0xf98] sm:$0xff]  ;;  %v9904_v37 = vcombine.high %v440_v29, %v444_v54  ;;  %v9903_v50 = vcombine.low %v440_v29, %v444_v54 }
 0x360   :  { %7372 = vmatprep.subr.bf16.mxu1 %v9936_v2  ;;  %v572_v36 = vld [vmem:[%s15462_s1 + $0xfb8] sm:$0xff] }
 0x361   :  { %7332 = vmatpush1.bf16.msra.mxu0 %v9807_v9  ;;  %v10032_v40 = vcombine.high %v568_v34, %v572_v36  ;;  %v432_v43 = vld [vmem:[%s15462_s1 + $0xb58] sm:$0xff]  ;;  %v10031_v39 = vcombine.low %v568_v34, %v572_v36 }
 0x362   :  { %7333 = vmatprep.subr.bf16.mxu0 %v9800_v30  ;;  %v436_v14 = vld [vmem:[%s15462_s1 + $0xb78] sm:$0xff] }
 0x363   :  { %7373 = vmatpush1.bf16.msra.mxu1 %v9935_v10  ;;  %v560_v35 = vld [vmem:[%s15462_s1 + $0xf58] sm:$0xff]  ;;  %v9896_v12 = vcombine.high %v432_v43, %v436_v14  ;;  %v9895_v6 = vcombine.low %v432_v43, %v436_v14 }
 0x364   :  { %7374 = vmatprep.subr.bf16.mxu1 %v9928_v0  ;;  %v564_v48 = vld [vmem:[%s15462_s1 + $0xf78] sm:$0xff] }
 0x365   :  { %7334 = vmatpush1.bf16.msra.mxu0 %v9799_v4  ;;  %v10024_v58 = vcombine.high %v560_v35, %v564_v48  ;;  %v424_v59 = vld [vmem:[%s15462_s1 + $0xb18] sm:$0xff]  ;;  %v10023_v63 = vcombine.low %v560_v35, %v564_v48 }
 0x366   :  { %7335 = vmatprep.subr.bf16.mxu0 %v9792_v18  ;;  %v428_v41 = vld [vmem:[%s15462_s1 + $0xb38] sm:$0xff] }
 0x367   :  { %7375 = vmatpush1.bf16.msra.mxu1 %v9927_v16  ;;  %v552_v2 = vld [vmem:[%s15462_s1 + $0xf18] sm:$0xff]  ;;  %v9888_v3 = vcombine.high %v424_v59, %v428_v41  ;;  %v9887_v11 = vcombine.low %v424_v59, %v428_v41 }
 0x368   :  { %7376 = vmatprep.subr.bf16.mxu1 %v9920_v46  ;;  %v556_v51 = vld [vmem:[%s15462_s1 + $0xf38] sm:$0xff] }
 0x369   :  { %7336 = vmatpush1.bf16.msra.mxu0 %v9791_v24  ;;  %v10016_v9 = vcombine.high %v552_v2, %v556_v51  ;;  %v416_v10 = vld [vmem:[%s15462_s1 + $0xad8] sm:$0xff]  ;;  %v10015_v13 = vcombine.low %v552_v2, %v556_v51 }
 0x36a   :  { %7337 = vmatprep.subr.bf16.mxu0 %v9912_v53  ;;  %v420_v30 = vld [vmem:[%s15462_s1 + $0xaf8] sm:$0xff] }
 0x36b   :  { %7377 = vmatpush1.bf16.msra.mxu1 %v9919_v26  ;;  %v544_v0 = vld [vmem:[%s15462_s1 + $0xed8] sm:$0xff]  ;;  %v9880_v21 = vcombine.high %v416_v10, %v420_v30  ;;  %v9879_v20 = vcombine.low %v416_v10, %v420_v30 }
 0x36c   :  { %7378 = vmatprep.subr.bf16.mxu1 %v10040_v31  ;;  %v548_v38 = vld [vmem:[%s15462_s1 + $0xef8] sm:$0xff] }
 0x36d   :  { %7338 = vmatpush2.bf16.msra.mxu0 %v9911_v33  ;;  %v10008_v4 = vcombine.high %v544_v0, %v548_v38  ;;  %v408_v16 = vld [vmem:[%s15462_s1 + $0xa98] sm:$0xff]  ;;  %v10007_v22 = vcombine.low %v544_v0, %v548_v38 }
 0x36e   :  { %7339 = vmatprep.subr.bf16.mxu0 %v9904_v37  ;;  %v412_v18 = vld [vmem:[%s15462_s1 + $0xab8] sm:$0xff] }
 0x36f   :  { %7379 = vmatpush2.bf16.msra.mxu1 %v10039_v62  ;;  %v536_v46 = vld [vmem:[%s15462_s1 + $0xe98] sm:$0xff]  ;;  %v9872_v61 = vcombine.high %v408_v16, %v412_v18  ;;  %v9871_v54 = vcombine.low %v408_v16, %v412_v18 }
 0x370   :  { %7380 = vmatprep.subr.bf16.mxu1 %v10032_v40  ;;  %v540_v25 = vld [vmem:[%s15462_s1 + $0xeb8] sm:$0xff] }
 0x371   :  { %7340 = vmatpush2.bf16.msra.mxu0 %v9903_v50  ;;  %v10000_v24 = vcombine.high %v536_v46, %v540_v25  ;;  %v400_v26 = vld [vmem:[%s15462_s1 + $0xa58] sm:$0xff]  ;;  %v9999_v34 = vcombine.low %v536_v46, %v540_v25 }
 0x372   :  { %7341 = vmatprep.subr.bf16.mxu0 %v9896_v12  ;;  %v404_v53 = vld [vmem:[%s15462_s1 + $0xa78] sm:$0xff] }
 0x373   :  { %7381 = vmatpush2.bf16.msra.mxu1 %v10031_v39  ;;  %v528_v31 = vld [vmem:[%s15462_s1 + $0xe58] sm:$0xff]  ;;  %v9864_v36 = vcombine.high %v400_v26, %v404_v53  ;;  %v9863_v14 = vcombine.low %v400_v26, %v404_v53 }
 0x374   :  { %7382 = vmatprep.subr.bf16.mxu1 %v10024_v58  ;;  %v532_v29 = vld [vmem:[%s15462_s1 + $0xe78] sm:$0xff] }
 0x375   :  { %7342 = vmatpush2.bf16.msra.mxu0 %v9895_v6  ;;  %v9992_v33 = vcombine.high %v528_v31, %v532_v29  ;;  %v392_v62 = vld [vmem:[%s15462_s1 + $0xa18] sm:$0xff]  ;;  %v9991_v35 = vcombine.low %v528_v31, %v532_v29 }
 0x376   :  { %7343 = vmatprep.subr.bf16.mxu0 %v9888_v3  ;;  %v396_v37 = vld [vmem:[%s15462_s1 + $0xa38] sm:$0xff] }
 0x377   :  { %7383 = vmatpush2.bf16.msra.mxu1 %v10023_v63  ;;  %v520_v40 = vld [vmem:[%s15462_s1 + $0xe18] sm:$0xff]  ;;  %v9856_v48 = vcombine.high %v392_v62, %v396_v37  ;;  %v9855_v41 = vcombine.low %v392_v62, %v396_v37 }
 0x378   :  { %7384 = vmatprep.subr.bf16.mxu1 %v10016_v9  ;;  %v524_v43 = vld [vmem:[%s15462_s1 + $0xe38] sm:$0xff] }
 0x379   :  { %7344 = vmatpush2.bf16.msra.mxu0 %v9887_v11  ;;  %v9984_v50 = vcombine.high %v520_v40, %v524_v43  ;;  %v640_v39 = vld [vmem:[%s15462_s1 + $0x11d8] sm:$0xff]  ;;  %v9983_v2 = vcombine.low %v520_v40, %v524_v43 }
 0x37a   :  { %7345 = vmatprep.subr.bf16.mxu0 %v9880_v21  ;;  %v644_v12 = vld [vmem:[%s15462_s1 + $0x11f8] sm:$0xff] }
 0x37b   :  { %7385 = vmatpush2.bf16.msra.mxu1 %v10015_v13  ;;  %v768_v58 = vld [vmem:[%s15462_s1 + $0x15d8] sm:$0xff]  ;;  %v10104_v51 = vcombine.high %v640_v39, %v644_v12  ;;  %v10103_v30 = vcombine.low %v640_v39, %v644_v12 }
 0x37c   :  { %7386 = vmatprep.subr.bf16.mxu1 %v10008_v4  ;;  %v772_v59 = vld [vmem:[%s15462_s1 + $0x15f8] sm:$0xff] }
 0x37d   :  { %7346 = vmatpush2.bf16.msra.mxu0 %v9879_v20  ;;  %v10232_v6 = vcombine.high %v768_v58, %v772_v59  ;;  %v632_v63 = vld [vmem:[%s15462_s1 + $0x1198] sm:$0xff]  ;;  %v10231_v0 = vcombine.low %v768_v58, %v772_v59 }
 0x37e   :  { %7347 = vmatprep.subr.bf16.mxu0 %v9872_v61  ;;  %v636_v3 = vld [vmem:[%s15462_s1 + $0x11b8] sm:$0xff] }
 0x37f   :  { %7387 = vmatpush2.bf16.msra.mxu1 %v10007_v22  ;;  %v760_v9 = vld [vmem:[%s15462_s1 + $0x1598] sm:$0xff]  ;;  %v10096_v38 = vcombine.high %v632_v63, %v636_v3  ;;  %v10095_v20 = vcombine.low %v632_v63, %v636_v3 }
 0x380   :  { %7388 = vmatprep.subr.bf16.mxu1 %v10000_v24  ;;  %v764_v10 = vld [vmem:[%s15462_s1 + $0x15b8] sm:$0xff] }
 0x381   :  { %7348 = vmatpush2.bf16.msra.mxu0 %v9871_v54  ;;  %v10224_v11 = vcombine.high %v760_v9, %v764_v10  ;;  %v624_v13 = vld [vmem:[%s15462_s1 + $0x1158] sm:$0xff]  ;;  %v10223_v61 = vcombine.low %v760_v9, %v764_v10 }
 0x382   :  { %7349 = vmatprep.subr.bf16.mxu0 %v9864_v36  ;;  %v628_v21 = vld [vmem:[%s15462_s1 + $0x1178] sm:$0xff] }
 0x383   :  { %7389 = vmatpush2.bf16.msra.mxu1 %v9999_v34  ;;  %v752_v16 = vld [vmem:[%s15462_s1 + $0x1558] sm:$0xff] }
 0x384   :  { %7390 = vmatprep.subr.bf16.mxu1 %v9992_v33  ;;  %v756_v18 = vld [vmem:[%s15462_s1 + $0x1578] sm:$0xff]  ;;  %v10087_v33 = vcombine.low %v624_v13, %v628_v21 }
 0x385   :  { %7350 = vmatpush2.bf16.msra.mxu0 %v9863_v14  ;;  %v10216_v31 = vcombine.high %v752_v16, %v756_v18  ;;  %v744_v54 = vld [vmem:[%s15462_s1 + $0x1518] sm:$0xff] }
 0x386   :  { %7351 = vmatprep.subr.bf16.mxu0 %v9856_v48  ;;  %v608_v14 = vld [vmem:[%s15462_s1 + $0x10d8] sm:$0xff] }
 0x387   :  { %7391 = vmatpush2.bf16.msra.mxu1 %v9991_v35  ;;  %v736_v35 = vld [vmem:[%s15462_s1 + $0x14d8] sm:$0xff] }
 0x388   :  { %7392 = vmatprep.subr.bf16.mxu1 %v9984_v50  ;;  %v740_v48 = vld [vmem:[%s15462_s1 + $0x14f8] sm:$0xff] }
 0x389   :  { %7352 = vmatpush2.bf16.msra.mxu0 %v9855_v41  ;;  %v10200_v58 = vcombine.high %v736_v35, %v740_v48  ;;  %v600_v59 = vld [vmem:[%s15462_s1 + $0x1098] sm:$0xff]  ;;  %v10199_v63 = vcombine.low %v736_v35, %v740_v48 }
 0x38a   :  { %7403 = vmatprep.subr.bf16.mxu0 %v10104_v51  ;;  %v604_v41 = vld [vmem:[%s15462_s1 + $0x10b8] sm:$0xff] }
 0x38b   :  { %7393 = vmatpush2.bf16.msra.mxu1 %v9983_v2  ;;  %v728_v2 = vld [vmem:[%s15462_s1 + $0x1498] sm:$0xff]  ;;  %v10064_v3 = vcombine.high %v600_v59, %v604_v41 }
 0x38c   :  { %7444 = vmatprep.subr.bf16.mxu1 %v10232_v6  ;;  %v7109_v4 = vpop.f32.mrf.mxu0  ;;  %7354 = vmatmul.mubr.bf16.vlgmr.msra.gmra.mxu0 %v11732_v45  ;;  %v10088_v45 = vcombine.high %v624_v13, %v628_v21  ;;  %v732_v51 = vld [vmem:[%s15462_s1 + $0x14b8] sm:$0xff] }
 0x38d   :  { %v7110_v46 = vadd.f32 %v7109_v4, %v14022_v44  ;;  %7404 = vmatpush1.bf16.msra.mxu0 %v10103_v30  ;;  %v616_v44 = vld [vmem:[%s15462_s1 + $0x1118] sm:$0xff]  ;;  %7435 = vmatprep.mubr.bf16.mxu0 %v11752_v56  ;;  %v10215_v56 = vcombine.low %v752_v16, %v756_v18  ;;  %v10192_v9 = vcombine.high %v728_v2, %v732_v51 }
 0x38e   :  { %v7150_v25 = vpop.f32.mrf.mxu1  ;;  %7395 = vmatmul.mubr.bf16.vlgmr.msra.gmra.mxu1 %v11738_v47  ;;  %v7111_v22 = vpop.f32.mrf.mxu0  ;;  %7405 = vmatprep.subr.bf16.mxu0 %v10096_v38  ;;  %v620_v47 = vld [vmem:[%s15462_s1 + $0x1138] sm:$0xff]  ;;  %v10191_v13 = vcombine.low %v728_v2, %v732_v51 }
 0x38f   :  { %7445 = vmatpush1.bf16.msra.mxu1 %v10231_v0  ;;  %v14224_v24 = vadd.f32 %v7150_v25, %v7110_v46  ;;  %v7112_v26 = vadd.f32 %v7111_v22, %v14039_v23  ;;  %v748_v23 = vld [vmem:[%s15462_s1 + $0x1538] sm:$0xff]  ;;  %7476 = vmatprep.mubr.bf16.mxu1 %v11755_v57  ;;  %v10080_v37 = vcombine.high %v616_v44, %v620_v47 }
 0x390   :  { %v7152_v53 = vpop.f32.mrf.mxu1  ;;  %7446 = vmatprep.subr.bf16.mxu1 %v10224_v11  ;;  %v7113_v29 = vpop.f32.mrf.mxu0  ;;  %v10208_v43 = vcombine.high %v744_v54, %v748_v23  ;;  %v612_v57 = vld [vmem:[%s15462_s1 + $0x10f8] sm:$0xff]  ;;  %v10079_v50 = vcombine.low %v616_v44, %v620_v47  ;;  %v10207_v39 = vcombine.low %v744_v54, %v748_v23  ;;  %v10063_v11 = vcombine.low %v600_v59, %v604_v41 }
 0x391   :  { %v14241_v34 = vadd.f32 %v7152_v53, %v7112_v26  ;;  %7406 = vmatpush1.bf16.msra.mxu0 %v10095_v20  ;;  %v10072_v12 = vcombine.high %v608_v14, %v612_v57  ;;  %v10071_v6 = vcombine.low %v608_v14, %v612_v57  ;;  %v592_v10 = vld [vmem:[%s15462_s1 + $0x1058] sm:$0xff] }
 0x392   :  { %v7154_v36 = vpop.f32.mrf.mxu1  ;;  %v7114_v62 = vpop.f32.mrf.mxu0  ;;  %7407 = vmatprep.subr.bf16.mxu0 %v10088_v45  ;;  %v596_v30 = vld [vmem:[%s15462_s1 + $0x1078] sm:$0xff] }
 0x393   :  { %7447 = vmatpush1.bf16.msra.mxu1 %v10223_v61  ;;  %v720_v0 = vld [vmem:[%s15462_s1 + $0x1458] sm:$0xff]  ;;  %v10056_v21 = vcombine.high %v592_v10, %v596_v30  ;;  %v10055_v20 = vcombine.low %v592_v10, %v596_v30 }
 0x394   :  { %v7155_v40 = vpop.f32.mrf.mxu1  ;;  %7448 = vmatprep.subr.bf16.mxu1 %v10216_v31  ;;  %v724_v38 = vld [vmem:[%s15462_s1 + $0x1478] sm:$0xff] }
 0x395   :  { %7408 = vmatpush1.bf16.msra.mxu0 %v10087_v33  ;;  %v10184_v4 = vcombine.high %v720_v0, %v724_v38  ;;  %v584_v16 = vld [vmem:[%s15462_s1 + $0x1018] sm:$0xff]  ;;  %v10183_v22 = vcombine.low %v720_v0, %v724_v38 }
 0x396   :  { %7409 = vmatprep.subr.bf16.mxu0 %v10080_v37  ;;  %v588_v18 = vld [vmem:[%s15462_s1 + $0x1038] sm:$0xff] }
 0x397   :  { %7449 = vmatpush1.bf16.msra.mxu1 %v10215_v56  ;;  %v712_v46 = vld [vmem:[%s15462_s1 + $0x1418] sm:$0xff]  ;;  %v10048_v61 = vcombine.high %v584_v16, %v588_v18  ;;  %v10047_v47 = vcombine.low %v584_v16, %v588_v18 }
 0x398   :  { %7450 = vmatprep.subr.bf16.mxu1 %v10208_v43  ;;  %v716_v25 = vld [vmem:[%s15462_s1 + $0x1438] sm:$0xff] }
 0x399   :  { %7410 = vmatpush1.bf16.msra.mxu0 %v10079_v50  ;;  %v10176_v45 = vcombine.high %v712_v46, %v716_v25  ;;  %v704_v26 = vld [vmem:[%s15462_s1 + $0x13d8] sm:$0xff]  ;;  %v10175_v29 = vcombine.low %v712_v46, %v716_v25 }
 0x39a   :  { %7411 = vmatprep.subr.bf16.mxu0 %v10072_v12  ;;  %v708_v53 = vld [vmem:[%s15462_s1 + $0x13f8] sm:$0xff] }
 0x39b   :  { %7451 = vmatpush1.bf16.msra.mxu1 %v10207_v39  ;;  %v832_v31 = vld [vmem:[%s15462_s1 + $0x17d8] sm:$0xff]  ;;  %v10168_v54 = vcombine.high %v704_v26, %v708_v53  ;;  %v10167_v37 = vcombine.low %v704_v26, %v708_v53 }
 0x39c   :  { %7452 = vmatprep.subr.bf16.mxu1 %v10200_v58  ;;  %v836_v44 = vld [vmem:[%s15462_s1 + $0x17f8] sm:$0xff] }
 0x39d   :  { %7412 = vmatpush1.bf16.msra.mxu0 %v10071_v6  ;;  %v10296_v23 = vcombine.high %v832_v31, %v836_v44  ;;  %v696_v36 = vld [vmem:[%s15462_s1 + $0x1398] sm:$0xff]  ;;  %v10295_v40 = vcombine.low %v832_v31, %v836_v44 }
 0x39e   :  { %7413 = vmatprep.subr.bf16.mxu0 %v10064_v3  ;;  %v700_v33 = vld [vmem:[%s15462_s1 + $0x13b8] sm:$0xff] }
 0x39f   :  { %7453 = vmatpush1.bf16.msra.mxu1 %v10199_v63  ;;  %v824_v62 = vld [vmem:[%s15462_s1 + $0x1798] sm:$0xff]  ;;  %v10160_v43 = vcombine.high %v696_v36, %v700_v33  ;;  %v10159_v39 = vcombine.low %v696_v36, %v700_v33 }
 0x3a0   :  { %7454 = vmatprep.subr.bf16.mxu1 %v10192_v9  ;;  %v828_v56 = vld [vmem:[%s15462_s1 + $0x17b8] sm:$0xff] }
 0x3a1   :  { %7414 = vmatpush1.bf16.msra.mxu0 %v10063_v11  ;;  %v10288_v14 = vcombine.high %v824_v62, %v828_v56  ;;  %v688_v57 = vld [vmem:[%s15462_s1 + $0x1358] sm:$0xff]  ;;  %v10287_v12 = vcombine.low %v824_v62, %v828_v56 }
 0x3a2   :  { %7415 = vmatprep.subr.bf16.mxu0 %v10056_v21  ;;  %v692_v35 = vld [vmem:[%s15462_s1 + $0x1378] sm:$0xff] }
 0x3a3   :  { %7455 = vmatpush1.bf16.msra.mxu1 %v10191_v13  ;;  %v816_v48 = vld [vmem:[%s15462_s1 + $0x1758] sm:$0xff]  ;;  %v10152_v58 = vcombine.high %v688_v57, %v692_v35  ;;  %v10151_v63 = vcombine.low %v688_v57, %v692_v35 }
 0x3a4   :  { %7456 = vmatprep.subr.bf16.mxu1 %v10184_v4  ;;  %v820_v50 = vld [vmem:[%s15462_s1 + $0x1778] sm:$0xff] }
 0x3a5   :  { %7416 = vmatpush1.bf16.msra.mxu0 %v10055_v20  ;;  %v10280_v59 = vcombine.high %v816_v48, %v820_v50  ;;  %v680_v41 = vld [vmem:[%s15462_s1 + $0x1318] sm:$0xff]  ;;  %v10279_v3 = vcombine.low %v816_v48, %v820_v50 }
 0x3a6   :  { %7417 = vmatprep.subr.bf16.mxu0 %v10048_v61  ;;  %v684_v2 = vld [vmem:[%s15462_s1 + $0x1338] sm:$0xff] }
 0x3a7   :  { %7457 = vmatpush1.bf16.msra.mxu1 %v10183_v22  ;;  %v808_v51 = vld [vmem:[%s15462_s1 + $0x1718] sm:$0xff]  ;;  %v10144_v9 = vcombine.high %v680_v41, %v684_v2  ;;  %v10143_v13 = vcombine.low %v680_v41, %v684_v2 }
 0x3a8   :  { %7458 = vmatprep.subr.bf16.mxu1 %v10176_v45  ;;  %v812_v6 = vld [vmem:[%s15462_s1 + $0x1738] sm:$0xff] }
 0x3a9   :  { %7418 = vmatpush1.bf16.msra.mxu0 %v10047_v47  ;;  %v10272_v10 = vcombine.high %v808_v51, %v812_v6  ;;  %v672_v30 = vld [vmem:[%s15462_s1 + $0x12d8] sm:$0xff]  ;;  %v10271_v21 = vcombine.low %v808_v51, %v812_v6 }
 0x3aa   :  { %7419 = vmatprep.subr.bf16.mxu0 %v10168_v54  ;;  %v676_v0 = vld [vmem:[%s15462_s1 + $0x12f8] sm:$0xff] }
 0x3ab   :  { %7459 = vmatpush1.bf16.msra.mxu1 %v10175_v29  ;;  %v800_v38 = vld [vmem:[%s15462_s1 + $0x16d8] sm:$0xff]  ;;  %v10136_v4 = vcombine.high %v672_v30, %v676_v0  ;;  %v10135_v22 = vcombine.low %v672_v30, %v676_v0 }
 0x3ac   :  { %7460 = vmatprep.subr.bf16.mxu1 %v10296_v23  ;;  %v804_v11 = vld [vmem:[%s15462_s1 + $0x16f8] sm:$0xff] }
 0x3ad   :  { %7420 = vmatpush2.bf16.msra.mxu0 %v10167_v37  ;;  %v10264_v16 = vcombine.high %v800_v38, %v804_v11  ;;  %v664_v18 = vld [vmem:[%s15462_s1 + $0x1298] sm:$0xff]  ;;  %v10263_v61 = vcombine.low %v800_v38, %v804_v11 }
 0x3ae   :  { %7421 = vmatprep.subr.bf16.mxu0 %v10160_v43  ;;  %v668_v46 = vld [vmem:[%s15462_s1 + $0x12b8] sm:$0xff] }
 0x3af   :  { %7461 = vmatpush2.bf16.msra.mxu1 %v10295_v40  ;;  %v792_v25 = vld [vmem:[%s15462_s1 + $0x1698] sm:$0xff]  ;;  %v10128_v45 = vcombine.high %v664_v18, %v668_v46  ;;  %v10127_v29 = vcombine.low %v664_v18, %v668_v46 }
 0x3b0   :  { %7462 = vmatprep.subr.bf16.mxu1 %v10288_v14  ;;  %v796_v20 = vld [vmem:[%s15462_s1 + $0x16b8] sm:$0xff] }
 0x3b1   :  { %7422 = vmatpush2.bf16.msra.mxu0 %v10159_v39  ;;  %v10256_v26 = vcombine.high %v792_v25, %v796_v20  ;;  %v656_v53 = vld [vmem:[%s15462_s1 + $0x1258] sm:$0xff]  ;;  %v10255_v54 = vcombine.low %v792_v25, %v796_v20 }
 0x3b2   :  { %7423 = vmatprep.subr.bf16.mxu0 %v10152_v58  ;;  %v660_v31 = vld [vmem:[%s15462_s1 + $0x1278] sm:$0xff] }
 0x3b3   :  { %7463 = vmatpush2.bf16.msra.mxu1 %v10287_v12  ;;  %v784_v44 = vld [vmem:[%s15462_s1 + $0x1658] sm:$0xff]  ;;  %v10120_v23 = vcombine.high %v656_v53, %v660_v31  ;;  %v10119_v40 = vcombine.low %v656_v53, %v660_v31 }
 0x3b4   :  { %7464 = vmatprep.subr.bf16.mxu1 %v10280_v59  ;;  %v788_v47 = vld [vmem:[%s15462_s1 + $0x1678] sm:$0xff] }
 0x3b5   :  { %7424 = vmatpush2.bf16.msra.mxu0 %v10151_v63  ;;  %v10248_v36 = vcombine.high %v784_v44, %v788_v47  ;;  %v648_v33 = vld [vmem:[%s15462_s1 + $0x1218] sm:$0xff]  ;;  %v10247_v43 = vcombine.low %v784_v44, %v788_v47 }
 0x3b6   :  { %7425 = vmatprep.subr.bf16.mxu0 %v10144_v9  ;;  %v652_v62 = vld [vmem:[%s15462_s1 + $0x1238] sm:$0xff] }
 0x3b7   :  { %7465 = vmatpush2.bf16.msra.mxu1 %v10279_v3  ;;  %v776_v56 = vld [vmem:[%s15462_s1 + $0x1618] sm:$0xff]  ;;  %v10112_v14 = vcombine.high %v648_v33, %v652_v62  ;;  %v10111_v12 = vcombine.low %v648_v33, %v652_v62 }
 0x3b8   :  { %7466 = vmatprep.subr.bf16.mxu1 %v10272_v10  ;;  %v780_v37 = vld [vmem:[%s15462_s1 + $0x1638] sm:$0xff] }
 0x3b9   :  { %7426 = vmatpush2.bf16.msra.mxu0 %v10143_v13  ;;  %v10240_v57 = vcombine.high %v776_v56, %v780_v37  ;;  %v896_v35 = vld [vmem:[%s15462_s1 + $0x19d8] sm:$0xff]  ;;  %v10239_v58 = vcombine.low %v776_v56, %v780_v37 }
 0x3ba   :  { %7427 = vmatprep.subr.bf16.mxu0 %v10136_v4  ;;  %v900_v48 = vld [vmem:[%s15462_s1 + $0x19f8] sm:$0xff] }
 0x3bb   :  { %7467 = vmatpush2.bf16.msra.mxu1 %v10271_v21  ;;  %v1024_v50 = vld [vmem:[%s15462_s1 + $0x1dd8] sm:$0xff]  ;;  %v10360_v59 = vcombine.high %v896_v35, %v900_v48  ;;  %v10359_v3 = vcombine.low %v896_v35, %v900_v48 }
 0x3bc   :  { %7468 = vmatprep.subr.bf16.mxu1 %v10264_v16  ;;  %v1028_v39 = vld [vmem:[%s15462_s1 + $0x1df8] sm:$0xff] }
 0x3bd   :  { %7428 = vmatpush2.bf16.msra.mxu0 %v10135_v22  ;;  %v10488_v41 = vcombine.high %v1024_v50, %v1028_v39  ;;  %v888_v2 = vld [vmem:[%s15462_s1 + $0x1998] sm:$0xff]  ;;  %v10487_v9 = vcombine.low %v1024_v50, %v1028_v39 }
 0x3be   :  { %7429 = vmatprep.subr.bf16.mxu0 %v10128_v45  ;;  %v892_v51 = vld [vmem:[%s15462_s1 + $0x19b8] sm:$0xff] }
 0x3bf   :  { %7469 = vmatpush2.bf16.msra.mxu1 %v10263_v61  ;;  %v1016_v6 = vld [vmem:[%s15462_s1 + $0x1d98] sm:$0xff]  ;;  %v10352_v10 = vcombine.high %v888_v2, %v892_v51  ;;  %v10351_v18 = vcombine.low %v888_v2, %v892_v51 }
 0x3c0   :  { %7470 = vmatprep.subr.bf16.mxu1 %v10256_v26  ;;  %v1020_v63 = vld [vmem:[%s15462_s1 + $0x1db8] sm:$0xff] }
 0x3c1   :  { %7430 = vmatpush2.bf16.msra.mxu0 %v10127_v29  ;;  %v10480_v30 = vcombine.high %v1016_v6, %v1020_v63  ;;  %v880_v0 = vld [vmem:[%s15462_s1 + $0x1958] sm:$0xff]  ;;  %v10479_v25 = vcombine.low %v1016_v6, %v1020_v63 }
 0x3c2   :  { %7431 = vmatprep.subr.bf16.mxu0 %v10120_v23  ;;  %v884_v38 = vld [vmem:[%s15462_s1 + $0x1978] sm:$0xff] }
 0x3c3   :  { %7471 = vmatpush2.bf16.msra.mxu1 %v10255_v54  ;;  %v1008_v13 = vld [vmem:[%s15462_s1 + $0x1d58] sm:$0xff]  ;;  %v10343_v47 = vcombine.low %v880_v0, %v884_v38 }
 0x3c4   :  { %7472 = vmatprep.subr.bf16.mxu1 %v10248_v36  ;;  %v1012_v21 = vld [vmem:[%s15462_s1 + $0x1d78] sm:$0xff] }
 0x3c5   :  { %7432 = vmatpush2.bf16.msra.mxu0 %v10119_v40  ;;  %v10472_v45 = vcombine.high %v1008_v13, %v1012_v21  ;;  %v1000_v53 = vld [vmem:[%s15462_s1 + $0x1d18] sm:$0xff] }
 0x3c6   :  { %7433 = vmatprep.subr.bf16.mxu0 %v10112_v14  ;;  %v864_v33 = vld [vmem:[%s15462_s1 + $0x18d8] sm:$0xff] }
 0x3c7   :  { %7473 = vmatpush2.bf16.msra.mxu1 %v10247_v43  ;;  %v992_v62 = vld [vmem:[%s15462_s1 + $0x1cd8] sm:$0xff] }
 0x3c8   :  { %7474 = vmatprep.subr.bf16.mxu1 %v10240_v57  ;;  %v996_v56 = vld [vmem:[%s15462_s1 + $0x1cf8] sm:$0xff] }
 0x3c9   :  { %7434 = vmatpush2.bf16.msra.mxu0 %v10111_v12  ;;  %v10456_v14 = vcombine.high %v992_v62, %v996_v56  ;;  %v856_v57 = vld [vmem:[%s15462_s1 + $0x1898] sm:$0xff]  ;;  %v10455_v12 = vcombine.low %v992_v62, %v996_v56 }
 0x3ca   :  { %7485 = vmatprep.subr.bf16.mxu0 %v10360_v59  ;;  %v860_v35 = vld [vmem:[%s15462_s1 + $0x18b8] sm:$0xff] }
 0x3cb   :  { %7475 = vmatpush2.bf16.msra.mxu1 %v10239_v58  ;;  %v984_v48 = vld [vmem:[%s15462_s1 + $0x1c98] sm:$0xff]  ;;  %v10320_v58 = vcombine.high %v856_v57, %v860_v35  ;;  %v10319_v63 = vcombine.low %v856_v57, %v860_v35 }
 0x3cc   :  { %7526 = vmatprep.subr.bf16.mxu1 %v10488_v41  ;;  %v7191_v11 = vpop.f32.mrf.mxu0  ;;  %7436 = vmatmul.mubr.bf16.vlgmr.msra.gmra.mxu0 %v11954_v17  ;;  %v10344_v17 = vcombine.high %v880_v0, %v884_v38  ;;  %v988_v50 = vld [vmem:[%s15462_s1 + $0x1cb8] sm:$0xff] }
 0x3cd   :  { %v7192_v4 = vadd.f32 %v7191_v11, %v14224_v24  ;;  %7486 = vmatpush1.bf16.msra.mxu0 %v10359_v3  ;;  %v872_v24 = vld [vmem:[%s15462_s1 + $0x1918] sm:$0xff]  ;;  %7517 = vmatprep.mubr.bf16.mxu0 %v11974_v27  ;;  %v10471_v27 = vcombine.low %v1008_v13, %v1012_v21  ;;  %v10448_v59 = vcombine.high %v984_v48, %v988_v50 }
 0x3ce   :  { %v7232_v16 = vpop.f32.mrf.mxu1  ;;  %7477 = vmatmul.mubr.bf16.vlgmr.msra.gmra.mxu1 %v11960_v19  ;;  %v7193_v46 = vpop.f32.mrf.mxu0  ;;  %7487 = vmatprep.subr.bf16.mxu0 %v10352_v10  ;;  %v876_v19 = vld [vmem:[%s15462_s1 + $0x1938] sm:$0xff]  ;;  %v10447_v3 = vcombine.low %v984_v48, %v988_v50 }
 0x3cf   :  { %7527 = vmatpush1.bf16.msra.mxu1 %v10487_v9  ;;  %v14426_v20 = vadd.f32 %v7232_v16, %v7192_v4  ;;  %v7194_v22 = vadd.f32 %v7193_v46, %v14241_v34  ;;  %v1004_v34 = vld [vmem:[%s15462_s1 + $0x1d38] sm:$0xff]  ;;  %7558 = vmatprep.mubr.bf16.mxu1 %v11977_v28  ;;  %v10336_v54 = vcombine.high %v872_v24, %v876_v19 }
 0x3d0   :  { %v7234_v61 = vpop.f32.mrf.mxu1  ;;  %7528 = vmatprep.subr.bf16.mxu1 %v10480_v30  ;;  %v7195_v26 = vpop.f32.mrf.mxu0  ;;  %v10464_v36 = vcombine.high %v1000_v53, %v1004_v34  ;;  %v868_v28 = vld [vmem:[%s15462_s1 + $0x18f8] sm:$0xff]  ;;  %v10335_v37 = vcombine.low %v872_v24, %v876_v19  ;;  %v10463_v40 = vcombine.low %v1000_v53, %v1004_v34 }
 0x3d1   :  { %v14443_v31 = vadd.f32 %v7234_v61, %v7194_v22  ;;  %7488 = vmatpush1.bf16.msra.mxu0 %v10351_v18  ;;  %v10328_v43 = vcombine.high %v864_v33, %v868_v28  ;;  %v10327_v39 = vcombine.low %v864_v33, %v868_v28  ;;  %v848_v41 = vld [vmem:[%s15462_s1 + $0x1858] sm:$0xff]  ;;  %vm7571_vm5 = vcmp.ge.f32.partialorder %v14426_v20, 0.0 }
 0x3d2   :  { %v7236_v44 = vpop.f32.mrf.mxu1  ;;  %v7196_v29 = vpop.f32.mrf.mxu0  ;;  %7489 = vmatprep.subr.bf16.mxu0 %v10344_v17  ;;  %v852_v2 = vld [vmem:[%s15462_s1 + $0x1878] sm:$0xff] }
 0x3d3   :  { %7529 = vmatpush1.bf16.msra.mxu1 %v10479_v25  ;;  %v976_v51 = vld [vmem:[%s15462_s1 + $0x1c58] sm:$0xff]  ;;  %v10312_v9 = vcombine.high %v848_v41, %v852_v2  ;;  %v10311_v13 = vcombine.low %v848_v41, %v852_v2  ;;  %vm7572_vm4 = vcmp.ge.f32.partialorder %v14443_v31, 0.0 }
 0x3d4   :  { %v7237_v23 = vpop.f32.mrf.mxu1  ;;  %7530 = vmatprep.subr.bf16.mxu1 %v10472_v45  ;;  %v980_v6 = vld [vmem:[%s15462_s1 + $0x1c78] sm:$0xff] }
 0x3d5   :  { %7490 = vmatpush1.bf16.msra.mxu0 %v10343_v47  ;;  %v10440_v10 = vcombine.high %v976_v51, %v980_v6  ;;  %v840_v30 = vld [vmem:[%s15462_s1 + $0x1818] sm:$0xff]  ;;  %v10439_v21 = vcombine.low %v976_v51, %v980_v6 }
 0x3d6   :  { %7491 = vmatprep.subr.bf16.mxu0 %v10336_v54  ;;  %v844_v0 = vld [vmem:[%s15462_s1 + $0x1838] sm:$0xff] }
 0x3d7   :  { %7531 = vmatpush1.bf16.msra.mxu1 %v10471_v27  ;;  %v968_v38 = vld [vmem:[%s15462_s1 + $0x1c18] sm:$0xff]  ;;  %v10304_v4 = vcombine.high %v840_v30, %v844_v0  ;;  %v10303_v22 = vcombine.low %v840_v30, %v844_v0 }
 0x3d8   :  { %7532 = vmatprep.subr.bf16.mxu1 %v10464_v36  ;;  %v972_v11 = vld [vmem:[%s15462_s1 + $0x1c38] sm:$0xff] }
 0x3d9   :  { %7492 = vmatpush1.bf16.msra.mxu0 %v10335_v37  ;;  %v10432_v16 = vcombine.high %v968_v38, %v972_v11  ;;  %v960_v18 = vld [vmem:[%s15462_s1 + $0x1bd8] sm:$0xff]  ;;  %v10431_v61 = vcombine.low %v968_v38, %v972_v11 }
 0x3da   :  { %7493 = vmatprep.subr.bf16.mxu0 %v10328_v43  ;;  %v964_v46 = vld [vmem:[%s15462_s1 + $0x1bf8] sm:$0xff] }
 0x3db   :  { %7533 = vmatpush1.bf16.msra.mxu1 %v10463_v40  ;;  %v1088_v25 = vld [vmem:[%s15462_s1 + $0x1fd8] sm:$0xff]  ;;  %v10424_v45 = vcombine.high %v960_v18, %v964_v46  ;;  %v10423_v44 = vcombine.low %v960_v18, %v964_v46 }
 0x3dc   :  { %7534 = vmatprep.subr.bf16.mxu1 %v10456_v14  ;;  %v1092_v17 = vld [vmem:[%s15462_s1 + $0x1ff8] sm:$0xff] }
 0x3dd   :  { %7494 = vmatpush1.bf16.msra.mxu0 %v10327_v39  ;;  %v10552_v24 = vcombine.high %v1088_v25, %v1092_v17  ;;  %v952_v19 = vld [vmem:[%s15462_s1 + $0x1b98] sm:$0xff]  ;;  %v10551_v47 = vcombine.low %v1088_v25, %v1092_v17 }
 0x3de   :  { %7495 = vmatprep.subr.bf16.mxu0 %v10320_v58  ;;  %v956_v26 = vld [vmem:[%s15462_s1 + $0x1bb8] sm:$0xff] }
 0x3df   :  { %7535 = vmatpush1.bf16.msra.mxu1 %v10455_v12  ;;  %v1080_v53 = vld [vmem:[%s15462_s1 + $0x1f98] sm:$0xff]  ;;  %v10416_v29 = vcombine.high %v952_v19, %v956_v26  ;;  %v10415_v28 = vcombine.low %v952_v19, %v956_v26 }
 0x3e0   :  { %7536 = vmatprep.subr.bf16.mxu1 %v10448_v59  ;;  %v1084_v34 = vld [vmem:[%s15462_s1 + $0x1fb8] sm:$0xff] }
 0x3e1   :  { %7496 = vmatpush1.bf16.msra.mxu0 %v10319_v63  ;;  %v10544_v27 = vcombine.high %v1080_v53, %v1084_v34  ;;  %v944_v54 = vld [vmem:[%s15462_s1 + $0x1b58] sm:$0xff]  ;;  %v10543_v62 = vcombine.low %v1080_v53, %v1084_v34 }
 0x3e2   :  { %7497 = vmatprep.subr.bf16.mxu0 %v10312_v9  ;;  %v948_v23 = vld [vmem:[%s15462_s1 + $0x1b78] sm:$0xff] }
 0x3e3   :  { %7537 = vmatpush1.bf16.msra.mxu1 %v10447_v3  ;;  %v1072_v36 = vld [vmem:[%s15462_s1 + $0x1f58] sm:$0xff]  ;;  %v10408_v56 = vcombine.high %v944_v54, %v948_v23  ;;  %v10407_v35 = vcombine.low %v944_v54, %v948_v23  ;;  %v7578_v54 = vmul.f32 0.2, %v13632_v15 }
 0x3e4   :  { %7538 = vmatprep.subr.bf16.mxu1 %v10440_v10  ;;  %v1076_v33 = vld [vmem:[%s15462_s1 + $0x1f78] sm:$0xff] }
 0x3e5   :  { %7498 = vmatpush1.bf16.msra.mxu0 %v10311_v13  ;;  %v10536_v37 = vcombine.high %v1072_v36, %v1076_v33  ;;  %v936_v40 = vld [vmem:[%s15462_s1 + $0x1b18] sm:$0xff]  ;;  %v10535_v48 = vcombine.low %v1072_v36, %v1076_v33  ;;  %v10820_v36 = vld [vmem:[%s15464_s3 + $0xe4] ss:$16 sps:$4 sm:$0xff]  }
 0x3e6   :  { %7499 = vmatprep.subr.bf16.mxu0 %v10304_v4  ;;  %v940_v43 = vld [vmem:[%s15462_s1 + $0x1b38] sm:$0xff]  ;;  %v10823_v33 = vld [vmem:[%s15464_s3 + $0x2e4] ss:$16 sps:$4 sm:$0xff]  }
 0x3e7   :  { %7539 = vmatpush1.bf16.msra.mxu1 %v10439_v21  ;;  %v1064_v14 = vld [vmem:[%s15462_s1 + $0x1f18] sm:$0xff]  ;;  %v10400_v50 = vcombine.high %v936_v40, %v940_v43  ;;  %v10399_v2 = vcombine.low %v936_v40, %v940_v43  ;;  %v10821_v43 = vld [vmem:[%s15464_s3 + $0x2e0] ss:$16 sps:$4 sm:$0xff]  }
 0x3e8   :  { %7540 = vmatprep.subr.bf16.mxu1 %v10432_v16  ;;  %v1068_v57 = vld [vmem:[%s15462_s1 + $0x1f38] sm:$0xff] }
 0x3e9   :  { %7500 = vmatpush1.bf16.msra.mxu0 %v10303_v22  ;;  %v10528_v39 = vcombine.high %v1064_v14, %v1068_v57  ;;  %v928_v12 = vld [vmem:[%s15462_s1 + $0x1ad8] sm:$0xff]  ;;  %v10527_v51 = vcombine.low %v1064_v14, %v1068_v57  ;;  %v7586_v14 = vsel %vm7570_vm1, %v13632_v15, %v7578_v54  ;;  %v10871_v54 = vld [vmem:[%s15464_s3 + $0x3e4] ss:$16 sps:$4 sm:$0xff]  }
 0x3ea   :  { %7501 = vmatprep.subr.bf16.mxu0 %v10424_v45  ;;  %v932_v58 = vld [vmem:[%s15462_s1 + $0x1af8] sm:$0xff]  ;;  %v14622_v15 = vpack.c.bf16 %v7586_v14, %v7586_v14  ;;  %v10881_v14 = vld [vmem:[%s15464_s3 + $0x3a0] ss:$16 sps:$4 sm:$0xff]  }
 0x3eb   :  { %7541 = vmatpush1.bf16.msra.mxu1 %v10431_v61  ;;  %v1056_v59 = vld [vmem:[%s15462_s1 + $0x1ed8] sm:$0xff]  ;;  %v10392_v6 = vcombine.high %v928_v12, %v932_v58  ;;  %v10391_v0 = vcombine.low %v928_v12, %v932_v58  ;;  %v10824_v58 = vld [vmem:[%s15464_s3 + $0xc0] ss:$16 sps:$4 sm:$0xff]  }
 0x3ec   :  { %7542 = vmatprep.subr.bf16.mxu1 %v10552_v24  ;;  %v1060_v41 = vld [vmem:[%s15462_s1 + $0x1ef8] sm:$0xff] }
 0x3ed   :  { %7502 = vmatpush2.bf16.msra.mxu0 %v10423_v44  ;;  %v10520_v63 = vcombine.high %v1056_v59, %v1060_v41  ;;  %v920_v3 = vld [vmem:[%s15462_s1 + $0x1a98] sm:$0xff]  ;;  %v10519_v38 = vcombine.low %v1056_v59, %v1060_v41  ;;  %v10827_v59 = vld [vmem:[%s15464_s3 + $0x2c0] ss:$16 sps:$4 sm:$0xff]   ;;  %v10832_v41 = vld [vmem:[%s15464_s3 + $0xa4] ss:$16 sps:$4 sm:$0xff]  }
 0x3ee   :  { %7503 = vmatprep.subr.bf16.mxu0 %v10416_v29  ;;  %v924_v9 = vld [vmem:[%s15462_s1 + $0x1ab8] sm:$0xff] }
 0x3ef   :  { %7543 = vmatpush2.bf16.msra.mxu1 %v10551_v47  ;;  %v1048_v10 = vld [vmem:[%s15462_s1 + $0x1e98] sm:$0xff]  ;;  %v10384_v11 = vcombine.high %v920_v3, %v924_v9  ;;  %v10383_v46 = vcombine.low %v920_v3, %v924_v9  ;;  %v7576_v47 = vmul.f32 0.2, %v12817_v5 }
 0x3f0   :  { %7544 = vmatprep.subr.bf16.mxu1 %v10544_v27  ;;  %v1052_v30 = vld [vmem:[%s15462_s1 + $0x1eb8] sm:$0xff]  ;;  %v1121_v27 = vsub.s32 6, %v12138_v42 }
 0x3f1   :  { %7504 = vmatpush2.bf16.msra.mxu0 %v10415_v28  ;;  %v10512_v13 = vcombine.high %v1048_v10, %v1052_v30  ;;  %v912_v21 = vld [vmem:[%s15462_s1 + $0x1a58] sm:$0xff]  ;;  %v10511_v25 = vcombine.low %v1048_v10, %v1052_v30  ;;  %v1125_v28 = vsub.s32 7, %v12138_v42  ;;  %v7584_v40 = vsel %vm7568_vm0, %v12817_v5, %v7576_v47  ;;  %v10829_v5 = vld [vmem:[%s15464_s3 + $0x2c4] ss:$16 sps:$4 sm:$0xff]   ;;  %v10830_v10 = vld [vmem:[%s15464_s3 + $0xa0] ss:$16 sps:$4 sm:$0xff]  }
 0x3f2   :  { %7505 = vmatprep.subr.bf16.mxu0 %v10408_v56  ;;  %v916_v4 = vld [vmem:[%s15462_s1 + $0x1a78] sm:$0xff]  ;;  %v10860_v47 = vld [vmem:[%s15464_s3] ss:$16 sps:$4 sm:$0xff]  }
 0x3f3   :  { %7545 = vmatpush2.bf16.msra.mxu1 %v10543_v62  ;;  %v1040_v16 = vld [vmem:[%s15462_s1 + $0x1e58] sm:$0xff]  ;;  %v10376_v17 = vcombine.high %v912_v21, %v916_v4  ;;  %v10375_v26 = vcombine.low %v912_v21, %v916_v4  ;;  %v11206_v62 = vld [vmem:[%s15463_s2] sm:$0xff] }
 0x3f4   :  { %7546 = vmatprep.subr.bf16.mxu1 %v10536_v37  ;;  %v1044_v18 = vld [vmem:[%s15462_s1 + $0x1e78] sm:$0xff]  ;;  %v1122_v56 = vrot.slane %v11206_v62, %v1121_v27  ;;  %v10818_v37 = vld [vmem:[%s15464_s3 + $0xe0] ss:$16 sps:$4 sm:$0xff]   ;;  %v1126_v57 = vrot.slane %v11206_v62, %v1125_v28  ;;  %v10868_v27 = vld [vmem:[%s15464_s3 + $0x1e4] ss:$16 sps:$4 sm:$0xff]  }
 0x3f5   :  { %7506 = vmatpush2.bf16.msra.mxu0 %v10407_v35  ;;  %v10504_v22 = vcombine.high %v1040_v16, %v1044_v18  ;;  %v904_v61 = vld [vmem:[%s15462_s1 + $0x1a18] sm:$0xff]  ;;  %v10503_v53 = vcombine.low %v1040_v16, %v1044_v18  ;;  %v10826_v35 = vld [vmem:[%s15464_s3 + $0xc4] ss:$16 sps:$4 sm:$0xff]   ;;  %v10836_v21 = vld [vmem:[%s15464_s3 + $0x80] ss:$16 sps:$4 sm:$0xff]  }
 0x3f6   :  { %7507 = vmatprep.subr.bf16.mxu0 %v10400_v50  ;;  %v908_v45 = vld [vmem:[%s15462_s1 + $0x1a38] sm:$0xff]  ;;  %v14616_v50 = vpack.c.bf16 %v7584_v40, %v7584_v40  ;;  %v10839_v4 = vld [vmem:[%s15464_s3 + $0x280] ss:$16 sps:$4 sm:$0xff]   ;;  %v10844_v16 = vld [vmem:[%s15464_s3 + $0x64] ss:$16 sps:$4 sm:$0xff]  }
 0x3f7   :  { %7547 = vmatpush2.bf16.msra.mxu1 %v10535_v48  ;;  %v1032_v24 = vld [vmem:[%s15462_s1 + $0x1e18] sm:$0xff]  ;;  %v10368_v34 = vcombine.high %v904_v61, %v908_v45  ;;  %v10367_v29 = vcombine.low %v904_v61, %v908_v45  ;;  %v10847_v18 = vld [vmem:[%s15464_s3 + $0x264] ss:$16 sps:$4 sm:$0xff]   ;;  %v10848_v61 = vld [vmem:[%s15464_s3 + $0x40] ss:$16 sps:$4 sm:$0xff]  }
 0x3f8   :  { %7548 = vmatprep.subr.bf16.mxu1 %v10528_v39  ;;  %v1036_v19 = vld [vmem:[%s15462_s1 + $0x1e38] sm:$0xff]  ;;  %v10851_v45 = vld [vmem:[%s15464_s3 + $0x240] ss:$16 sps:$4 sm:$0xff]   ;;  %v10877_v28 = vld [vmem:[%s15464_s3 + $0x3c4] ss:$16 sps:$4 sm:$0xff]  }
 0x3f9   :  { %7508 = vmatpush2.bf16.msra.mxu0 %v10399_v2  ;;  %v10496_v44 = vcombine.high %v1032_v24, %v1036_v19  ;;  %v10495_v23 = vcombine.low %v1032_v24, %v1036_v19  ;;  %v10856_v24 = vld [vmem:[%s15464_s3 + $0x24] ss:$16 sps:$4 sm:$0xff]   ;;  %v10872_v62 = vld [vmem:[%s15464_s3 + $0x1c0] ss:$16 sps:$4 sm:$0xff]  }
 0x3fa   :  { %7509 = vmatprep.subr.bf16.mxu0 %v10392_v6  ;;  %v10835_v6 = vld [vmem:[%s15464_s3 + $0x2a4] ss:$16 sps:$4 sm:$0xff]  }
 0x3fb   :  { %7549 = vmatpush2.bf16.msra.mxu1 %v10527_v51  ;;  %v10859_v19 = vld [vmem:[%s15464_s3 + $0x224] ss:$16 sps:$4 sm:$0xff]  }
 0x3fc   :  { %7550 = vmatprep.subr.bf16.mxu1 %v10520_v63  ;;  %v10883_v40 = vld [vmem:[%s15464_s3 + $0x3a4] ss:$16 sps:$4 sm:$0xff]  }
 0x3fd   :  { %7510 = vmatpush2.bf16.msra.mxu0 %v10391_v0  ;;  %v10833_v0 = vld [vmem:[%s15464_s3 + $0x2a0] ss:$16 sps:$4 sm:$0xff]  }
 0x3fe   :  { %7511 = vmatprep.subr.bf16.mxu0 %v10384_v11 }
 0x3ff   :  { %7551 = vmatpush2.bf16.msra.mxu1 %v10519_v38  ;;  %v10838_v38 = vld [vmem:[%s15464_s3 + $0x84] ss:$16 sps:$4 sm:$0xff]  }
 0x400   :  { %7552 = vmatprep.subr.bf16.mxu1 %v10512_v13  ;;  %v10841_v13 = vld [vmem:[%s15464_s3 + $0x284] ss:$16 sps:$4 sm:$0xff]  }
 0x401   :  { %7512 = vmatpush2.bf16.msra.mxu0 %v10383_v46  ;;  %v10842_v46 = vld [vmem:[%s15464_s3 + $0x60] ss:$16 sps:$4 sm:$0xff]  }
 0x402   :  { %7513 = vmatprep.subr.bf16.mxu0 %v10376_v17  ;;  %v10850_v17 = vld [vmem:[%s15464_s3 + $0x44] ss:$16 sps:$4 sm:$0xff]  }
 0x403   :  { %7553 = vmatpush2.bf16.msra.mxu1 %v10511_v25  ;;  %v10845_v25 = vld [vmem:[%s15464_s3 + $0x260] ss:$16 sps:$4 sm:$0xff]  }
 0x404   :  { %7554 = vmatprep.subr.bf16.mxu1 %v10504_v22  ;;  %v10853_v22 = vld [vmem:[%s15464_s3 + $0x244] ss:$16 sps:$4 sm:$0xff]  }
 0x405   :  { %7514 = vmatpush2.bf16.msra.mxu0 %v10375_v26  ;;  %v10854_v26 = vld [vmem:[%s15464_s3 + $0x20] ss:$16 sps:$4 sm:$0xff]  }
 0x406   :  { %7515 = vmatprep.subr.bf16.mxu0 %v10368_v34  ;;  %v10862_v34 = vld [vmem:[%s15464_s3 + $0x4] ss:$16 sps:$4 sm:$0xff]  }
 0x407   :  { %7555 = vmatpush2.bf16.msra.mxu1 %v10503_v53  ;;  %v10857_v53 = vld [vmem:[%s15464_s3 + $0x220] ss:$16 sps:$4 sm:$0xff]  }
 0x408   :  { %7556 = vmatprep.subr.bf16.mxu1 %v10496_v44  ;;  %v10865_v44 = vld [vmem:[%s15464_s3 + $0x204] ss:$16 sps:$4 sm:$0xff]  }
 0x409   :  { %7516 = vmatpush2.bf16.msra.mxu0 %v10367_v29  ;;  %v10863_v29 = vld [vmem:[%s15464_s3 + $0x200] ss:$16 sps:$4 sm:$0xff]  }
 0x40a   :  { %9157 = vmatprep.subr.bf16.mxu0 %v10820_v36  ;;  %v10869_v36 = vld [vmem:[%s15464_s3 + $0x3e0] ss:$16 sps:$4 sm:$0xff]  }
 0x40b   :  { %7557 = vmatpush2.bf16.msra.mxu1 %v10495_v23  ;;  %v10866_v23 = vld [vmem:[%s15464_s3 + $0x1e0] ss:$16 sps:$4 sm:$0xff]  }
 0x40c   :  { %9198 = vmatprep.subr.bf16.mxu1 %v10823_v33  ;;  %v7273_v48 = vpop.f32.mrf.mxu0  ;;  %7518 = vmatmul.mubr.bf16.vlgmr.msra.gmra.mxu0 %v12165_v1  ;;  %v10874_v33 = vld [vmem:[%s15464_s3 + $0x1c4] ss:$16 sps:$4 sm:$0xff]  }
 0x40d   :  { %v7274_v39 = vadd.f32 %v7273_v48, %v1122_v56  ;;  %9158 = vmatpush1.bf16.msra.mxu0 %v10818_v37  ;;  %9189 = vmatprep.mubr.bf16.mxu0 %v14616_v50  ;;  %v10875_v56 = vld [vmem:[%s15464_s3 + $0x3c0] ss:$16 sps:$4 sm:$0xff]   ;;  %v10880_v37 = vld [vmem:[%s15464_s3 + $0x1a4] ss:$16 sps:$4 sm:$0xff]  }
 0x40e   :  { %v7314_v12 = vpop.f32.mrf.mxu1  ;;  %7559 = vmatmul.mubr.bf16.vlgmr.msra.gmra.mxu1 %v12177_v7  ;;  %v7275_v1 = vpop.f32.mrf.mxu0  ;;  %9159 = vmatprep.subr.bf16.mxu0 %v10826_v35  ;;  %v10889_v35 = vld [vmem:[%s15464_s3 + $0x384] ss:$16 sps:$4 sm:$0xff]   ;;  %v10884_v48 = vld [vmem:[%s15464_s3 + $0x180] ss:$16 sps:$4 sm:$0xff]  }
 0x40f   :  { %9199 = vmatpush1.bf16.msra.mxu1 %v10821_v43  ;;  %v14634_v7 = vadd.f32 %v7314_v12, %v7274_v39  ;;  %9230 = vmatprep.mubr.bf16.mxu1 %v14622_v15  ;;  %v7276_v2 = vadd.f32 %v7275_v1, %v1126_v57  ;;  %v10878_v43 = vld [vmem:[%s15464_s3 + $0x1a0] ss:$16 sps:$4 sm:$0xff]   ;;  %v10886_v57 = vld [vmem:[%s15464_s3 + $0x184] ss:$16 sps:$4 sm:$0xff]  }
 0x410   :  { %v7316_v51 = vpop.f32.mrf.mxu1  ;;  %v7277_v63 = vpop.f32.mrf.mxu0  ;;  %9200 = vmatprep.subr.bf16.mxu1 %v10829_v5  ;;  %v10887_v5 = vld [vmem:[%s15464_s3 + $0x380] ss:$16 sps:$4 sm:$0xff]   ;;  %v10892_v39 = vld [vmem:[%s15464_s3 + $0x164] ss:$16 sps:$4 sm:$0xff]  }
 0x411   :  { %v14640_v3 = vadd.f32 %v7316_v51, %v7276_v2  ;;  %9160 = vmatpush1.bf16.msra.mxu0 %v10824_v58  ;;  %v10895_v12 = vld [vmem:[%s15464_s3 + $0x364] ss:$16 sps:$4 sm:$0xff]   ;;  %v10890_v58 = vld [vmem:[%s15464_s3 + $0x160] ss:$16 sps:$4 sm:$0xff]  }
 0x412   :  { %v7318_v9 = vpop.f32.mrf.mxu1  ;;  %v7278_v30 = vpop.f32.mrf.mxu0  ;;  %9161 = vmatprep.subr.bf16.mxu0 %v10832_v41  ;;  %v10893_v1 = vld [vmem:[%s15464_s3 + $0x360] ss:$16 sps:$4 sm:$0xff]   ;;  %v10901_v41 = vld [vmem:[%s15464_s3 + $0x344] ss:$16 sps:$4 sm:$0xff]  }
 0x413   :  { %9201 = vmatpush1.bf16.msra.mxu1 %v10827_v59  ;;  %v10898_v59 = vld [vmem:[%s15464_s3 + $0x144] ss:$16 sps:$4 sm:$0xff]   ;;  %v10896_v2 = vld [vmem:[%s15464_s3 + $0x140] ss:$16 sps:$4 sm:$0xff]  }
 0x414   :  { %v7319_v11 = vpop.f32.mrf.mxu1  ;;  %9202 = vmatprep.subr.bf16.mxu1 %v10835_v6  ;;  %v10899_v51 = vld [vmem:[%s15464_s3 + $0x340] ss:$16 sps:$4 sm:$0xff]   ;;  %v10904_v6 = vld [vmem:[%s15464_s3 + $0x124] ss:$16 sps:$4 sm:$0xff]  }
 0x415   :  { %9162 = vmatpush1.bf16.msra.mxu0 %v10830_v10  ;;  %v10907_v63 = vld [vmem:[%s15464_s3 + $0x324] ss:$16 sps:$4 sm:$0xff]   ;;  %v10902_v9 = vld [vmem:[%s15464_s3 + $0x120] ss:$16 sps:$4 sm:$0xff]   ;;  %v7577_v11 = vmul.f32 0.2, %v13615_v32 }
 0x416   :  { %9163 = vmatprep.subr.bf16.mxu0 %v10838_v38  ;;  %v10905_v10 = vld [vmem:[%s15464_s3 + $0x320] ss:$16 sps:$4 sm:$0xff]   ;;  %v10910_v30 = vld [vmem:[%s15464_s3 + $0x104] ss:$16 sps:$4 sm:$0xff]  }
 0x417   :  { %9203 = vmatpush1.bf16.msra.mxu1 %v10833_v0  ;;  %v7575_v0 = vmul.f32 0.2, %v12800_v8  ;;  %v10913_v38 = vld [vmem:[%s15464_s3 + $0x304] ss:$16 sps:$4 sm:$0xff]  }
 0x418   :  { %9204 = vmatprep.subr.bf16.mxu1 %v10841_v13  ;;  %v7580_v13 = vmul.f32 0.2, %v14443_v31 }
 0x419   :  { %9164 = vmatpush1.bf16.msra.mxu0 %v10836_v21  ;;  %v10908_v21 = vld [vmem:[%s15464_s3 + $0x100] ss:$16 sps:$4 sm:$0xff]  }
 0x41a   :  { %9165 = vmatprep.subr.bf16.mxu0 %v10844_v16  ;;  %v10916_v16 = vld [vmem:[%s15464_s3 + $0x4e4] ss:$16 sps:$4 sm:$0xff]  }
 0x41b   :  { %9205 = vmatpush1.bf16.msra.mxu1 %v10839_v4  ;;  %v10911_v4 = vld [vmem:[%s15464_s3 + $0x300] ss:$16 sps:$4 sm:$0xff]  }
 0x41c   :  { %9206 = vmatprep.subr.bf16.mxu1 %v10847_v18  ;;  %v7583_v18 = vsel %vm7567_vm2, %v12800_v8, %v7575_v0  ;;  %v10919_v8 = vld [vmem:[%s15464_s3 + $0x4c4] ss:$16 sps:$4 sm:$0xff]   ;;  %v11013_v0 = vld [vmem:[%s15464_s3 + $0x600] ss:$16 sps:$4 sm:$0xff]  }
 0x41d   :  { %9166 = vmatpush1.bf16.msra.mxu0 %v10842_v46  ;;  %v10973_v46 = vld [vmem:[%s15464_s3 + $0x6e4] ss:$16 sps:$4 sm:$0xff]  }
 0x41e   :  { %9167 = vmatprep.subr.bf16.mxu0 %v10850_v17  ;;  %v10914_v17 = vld [vmem:[%s15464_s3 + $0x4e0] ss:$16 sps:$4 sm:$0xff]  }
 0x41f   :  { %9207 = vmatpush1.bf16.msra.mxu1 %v10845_v25  ;;  %v7585_v25 = vsel %vm7569_vm3, %v13615_v32, %v7577_v11  ;;  %v10971_v32 = vld [vmem:[%s15464_s3 + $0x6e0] ss:$16 sps:$4 sm:$0xff]  }
 0x420   :  { %9208 = vmatprep.subr.bf16.mxu1 %v10853_v22  ;;  %v7588_v22 = vsel %vm7572_vm4, %v14443_v31, %v7580_v13  ;;  %v10979_v31 = vld [vmem:[%s15464_s3 + $0x6c4] ss:$16 sps:$4 sm:$0xff]   ;;  %v10938_v11 = vld [vmem:[%s15464_s3 + $0x5e0] ss:$16 sps:$4 sm:$0xff]  }
 0x421   :  { %9168 = vmatpush1.bf16.msra.mxu0 %v10848_v61  ;;  %v14822_v61 = vpack.c.bf16 %v7583_v18, %v7583_v18  ;;  %v10943_v13 = vld [vmem:[%s15464_s3 + $0x5c4] ss:$16 sps:$4 sm:$0xff]  }
 0x422   :  { %9169 = vmatprep.subr.bf16.mxu0 %v10856_v24  ;;  %v10946_v18 = vld [vmem:[%s15464_s3 + $0x5a4] ss:$16 sps:$4 sm:$0xff]  }
 0x423   :  { %9209 = vmatpush1.bf16.msra.mxu1 %v10851_v45  ;;  %v14827_v45 = vpack.c.bf16 %v7585_v25, %v7585_v25  ;;  %v11033_v25 = vld [vmem:[%s15464_s3 + $0x7a4] ss:$16 sps:$4 sm:$0xff]  }
 0x424   :  { %9210 = vmatprep.subr.bf16.mxu1 %v10859_v19  ;;  %v14833_v19 = vpack.c.bf16 %v7588_v22, %v7588_v22  ;;  %v10949_v22 = vld [vmem:[%s15464_s3 + $0x584] ss:$16 sps:$4 sm:$0xff]  }
 0x425   :  { %9170 = vmatpush1.bf16.msra.mxu0 %v10854_v26 }
 0x426   :  { %9171 = vmatprep.subr.bf16.mxu0 %v10862_v34  ;;  %v10917_v34 = vld [vmem:[%s15464_s3 + $0x4c0] ss:$16 sps:$4 sm:$0xff]  }
 0x427   :  { %9211 = vmatpush1.bf16.msra.mxu1 %v10857_v53 }
 0x428   :  { %9212 = vmatprep.subr.bf16.mxu1 %v10865_v44 }
 0x429   :  { %9172 = vmatpush1.bf16.msra.mxu0 %v10860_v47  ;;  %v10922_v47 = vld [vmem:[%s15464_s3 + $0x4a4] ss:$16 sps:$4 sm:$0xff]  }
 0x42a   :  { %9173 = vmatprep.subr.bf16.mxu0 %v10868_v27 }
 0x42b   :  { %9213 = vmatpush1.bf16.msra.mxu1 %v10863_v29 }
 0x42c   :  { %9214 = vmatprep.subr.bf16.mxu1 %v10871_v54  ;;  %v10977_v54 = vld [vmem:[%s15464_s3 + $0x6c0] ss:$16 sps:$4 sm:$0xff]  }
 0x42d   :  { %9174 = vmatpush2.bf16.msra.mxu0 %v10866_v23 }
 0x42e   :  { %9175 = vmatprep.subr.bf16.mxu0 %v10874_v33 }
 0x42f   :  { %9215 = vmatpush2.bf16.msra.mxu1 %v10869_v36  ;;  %v10985_v36 = vld [vmem:[%s15464_s3 + $0x6a4] ss:$16 sps:$4 sm:$0xff]  }
 0x430   :  { %9216 = vmatprep.subr.bf16.mxu1 %v10877_v28 }
 0x431   :  { %9176 = vmatpush2.bf16.msra.mxu0 %v10872_v62 }
 0x432   :  { %9177 = vmatprep.subr.bf16.mxu0 %v10880_v37 }
 0x433   :  { %9217 = vmatpush2.bf16.msra.mxu1 %v10875_v56  ;;  %v10925_v56 = vld [vmem:[%s15464_s3 + $0x484] ss:$16 sps:$4 sm:$0xff]  }
 0x434   :  { %9218 = vmatprep.subr.bf16.mxu1 %v10883_v40  ;;  %v10983_v40 = vld [vmem:[%s15464_s3 + $0x6a0] ss:$16 sps:$4 sm:$0xff]  }
 0x435   :  { %9178 = vmatpush2.bf16.msra.mxu0 %v10878_v43  ;;  %v10991_v43 = vld [vmem:[%s15464_s3 + $0x684] ss:$16 sps:$4 sm:$0xff]  }
 0x436   :  { %9179 = vmatprep.subr.bf16.mxu0 %v10886_v57  ;;  %v10928_v57 = vld [vmem:[%s15464_s3 + $0x464] ss:$16 sps:$4 sm:$0xff]  }
 0x437   :  { %9219 = vmatpush2.bf16.msra.mxu1 %v10881_v14  ;;  %v10923_v14 = vld [vmem:[%s15464_s3 + $0x480] ss:$16 sps:$4 sm:$0xff]  }
 0x438   :  { %9220 = vmatprep.subr.bf16.mxu1 %v10889_v35  ;;  %v10989_v35 = vld [vmem:[%s15464_s3 + $0x680] ss:$16 sps:$4 sm:$0xff]  }
 0x439   :  { %9180 = vmatpush2.bf16.msra.mxu0 %v10884_v48  ;;  %v10997_v48 = vld [vmem:[%s15464_s3 + $0x664] ss:$16 sps:$4 sm:$0xff]  }
 0x43a   :  { %9181 = vmatprep.subr.bf16.mxu0 %v10892_v39  ;;  %v10931_v39 = vld [vmem:[%s15464_s3 + $0x444] ss:$16 sps:$4 sm:$0xff]  }
 0x43b   :  { %9221 = vmatpush2.bf16.msra.mxu1 %v10887_v5  ;;  %v10926_v5 = vld [vmem:[%s15464_s3 + $0x460] ss:$16 sps:$4 sm:$0xff]  }
 0x43c   :  { %9222 = vmatprep.subr.bf16.mxu1 %v10895_v12  ;;  %v10995_v12 = vld [vmem:[%s15464_s3 + $0x660] ss:$16 sps:$4 sm:$0xff]  }
 0x43d   :  { %9182 = vmatpush2.bf16.msra.mxu0 %v10890_v58  ;;  %v11003_v58 = vld [vmem:[%s15464_s3 + $0x644] ss:$16 sps:$4 sm:$0xff]  }
 0x43e   :  { %9183 = vmatprep.subr.bf16.mxu0 %v10898_v59  ;;  %v10934_v59 = vld [vmem:[%s15464_s3 + $0x424] ss:$16 sps:$4 sm:$0xff]  }
 0x43f   :  { %9223 = vmatpush2.bf16.msra.mxu1 %v10893_v1  ;;  %v10929_v1 = vld [vmem:[%s15464_s3 + $0x440] ss:$16 sps:$4 sm:$0xff]  }
 0x440   :  { %9224 = vmatprep.subr.bf16.mxu1 %v10901_v41  ;;  %v11001_v41 = vld [vmem:[%s15464_s3 + $0x640] ss:$16 sps:$4 sm:$0xff]  }
 0x441   :  { %9184 = vmatpush2.bf16.msra.mxu0 %v10896_v2  ;;  %v11009_v2 = vld [vmem:[%s15464_s3 + $0x624] ss:$16 sps:$4 sm:$0xff]  }
 0x442   :  { %9185 = vmatprep.subr.bf16.mxu0 %v10904_v6  ;;  %v10937_v6 = vld [vmem:[%s15464_s3 + $0x404] ss:$16 sps:$4 sm:$0xff]  }
 0x443   :  { %9225 = vmatpush2.bf16.msra.mxu1 %v10899_v51  ;;  %v10932_v51 = vld [vmem:[%s15464_s3 + $0x420] ss:$16 sps:$4 sm:$0xff]  }
 0x444   :  { %9226 = vmatprep.subr.bf16.mxu1 %v10907_v63  ;;  %v11007_v63 = vld [vmem:[%s15464_s3 + $0x620] ss:$16 sps:$4 sm:$0xff]  }
 0x445   :  { %9186 = vmatpush2.bf16.msra.mxu0 %v10902_v9  ;;  %v11015_v9 = vld [vmem:[%s15464_s3 + $0x604] ss:$16 sps:$4 sm:$0xff]  }
 0x446   :  { %9187 = vmatprep.subr.bf16.mxu0 %v10910_v30  ;;  %v10940_v30 = vld [vmem:[%s15464_s3 + $0x5e4] ss:$16 sps:$4 sm:$0xff]  }
 0x447   :  { %9227 = vmatpush2.bf16.msra.mxu1 %v10905_v10  ;;  %v10935_v10 = vld [vmem:[%s15464_s3 + $0x400] ss:$16 sps:$4 sm:$0xff]  }
 0x448   :  { %9228 = vmatprep.subr.bf16.mxu1 %v10913_v38  ;;  %v11021_v38 = vld [vmem:[%s15464_s3 + $0x7e4] ss:$16 sps:$4 sm:$0xff]  }
 0x449   :  { %9188 = vmatpush2.bf16.msra.mxu0 %v10908_v21  ;;  %v11019_v21 = vld [vmem:[%s15464_s3 + $0x7e0] ss:$16 sps:$4 sm:$0xff]  }
 0x44a   :  { %9239 = vmatprep.subr.bf16.mxu0 %v10916_v16  ;;  %v10941_v16 = vld [vmem:[%s15464_s3 + $0x5c0] ss:$16 sps:$4 sm:$0xff]  }
 0x44b   :  { %9229 = vmatpush2.bf16.msra.mxu1 %v10911_v4  ;;  %v11027_v4 = vld [vmem:[%s15464_s3 + $0x7c4] ss:$16 sps:$4 sm:$0xff]  }
 0x44c   :  { %9280 = vmatprep.subr.bf16.mxu1 %v10973_v46  ;;  %v7355_v24 = vpop.f32.mrf.mxu0  ;;  %9190 = vmatmul.mubr.bf16.vlgmr.msra.gmra.mxu0 %v14822_v61  ;;  %v11025_v46 = vld [vmem:[%s15464_s3 + $0x7c0] ss:$16 sps:$4 sm:$0xff]  }
 0x44d   :  { %v7356_v26 = vadd.f32 %v7355_v24, %v14634_v7  ;;  %9240 = vmatpush1.bf16.msra.mxu0 %v10914_v17  ;;  %9271 = vmatprep.mubr.bf16.mxu0 %v14833_v19  ;;  %v10944_v17 = vld [vmem:[%s15464_s3 + $0x5a0] ss:$16 sps:$4 sm:$0xff]  }
 0x44e   :  { %v7396_v53 = vpop.f32.mrf.mxu1  ;;  %9231 = vmatmul.mubr.bf16.vlgmr.msra.gmra.mxu1 %v14827_v45  ;;  %v7357_v44 = vpop.f32.mrf.mxu0  ;;  %9241 = vmatprep.subr.bf16.mxu0 %v10919_v8  ;;  %v11031_v8 = vld [vmem:[%s15464_s3 + $0x7a0] ss:$16 sps:$4 sm:$0xff]  }
 0x44f   :  { %v14847_v29 = vadd.f32 %v7396_v53, %v7356_v26  ;;  %v7358_v7 = vadd.f32 %v7357_v44, %v14640_v3  ;;  %9281 = vmatpush1.bf16.msra.mxu1 %v10971_v32  ;;  %v10920_v3 = vld [vmem:[%s15464_s3 + $0x4a0] ss:$16 sps:$4 sm:$0xff]   ;;  %v11039_v32 = vld [vmem:[%s15464_s3 + $0x784] ss:$16 sps:$4 sm:$0xff]  }
 0x450   :  { %v7398_v27 = vpop.f32.mrf.mxu1  ;;  %v7359_v23 = vpop.f32.mrf.mxu0  ;;  %9282 = vmatprep.subr.bf16.mxu1 %v10979_v31  ;;  %v10947_v24 = vld [vmem:[%s15464_s3 + $0x580] ss:$16 sps:$4 sm:$0xff]   ;;  %v10952_v31 = vld [vmem:[%s15464_s3 + $0x564] ss:$16 sps:$4 sm:$0xff]  }
 0x451   :  { %v14856_v33 = vadd.f32 %v7398_v27, %v7358_v7  ;;  %9242 = vmatpush1.bf16.msra.mxu0 %v10917_v34  ;;  %v11037_v26 = vld [vmem:[%s15464_s3 + $0x780] ss:$16 sps:$4 sm:$0xff]   ;;  %v11045_v53 = vld [vmem:[%s15464_s3 + $0x764] ss:$16 sps:$4 sm:$0xff]  }
 0x452   :  { %v7400_v28 = vpop.f32.mrf.mxu1  ;;  %v7360_v62 = vpop.f32.mrf.mxu0  ;;  %9243 = vmatprep.subr.bf16.mxu0 %v10922_v47  ;;  %v10950_v34 = vld [vmem:[%s15464_s3 + $0x560] ss:$16 sps:$4 sm:$0xff]   ;;  %v10955_v44 = vld [vmem:[%s15464_s3 + $0x544] ss:$16 sps:$4 sm:$0xff]  }
 0x453   :  { %9283 = vmatpush1.bf16.msra.mxu1 %v10977_v54  ;;  %v11043_v47 = vld [vmem:[%s15464_s3 + $0x760] ss:$16 sps:$4 sm:$0xff]   ;;  %v11051_v7 = vld [vmem:[%s15464_s3 + $0x744] ss:$16 sps:$4 sm:$0xff]   ;;  %v7579_v62 = vmul.f32 0.2, %v14426_v20 }
 0x454   :  { %v7401_v37 = vpop.f32.mrf.mxu1  ;;  %9284 = vmatprep.subr.bf16.mxu1 %v10985_v36  ;;  %v10953_v27 = vld [vmem:[%s15464_s3 + $0x540] ss:$16 sps:$4 sm:$0xff]   ;;  %v10958_v54 = vld [vmem:[%s15464_s3 + $0x524] ss:$16 sps:$4 sm:$0xff]  }
 0x455   :  { %9244 = vmatpush1.bf16.msra.mxu0 %v10920_v3  ;;  %v11049_v23 = vld [vmem:[%s15464_s3 + $0x740] ss:$16 sps:$4 sm:$0xff]   ;;  %v11057_v36 = vld [vmem:[%s15464_s3 + $0x724] ss:$16 sps:$4 sm:$0xff]  }
 0x456   :  { %9245 = vmatprep.subr.bf16.mxu0 %v10925_v56  ;;  %v10956_v28 = vld [vmem:[%s15464_s3 + $0x520] ss:$16 sps:$4 sm:$0xff]   ;;  %v10961_v3 = vld [vmem:[%s15464_s3 + $0x504] ss:$16 sps:$4 sm:$0xff]  }
 0x457   :  { %9285 = vmatpush1.bf16.msra.mxu1 %v10983_v40  ;;  %v11055_v56 = vld [vmem:[%s15464_s3 + $0x720] ss:$16 sps:$4 sm:$0xff]   ;;  %v11063_v37 = vld [vmem:[%s15464_s3 + $0x704] ss:$16 sps:$4 sm:$0xff]  }
 0x458   :  { %9286 = vmatprep.subr.bf16.mxu1 %v10991_v43  ;;  %v10959_v40 = vld [vmem:[%s15464_s3 + $0x500] ss:$16 sps:$4 sm:$0xff]   ;;  %v10964_v43 = vld [vmem:[%s15464_s3 + $0xec] ss:$16 sps:$4 sm:$0xff]  }
 0x459   :  { %9246 = vmatpush1.bf16.msra.mxu0 %v10923_v14  ;;  %v7587_v14 = vsel %vm7571_vm5, %v14426_v20, %v7579_v62  ;;  %v10967_v20 = vld [vmem:[%s15464_s3 + $0xcc] ss:$16 sps:$4 sm:$0xff]  }
 0x45a   :  { %9247 = vmatprep.subr.bf16.mxu0 %v10928_v57  ;;  %v11061_v57 = vld [vmem:[%s15464_s3 + $0x700] ss:$16 sps:$4 sm:$0xff]  }
 0x45b   :  { %9287 = vmatpush1.bf16.msra.mxu1 %v10989_v35  ;;  %v11069_v35 = vld [vmem:[%s15464_s3 + $0x2ec] ss:$16 sps:$4 sm:$0xff]  }
 0x45c   :  { %9288 = vmatprep.subr.bf16.mxu1 %v10997_v48  ;;  %v10962_v48 = vld [vmem:[%s15464_s3 + $0xe8] ss:$16 sps:$4 sm:$0xff]  }
 0x45d   :  { %9248 = vmatpush1.bf16.msra.mxu0 %v10926_v5  ;;  %v15032_v5 = vpack.c.bf16 %v7587_v14, %v7587_v14  ;;  %v11066_v14 = vld [vmem:[%s15464_s3 + $0x4ac] ss:$16 sps:$4 sm:$0xff]  }
 0x45e   :  { %9249 = vmatprep.subr.bf16.mxu0 %v10931_v39 }
 0x45f   :  { %9289 = vmatpush1.bf16.msra.mxu1 %v10995_v12 }
 0x460   :  { %9290 = vmatprep.subr.bf16.mxu1 %v11003_v58 }
 0x461   :  { %9250 = vmatpush1.bf16.msra.mxu0 %v10929_v1  ;;  %v10965_v1 = vld [vmem:[%s15464_s3 + $0xc8] ss:$16 sps:$4 sm:$0xff]  }
 0x462   :  { %9251 = vmatprep.subr.bf16.mxu0 %v10934_v59 }
 0x463   :  { %9291 = vmatpush1.bf16.msra.mxu1 %v11001_v41  ;;  %v10970_v41 = vld [vmem:[%s15464_s3 + $0xac] ss:$16 sps:$4 sm:$0xff]  }
 0x464   :  { %9292 = vmatprep.subr.bf16.mxu1 %v11009_v2 }
 0x465   :  { %9252 = vmatpush1.bf16.msra.mxu0 %v10932_v51 }
 0x466   :  { %9253 = vmatprep.subr.bf16.mxu0 %v10937_v6 }
 0x467   :  { %9293 = vmatpush1.bf16.msra.mxu1 %v11007_v63 }
 0x468   :  { %9294 = vmatprep.subr.bf16.mxu1 %v11015_v9  ;;  %v10976_v9 = vld [vmem:[%s15464_s3 + $0x8c] ss:$16 sps:$4 sm:$0xff]  }
 0x469   :  { %9254 = vmatpush1.bf16.msra.mxu0 %v10935_v10 }
 0x46a   :  { %9255 = vmatprep.subr.bf16.mxu0 %v10940_v30  ;;  %v10974_v30 = vld [vmem:[%s15464_s3 + $0x88] ss:$16 sps:$4 sm:$0xff]  }
 0x46b   :  { %9295 = vmatpush1.bf16.msra.mxu1 %v11013_v0  ;;  %v10982_v0 = vld [vmem:[%s15464_s3 + $0x6c] ss:$16 sps:$4 sm:$0xff]  }
 0x46c   :  { %9296 = vmatprep.subr.bf16.mxu1 %v11021_v38  ;;  %v10980_v38 = vld [vmem:[%s15464_s3 + $0x68] ss:$16 sps:$4 sm:$0xff]  }
 0x46d   :  { %9256 = vmatpush2.bf16.msra.mxu0 %v10938_v11  ;;  %v10988_v11 = vld [vmem:[%s15464_s3 + $0x4c] ss:$16 sps:$4 sm:$0xff]  }
 0x46e   :  { %9257 = vmatprep.subr.bf16.mxu0 %v10943_v13  ;;  %v10986_v13 = vld [vmem:[%s15464_s3 + $0x48] ss:$16 sps:$4 sm:$0xff]  }
 0x46f   :  { %9297 = vmatpush2.bf16.msra.mxu1 %v11019_v21  ;;  %v10994_v21 = vld [vmem:[%s15464_s3 + $0x2c] ss:$16 sps:$4 sm:$0xff]  }
 0x470   :  { %9298 = vmatprep.subr.bf16.mxu1 %v11027_v4  ;;  %v10992_v4 = vld [vmem:[%s15464_s3 + $0x28] ss:$16 sps:$4 sm:$0xff]  }
 0x471   :  { %9258 = vmatpush2.bf16.msra.mxu0 %v10941_v16  ;;  %v11000_v16 = vld [vmem:[%s15464_s3 + $0xc] ss:$16 sps:$4 sm:$0xff]  }
 0x472   :  { %9259 = vmatprep.subr.bf16.mxu0 %v10946_v18  ;;  %v10998_v18 = vld [vmem:[%s15464_s3 + $0x8] ss:$16 sps:$4 sm:$0xff]  }
 0x473   :  { %9299 = vmatpush2.bf16.msra.mxu1 %v11025_v46  ;;  %v11006_v46 = vld [vmem:[%s15464_s3 + $0x1ec] ss:$16 sps:$4 sm:$0xff]  }
 0x474   :  { %9300 = vmatprep.subr.bf16.mxu1 %v11033_v25  ;;  %v11004_v25 = vld [vmem:[%s15464_s3 + $0x1e8] ss:$16 sps:$4 sm:$0xff]  }
 0x475   :  { %9260 = vmatpush2.bf16.msra.mxu0 %v10944_v17  ;;  %v11012_v17 = vld [vmem:[%s15464_s3 + $0x1cc] ss:$16 sps:$4 sm:$0xff]  }
 0x476   :  { %9261 = vmatprep.subr.bf16.mxu0 %v10949_v22  ;;  %v11010_v22 = vld [vmem:[%s15464_s3 + $0x1c8] ss:$16 sps:$4 sm:$0xff]  }
 0x477   :  { %9301 = vmatpush2.bf16.msra.mxu1 %v11031_v8  ;;  %v11018_v8 = vld [vmem:[%s15464_s3 + $0x1ac] ss:$16 sps:$4 sm:$0xff]  }
 0x478   :  { %9302 = vmatprep.subr.bf16.mxu1 %v11039_v32  ;;  %v11016_v32 = vld [vmem:[%s15464_s3 + $0x1a8] ss:$16 sps:$4 sm:$0xff]  }
 0x479   :  { %9262 = vmatpush2.bf16.msra.mxu0 %v10947_v24  ;;  %v11024_v24 = vld [vmem:[%s15464_s3 + $0x18c] ss:$16 sps:$4 sm:$0xff]  }
 0x47a   :  { %9263 = vmatprep.subr.bf16.mxu0 %v10952_v31  ;;  %v11022_v31 = vld [vmem:[%s15464_s3 + $0x188] ss:$16 sps:$4 sm:$0xff]  }
 0x47b   :  { %9303 = vmatpush2.bf16.msra.mxu1 %v11037_v26  ;;  %v11030_v26 = vld [vmem:[%s15464_s3 + $0x16c] ss:$16 sps:$4 sm:$0xff]  }
 0x47c   :  { %9304 = vmatprep.subr.bf16.mxu1 %v11045_v53  ;;  %v11028_v53 = vld [vmem:[%s15464_s3 + $0x168] ss:$16 sps:$4 sm:$0xff]  }
 0x47d   :  { %9264 = vmatpush2.bf16.msra.mxu0 %v10950_v34  ;;  %v11036_v34 = vld [vmem:[%s15464_s3 + $0x14c] ss:$16 sps:$4 sm:$0xff]  }
 0x47e   :  { %9265 = vmatprep.subr.bf16.mxu0 %v10955_v44  ;;  %v11034_v44 = vld [vmem:[%s15464_s3 + $0x148] ss:$16 sps:$4 sm:$0xff]  }
 0x47f   :  { %9305 = vmatpush2.bf16.msra.mxu1 %v11043_v47  ;;  %v11042_v47 = vld [vmem:[%s15464_s3 + $0x12c] ss:$16 sps:$4 sm:$0xff]  }
 0x480   :  { %9306 = vmatprep.subr.bf16.mxu1 %v11051_v7  ;;  %v11040_v7 = vld [vmem:[%s15464_s3 + $0x128] ss:$16 sps:$4 sm:$0xff]  }
 0x481   :  { %9266 = vmatpush2.bf16.msra.mxu0 %v10953_v27  ;;  %v11048_v27 = vld [vmem:[%s15464_s3 + $0x10c] ss:$16 sps:$4 sm:$0xff]  }
 0x482   :  { %9267 = vmatprep.subr.bf16.mxu0 %v10958_v54  ;;  %v11046_v54 = vld [vmem:[%s15464_s3 + $0x108] ss:$16 sps:$4 sm:$0xff]  }
 0x483   :  { %9307 = vmatpush2.bf16.msra.mxu1 %v11049_v23  ;;  %v11054_v23 = vld [vmem:[%s15464_s3 + $0x4ec] ss:$16 sps:$4 sm:$0xff]  }
 0x484   :  { %9308 = vmatprep.subr.bf16.mxu1 %v11057_v36 }
 0x485   :  { %9268 = vmatpush2.bf16.msra.mxu0 %v10956_v28  ;;  %v11052_v28 = vld [vmem:[%s15464_s3 + $0x4e8] ss:$16 sps:$4 sm:$0xff]  }
 0x486   :  { %9269 = vmatprep.subr.bf16.mxu0 %v10961_v3  ;;  %v11060_v3 = vld [vmem:[%s15464_s3 + $0x4cc] ss:$16 sps:$4 sm:$0xff]  }
 0x487   :  { %9309 = vmatpush2.bf16.msra.mxu1 %v11055_v56 }
 0x488   :  { %9310 = vmatprep.subr.bf16.mxu1 %v11063_v37 }
 0x489   :  { %9270 = vmatpush2.bf16.msra.mxu0 %v10959_v40 }
 0x48a   :  { %9321 = vmatprep.subr.bf16.mxu0 %v10964_v43 }
 0x48b   :  { %9311 = vmatpush2.bf16.msra.mxu1 %v11061_v57 }
 0x48c   :  { %v7437_v39 = vpop.f32.mrf.mxu0  ;;  %9272 = vmatmul.mubr.bf16.vlgmr.msra.gmra.mxu0 %v15032_v5  ;;  %9362 = vmatprep.subr.bf16.mxu1 %v11069_v35 }
 0x48d   :  { %v7438_v12 = vadd.f32 %v7437_v39, %v14847_v29  ;;  %9322 = vmatpush1.bf16.msra.mxu0 %v10962_v48  ;;  %9353 = vmatprep.mubr.bf16.mxu0 %v14616_v50  ;;  %v10968_v50 = vld [vmem:[%s15464_s3 + $0xa8] ss:$16 sps:$4 sm:$0xff]  }
 0x48e   :  { %v7478_v58 = vpop.f32.mrf.mxu1  ;;  %v15043_v59 = vpop.f32.mrf.mxu0  ;;  %9323 = vmatprep.subr.bf16.mxu0 %v10967_v20 }
 0x48f   :  { %v15048_v2 = vadd.f32 %v7478_v58, %v7438_v12  ;;  %v7440_v36 = vadd.f32 %v15043_v59, %v14856_v33  ;;  %v11058_v33 = vld [vmem:[%s15464_s3 + $0x4c8] ss:$16 sps:$4 sm:$0xff]  }
 0x490   :  { %v15050_v51 = vpop.f32.mrf.mxu1  ;;  %v7441_v29 = vpop.f32.mrf.mxu0 }
 0x491   :  { %9324 = vmatpush1.bf16.msra.mxu0 %v10965_v1  ;;  %v7481_v56 = vadd.f32 %v15050_v51, %v7440_v36  ;;  %v11072_v1 = vld [vmem:[%s15464_s3 + $0x48c] ss:$16 sps:$4 sm:$0xff]   ;;  %v11070_v29 = vld [vmem:[%s15464_s3 + $0x488] ss:$16 sps:$4 sm:$0xff]  }
 0x492   :  { %v7482_v6 = vpop.f32.mrf.mxu1  ;;  %v7442_v63 = vpop.f32.mrf.mxu0  ;;  %9325 = vmatprep.subr.bf16.mxu0 %v10970_v41  ;;  %v11117_v36 = vld [vmem:[%s15464_s3 + $0x3ec] ss:$16 sps:$4 sm:$0xff]  }
 0x494   :  { %v7483_v10 = vpop.f32.mrf.mxu1 }
 0x495   :  { %9326 = vmatpush1.bf16.msra.mxu0 %v10968_v50  ;;  %v11067_v50 = vld [vmem:[%s15464_s3 + $0x2e8] ss:$16 sps:$4 sm:$0xff]   ;;  %v11078_v10 = vld [vmem:[%s15464_s3 + $0x46c] ss:$16 sps:$4 sm:$0xff]  }
 0x496   :  { %9327 = vmatprep.subr.bf16.mxu0 %v10976_v9  ;;  %v11075_v9 = vld [vmem:[%s15464_s3 + $0x2cc] ss:$16 sps:$4 sm:$0xff]  }
 0x499   :  { %9328 = vmatpush1.bf16.msra.mxu0 %v10974_v30  ;;  %v11076_v30 = vld [vmem:[%s15464_s3 + $0x468] ss:$16 sps:$4 sm:$0xff]  }
 0x49a   :  { %9329 = vmatprep.subr.bf16.mxu0 %v10982_v0  ;;  %v11073_v0 = vld [vmem:[%s15464_s3 + $0x2c8] ss:$16 sps:$4 sm:$0xff]  }
 0x49d   :  { %9330 = vmatpush1.bf16.msra.mxu0 %v10980_v38  ;;  %v11084_v38 = vld [vmem:[%s15464_s3 + $0x44c] ss:$16 sps:$4 sm:$0xff]  }
 0x49e   :  { %9331 = vmatprep.subr.bf16.mxu0 %v10988_v11  ;;  %v11081_v11 = vld [vmem:[%s15464_s3 + $0x2ac] ss:$16 sps:$4 sm:$0xff]  }
 0x4a1   :  { %9332 = vmatpush1.bf16.msra.mxu0 %v10986_v13  ;;  %v11082_v13 = vld [vmem:[%s15464_s3 + $0x448] ss:$16 sps:$4 sm:$0xff]  }
 0x4a2   :  { %9333 = vmatprep.subr.bf16.mxu0 %v10994_v21  ;;  %v11090_v21 = vld [vmem:[%s15464_s3 + $0x42c] ss:$16 sps:$4 sm:$0xff]  }
 0x4a5   :  { %9334 = vmatpush1.bf16.msra.mxu0 %v10992_v4  ;;  %v11087_v4 = vld [vmem:[%s15464_s3 + $0x28c] ss:$16 sps:$4 sm:$0xff]  }
 0x4a6   :  { %9335 = vmatprep.subr.bf16.mxu0 %v11000_v16  ;;  %v11088_v16 = vld [vmem:[%s15464_s3 + $0x428] ss:$16 sps:$4 sm:$0xff]  }
 0x4a9   :  { %9336 = vmatpush1.bf16.msra.mxu0 %v10998_v18  ;;  %v11085_v18 = vld [vmem:[%s15464_s3 + $0x288] ss:$16 sps:$4 sm:$0xff]  }
 0x4aa   :  { %9337 = vmatprep.subr.bf16.mxu0 %v11006_v46  ;;  %v11096_v46 = vld [vmem:[%s15464_s3 + $0x40c] ss:$16 sps:$4 sm:$0xff]  }
 0x4ad   :  { %9338 = vmatpush2.bf16.msra.mxu0 %v11004_v25  ;;  %v11093_v25 = vld [vmem:[%s15464_s3 + $0x26c] ss:$16 sps:$4 sm:$0xff]  }
 0x4ae   :  { %9339 = vmatprep.subr.bf16.mxu0 %v11012_v17  ;;  %v11094_v17 = vld [vmem:[%s15464_s3 + $0x408] ss:$16 sps:$4 sm:$0xff]  }
 0x4b1   :  { %9340 = vmatpush2.bf16.msra.mxu0 %v11010_v22  ;;  %v11091_v22 = vld [vmem:[%s15464_s3 + $0x268] ss:$16 sps:$4 sm:$0xff]  }
 0x4b2   :  { %9341 = vmatprep.subr.bf16.mxu0 %v11018_v8  ;;  %v11102_v8 = vld [vmem:[%s15464_s3 + $0x5ec] ss:$16 sps:$4 sm:$0xff]  }
 0x4b5   :  { %9342 = vmatpush2.bf16.msra.mxu0 %v11016_v32  ;;  %v11099_v32 = vld [vmem:[%s15464_s3 + $0x24c] ss:$16 sps:$4 sm:$0xff]  }
 0x4b6   :  { %9343 = vmatprep.subr.bf16.mxu0 %v11024_v24  ;;  %v11100_v24 = vld [vmem:[%s15464_s3 + $0x5e8] ss:$16 sps:$4 sm:$0xff]  }
 0x4b9   :  { %9344 = vmatpush2.bf16.msra.mxu0 %v11022_v31  ;;  %v11097_v31 = vld [vmem:[%s15464_s3 + $0x248] ss:$16 sps:$4 sm:$0xff]  }
 0x4ba   :  { %9345 = vmatprep.subr.bf16.mxu0 %v11030_v26  ;;  %v11108_v26 = vld [vmem:[%s15464_s3 + $0x5cc] ss:$16 sps:$4 sm:$0xff]  }
 0x4bd   :  { %9346 = vmatpush2.bf16.msra.mxu0 %v11028_v53  ;;  %v11105_v53 = vld [vmem:[%s15464_s3 + $0x22c] ss:$16 sps:$4 sm:$0xff]  }
 0x4be   :  { %9347 = vmatprep.subr.bf16.mxu0 %v11036_v34  ;;  %v11106_v34 = vld [vmem:[%s15464_s3 + $0x5c8] ss:$16 sps:$4 sm:$0xff]  }
 0x4c1   :  { %9348 = vmatpush2.bf16.msra.mxu0 %v11034_v44  ;;  %v11103_v44 = vld [vmem:[%s15464_s3 + $0x228] ss:$16 sps:$4 sm:$0xff]  }
 0x4c2   :  { %9349 = vmatprep.subr.bf16.mxu0 %v11042_v47  ;;  %v11114_v47 = vld [vmem:[%s15464_s3 + $0x5ac] ss:$16 sps:$4 sm:$0xff]  }
 0x4c5   :  { %9350 = vmatpush2.bf16.msra.mxu0 %v11040_v7  ;;  %v11111_v7 = vld [vmem:[%s15464_s3 + $0x20c] ss:$16 sps:$4 sm:$0xff]  }
 0x4c6   :  { %9351 = vmatprep.subr.bf16.mxu0 %v11048_v27  ;;  %v11112_v27 = vld [vmem:[%s15464_s3 + $0x5a8] ss:$16 sps:$4 sm:$0xff]  }
 0x4c9   :  { %9352 = vmatpush2.bf16.msra.mxu0 %v11046_v54  ;;  %v11109_v54 = vld [vmem:[%s15464_s3 + $0x208] ss:$16 sps:$4 sm:$0xff]  }
 0x4ca   :  { %9403 = vmatprep.subr.bf16.mxu0 %v11054_v23  ;;  %v11120_v23 = vld [vmem:[%s15464_s3 + $0x58c] ss:$16 sps:$4 sm:$0xff]  }
 0x4cc   :  { %v7519_v62 = vpop.f32.mrf.mxu0  ;;  %9354 = vmatmul.mubr.bf16.vlgmr.msra.gmra.mxu0 %v14822_v61 }
 0x4cd   :  { %v7520_v37 = vadd.f32 %v7519_v62, %v15048_v2  ;;  %9404 = vmatpush1.bf16.msra.mxu0 %v11052_v28  ;;  %9435 = vmatprep.mubr.bf16.mxu0 %v14833_v19  ;;  %v11064_v19 = vld [vmem:[%s15464_s3 + $0x4a8] ss:$16 sps:$4 sm:$0xff]   ;;  %v11126_v62 = vld [vmem:[%s15464_s3 + $0x56c] ss:$16 sps:$4 sm:$0xff]  }
 0x4ce   :  { %v7560_v40 = vpop.f32.mrf.mxu1  ;;  %v7521_v43 = vpop.f32.mrf.mxu0  ;;  %9405 = vmatprep.subr.bf16.mxu0 %v11060_v3  ;;  %v11118_v28 = vld [vmem:[%s15464_s3 + $0x588] ss:$16 sps:$4 sm:$0xff]  }
 0x4cf   :  { %v7561_v57 = vadd.f32 %v7560_v40, %v7520_v37  ;;  %v7522_v61 = vadd.f32 %v7521_v43, %v7481_v56  ;;  %v11115_v3 = vld [vmem:[%s15464_s3 + $0x3e8] ss:$16 sps:$4 sm:$0xff]   ;;  %v11123_v56 = vld [vmem:[%s15464_s3 + $0x3cc] ss:$16 sps:$4 sm:$0xff]  }
 0x4d0   :  { %v7562_v35 = vpop.f32.mrf.mxu1  ;;  %v7523_v48 = vpop.f32.mrf.mxu0  ;;  %v11124_v37 = vld [vmem:[%s15464_s3 + $0x568] ss:$16 sps:$4 sm:$0xff]   ;;  %v11129_v43 = vld [vmem:[%s15464_s3 + $0x3ac] ss:$16 sps:$4 sm:$0xff]  }
 0x4d1   :  { %vm7573_vm6 = vcmp.ge.f32.partialorder %v7561_v57, 0.0  ;;  %v7581_v20 = vmul.f32 0.2, %v7561_v57  ;;  %v7563_v39 = vadd.f32 %v7562_v35, %v7522_v61  ;;  %9406 = vmatpush1.bf16.msra.mxu0 %v11058_v33  ;;  %v11121_v40 = vld [vmem:[%s15464_s3 + $0x3c8] ss:$16 sps:$4 sm:$0xff]  }
 0x4d2   :  { %v7564_v12 = vpop.f32.mrf.mxu1  ;;  %v7524_v58 = vpop.f32.mrf.mxu0  ;;  %9407 = vmatprep.subr.bf16.mxu0 %v11066_v14  ;;  %v11132_v33 = vld [vmem:[%s15464_s3 + $0x54c] ss:$16 sps:$4 sm:$0xff]   ;;  %v11130_v14 = vld [vmem:[%s15464_s3 + $0x548] ss:$16 sps:$4 sm:$0xff]  }
 0x4d3   :  { %vm7574_vm7 = vcmp.ge.f32.partialorder %v7563_v39, 0.0  ;;  %v7582_v59 = vmul.f32 0.2, %v7563_v39  ;;  %v7589_v2 = vsel %vm7573_vm6, %v7561_v57, %v7581_v20  ;;  %v11127_v57 = vld [vmem:[%s15464_s3 + $0x3a8] ss:$16 sps:$4 sm:$0xff]  }
 0x4d4   :  { %v7565_v41 = vpop.f32.mrf.mxu1  ;;  %v15168_v63 = vpack.c.bf16 %v7589_v2, %v7589_v2  ;;  %v11138_v61 = vld [vmem:[%s15464_s3 + $0x52c] ss:$16 sps:$4 sm:$0xff]   ;;  %v11136_v48 = vld [vmem:[%s15464_s3 + $0x528] ss:$16 sps:$4 sm:$0xff]  }
 0x4d5   :  { %9408 = vmatpush1.bf16.msra.mxu0 %v11064_v19  ;;  %v7590_v51 = vsel %vm7574_vm7, %v7563_v39, %v7582_v59  ;;  %v11135_v35 = vld [vmem:[%s15464_s3 + $0x38c] ss:$16 sps:$4 sm:$0xff]   ;;  %v11133_v20 = vld [vmem:[%s15464_s3 + $0x388] ss:$16 sps:$4 sm:$0xff]  }
 0x4d6   :  { %v15163_v6 = vpack.c.bf16 %v7590_v51, %v7590_v51  ;;  %9409 = vmatprep.subr.bf16.mxu0 %v11072_v1  ;;  %v11144_v39 = vld [vmem:[%s15464_s3 + $0x50c] ss:$16 sps:$4 sm:$0xff]   ;;  %v11142_v19 = vld [vmem:[%s15464_s3 + $0x508] ss:$16 sps:$4 sm:$0xff]   ;;  %v15320_v1 = vld [vmem:[%s15465_s4] sm:$0xf] }
 0x4d7   :  { %v11141_v12 = vld [vmem:[%s15464_s3 + $0x36c] ss:$16 sps:$4 sm:$0xff]   ;;  %v11139_v58 = vld [vmem:[%s15464_s3 + $0x368] ss:$16 sps:$4 sm:$0xff]   ;;  %v7860_v41 = vrot.slane %v15320_v1, %v1097_v52  ;;  %v7864_v51 = vrot.slane %v15320_v1, %v1101_v60 }
 0x4d8   :  { %9312 = vmatprep.mubr.bf16.mxu1 %v15163_v6  ;;  %v11147_v59 = vld [vmem:[%s15464_s3 + $0x34c] ss:$16 sps:$4 sm:$0xff]   ;;  %v11145_v2 = vld [vmem:[%s15464_s3 + $0x348] ss:$16 sps:$4 sm:$0xff]  }
 0x4d9   :  { %9313 = vmatmul.mubr.bf16.vlgmr.msra.gmra.mxu1 %v15168_v63  ;;  %9410 = vmatpush1.bf16.msra.mxu0 %v11070_v29  ;;  %v11150_v29 = vld [vmem:[%s15464_s3 + $0x32c] ss:$16 sps:$4 sm:$0xff]  }
 0x4da   :  { %9363 = vmatpush1.bf16.msra.mxu1 %v11067_v50  ;;  %9394 = vmatprep.mubr.bf16.mxu1 %v14622_v15  ;;  %v11079_v15 = vld [vmem:[%s15464_s3 + $0x2a8] ss:$16 sps:$4 sm:$0xff]   ;;  %v11153_v60 = vld [vmem:[%s15464_s3 + $0x30c] ss:$16 sps:$4 sm:$0xff]  }
 0x4db   :  { %9364 = vmatprep.subr.bf16.mxu1 %v11075_v9  ;;  %9411 = vmatprep.subr.bf16.mxu0 %v11078_v10 }
 0x4dd   :  { %9412 = vmatpush1.bf16.msra.mxu0 %v11076_v30  ;;  %v11148_v30 = vld [vmem:[%s15464_s3 + $0x328] ss:$16 sps:$4 sm:$0xff]  }
 0x4de   :  { %9365 = vmatpush1.bf16.msra.mxu1 %v11073_v0  ;;  %9413 = vmatprep.subr.bf16.mxu0 %v11084_v38 }
 0x4df   :  { %9366 = vmatprep.subr.bf16.mxu1 %v11081_v11 }
 0x4e1   :  { %9414 = vmatpush1.bf16.msra.mxu0 %v11082_v13 }
 0x4e2   :  { %9367 = vmatpush1.bf16.msra.mxu1 %v11079_v15  ;;  %9415 = vmatprep.subr.bf16.mxu0 %v11090_v21 }
 0x4e3   :  { %9368 = vmatprep.subr.bf16.mxu1 %v11087_v4  ;;  %v11151_v4 = vld [vmem:[%s15464_s3 + $0x308] ss:$16 sps:$4 sm:$0xff]  }
 0x4e5   :  { %9416 = vmatpush1.bf16.msra.mxu0 %v11088_v16 }
 0x4e6   :  { %9369 = vmatpush1.bf16.msra.mxu1 %v11085_v18  ;;  %9417 = vmatprep.subr.bf16.mxu0 %v11096_v46  ;;  %v11156_v18 = vld [vmem:[%s15464_s3 + $0x6ec] ss:$16 sps:$4 sm:$0xff]   ;;  %v11154_v46 = vld [vmem:[%s15464_s3 + $0x6e8] ss:$16 sps:$4 sm:$0xff]  }
 0x4e7   :  { %9370 = vmatprep.subr.bf16.mxu1 %v11093_v25  ;;  %v11159_v25 = vld [vmem:[%s15464_s3 + $0x6cc] ss:$16 sps:$4 sm:$0xff]  }
 0x4e9   :  { %9418 = vmatpush1.bf16.msra.mxu0 %v11094_v17  ;;  %v11157_v17 = vld [vmem:[%s15464_s3 + $0x6c8] ss:$16 sps:$4 sm:$0xff]  }
 0x4ea   :  { %9371 = vmatpush1.bf16.msra.mxu1 %v11091_v22  ;;  %9419 = vmatprep.subr.bf16.mxu0 %v11102_v8  ;;  %v11162_v22 = vld [vmem:[%s15464_s3 + $0x6ac] ss:$16 sps:$4 sm:$0xff]   ;;  %v11160_v8 = vld [vmem:[%s15464_s3 + $0x6a8] ss:$16 sps:$4 sm:$0xff]  }
 0x4eb   :  { %9372 = vmatprep.subr.bf16.mxu1 %v11099_v32  ;;  %v11168_v32 = vld [vmem:[%s15464_s3 + $0x66c] ss:$16 sps:$4 sm:$0xff]  }
 0x4ed   :  { %9420 = vmatpush2.bf16.msra.mxu0 %v11100_v24  ;;  %v11166_v24 = vld [vmem:[%s15464_s3 + $0x668] ss:$16 sps:$4 sm:$0xff]  }
 0x4ee   :  { %9373 = vmatpush1.bf16.msra.mxu1 %v11097_v31  ;;  %9421 = vmatprep.subr.bf16.mxu0 %v11108_v26  ;;  %v11171_v31 = vld [vmem:[%s15464_s3 + $0x64c] ss:$16 sps:$4 sm:$0xff]   ;;  %v11169_v26 = vld [vmem:[%s15464_s3 + $0x648] ss:$16 sps:$4 sm:$0xff]  }
 0x4ef   :  { %9374 = vmatprep.subr.bf16.mxu1 %v11105_v53  ;;  %v11174_v53 = vld [vmem:[%s15464_s3 + $0x62c] ss:$16 sps:$4 sm:$0xff]  }
 0x4f1   :  { %9422 = vmatpush2.bf16.msra.mxu0 %v11106_v34  ;;  %v11172_v34 = vld [vmem:[%s15464_s3 + $0x628] ss:$16 sps:$4 sm:$0xff]  }
 0x4f2   :  { %9375 = vmatpush1.bf16.msra.mxu1 %v11103_v44  ;;  %9423 = vmatprep.subr.bf16.mxu0 %v11114_v47  ;;  %v11177_v44 = vld [vmem:[%s15464_s3 + $0x60c] ss:$16 sps:$4 sm:$0xff]   ;;  %v11175_v47 = vld [vmem:[%s15464_s3 + $0x608] ss:$16 sps:$4 sm:$0xff]  }
 0x4f3   :  { %9376 = vmatprep.subr.bf16.mxu1 %v11111_v7  ;;  %v11180_v7 = vld [vmem:[%s15464_s3 + $0x7ec] ss:$16 sps:$4 sm:$0xff]  }
 0x4f5   :  { %9424 = vmatpush2.bf16.msra.mxu0 %v11112_v27  ;;  %v11178_v27 = vld [vmem:[%s15464_s3 + $0x7e8] ss:$16 sps:$4 sm:$0xff]  }
 0x4f6   :  { %9377 = vmatpush1.bf16.msra.mxu1 %v11109_v54  ;;  %9425 = vmatprep.subr.bf16.mxu0 %v11120_v23  ;;  %v11183_v54 = vld [vmem:[%s15464_s3 + $0x7cc] ss:$16 sps:$4 sm:$0xff]   ;;  %v11181_v23 = vld [vmem:[%s15464_s3 + $0x7c8] ss:$16 sps:$4 sm:$0xff]  }
 0x4f7   :  { %9378 = vmatprep.subr.bf16.mxu1 %v11117_v36  ;;  %v11186_v36 = vld [vmem:[%s15464_s3 + $0x7ac] ss:$16 sps:$4 sm:$0xff]  }
 0x4f9   :  { %9426 = vmatpush2.bf16.msra.mxu0 %v11118_v28  ;;  %v11184_v28 = vld [vmem:[%s15464_s3 + $0x7a8] ss:$16 sps:$4 sm:$0xff]  }
 0x4fa   :  { %9379 = vmatpush2.bf16.msra.mxu1 %v11115_v3  ;;  %9427 = vmatprep.subr.bf16.mxu0 %v11126_v62  ;;  %v11189_v3 = vld [vmem:[%s15464_s3 + $0x78c] ss:$16 sps:$4 sm:$0xff]   ;;  %v11187_v62 = vld [vmem:[%s15464_s3 + $0x788] ss:$16 sps:$4 sm:$0xff]  }
 0x4fb   :  { %9380 = vmatprep.subr.bf16.mxu1 %v11123_v56  ;;  %v11192_v56 = vld [vmem:[%s15464_s3 + $0x76c] ss:$16 sps:$4 sm:$0xff]  }
 0x4fd   :  { %9428 = vmatpush2.bf16.msra.mxu0 %v11124_v37  ;;  %v11190_v37 = vld [vmem:[%s15464_s3 + $0x768] ss:$16 sps:$4 sm:$0xff]  }
 0x4fe   :  { %9381 = vmatpush2.bf16.msra.mxu1 %v11121_v40  ;;  %9429 = vmatprep.subr.bf16.mxu0 %v11132_v33  ;;  %v11195_v40 = vld [vmem:[%s15464_s3 + $0x74c] ss:$16 sps:$4 sm:$0xff]   ;;  %v11193_v33 = vld [vmem:[%s15464_s3 + $0x748] ss:$16 sps:$4 sm:$0xff]  }
 0x4ff   :  { %9382 = vmatprep.subr.bf16.mxu1 %v11129_v43  ;;  %v11198_v43 = vld [vmem:[%s15464_s3 + $0x72c] ss:$16 sps:$4 sm:$0xff]  }
 0x501   :  { %9430 = vmatpush2.bf16.msra.mxu0 %v11130_v14 }
 0x502   :  { %9383 = vmatpush2.bf16.msra.mxu1 %v11127_v57  ;;  %9431 = vmatprep.subr.bf16.mxu0 %v11138_v61 }
 0x503   :  { %9384 = vmatprep.subr.bf16.mxu1 %v11135_v35  ;;  %v11196_v35 = vld [vmem:[%s15464_s3 + $0x728] ss:$16 sps:$4 sm:$0xff]  }
 0x505   :  { %9432 = vmatpush2.bf16.msra.mxu0 %v11136_v48 }
 0x506   :  { %9385 = vmatpush2.bf16.msra.mxu1 %v11133_v20  ;;  %9433 = vmatprep.subr.bf16.mxu0 %v11144_v39  ;;  %v11201_v20 = vld [vmem:[%s15464_s3 + $0x70c] ss:$16 sps:$4 sm:$0xff]  }
 0x507   :  { %9386 = vmatprep.subr.bf16.mxu1 %v11141_v12 }
 0x509   :  { %9434 = vmatpush2.bf16.msra.mxu0 %v11142_v19  ;;  %v11199_v19 = vld [vmem:[%s15464_s3 + $0x708] ss:$16 sps:$4 sm:$0xff]  }
 0x50a   :  { %9387 = vmatpush2.bf16.msra.mxu1 %v11139_v58 }
 0x50b   :  { %9388 = vmatprep.subr.bf16.mxu1 %v11147_v59 }
 0x50c   :  { %v9191_v50 = vpop.f32.mrf.mxu0  ;;  %9436 = vmatmul.mubr.bf16.vlgmr.msra.gmra.mxu0 %v15032_v5 }
 0x50d   :  { %v9192_v9 = vadd.f32 %v9191_v50, %v7860_v41 }
 0x50e   :  { %v9232_v10 = vpop.f32.mrf.mxu1  ;;  %9389 = vmatpush2.bf16.msra.mxu1 %v11145_v2  ;;  %v9193_v52 = vpop.f32.mrf.mxu0 }
 0x50f   :  { %v15341_v0 = vadd.f32 %v9232_v10, %v9192_v9  ;;  %v9194_v38 = vadd.f32 %v9193_v52, %v7864_v51  ;;  %9390 = vmatprep.subr.bf16.mxu1 %v11150_v29 }
 0x510   :  { %v9234_v11 = vpop.f32.mrf.mxu1  ;;  %v9195_v13 = vpop.f32.mrf.mxu0 }
 0x511   :  { %v15346_v15 = vadd.f32 %v9234_v11, %v9194_v38 }
 0x512   :  { %v9236_v5 = vpop.f32.mrf.mxu1  ;;  %9391 = vmatpush2.bf16.msra.mxu1 %v11148_v30  ;;  %v9196_v21 = vpop.f32.mrf.mxu0 }
 0x513   :  { %9392 = vmatprep.subr.bf16.mxu1 %v11153_v60  ;;  %v7868_v60 = vrot.slane %v15320_v1, %v1105_v49 }
 0x514   :  { %v9237_v16 = vpop.f32.mrf.mxu1 }
 0x516   :  { %9393 = vmatpush2.bf16.msra.mxu1 %v11151_v4 }
 0x517   :  { %9444 = vmatprep.subr.bf16.mxu1 %v11156_v18 }
 0x519   :  { %9395 = vmatmul.mubr.bf16.vlgmr.msra.gmra.mxu1 %v14827_v45  ;;  %v11165_v45 = vld [vmem:[%s15464_s3 + $0x68c] ss:$16 sps:$4 sm:$0xff]  }
 0x51a   :  { %9445 = vmatpush1.bf16.msra.mxu1 %v11154_v46  ;;  %9476 = vmatprep.mubr.bf16.mxu1 %v15163_v6  ;;  %v11163_v6 = vld [vmem:[%s15464_s3 + $0x688] ss:$16 sps:$4 sm:$0xff]   ;;  %s11229_s3 = smov [#allocation2]  }
 0x51b   :  { %9446 = vmatprep.subr.bf16.mxu1 %v11159_v25  ;;  %s9521_s0 = sshll.u32 %s11229_s3, 4  ;;  %s9522_s0 = int_to_ptr.vmem [resolvable:$true] %s9521_s0 }
 0x51c   :  { %s11207_s7 = scalar_lea.vmem %s9522_s0, 256  ;;  %p11212_p1 = scmp.lt.s32.totalorder %s9522_s0, %s9522_s0 }
 0x51d   :  { %p11208_p0 = scmp.ne.s32.totalorder %s9522_s0, %s11207_s7  ;;  %p11213_p2 = scmp.lt.s32.totalorder %s11207_s7, %s11207_s7 }
 0x51e   :  { %9447 = vmatpush1.bf16.msra.mxu1 %v11157_v17 }
 0x51f   :  { %9448 = vmatprep.subr.bf16.mxu1 %v11162_v22  ;;  %p11214_p3 = por %p11213_p2, %p11212_p1 }
 0x521   :  { %p11215_p4 = pnand %p11214_p3, %p11208_p0 }
 0x522   :  { %9449 = vmatpush1.bf16.msra.mxu1 %v11160_v8 }
 0x523   :  { %9450 = vmatprep.subr.bf16.mxu1 %v11165_v45 }
 0x526   :  { %9451 = vmatpush1.bf16.msra.mxu1 %v11163_v6 }
 0x527   :  { %9452 = vmatprep.subr.bf16.mxu1 %v11168_v32 }
 0x52a   :  { %9453 = vmatpush1.bf16.msra.mxu1 %v11166_v24 }
 0x52b   :  { %9454 = vmatprep.subr.bf16.mxu1 %v11171_v31 }
 0x52e   :  { %9455 = vmatpush1.bf16.msra.mxu1 %v11169_v26 }
 0x52f   :  { %9456 = vmatprep.subr.bf16.mxu1 %v11174_v53 }
 0x532   :  { %9457 = vmatpush1.bf16.msra.mxu1 %v11172_v34 }
 0x533   :  { %9458 = vmatprep.subr.bf16.mxu1 %v11177_v44 }
 0x536   :  { %9459 = vmatpush1.bf16.msra.mxu1 %v11175_v47 }
 0x537   :  { %9460 = vmatprep.subr.bf16.mxu1 %v11180_v7 }
 0x53a   :  { %9461 = vmatpush2.bf16.msra.mxu1 %v11178_v27 }
 0x53b   :  { %9462 = vmatprep.subr.bf16.mxu1 %v11183_v54 }
 0x53e   :  { %9463 = vmatpush2.bf16.msra.mxu1 %v11181_v23 }
 0x53f   :  { %9464 = vmatprep.subr.bf16.mxu1 %v11186_v36 }
 0x542   :  { %9465 = vmatpush2.bf16.msra.mxu1 %v11184_v28 }
 0x543   :  { %9466 = vmatprep.subr.bf16.mxu1 %v11189_v3 }
 0x546   :  { %9467 = vmatpush2.bf16.msra.mxu1 %v11187_v62 }
 0x547   :  { %9468 = vmatprep.subr.bf16.mxu1 %v11192_v56 }
 0x54a   :  { %9469 = vmatpush2.bf16.msra.mxu1 %v11190_v37 }
 0x54b   :  { %9470 = vmatprep.subr.bf16.mxu1 %v11195_v40 }
 0x54c   :  { %v9273_v14 = vpop.f32.mrf.mxu0 }
 0x54d   :  { %v9274_v57 = vadd.f32 %v9273_v14, %v15341_v0 }
 0x54e   :  { %9471 = vmatpush2.bf16.msra.mxu1 %v11193_v33  ;;  %v9275_v61 = vpop.f32.mrf.mxu0 }
 0x54f   :  { %v9276_v48 = vadd.f32 %v9275_v61, %v15346_v15  ;;  %9472 = vmatprep.subr.bf16.mxu1 %v11198_v43 }
 0x550   :  { %v9277_v39 = vpop.f32.mrf.mxu0 }
 0x552   :  { %9473 = vmatpush2.bf16.msra.mxu1 %v11196_v35  ;;  %v9278_v12 = vpop.f32.mrf.mxu0 }
 0x553   :  { %9474 = vmatprep.subr.bf16.mxu1 %v11201_v20 }
 0x556   :  { %9475 = vmatpush2.bf16.msra.mxu1 %v11199_v19 }
 0x559   :  { %9477 = vmatmul.mubr.bf16.vlgmr.msra.gmra.mxu1 %v15168_v63  ;;  %v7872_v63 = vrot.slane %v15320_v1, %v1109_v55 }
 0x58c   :  { %v9355_v58 = vpop.f32.mrf.mxu0 }
 0x58d   :  { %v9356_v13 = vadd.f32 %v9355_v58, %v7868_v60 }
 0x58e   :  { %v9357_v59 = vpop.f32.mrf.mxu0 }
 0x58f   :  { %v9358_v5 = vadd.f32 %v9357_v59, %v7872_v63 }
 0x590   :  { %v9359_v41 = vpop.f32.mrf.mxu0 }
 0x592   :  { %v9360_v2 = vpop.f32.mrf.mxu0 }
 0x599   :  { %v9314_v51 = vpop.f32.mrf.mxu1 }
 0x59a   :  { %v9315_v29 = vadd.f32 %v9314_v51, %v9274_v57 }
 0x59b   :  { %v9316_v50 = vpop.f32.mrf.mxu1 }
 0x59c   :  { %v9317_v9 = vadd.f32 %v9316_v50, %v9276_v48  ;;  %v9485_v8 = vmul.f32 %v9315_v29, %v9315_v29 }
 0x59d   :  { %v9318_v10 = vpop.f32.mrf.mxu1 }
 0x59e   :  { %v9486_v22 = vmul.f32 %v9317_v9, %v9317_v9  ;;  %v9490_v42 = vsel %vm9489_vm8, %v9485_v8, 0.0 }
 0x59f   :  { %v9319_v52 = vpop.f32.mrf.mxu1 }
 0x5a0   :  { %v9491_v6 = vsel %vm9489_vm8, %v9486_v22, 0.0 }
 0x5a1   :  { %v9492_v31 = vadd.f32 %v9491_v6, %v9490_v42 }
 0x5cc   :  { %v9437_v30 = vpop.f32.mrf.mxu0 }
 0x5ce   :  { %v9439_v0 = vpop.f32.mrf.mxu0 }
 0x5d0   :  { %v9441_v38 = vpop.f32.mrf.mxu0 }
 0x5d2   :  { %v9442_v11 = vpop.f32.mrf.mxu0 }
 0x5d9   :  { %v9396_v15 = vpop.f32.mrf.mxu1 }
 0x5da   :  { %v9397_v21 = vadd.f32 %v9396_v15, %v9356_v13 }
 0x5db   :  { %v9398_v4 = vpop.f32.mrf.mxu1 }
 0x5dc   :  { %v9399_v16 = vadd.f32 %v9398_v4, %v9358_v5  ;;  %v9438_v18 = vadd.f32 %v9437_v30, %v9397_v21 }
 0x5dd   :  { %v9400_v46 = vpop.f32.mrf.mxu1 }
 0x5de   :  { %v9440_v25 = vadd.f32 %v9439_v0, %v9399_v16 }
 0x5df   :  { %v9401_v17 = vpop.f32.mrf.mxu1 }
 0x619   :  { %v9478_v45 = vpop.f32.mrf.mxu1 }
 0x61a   :  { %v9479_v49 = vadd.f32 %v9478_v45, %v9438_v18 }
 0x61b   :  { %v9480_v32 = vpop.f32.mrf.mxu1 }
 0x61c   :  { %v9487_v24 = vmul.f32 %v9479_v49, %v9479_v49  ;;  %v9481_v55 = vadd.f32 %v9480_v32, %v9440_v25 }
 0x61d   :  { %v9482_v1 = vpop.f32.mrf.mxu1 }
 0x61e   :  { %v9488_v26 = vmul.f32 %v9481_v55, %v9481_v55  ;;  %v9493_v53 = vsel %vm9489_vm8, %v9487_v24, 0.0 }
 0x61f   :  { %v9483_v34 = vpop.f32.mrf.mxu1  ;;  %v9494_v44 = vadd.f32 %v9493_v53, %v9492_v31 }
 0x620   :  { %v9495_v47 = vsel %vm9489_vm8, %v9488_v26, 0.0 }
 0x621   :  { %v9496_v7 = vadd.f32 %v9495_v47, %v9494_v44 }
 0x623   :  { %9497 = vadd.xlane.f32.xlu0 %v9496_v7 }
 0x6ac   :  { %v9498_v27 = vpop.xlane.xlu0 %9497 }
 0x6ad   :  { %v9499_v54 = vmax.f32 %v9498_v27, 1e-24 }
 0x6af   :  { %11202 = vrsqrt.f32 %v9499_v54 }
 0x6bc   :  { %v11203_v23 = vpop.eup %11202 }
 0x6bd   :  { %v9501_v36 = vmul.f32 %v11203_v23, %v9315_v29  ;;  %v9502_v28 = vmul.f32 %v11203_v23, %v9317_v9  ;;  %v9503_v3 = vmul.f32 %v11203_v23, %v9479_v49  ;;  %v9504_v62 = vmul.f32 %v11203_v23, %v9481_v55 }
 0x6bf   :  { %v9509_v56 = vcombine.low %v9501_v36, %v9502_v28  ;;  %v9510_v37 = vcombine.low %v9503_v3, %v9504_v62 }
 0x6c1   :  { %9513 = vst [vmem:[#allocation2] sm:$0xff] %v9509_v56  ;;  %9514 = vst [vmem:[#allocation2 + $0x8] sm:$0xff] %v9510_v37 }
 0x6c2   :  { %11218 = shalt.err (!%p11215_p4)
}
 0x6c3   :  { %9524 = dma.vmem_to_hbm [thread:$0]  %s9522_s0, 256, %s15466_s5, [#allocation3]  }
 0x6c4   :  { %11227 = dma.done.wait [#allocation3], 256  }
 0x6c5   :  { %11228 = vsyncadd [#allocation3], 4294967040 }
 0x6c6   :  { %9528 = vsyncpa [#allocation3], 1 }

</bundles_post_ra>
